<compile_context>
chip_gen: v7x
topology: tpu7x:2x2x1
jax: 0.10.0
libtpu: 0.0.40
codegen_flags: <defaults>
</compile_context>

<pallas_src>
import jax
import jax.numpy as jnp
from jax import lax
from jax.experimental import pallas as pl
from jax.experimental.pallas import tpu as pltpu

# Geometry (the module requires 3x32x32 inputs because of the 16*5*5 flatten).
H = W = 32
K = 5
C1_IN, C1_OUT = 3, 6
C2_IN, C2_OUT = 6, 16
FC1_IN, FC1_OUT = 16 * 5 * 5, 120
FC2_OUT, FC3_OUT = 84, 10
LANES = 128

CONV1_ROWS = 28 * 28          # 784, conv1 output frame (row = 28*i + j)
P1_ROWS = 232                 # pool1 frame: 16-row groups per i2 (14 groups) + zero tail
A2_ROWS = 160                 # conv2 output frame: 16-row groups per i2 (10 groups)


# ----------------------------------------------------------------------------
# Fused kernel: one sample per grid step.
# ----------------------------------------------------------------------------
def _lenet_kernel(x_ref, w1_ref, b1_ref, w2_ref, b2_ref,
                  wfc1_ref, bfc1_ref, wfc2_ref, bfc2_ref, wfc3_ref, bfc3_ref,
                  out_ref, a1_ref, p1c_ref, y_ref, a2c_ref):
    f32 = jnp.float32
    bf16 = jnp.bfloat16

    # Zero the scratch buffers that are only partially written (keeps every row the
    # convolution windows can touch finite / exact zero).
    p1c_ref[...] = jnp.zeros_like(p1c_ref)
    a2c_ref[...] = jnp.zeros_like(a2c_ref)

    # ---- conv1 + bias + relu: one packed-contraction matmul (75 useful lanes) ----
    a1 = jnp.dot(x_ref[...], w1_ref[...], preferred_element_type=f32)
    a1_ref[...] = jnp.maximum(a1 + b1_ref[...], 0.0)

    # ---- maxpool 2x2/2: 28x28 -> 14x14, stored in 16-row groups (row=16*i2+j2) ----
    for i2 in range(14):
        base = 56 * i2
        v00 = a1_ref[pl.ds(base, 14, stride=2), :]
        v01 = a1_ref[pl.ds(base + 1, 14, stride=2), :]
        v10 = a1_ref[pl.ds(base + 28, 14, stride=2), :]
        v11 = a1_ref[pl.ds(base + 29, 14, stride=2), :]
        m = jnp.maximum(jnp.maximum(v00, v01), jnp.maximum(v10, v11))
        p1c_ref[16 * i2:16 * i2 + 14, :] = m.astype(bf16)

    # ---- conv2: one K=128 matmul with the 25 taps packed along the output axis ----
    y_ref[...] = jnp.dot(p1c_ref[...], w2_ref[...], preferred_element_type=f32)
    acc = y_ref[0:A2_ROWS, 0:16]                          # tap (ki=0, kj=0)
    for t in range(1, 25):
        ki, kj = t // 5, t % 5
        off = 16 * ki + kj
        acc = acc + y_ref[off:off + A2_ROWS, 16 * t:16 * t + 16]
    a2c_ref[:, 0:16] = jnp.maximum(acc + b2_ref[:, 0:16], 0.0)

    # ---- maxpool 2x2/2: 10x10 -> 5x5 (kept as small in-register values) ----------
    p2_rows = []
    for i3 in range(5):
        base = 32 * i3
        v00 = a2c_ref[pl.ds(base, 5, stride=2), :]
        v01 = a2c_ref[pl.ds(base + 1, 5, stride=2), :]
        v10 = a2c_ref[pl.ds(base + 16, 5, stride=2), :]
        v11 = a2c_ref[pl.ds(base + 17, 5, stride=2), :]
        p2_rows.append(jnp.maximum(jnp.maximum(v00, v01), jnp.maximum(v10, v11)))

    # ---- fc1(+relu): 25 position taps against 128-row windows of the weight stack.
    # Exact because LHS lanes >= 16 are exactly zero (a2c pre-zeroed).
    acc1 = jnp.zeros((1, LANES), f32)
    for p in range(25):
        i3, j3 = p // 5, p % 5
        lhs = p2_rows[i3][j3:j3 + 1, :].astype(bf16)
        acc1 = acc1 + jnp.dot(lhs, wfc1_ref[16 * p:16 * p + 128, :],
                              preferred_element_type=f32)
    h1 = jnp.maximum(acc1 + bfc1_ref[...], 0.0)

    # ---- fc2(+relu) + fc3 ---------------------------------------------------------
    h2 = jnp.maximum(
        jnp.dot(h1.astype(bf16), wfc2_ref[...], preferred_element_type=f32)
        + bfc2_ref[...], 0.0)
    o = (jnp.dot(h2.astype(bf16), wfc3_ref[...], preferred_element_type=f32)
         + bfc3_ref[...])
    out_ref[0] = jnp.broadcast_to(o, (8, LANES))


def _build_forward(n_batch):
    wspec2 = lambda shape: pl.BlockSpec(shape, lambda n: (0, 0))
    return pl.pallas_call(
        _lenet_kernel,
        out_shape=jax.ShapeDtypeStruct((n_batch, 8, LANES), jnp.float32),
        grid=(n_batch,),
        in_specs=[
            pl.BlockSpec((CONV1_ROWS, LANES), lambda n: (n, 0)),  # im2col'd input
            wspec2((128, 128)), wspec2((1, 128)),                 # conv1 w / b
            wspec2((128, 512)), wspec2((1, 128)),                 # conv2 w / b
            wspec2((512, 128)), wspec2((1, 128)),                 # fc1 w / b
            wspec2((128, 128)), wspec2((1, 128)),                 # fc2 w / b
            wspec2((128, 128)), wspec2((1, 128)),                 # fc3 w / b
        ],
        out_specs=pl.BlockSpec((1, 8, LANES), lambda n: (n, 0, 0)),
        scratch_shapes=[
            pltpu.VMEM((CONV1_ROWS, LANES), jnp.float32),   # conv1 activations (28x28)
            pltpu.VMEM((P1_ROWS, LANES), jnp.bfloat16),     # pool1, 16-row groups
            pltpu.VMEM((P1_ROWS, 512), jnp.float32),        # conv2 tap-packed products
            pltpu.VMEM((A2_ROWS, LANES), jnp.float32),      # conv2 activations
        ],
        compiler_params=pltpu.CompilerParams(
            dimension_semantics=("parallel",),
        ),
    )


# ----------------------------------------------------------------------------
# Parameters (deterministic, PyTorch-default-style uniform init)
# ----------------------------------------------------------------------------
def init_params(key):
    def uni(k, shape, fan_in):
        bound = 1.0 / (fan_in ** 0.5)
        return jax.random.uniform(k, shape, jnp.float32, -bound, bound)

    ks = jax.random.split(key, 10)
    return {
        "conv1_w": uni(ks[0], (C1_OUT, C1_IN, K, K), C1_IN * K * K),
        "conv1_b": uni(ks[1], (C1_OUT,), C1_IN * K * K),
        "conv2_w": uni(ks[2], (C2_OUT, C2_IN, K, K), C2_IN * K * K),
        "conv2_b": uni(ks[3], (C2_OUT,), C2_IN * K * K),
        "fc1_w": uni(ks[4], (FC1_OUT, FC1_IN), FC1_IN),
        "fc1_b": uni(ks[5], (FC1_OUT,), FC1_IN),
        "fc2_w": uni(ks[6], (FC2_OUT, FC1_OUT), FC1_OUT),
        "fc2_b": uni(ks[7], (FC2_OUT,), FC1_OUT),
        "fc3_w": uni(ks[8], (FC3_OUT, FC2_OUT), FC2_OUT),
        "fc3_b": uni(ks[9], (FC3_OUT,), FC2_OUT),
    }


def prepare_params(p):
    """One-time weight preprocessing: pack/transpose, pad to MXU tiles, cast to bf16."""
    def pad2(m, rows=128, cols=128):
        out = jnp.zeros((rows, cols), jnp.float32)
        return out.at[:m.shape[0], :m.shape[1]].set(m)

    def pad_row(v):
        return jnp.zeros((1, LANES), jnp.float32).at[0, :v.shape[0]].set(v)

    bf = jnp.bfloat16
    # conv1: row index = 3*tap + cin  (tap = 5*ki + kj), col = cout
    w1 = p["conv1_w"].transpose(2, 3, 1, 0).reshape(25 * C1_IN, C1_OUT)
    # conv2 packed along outputs: row = cin, col = 16*tap + cout
    w2 = p["conv2_w"].transpose(1, 2, 3, 0).reshape(C2_IN, 25 * C2_OUT)
    # fc1 stacked windows: row = 16*pos + cin, col = out  (PyTorch flatten idx = 25*c + pos)
    wf1 = p["fc1_w"].reshape(FC1_OUT, C2_OUT, 25).transpose(2, 1, 0).reshape(400, FC1_OUT)
    return {
        "w1": pad2(w1).astype(bf), "b1": pad_row(p["conv1_b"]),
        "w2": pad2(w2, 128, 512).astype(bf), "b2": pad_row(p["conv2_b"]),
        "wfc1": pad2(wf1, 512, 128).astype(bf), "bfc1": pad_row(p["fc1_b"]),
        "wfc2": pad2(p["fc2_w"].T).astype(bf), "bfc2": pad_row(p["fc2_b"]),
        "wfc3": pad2(p["fc3_w"].T).astype(bf), "bfc3": pad_row(p["fc3_b"]),
    }


# ----------------------------------------------------------------------------
# Forward pass (mirrors Net.forward)
# ----------------------------------------------------------------------------
@jax.jit
def net_forward(prepped, x):
    n, c, h, w = x.shape
    assert (c, h, w) == (C1_IN, H, W), x.shape
    # Wrapper-side im2col (packed conv1 contraction): (N, 784, 75) -> bf16 (N*784, 128).
    ps = jnp.stack([x[:, :, ki:ki + 28, kj:kj + 28]
                    for ki in range(5) for kj in range(5)], axis=1)   # (N,25,3,28,28)
    ps = ps.transpose(0, 3, 4, 1, 2).reshape(n, 784, 75)              # lane = 3*tap + c
    ps = jnp.pad(ps, ((0, 0), (0, 0), (0, LANES - 75))).astype(jnp.bfloat16)
    xf = ps.reshape(n * 784, LANES)
    out = _build_forward(n)(
        xf,
        prepped["w1"], prepped["b1"],
        prepped["w2"], prepped["b2"],
        prepped["wfc1"], prepped["bfc1"],
        prepped["wfc2"], prepped["bfc2"],
        prepped["wfc3"], prepped["bfc3"],
    )
    return out[:, 0, :FC3_OUT]


# Pure-JAX reference (f32, high precision) for a tolerance check.
def reference_forward(params, x):
    dn = ("NCHW", "OIHW", "NCHW")
    hi = lax.Precision.HIGHEST
    y = lax.conv_general_dilated(x, params["conv1_w"], (1, 1), "VALID",
                                 dimension_numbers=dn, precision=hi)
    y = jnp.maximum(y + params["conv1_b"][None, :, None, None], 0.0)
    y = lax.reduce_window(y, -jnp.inf, lax.max, (1, 1, 2, 2), (1, 1, 2, 2), "VALID")
    y = lax.conv_general_dilated(y, params["conv2_w"], (1, 1), "VALID",
                                 dimension_numbers=dn, precision=hi)
    y = jnp.maximum(y + params["conv2_b"][None, :, None, None], 0.0)
    y = lax.reduce_window(y, -jnp.inf, lax.max, (1, 1, 2, 2), (1, 1, 2, 2), "VALID")
    y = y.reshape(y.shape[0], -1)
    y = jnp.maximum(jnp.dot(y, params["fc1_w"].T, precision=hi) + params["fc1_b"], 0.0)
    y = jnp.maximum(jnp.dot(y, params["fc2_w"].T, precision=hi) + params["fc2_b"], 0.0)
    return jnp.dot(y, params["fc3_w"].T, precision=hi) + params["fc3_b"]


if __name__ == "__main__":
    key = jax.random.PRNGKey(0)
    pkey, xkey = jax.random.split(key)
    params = init_params(pkey)
    prepped = prepare_params(params)

    # NCHW input; 3x32x32 is required by the 16*5*5 flatten in the reference module.
    x = jax.random.normal(xkey, (2, C1_IN, H, W), dtype=jnp.float32)

    out = net_forward(prepped, x)
    out = jax.block_until_ready(out)
    assert out.shape == (2, FC3_OUT), out.shape
    assert bool(jnp.all(jnp.isfinite(out)))

    ref = reference_forward(params, x)
    max_err = float(jnp.max(jnp.abs(out - ref)))
    assert max_err < 2.5e-2, f"max_err={max_err}"
    print("KERNEL_OK")
</pallas_src>

<mosaic_0001>
module attributes {stable_mosaic.version = 11 : i64} {
  func.func @_lenet_kernel(%arg0: i32, %arg1: memref<784x128xbf16, #tpu.memory_space<vmem>>, %arg2: memref<128x128xbf16, #tpu.memory_space<vmem>>, %arg3: memref<1x128xf32, #tpu.memory_space<vmem>>, %arg4: memref<128x512xbf16, #tpu.memory_space<vmem>>, %arg5: memref<1x128xf32, #tpu.memory_space<vmem>>, %arg6: memref<512x128xbf16, #tpu.memory_space<vmem>>, %arg7: memref<1x128xf32, #tpu.memory_space<vmem>>, %arg8: memref<128x128xbf16, #tpu.memory_space<vmem>>, %arg9: memref<1x128xf32, #tpu.memory_space<vmem>>, %arg10: memref<128x128xbf16, #tpu.memory_space<vmem>>, %arg11: memref<1x128xf32, #tpu.memory_space<vmem>>, %arg12: memref<1x8x128xf32, #tpu.memory_space<vmem>>, %arg13: memref<784x128xf32, #tpu.memory_space<vmem>>, %arg14: memref<232x128xbf16, #tpu.memory_space<vmem>>, %arg15: memref<232x512xf32, #tpu.memory_space<vmem>>, %arg16: memref<160x128xf32, #tpu.memory_space<vmem>>) attributes {dimension_semantics = [#tpu.dimension_semantics<parallel>], iteration_bounds = array<i64: 2>, scalar_prefetch = 0 : i64, scratch_operands = 4 : i64, tpu.core_type = #tpu.core_type<tc>, window_params = [{transform_indices = @transform_0, window_bounds = array<i64: 784, 128>}, {pipeline_mode = #tpu.pipeline_mode<synchronous>, transform_indices = @transform_1, window_bounds = array<i64: 128, 128>}, {pipeline_mode = #tpu.pipeline_mode<synchronous>, transform_indices = @transform_2, window_bounds = array<i64: 1, 128>}, {pipeline_mode = #tpu.pipeline_mode<synchronous>, transform_indices = @transform_3, window_bounds = array<i64: 128, 512>}, {pipeline_mode = #tpu.pipeline_mode<synchronous>, transform_indices = @transform_4, window_bounds = array<i64: 1, 128>}, {pipeline_mode = #tpu.pipeline_mode<synchronous>, transform_indices = @transform_5, window_bounds = array<i64: 512, 128>}, {pipeline_mode = #tpu.pipeline_mode<synchronous>, transform_indices = @transform_6, window_bounds = array<i64: 1, 128>}, {pipeline_mode = #tpu.pipeline_mode<synchronous>, transform_indices = @transform_7, window_bounds = array<i64: 128, 128>}, {pipeline_mode = #tpu.pipeline_mode<synchronous>, transform_indices = @transform_8, window_bounds = array<i64: 1, 128>}, {pipeline_mode = #tpu.pipeline_mode<synchronous>, transform_indices = @transform_9, window_bounds = array<i64: 128, 128>}, {pipeline_mode = #tpu.pipeline_mode<synchronous>, transform_indices = @transform_10, window_bounds = array<i64: 1, 128>}, {transform_indices = @transform_11, window_bounds = array<i64: 1, 8, 128>}]} {
    %cst = arith.constant 0.000000e+00 : bf16
    %0 = vector.broadcast %cst : bf16 to vector<232x128xbf16>
    %c0 = arith.constant 0 : index
    %c0_0 = arith.constant 0 : index
    %1 = vector.load %arg14[%c0, %c0_0] : memref<232x128xbf16, #tpu.memory_space<vmem>>, vector<232x128xbf16>
    tpu.vector_store %arg14[%c0, %c0_0], %0 {strides = array<i32>} : memref<232x128xbf16, #tpu.memory_space<vmem>>, vector<232x128xbf16>,
    %cst_1 = arith.constant 0.000000e+00 : f32
    %2 = vector.broadcast %cst_1 : f32 to vector<160x128xf32>
    %c0_2 = arith.constant 0 : index
    %c0_3 = arith.constant 0 : index
    %3 = vector.load %arg16[%c0_2, %c0_3] : memref<160x128xf32, #tpu.memory_space<vmem>>, vector<160x128xf32>
    tpu.vector_store %arg16[%c0_2, %c0_3], %2 {strides = array<i32>} : memref<160x128xf32, #tpu.memory_space<vmem>>, vector<160x128xf32>,
    %c0_4 = arith.constant 0 : index
    %c0_5 = arith.constant 0 : index
    %4 = vector.load %arg1[%c0_4, %c0_5] : memref<784x128xbf16, #tpu.memory_space<vmem>>, vector<784x128xbf16>
    %c0_6 = arith.constant 0 : index
    %c0_7 = arith.constant 0 : index
    %5 = vector.load %arg2[%c0_6, %c0_7] : memref<128x128xbf16, #tpu.memory_space<vmem>>, vector<128x128xbf16>
    %cst_8 = arith.constant dense<0.000000e+00> : vector<784x128xf32>
    %6 = tpu.matmul %4, %5, %cst_8 {dimension_numbers = #tpu.dot_dimension_numbers<[1], [0], [0], [1], [0, 0, 1, 1], [], []>} : vector<784x128xbf16>, vector<128x128xbf16>, vector<784x128xf32> -> vector<784x128xf32>
    %c0_9 = arith.constant 0 : index
    %c0_10 = arith.constant 0 : index
    %7 = vector.load %arg3[%c0_9, %c0_10] : memref<1x128xf32, #tpu.memory_space<vmem>>, vector<1x128xf32>
    %8 = vector.broadcast %7 : vector<1x128xf32> to vector<784x128xf32>
    %9 = arith.addf %6, %8 : vector<784x128xf32>
    %cst_11 = arith.constant 0.000000e+00 : f32
    %10 = vector.broadcast %cst_11 : f32 to vector<784x128xf32>
    %11 = arith.maximumf %9, %10 : vector<784x128xf32>
    %c0_12 = arith.constant 0 : index
    %c0_13 = arith.constant 0 : index
    %12 = vector.load %arg13[%c0_12, %c0_13] : memref<784x128xf32, #tpu.memory_space<vmem>>, vector<784x128xf32>
    tpu.vector_store %arg13[%c0_12, %c0_13], %11 {strides = array<i32>} : memref<784x128xf32, #tpu.memory_space<vmem>>, vector<784x128xf32>,
    %c0_14 = arith.constant 0 : index
    %c0_15 = arith.constant 0 : index
    %13 = tpu.strided_load %arg13[%c0_14, %c0_15] {strides = array<i32: 2, 1>} : memref<784x128xf32, #tpu.memory_space<vmem>>, vector<14x128xf32>
    %c1 = arith.constant 1 : index
    %c0_16 = arith.constant 0 : index
    %14 = tpu.strided_load %arg13[%c1, %c0_16] {strides = array<i32: 2, 1>} : memref<784x128xf32, #tpu.memory_space<vmem>>, vector<14x128xf32>
    %c28 = arith.constant 28 : index
    %c0_17 = arith.constant 0 : index
    %15 = tpu.strided_load %arg13[%c28, %c0_17] {strides = array<i32: 2, 1>} : memref<784x128xf32, #tpu.memory_space<vmem>>, vector<14x128xf32>
    %c29 = arith.constant 29 : index
    %c0_18 = arith.constant 0 : index
    %16 = tpu.strided_load %arg13[%c29, %c0_18] {strides = array<i32: 2, 1>} : memref<784x128xf32, #tpu.memory_space<vmem>>, vector<14x128xf32>
    %17 = arith.maximumf %13, %14 : vector<14x128xf32>
    %18 = arith.maximumf %15, %16 : vector<14x128xf32>
    %19 = arith.maximumf %17, %18 : vector<14x128xf32>
    %20 = arith.truncf %19 : vector<14x128xf32> to vector<14x128xbf16>
    %c0_19 = arith.constant 0 : index
    %c0_20 = arith.constant 0 : index
    %21 = vector.load %arg14[%c0_19, %c0_20] : memref<232x128xbf16, #tpu.memory_space<vmem>>, vector<14x128xbf16>
    tpu.vector_store %arg14[%c0_19, %c0_20], %20 {strides = array<i32>} : memref<232x128xbf16, #tpu.memory_space<vmem>>, vector<14x128xbf16>,
    %c56 = arith.constant 56 : index
    %c0_21 = arith.constant 0 : index
    %22 = tpu.strided_load %arg13[%c56, %c0_21] {strides = array<i32: 2, 1>} : memref<784x128xf32, #tpu.memory_space<vmem>>, vector<14x128xf32>
    %c57 = arith.constant 57 : index
    %c0_22 = arith.constant 0 : index
    %23 = tpu.strided_load %arg13[%c57, %c0_22] {strides = array<i32: 2, 1>} : memref<784x128xf32, #tpu.memory_space<vmem>>, vector<14x128xf32>
    %c84 = arith.constant 84 : index
    %c0_23 = arith.constant 0 : index
    %24 = tpu.strided_load %arg13[%c84, %c0_23] {strides = array<i32: 2, 1>} : memref<784x128xf32, #tpu.memory_space<vmem>>, vector<14x128xf32>
    %c85 = arith.constant 85 : index
    %c0_24 = arith.constant 0 : index
    %25 = tpu.strided_load %arg13[%c85, %c0_24] {strides = array<i32: 2, 1>} : memref<784x128xf32, #tpu.memory_space<vmem>>, vector<14x128xf32>
    %26 = arith.maximumf %22, %23 : vector<14x128xf32>
    %27 = arith.maximumf %24, %25 : vector<14x128xf32>
    %28 = arith.maximumf %26, %27 : vector<14x128xf32>
    %29 = arith.truncf %28 : vector<14x128xf32> to vector<14x128xbf16>
    %c16 = arith.constant 16 : index
    %c0_25 = arith.constant 0 : index
    %30 = vector.load %arg14[%c16, %c0_25] : memref<232x128xbf16, #tpu.memory_space<vmem>>, vector<14x128xbf16>
    tpu.vector_store %arg14[%c16, %c0_25], %29 {strides = array<i32>} : memref<232x128xbf16, #tpu.memory_space<vmem>>, vector<14x128xbf16>,
    %c112 = arith.constant 112 : index
    %c0_26 = arith.constant 0 : index
    %31 = tpu.strided_load %arg13[%c112, %c0_26] {strides = array<i32: 2, 1>} : memref<784x128xf32, #tpu.memory_space<vmem>>, vector<14x128xf32>
    %c113 = arith.constant 113 : index
    %c0_27 = arith.constant 0 : index
    %32 = tpu.strided_load %arg13[%c113, %c0_27] {strides = array<i32: 2, 1>} : memref<784x128xf32, #tpu.memory_space<vmem>>, vector<14x128xf32>
    %c140 = arith.constant 140 : index
    %c0_28 = arith.constant 0 : index
    %33 = tpu.strided_load %arg13[%c140, %c0_28] {strides = array<i32: 2, 1>} : memref<784x128xf32, #tpu.memory_space<vmem>>, vector<14x128xf32>
    %c141 = arith.constant 141 : index
    %c0_29 = arith.constant 0 : index
    %34 = tpu.strided_load %arg13[%c141, %c0_29] {strides = array<i32: 2, 1>} : memref<784x128xf32, #tpu.memory_space<vmem>>, vector<14x128xf32>
    %35 = arith.maximumf %31, %32 : vector<14x128xf32>
    %36 = arith.maximumf %33, %34 : vector<14x128xf32>
    %37 = arith.maximumf %35, %36 : vector<14x128xf32>
    %38 = arith.truncf %37 : vector<14x128xf32> to vector<14x128xbf16>
    %c32 = arith.constant 32 : index
    %c0_30 = arith.constant 0 : index
    %39 = vector.load %arg14[%c32, %c0_30] : memref<232x128xbf16, #tpu.memory_space<vmem>>, vector<14x128xbf16>
    tpu.vector_store %arg14[%c32, %c0_30], %38 {strides = array<i32>} : memref<232x128xbf16, #tpu.memory_space<vmem>>, vector<14x128xbf16>,
    %c168 = arith.constant 168 : index
    %c0_31 = arith.constant 0 : index
    %40 = tpu.strided_load %arg13[%c168, %c0_31] {strides = array<i32: 2, 1>} : memref<784x128xf32, #tpu.memory_space<vmem>>, vector<14x128xf32>
    %c169 = arith.constant 169 : index
    %c0_32 = arith.constant 0 : index
    %41 = tpu.strided_load %arg13[%c169, %c0_32] {strides = array<i32: 2, 1>} : memref<784x128xf32, #tpu.memory_space<vmem>>, vector<14x128xf32>
    %c196 = arith.constant 196 : index
    %c0_33 = arith.constant 0 : index
    %42 = tpu.strided_load %arg13[%c196, %c0_33] {strides = array<i32: 2, 1>} : memref<784x128xf32, #tpu.memory_space<vmem>>, vector<14x128xf32>
    %c197 = arith.constant 197 : index
    %c0_34 = arith.constant 0 : index
    %43 = tpu.strided_load %arg13[%c197, %c0_34] {strides = array<i32: 2, 1>} : memref<784x128xf32, #tpu.memory_space<vmem>>, vector<14x128xf32>
    %44 = arith.maximumf %40, %41 : vector<14x128xf32>
    %45 = arith.maximumf %42, %43 : vector<14x128xf32>
    %46 = arith.maximumf %44, %45 : vector<14x128xf32>
    %47 = arith.truncf %46 : vector<14x128xf32> to vector<14x128xbf16>
    %c48 = arith.constant 48 : index
    %c0_35 = arith.constant 0 : index
    %48 = vector.load %arg14[%c48, %c0_35] : memref<232x128xbf16, #tpu.memory_space<vmem>>, vector<14x128xbf16>
    tpu.vector_store %arg14[%c48, %c0_35], %47 {strides = array<i32>} : memref<232x128xbf16, #tpu.memory_space<vmem>>, vector<14x128xbf16>,
    %c224 = arith.constant 224 : index
    %c0_36 = arith.constant 0 : index
    %49 = tpu.strided_load %arg13[%c224, %c0_36] {strides = array<i32: 2, 1>} : memref<784x128xf32, #tpu.memory_space<vmem>>, vector<14x128xf32>
    %c225 = arith.constant 225 : index
    %c0_37 = arith.constant 0 : index
    %50 = tpu.strided_load %arg13[%c225, %c0_37] {strides = array<i32: 2, 1>} : memref<784x128xf32, #tpu.memory_space<vmem>>, vector<14x128xf32>
    %c252 = arith.constant 252 : index
    %c0_38 = arith.constant 0 : index
    %51 = tpu.strided_load %arg13[%c252, %c0_38] {strides = array<i32: 2, 1>} : memref<784x128xf32, #tpu.memory_space<vmem>>, vector<14x128xf32>
    %c253 = arith.constant 253 : index
    %c0_39 = arith.constant 0 : index
    %52 = tpu.strided_load %arg13[%c253, %c0_39] {strides = array<i32: 2, 1>} : memref<784x128xf32, #tpu.memory_space<vmem>>, vector<14x128xf32>
    %53 = arith.maximumf %49, %50 : vector<14x128xf32>
    %54 = arith.maximumf %51, %52 : vector<14x128xf32>
    %55 = arith.maximumf %53, %54 : vector<14x128xf32>
    %56 = arith.truncf %55 : vector<14x128xf32> to vector<14x128xbf16>
    %c64 = arith.constant 64 : index
    %c0_40 = arith.constant 0 : index
    %57 = vector.load %arg14[%c64, %c0_40] : memref<232x128xbf16, #tpu.memory_space<vmem>>, vector<14x128xbf16>
    tpu.vector_store %arg14[%c64, %c0_40], %56 {strides = array<i32>} : memref<232x128xbf16, #tpu.memory_space<vmem>>, vector<14x128xbf16>,
    %c280 = arith.constant 280 : index
    %c0_41 = arith.constant 0 : index
    %58 = tpu.strided_load %arg13[%c280, %c0_41] {strides = array<i32: 2, 1>} : memref<784x128xf32, #tpu.memory_space<vmem>>, vector<14x128xf32>
    %c281 = arith.constant 281 : index
    %c0_42 = arith.constant 0 : index
    %59 = tpu.strided_load %arg13[%c281, %c0_42] {strides = array<i32: 2, 1>} : memref<784x128xf32, #tpu.memory_space<vmem>>, vector<14x128xf32>
    %c308 = arith.constant 308 : index
    %c0_43 = arith.constant 0 : index
    %60 = tpu.strided_load %arg13[%c308, %c0_43] {strides = array<i32: 2, 1>} : memref<784x128xf32, #tpu.memory_space<vmem>>, vector<14x128xf32>
    %c309 = arith.constant 309 : index
    %c0_44 = arith.constant 0 : index
    %61 = tpu.strided_load %arg13[%c309, %c0_44] {strides = array<i32: 2, 1>} : memref<784x128xf32, #tpu.memory_space<vmem>>, vector<14x128xf32>
    %62 = arith.maximumf %58, %59 : vector<14x128xf32>
    %63 = arith.maximumf %60, %61 : vector<14x128xf32>
    %64 = arith.maximumf %62, %63 : vector<14x128xf32>
    %65 = arith.truncf %64 : vector<14x128xf32> to vector<14x128xbf16>
    %c80 = arith.constant 80 : index
    %c0_45 = arith.constant 0 : index
    %66 = vector.load %arg14[%c80, %c0_45] : memref<232x128xbf16, #tpu.memory_space<vmem>>, vector<14x128xbf16>
    tpu.vector_store %arg14[%c80, %c0_45], %65 {strides = array<i32>} : memref<232x128xbf16, #tpu.memory_space<vmem>>, vector<14x128xbf16>,
    %c336 = arith.constant 336 : index
    %c0_46 = arith.constant 0 : index
    %67 = tpu.strided_load %arg13[%c336, %c0_46] {strides = array<i32: 2, 1>} : memref<784x128xf32, #tpu.memory_space<vmem>>, vector<14x128xf32>
    %c337 = arith.constant 337 : index
    %c0_47 = arith.constant 0 : index
    %68 = tpu.strided_load %arg13[%c337, %c0_47] {strides = array<i32: 2, 1>} : memref<784x128xf32, #tpu.memory_space<vmem>>, vector<14x128xf32>
    %c364 = arith.constant 364 : index
    %c0_48 = arith.constant 0 : index
    %69 = tpu.strided_load %arg13[%c364, %c0_48] {strides = array<i32: 2, 1>} : memref<784x128xf32, #tpu.memory_space<vmem>>, vector<14x128xf32>
    %c365 = arith.constant 365 : index
    %c0_49 = arith.constant 0 : index
    %70 = tpu.strided_load %arg13[%c365, %c0_49] {strides = array<i32: 2, 1>} : memref<784x128xf32, #tpu.memory_space<vmem>>, vector<14x128xf32>
    %71 = arith.maximumf %67, %68 : vector<14x128xf32>
    %72 = arith.maximumf %69, %70 : vector<14x128xf32>
    %73 = arith.maximumf %71, %72 : vector<14x128xf32>
    %74 = arith.truncf %73 : vector<14x128xf32> to vector<14x128xbf16>
    %c96 = arith.constant 96 : index
    %c0_50 = arith.constant 0 : index
    %75 = vector.load %arg14[%c96, %c0_50] : memref<232x128xbf16, #tpu.memory_space<vmem>>, vector<14x128xbf16>
    tpu.vector_store %arg14[%c96, %c0_50], %74 {strides = array<i32>} : memref<232x128xbf16, #tpu.memory_space<vmem>>, vector<14x128xbf16>,
    %c392 = arith.constant 392 : index
    %c0_51 = arith.constant 0 : index
    %76 = tpu.strided_load %arg13[%c392, %c0_51] {strides = array<i32: 2, 1>} : memref<784x128xf32, #tpu.memory_space<vmem>>, vector<14x128xf32>
    %c393 = arith.constant 393 : index
    %c0_52 = arith.constant 0 : index
    %77 = tpu.strided_load %arg13[%c393, %c0_52] {strides = array<i32: 2, 1>} : memref<784x128xf32, #tpu.memory_space<vmem>>, vector<14x128xf32>
    %c420 = arith.constant 420 : index
    %c0_53 = arith.constant 0 : index
    %78 = tpu.strided_load %arg13[%c420, %c0_53] {strides = array<i32: 2, 1>} : memref<784x128xf32, #tpu.memory_space<vmem>>, vector<14x128xf32>
    %c421 = arith.constant 421 : index
    %c0_54 = arith.constant 0 : index
    %79 = tpu.strided_load %arg13[%c421, %c0_54] {strides = array<i32: 2, 1>} : memref<784x128xf32, #tpu.memory_space<vmem>>, vector<14x128xf32>
    %80 = arith.maximumf %76, %77 : vector<14x128xf32>
    %81 = arith.maximumf %78, %79 : vector<14x128xf32>
    %82 = arith.maximumf %80, %81 : vector<14x128xf32>
    %83 = arith.truncf %82 : vector<14x128xf32> to vector<14x128xbf16>
    %c112_55 = arith.constant 112 : index
    %c0_56 = arith.constant 0 : index
    %84 = vector.load %arg14[%c112_55, %c0_56] : memref<232x128xbf16, #tpu.memory_space<vmem>>, vector<14x128xbf16>
    tpu.vector_store %arg14[%c112_55, %c0_56], %83 {strides = array<i32>} : memref<232x128xbf16, #tpu.memory_space<vmem>>, vector<14x128xbf16>,
    %c448 = arith.constant 448 : index
    %c0_57 = arith.constant 0 : index
    %85 = tpu.strided_load %arg13[%c448, %c0_57] {strides = array<i32: 2, 1>} : memref<784x128xf32, #tpu.memory_space<vmem>>, vector<14x128xf32>
    %c449 = arith.constant 449 : index
    %c0_58 = arith.constant 0 : index
    %86 = tpu.strided_load %arg13[%c449, %c0_58] {strides = array<i32: 2, 1>} : memref<784x128xf32, #tpu.memory_space<vmem>>, vector<14x128xf32>
    %c476 = arith.constant 476 : index
    %c0_59 = arith.constant 0 : index
    %87 = tpu.strided_load %arg13[%c476, %c0_59] {strides = array<i32: 2, 1>} : memref<784x128xf32, #tpu.memory_space<vmem>>, vector<14x128xf32>
    %c477 = arith.constant 477 : index
    %c0_60 = arith.constant 0 : index
    %88 = tpu.strided_load %arg13[%c477, %c0_60] {strides = array<i32: 2, 1>} : memref<784x128xf32, #tpu.memory_space<vmem>>, vector<14x128xf32>
    %89 = arith.maximumf %85, %86 : vector<14x128xf32>
    %90 = arith.maximumf %87, %88 : vector<14x128xf32>
    %91 = arith.maximumf %89, %90 : vector<14x128xf32>
    %92 = arith.truncf %91 : vector<14x128xf32> to vector<14x128xbf16>
    %c128 = arith.constant 128 : index
    %c0_61 = arith.constant 0 : index
    %93 = vector.load %arg14[%c128, %c0_61] : memref<232x128xbf16, #tpu.memory_space<vmem>>, vector<14x128xbf16>
    tpu.vector_store %arg14[%c128, %c0_61], %92 {strides = array<i32>} : memref<232x128xbf16, #tpu.memory_space<vmem>>, vector<14x128xbf16>,
    %c504 = arith.constant 504 : index
    %c0_62 = arith.constant 0 : index
    %94 = tpu.strided_load %arg13[%c504, %c0_62] {strides = array<i32: 2, 1>} : memref<784x128xf32, #tpu.memory_space<vmem>>, vector<14x128xf32>
    %c505 = arith.constant 505 : index
    %c0_63 = arith.constant 0 : index
    %95 = tpu.strided_load %arg13[%c505, %c0_63] {strides = array<i32: 2, 1>} : memref<784x128xf32, #tpu.memory_space<vmem>>, vector<14x128xf32>
    %c532 = arith.constant 532 : index
    %c0_64 = arith.constant 0 : index
    %96 = tpu.strided_load %arg13[%c532, %c0_64] {strides = array<i32: 2, 1>} : memref<784x128xf32, #tpu.memory_space<vmem>>, vector<14x128xf32>
    %c533 = arith.constant 533 : index
    %c0_65 = arith.constant 0 : index
    %97 = tpu.strided_load %arg13[%c533, %c0_65] {strides = array<i32: 2, 1>} : memref<784x128xf32, #tpu.memory_space<vmem>>, vector<14x128xf32>
    %98 = arith.maximumf %94, %95 : vector<14x128xf32>
    %99 = arith.maximumf %96, %97 : vector<14x128xf32>
    %100 = arith.maximumf %98, %99 : vector<14x128xf32>
    %101 = arith.truncf %100 : vector<14x128xf32> to vector<14x128xbf16>
    %c144 = arith.constant 144 : index
    %c0_66 = arith.constant 0 : index
    %102 = vector.load %arg14[%c144, %c0_66] : memref<232x128xbf16, #tpu.memory_space<vmem>>, vector<14x128xbf16>
    tpu.vector_store %arg14[%c144, %c0_66], %101 {strides = array<i32>} : memref<232x128xbf16, #tpu.memory_space<vmem>>, vector<14x128xbf16>,
    %c560 = arith.constant 560 : index
    %c0_67 = arith.constant 0 : index
    %103 = tpu.strided_load %arg13[%c560, %c0_67] {strides = array<i32: 2, 1>} : memref<784x128xf32, #tpu.memory_space<vmem>>, vector<14x128xf32>
    %c561 = arith.constant 561 : index
    %c0_68 = arith.constant 0 : index
    %104 = tpu.strided_load %arg13[%c561, %c0_68] {strides = array<i32: 2, 1>} : memref<784x128xf32, #tpu.memory_space<vmem>>, vector<14x128xf32>
    %c588 = arith.constant 588 : index
    %c0_69 = arith.constant 0 : index
    %105 = tpu.strided_load %arg13[%c588, %c0_69] {strides = array<i32: 2, 1>} : memref<784x128xf32, #tpu.memory_space<vmem>>, vector<14x128xf32>
    %c589 = arith.constant 589 : index
    %c0_70 = arith.constant 0 : index
    %106 = tpu.strided_load %arg13[%c589, %c0_70] {strides = array<i32: 2, 1>} : memref<784x128xf32, #tpu.memory_space<vmem>>, vector<14x128xf32>
    %107 = arith.maximumf %103, %104 : vector<14x128xf32>
    %108 = arith.maximumf %105, %106 : vector<14x128xf32>
    %109 = arith.maximumf %107, %108 : vector<14x128xf32>
    %110 = arith.truncf %109 : vector<14x128xf32> to vector<14x128xbf16>
    %c160 = arith.constant 160 : index
    %c0_71 = arith.constant 0 : index
    %111 = vector.load %arg14[%c160, %c0_71] : memref<232x128xbf16, #tpu.memory_space<vmem>>, vector<14x128xbf16>
    tpu.vector_store %arg14[%c160, %c0_71], %110 {strides = array<i32>} : memref<232x128xbf16, #tpu.memory_space<vmem>>, vector<14x128xbf16>,
    %c616 = arith.constant 616 : index
    %c0_72 = arith.constant 0 : index
    %112 = tpu.strided_load %arg13[%c616, %c0_72] {strides = array<i32: 2, 1>} : memref<784x128xf32, #tpu.memory_space<vmem>>, vector<14x128xf32>
    %c617 = arith.constant 617 : index
    %c0_73 = arith.constant 0 : index
    %113 = tpu.strided_load %arg13[%c617, %c0_73] {strides = array<i32: 2, 1>} : memref<784x128xf32, #tpu.memory_space<vmem>>, vector<14x128xf32>
    %c644 = arith.constant 644 : index
    %c0_74 = arith.constant 0 : index
    %114 = tpu.strided_load %arg13[%c644, %c0_74] {strides = array<i32: 2, 1>} : memref<784x128xf32, #tpu.memory_space<vmem>>, vector<14x128xf32>
    %c645 = arith.constant 645 : index
    %c0_75 = arith.constant 0 : index
    %115 = tpu.strided_load %arg13[%c645, %c0_75] {strides = array<i32: 2, 1>} : memref<784x128xf32, #tpu.memory_space<vmem>>, vector<14x128xf32>
    %116 = arith.maximumf %112, %113 : vector<14x128xf32>
    %117 = arith.maximumf %114, %115 : vector<14x128xf32>
    %118 = arith.maximumf %116, %117 : vector<14x128xf32>
    %119 = arith.truncf %118 : vector<14x128xf32> to vector<14x128xbf16>
    %c176 = arith.constant 176 : index
    %c0_76 = arith.constant 0 : index
    %120 = vector.load %arg14[%c176, %c0_76] : memref<232x128xbf16, #tpu.memory_space<vmem>>, vector<14x128xbf16>
    tpu.vector_store %arg14[%c176, %c0_76], %119 {strides = array<i32>} : memref<232x128xbf16, #tpu.memory_space<vmem>>, vector<14x128xbf16>,
    %c672 = arith.constant 672 : index
    %c0_77 = arith.constant 0 : index
    %121 = tpu.strided_load %arg13[%c672, %c0_77] {strides = array<i32: 2, 1>} : memref<784x128xf32, #tpu.memory_space<vmem>>, vector<14x128xf32>
    %c673 = arith.constant 673 : index
    %c0_78 = arith.constant 0 : index
    %122 = tpu.strided_load %arg13[%c673, %c0_78] {strides = array<i32: 2, 1>} : memref<784x128xf32, #tpu.memory_space<vmem>>, vector<14x128xf32>
    %c700 = arith.constant 700 : index
    %c0_79 = arith.constant 0 : index
    %123 = tpu.strided_load %arg13[%c700, %c0_79] {strides = array<i32: 2, 1>} : memref<784x128xf32, #tpu.memory_space<vmem>>, vector<14x128xf32>
    %c701 = arith.constant 701 : index
    %c0_80 = arith.constant 0 : index
    %124 = tpu.strided_load %arg13[%c701, %c0_80] {strides = array<i32: 2, 1>} : memref<784x128xf32, #tpu.memory_space<vmem>>, vector<14x128xf32>
    %125 = arith.maximumf %121, %122 : vector<14x128xf32>
    %126 = arith.maximumf %123, %124 : vector<14x128xf32>
    %127 = arith.maximumf %125, %126 : vector<14x128xf32>
    %128 = arith.truncf %127 : vector<14x128xf32> to vector<14x128xbf16>
    %c192 = arith.constant 192 : index
    %c0_81 = arith.constant 0 : index
    %129 = vector.load %arg14[%c192, %c0_81] : memref<232x128xbf16, #tpu.memory_space<vmem>>, vector<14x128xbf16>
    tpu.vector_store %arg14[%c192, %c0_81], %128 {strides = array<i32>} : memref<232x128xbf16, #tpu.memory_space<vmem>>, vector<14x128xbf16>,
    %c728 = arith.constant 728 : index
    %c0_82 = arith.constant 0 : index
    %130 = tpu.strided_load %arg13[%c728, %c0_82] {strides = array<i32: 2, 1>} : memref<784x128xf32, #tpu.memory_space<vmem>>, vector<14x128xf32>
    %c729 = arith.constant 729 : index
    %c0_83 = arith.constant 0 : index
    %131 = tpu.strided_load %arg13[%c729, %c0_83] {strides = array<i32: 2, 1>} : memref<784x128xf32, #tpu.memory_space<vmem>>, vector<14x128xf32>
    %c756 = arith.constant 756 : index
    %c0_84 = arith.constant 0 : index
    %132 = tpu.strided_load %arg13[%c756, %c0_84] {strides = array<i32: 2, 1>} : memref<784x128xf32, #tpu.memory_space<vmem>>, vector<14x128xf32>
    %c757 = arith.constant 757 : index
    %c0_85 = arith.constant 0 : index
    %133 = tpu.strided_load %arg13[%c757, %c0_85] {strides = array<i32: 2, 1>} : memref<784x128xf32, #tpu.memory_space<vmem>>, vector<14x128xf32>
    %134 = arith.maximumf %130, %131 : vector<14x128xf32>
    %135 = arith.maximumf %132, %133 : vector<14x128xf32>
    %136 = arith.maximumf %134, %135 : vector<14x128xf32>
    %137 = arith.truncf %136 : vector<14x128xf32> to vector<14x128xbf16>
    %c208 = arith.constant 208 : index
    %c0_86 = arith.constant 0 : index
    %138 = vector.load %arg14[%c208, %c0_86] : memref<232x128xbf16, #tpu.memory_space<vmem>>, vector<14x128xbf16>
    tpu.vector_store %arg14[%c208, %c0_86], %137 {strides = array<i32>} : memref<232x128xbf16, #tpu.memory_space<vmem>>, vector<14x128xbf16>,
    %c0_87 = arith.constant 0 : index
    %c0_88 = arith.constant 0 : index
    %139 = vector.load %arg14[%c0_87, %c0_88] : memref<232x128xbf16, #tpu.memory_space<vmem>>, vector<232x128xbf16>
    %c0_89 = arith.constant 0 : index
    %c0_90 = arith.constant 0 : index
    %140 = vector.load %arg4[%c0_89, %c0_90] : memref<128x512xbf16, #tpu.memory_space<vmem>>, vector<128x512xbf16>
    %cst_91 = arith.constant dense<0.000000e+00> : vector<232x512xf32>
    %141 = tpu.matmul %139, %140, %cst_91 {dimension_numbers = #tpu.dot_dimension_numbers<[1], [0], [0], [1], [0, 0, 1, 1], [], []>} : vector<232x128xbf16>, vector<128x512xbf16>, vector<232x512xf32> -> vector<232x512xf32>
    %c0_92 = arith.constant 0 : index
    %c0_93 = arith.constant 0 : index
    %142 = vector.load %arg15[%c0_92, %c0_93] : memref<232x512xf32, #tpu.memory_space<vmem>>, vector<232x512xf32>
    tpu.vector_store %arg15[%c0_92, %c0_93], %141 {strides = array<i32>} : memref<232x512xf32, #tpu.memory_space<vmem>>, vector<232x512xf32>,
    %c0_94 = arith.constant 0 : index
    %c0_95 = arith.constant 0 : index
    %143 = vector.load %arg15[%c0_94, %c0_95] : memref<232x512xf32, #tpu.memory_space<vmem>>, vector<160x16xf32>
    %c1_96 = arith.constant 1 : index
    %c16_97 = arith.constant 16 : index
    %144 = vector.load %arg15[%c1_96, %c16_97] : memref<232x512xf32, #tpu.memory_space<vmem>>, vector<160x16xf32>
    %145 = arith.addf %143, %144 : vector<160x16xf32>
    %c2 = arith.constant 2 : index
    %c32_98 = arith.constant 32 : index
    %146 = vector.load %arg15[%c2, %c32_98] : memref<232x512xf32, #tpu.memory_space<vmem>>, vector<160x16xf32>
    %147 = arith.addf %145, %146 : vector<160x16xf32>
    %c3 = arith.constant 3 : index
    %c48_99 = arith.constant 48 : index
    %148 = vector.load %arg15[%c3, %c48_99] : memref<232x512xf32, #tpu.memory_space<vmem>>, vector<160x16xf32>
    %149 = arith.addf %147, %148 : vector<160x16xf32>
    %c4 = arith.constant 4 : index
    %c64_100 = arith.constant 64 : index
    %150 = vector.load %arg15[%c4, %c64_100] : memref<232x512xf32, #tpu.memory_space<vmem>>, vector<160x16xf32>
    %151 = arith.addf %149, %150 : vector<160x16xf32>
    %c16_101 = arith.constant 16 : index
    %c80_102 = arith.constant 80 : index
    %152 = vector.load %arg15[%c16_101, %c80_102] : memref<232x512xf32, #tpu.memory_space<vmem>>, vector<160x16xf32>
    %153 = arith.addf %151, %152 : vector<160x16xf32>
    %c17 = arith.constant 17 : index
    %c96_103 = arith.constant 96 : index
    %154 = vector.load %arg15[%c17, %c96_103] : memref<232x512xf32, #tpu.memory_space<vmem>>, vector<160x16xf32>
    %155 = arith.addf %153, %154 : vector<160x16xf32>
    %c18 = arith.constant 18 : index
    %c112_104 = arith.constant 112 : index
    %156 = vector.load %arg15[%c18, %c112_104] : memref<232x512xf32, #tpu.memory_space<vmem>>, vector<160x16xf32>
    %157 = arith.addf %155, %156 : vector<160x16xf32>
    %c19 = arith.constant 19 : index
    %c128_105 = arith.constant 128 : index
    %158 = vector.load %arg15[%c19, %c128_105] : memref<232x512xf32, #tpu.memory_space<vmem>>, vector<160x16xf32>
    %159 = arith.addf %157, %158 : vector<160x16xf32>
    %c20 = arith.constant 20 : index
    %c144_106 = arith.constant 144 : index
    %160 = vector.load %arg15[%c20, %c144_106] : memref<232x512xf32, #tpu.memory_space<vmem>>, vector<160x16xf32>
    %161 = arith.addf %159, %160 : vector<160x16xf32>
    %c32_107 = arith.constant 32 : index
    %c160_108 = arith.constant 160 : index
    %162 = vector.load %arg15[%c32_107, %c160_108] : memref<232x512xf32, #tpu.memory_space<vmem>>, vector<160x16xf32>
    %163 = arith.addf %161, %162 : vector<160x16xf32>
    %c33 = arith.constant 33 : index
    %c176_109 = arith.constant 176 : index
    %164 = vector.load %arg15[%c33, %c176_109] : memref<232x512xf32, #tpu.memory_space<vmem>>, vector<160x16xf32>
    %165 = arith.addf %163, %164 : vector<160x16xf32>
    %c34 = arith.constant 34 : index
    %c192_110 = arith.constant 192 : index
    %166 = vector.load %arg15[%c34, %c192_110] : memref<232x512xf32, #tpu.memory_space<vmem>>, vector<160x16xf32>
    %167 = arith.addf %165, %166 : vector<160x16xf32>
    %c35 = arith.constant 35 : index
    %c208_111 = arith.constant 208 : index
    %168 = vector.load %arg15[%c35, %c208_111] : memref<232x512xf32, #tpu.memory_space<vmem>>, vector<160x16xf32>
    %169 = arith.addf %167, %168 : vector<160x16xf32>
    %c36 = arith.constant 36 : index
    %c224_112 = arith.constant 224 : index
    %170 = vector.load %arg15[%c36, %c224_112] : memref<232x512xf32, #tpu.memory_space<vmem>>, vector<160x16xf32>
    %171 = arith.addf %169, %170 : vector<160x16xf32>
    %c48_113 = arith.constant 48 : index
    %c240 = arith.constant 240 : index
    %172 = vector.load %arg15[%c48_113, %c240] : memref<232x512xf32, #tpu.memory_space<vmem>>, vector<160x16xf32>
    %173 = arith.addf %171, %172 : vector<160x16xf32>
    %c49 = arith.constant 49 : index
    %c256 = arith.constant 256 : index
    %174 = vector.load %arg15[%c49, %c256] : memref<232x512xf32, #tpu.memory_space<vmem>>, vector<160x16xf32>
    %175 = arith.addf %173, %174 : vector<160x16xf32>
    %c50 = arith.constant 50 : index
    %c272 = arith.constant 272 : index
    %176 = vector.load %arg15[%c50, %c272] : memref<232x512xf32, #tpu.memory_space<vmem>>, vector<160x16xf32>
    %177 = arith.addf %175, %176 : vector<160x16xf32>
    %c51 = arith.constant 51 : index
    %c288 = arith.constant 288 : index
    %178 = vector.load %arg15[%c51, %c288] : memref<232x512xf32, #tpu.memory_space<vmem>>, vector<160x16xf32>
    %179 = arith.addf %177, %178 : vector<160x16xf32>
    %c52 = arith.constant 52 : index
    %c304 = arith.constant 304 : index
    %180 = vector.load %arg15[%c52, %c304] : memref<232x512xf32, #tpu.memory_space<vmem>>, vector<160x16xf32>
    %181 = arith.addf %179, %180 : vector<160x16xf32>
    %c64_114 = arith.constant 64 : index
    %c320 = arith.constant 320 : index
    %182 = vector.load %arg15[%c64_114, %c320] : memref<232x512xf32, #tpu.memory_space<vmem>>, vector<160x16xf32>
    %183 = arith.addf %181, %182 : vector<160x16xf32>
    %c65 = arith.constant 65 : index
    %c336_115 = arith.constant 336 : index
    %184 = vector.load %arg15[%c65, %c336_115] : memref<232x512xf32, #tpu.memory_space<vmem>>, vector<160x16xf32>
    %185 = arith.addf %183, %184 : vector<160x16xf32>
    %c66 = arith.constant 66 : index
    %c352 = arith.constant 352 : index
    %186 = vector.load %arg15[%c66, %c352] : memref<232x512xf32, #tpu.memory_space<vmem>>, vector<160x16xf32>
    %187 = arith.addf %185, %186 : vector<160x16xf32>
    %c67 = arith.constant 67 : index
    %c368 = arith.constant 368 : index
    %188 = vector.load %arg15[%c67, %c368] : memref<232x512xf32, #tpu.memory_space<vmem>>, vector<160x16xf32>
    %189 = arith.addf %187, %188 : vector<160x16xf32>
    %c68 = arith.constant 68 : index
    %c384 = arith.constant 384 : index
    %190 = vector.load %arg15[%c68, %c384] : memref<232x512xf32, #tpu.memory_space<vmem>>, vector<160x16xf32>
    %191 = arith.addf %189, %190 : vector<160x16xf32>
    %c0_116 = arith.constant 0 : index
    %c0_117 = arith.constant 0 : index
    %192 = vector.load %arg5[%c0_116, %c0_117] : memref<1x128xf32, #tpu.memory_space<vmem>>, vector<1x16xf32>
    %193 = vector.broadcast %192 : vector<1x16xf32> to vector<160x16xf32>
    %194 = arith.addf %191, %193 : vector<160x16xf32>
    %cst_118 = arith.constant 0.000000e+00 : f32
    %195 = vector.broadcast %cst_118 : f32 to vector<160x16xf32>
    %196 = arith.maximumf %194, %195 : vector<160x16xf32>
    %c0_119 = arith.constant 0 : index
    %c0_120 = arith.constant 0 : index
    %197 = vector.load %arg16[%c0_119, %c0_120] : memref<160x128xf32, #tpu.memory_space<vmem>>, vector<160x16xf32>
    tpu.vector_store %arg16[%c0_119, %c0_120], %196 {strides = array<i32>} : memref<160x128xf32, #tpu.memory_space<vmem>>, vector<160x16xf32>,
    %c0_121 = arith.constant 0 : index
    %c0_122 = arith.constant 0 : index
    %198 = tpu.strided_load %arg16[%c0_121, %c0_122] {strides = array<i32: 2, 1>} : memref<160x128xf32, #tpu.memory_space<vmem>>, vector<5x128xf32>
    %c1_123 = arith.constant 1 : index
    %c0_124 = arith.constant 0 : index
    %199 = tpu.strided_load %arg16[%c1_123, %c0_124] {strides = array<i32: 2, 1>} : memref<160x128xf32, #tpu.memory_space<vmem>>, vector<5x128xf32>
    %c16_125 = arith.constant 16 : index
    %c0_126 = arith.constant 0 : index
    %200 = tpu.strided_load %arg16[%c16_125, %c0_126] {strides = array<i32: 2, 1>} : memref<160x128xf32, #tpu.memory_space<vmem>>, vector<5x128xf32>
    %c17_127 = arith.constant 17 : index
    %c0_128 = arith.constant 0 : index
    %201 = tpu.strided_load %arg16[%c17_127, %c0_128] {strides = array<i32: 2, 1>} : memref<160x128xf32, #tpu.memory_space<vmem>>, vector<5x128xf32>
    %202 = arith.maximumf %198, %199 : vector<5x128xf32>
    %203 = arith.maximumf %200, %201 : vector<5x128xf32>
    %204 = arith.maximumf %202, %203 : vector<5x128xf32>
    %c32_129 = arith.constant 32 : index
    %c0_130 = arith.constant 0 : index
    %205 = tpu.strided_load %arg16[%c32_129, %c0_130] {strides = array<i32: 2, 1>} : memref<160x128xf32, #tpu.memory_space<vmem>>, vector<5x128xf32>
    %c33_131 = arith.constant 33 : index
    %c0_132 = arith.constant 0 : index
    %206 = tpu.strided_load %arg16[%c33_131, %c0_132] {strides = array<i32: 2, 1>} : memref<160x128xf32, #tpu.memory_space<vmem>>, vector<5x128xf32>
    %c48_133 = arith.constant 48 : index
    %c0_134 = arith.constant 0 : index
    %207 = tpu.strided_load %arg16[%c48_133, %c0_134] {strides = array<i32: 2, 1>} : memref<160x128xf32, #tpu.memory_space<vmem>>, vector<5x128xf32>
    %c49_135 = arith.constant 49 : index
    %c0_136 = arith.constant 0 : index
    %208 = tpu.strided_load %arg16[%c49_135, %c0_136] {strides = array<i32: 2, 1>} : memref<160x128xf32, #tpu.memory_space<vmem>>, vector<5x128xf32>
    %209 = arith.maximumf %205, %206 : vector<5x128xf32>
    %210 = arith.maximumf %207, %208 : vector<5x128xf32>
    %211 = arith.maximumf %209, %210 : vector<5x128xf32>
    %c64_137 = arith.constant 64 : index
    %c0_138 = arith.constant 0 : index
    %212 = tpu.strided_load %arg16[%c64_137, %c0_138] {strides = array<i32: 2, 1>} : memref<160x128xf32, #tpu.memory_space<vmem>>, vector<5x128xf32>
    %c65_139 = arith.constant 65 : index
    %c0_140 = arith.constant 0 : index
    %213 = tpu.strided_load %arg16[%c65_139, %c0_140] {strides = array<i32: 2, 1>} : memref<160x128xf32, #tpu.memory_space<vmem>>, vector<5x128xf32>
    %c80_141 = arith.constant 80 : index
    %c0_142 = arith.constant 0 : index
    %214 = tpu.strided_load %arg16[%c80_141, %c0_142] {strides = array<i32: 2, 1>} : memref<160x128xf32, #tpu.memory_space<vmem>>, vector<5x128xf32>
    %c81 = arith.constant 81 : index
    %c0_143 = arith.constant 0 : index
    %215 = tpu.strided_load %arg16[%c81, %c0_143] {strides = array<i32: 2, 1>} : memref<160x128xf32, #tpu.memory_space<vmem>>, vector<5x128xf32>
    %216 = arith.maximumf %212, %213 : vector<5x128xf32>
    %217 = arith.maximumf %214, %215 : vector<5x128xf32>
    %218 = arith.maximumf %216, %217 : vector<5x128xf32>
    %c96_144 = arith.constant 96 : index
    %c0_145 = arith.constant 0 : index
    %219 = tpu.strided_load %arg16[%c96_144, %c0_145] {strides = array<i32: 2, 1>} : memref<160x128xf32, #tpu.memory_space<vmem>>, vector<5x128xf32>
    %c97 = arith.constant 97 : index
    %c0_146 = arith.constant 0 : index
    %220 = tpu.strided_load %arg16[%c97, %c0_146] {strides = array<i32: 2, 1>} : memref<160x128xf32, #tpu.memory_space<vmem>>, vector<5x128xf32>
    %c112_147 = arith.constant 112 : index
    %c0_148 = arith.constant 0 : index
    %221 = tpu.strided_load %arg16[%c112_147, %c0_148] {strides = array<i32: 2, 1>} : memref<160x128xf32, #tpu.memory_space<vmem>>, vector<5x128xf32>
    %c113_149 = arith.constant 113 : index
    %c0_150 = arith.constant 0 : index
    %222 = tpu.strided_load %arg16[%c113_149, %c0_150] {strides = array<i32: 2, 1>} : memref<160x128xf32, #tpu.memory_space<vmem>>, vector<5x128xf32>
    %223 = arith.maximumf %219, %220 : vector<5x128xf32>
    %224 = arith.maximumf %221, %222 : vector<5x128xf32>
    %225 = arith.maximumf %223, %224 : vector<5x128xf32>
    %c128_151 = arith.constant 128 : index
    %c0_152 = arith.constant 0 : index
    %226 = tpu.strided_load %arg16[%c128_151, %c0_152] {strides = array<i32: 2, 1>} : memref<160x128xf32, #tpu.memory_space<vmem>>, vector<5x128xf32>
    %c129 = arith.constant 129 : index
    %c0_153 = arith.constant 0 : index
    %227 = tpu.strided_load %arg16[%c129, %c0_153] {strides = array<i32: 2, 1>} : memref<160x128xf32, #tpu.memory_space<vmem>>, vector<5x128xf32>
    %c144_154 = arith.constant 144 : index
    %c0_155 = arith.constant 0 : index
    %228 = tpu.strided_load %arg16[%c144_154, %c0_155] {strides = array<i32: 2, 1>} : memref<160x128xf32, #tpu.memory_space<vmem>>, vector<5x128xf32>
    %c145 = arith.constant 145 : index
    %c0_156 = arith.constant 0 : index
    %229 = tpu.strided_load %arg16[%c145, %c0_156] {strides = array<i32: 2, 1>} : memref<160x128xf32, #tpu.memory_space<vmem>>, vector<5x128xf32>
    %230 = arith.maximumf %226, %227 : vector<5x128xf32>
    %231 = arith.maximumf %228, %229 : vector<5x128xf32>
    %232 = arith.maximumf %230, %231 : vector<5x128xf32>
    %cst_157 = arith.constant 0.000000e+00 : f32
    %233 = vector.broadcast %cst_157 : f32 to vector<1x128xf32>
    %234 = vector.extract_strided_slice %204 {offsets = [0, 0], sizes = [1, 128], strides = [1, 1]} : vector<5x128xf32> to vector<1x128xf32>
    %235 = arith.truncf %234 : vector<1x128xf32> to vector<1x128xbf16>
    %c0_158 = arith.constant 0 : index
    %c0_159 = arith.constant 0 : index
    %236 = vector.load %arg6[%c0_158, %c0_159] : memref<512x128xbf16, #tpu.memory_space<vmem>>, vector<128x128xbf16>
    %cst_160 = arith.constant dense<0.000000e+00> : vector<1x128xf32>
    %237 = tpu.matmul %235, %236, %cst_160 {dimension_numbers = #tpu.dot_dimension_numbers<[1], [0], [0], [1], [0, 0, 1, 1], [], []>} : vector<1x128xbf16>, vector<128x128xbf16>, vector<1x128xf32> -> vector<1x128xf32>
    %238 = arith.addf %233, %237 : vector<1x128xf32>
    %239 = vector.extract_strided_slice %204 {offsets = [1, 0], sizes = [1, 128], strides = [1, 1]} : vector<5x128xf32> to vector<1x128xf32>
    %240 = arith.truncf %239 : vector<1x128xf32> to vector<1x128xbf16>
    %c16_161 = arith.constant 16 : index
    %c0_162 = arith.constant 0 : index
    %241 = vector.load %arg6[%c16_161, %c0_162] : memref<512x128xbf16, #tpu.memory_space<vmem>>, vector<128x128xbf16>
    %cst_163 = arith.constant dense<0.000000e+00> : vector<1x128xf32>
    %242 = tpu.matmul %240, %241, %cst_163 {dimension_numbers = #tpu.dot_dimension_numbers<[1], [0], [0], [1], [0, 0, 1, 1], [], []>} : vector<1x128xbf16>, vector<128x128xbf16>, vector<1x128xf32> -> vector<1x128xf32>
    %243 = arith.addf %238, %242 : vector<1x128xf32>
    %244 = vector.extract_strided_slice %204 {offsets = [2, 0], sizes = [1, 128], strides = [1, 1]} : vector<5x128xf32> to vector<1x128xf32>
    %245 = arith.truncf %244 : vector<1x128xf32> to vector<1x128xbf16>
    %c32_164 = arith.constant 32 : index
    %c0_165 = arith.constant 0 : index
    %246 = vector.load %arg6[%c32_164, %c0_165] : memref<512x128xbf16, #tpu.memory_space<vmem>>, vector<128x128xbf16>
    %cst_166 = arith.constant dense<0.000000e+00> : vector<1x128xf32>
    %247 = tpu.matmul %245, %246, %cst_166 {dimension_numbers = #tpu.dot_dimension_numbers<[1], [0], [0], [1], [0, 0, 1, 1], [], []>} : vector<1x128xbf16>, vector<128x128xbf16>, vector<1x128xf32> -> vector<1x128xf32>
    %248 = arith.addf %243, %247 : vector<1x128xf32>
    %249 = vector.extract_strided_slice %204 {offsets = [3, 0], sizes = [1, 128], strides = [1, 1]} : vector<5x128xf32> to vector<1x128xf32>
    %250 = arith.truncf %249 : vector<1x128xf32> to vector<1x128xbf16>
    %c48_167 = arith.constant 48 : index
    %c0_168 = arith.constant 0 : index
    %251 = vector.load %arg6[%c48_167, %c0_168] : memref<512x128xbf16, #tpu.memory_space<vmem>>, vector<128x128xbf16>
    %cst_169 = arith.constant dense<0.000000e+00> : vector<1x128xf32>
    %252 = tpu.matmul %250, %251, %cst_169 {dimension_numbers = #tpu.dot_dimension_numbers<[1], [0], [0], [1], [0, 0, 1, 1], [], []>} : vector<1x128xbf16>, vector<128x128xbf16>, vector<1x128xf32> -> vector<1x128xf32>
    %253 = arith.addf %248, %252 : vector<1x128xf32>
    %254 = vector.extract_strided_slice %204 {offsets = [4, 0], sizes = [1, 128], strides = [1, 1]} : vector<5x128xf32> to vector<1x128xf32>
    %255 = arith.truncf %254 : vector<1x128xf32> to vector<1x128xbf16>
    %c64_170 = arith.constant 64 : index
    %c0_171 = arith.constant 0 : index
    %256 = vector.load %arg6[%c64_170, %c0_171] : memref<512x128xbf16, #tpu.memory_space<vmem>>, vector<128x128xbf16>
    %cst_172 = arith.constant dense<0.000000e+00> : vector<1x128xf32>
    %257 = tpu.matmul %255, %256, %cst_172 {dimension_numbers = #tpu.dot_dimension_numbers<[1], [0], [0], [1], [0, 0, 1, 1], [], []>} : vector<1x128xbf16>, vector<128x128xbf16>, vector<1x128xf32> -> vector<1x128xf32>
    %258 = arith.addf %253, %257 : vector<1x128xf32>
    %259 = vector.extract_strided_slice %211 {offsets = [0, 0], sizes = [1, 128], strides = [1, 1]} : vector<5x128xf32> to vector<1x128xf32>
    %260 = arith.truncf %259 : vector<1x128xf32> to vector<1x128xbf16>
    %c80_173 = arith.constant 80 : index
    %c0_174 = arith.constant 0 : index
    %261 = vector.load %arg6[%c80_173, %c0_174] : memref<512x128xbf16, #tpu.memory_space<vmem>>, vector<128x128xbf16>
    %cst_175 = arith.constant dense<0.000000e+00> : vector<1x128xf32>
    %262 = tpu.matmul %260, %261, %cst_175 {dimension_numbers = #tpu.dot_dimension_numbers<[1], [0], [0], [1], [0, 0, 1, 1], [], []>} : vector<1x128xbf16>, vector<128x128xbf16>, vector<1x128xf32> -> vector<1x128xf32>
    %263 = arith.addf %258, %262 : vector<1x128xf32>
    %264 = vector.extract_strided_slice %211 {offsets = [1, 0], sizes = [1, 128], strides = [1, 1]} : vector<5x128xf32> to vector<1x128xf32>
    %265 = arith.truncf %264 : vector<1x128xf32> to vector<1x128xbf16>
    %c96_176 = arith.constant 96 : index
    %c0_177 = arith.constant 0 : index
    %266 = vector.load %arg6[%c96_176, %c0_177] : memref<512x128xbf16, #tpu.memory_space<vmem>>, vector<128x128xbf16>
    %cst_178 = arith.constant dense<0.000000e+00> : vector<1x128xf32>
    %267 = tpu.matmul %265, %266, %cst_178 {dimension_numbers = #tpu.dot_dimension_numbers<[1], [0], [0], [1], [0, 0, 1, 1], [], []>} : vector<1x128xbf16>, vector<128x128xbf16>, vector<1x128xf32> -> vector<1x128xf32>
    %268 = arith.addf %263, %267 : vector<1x128xf32>
    %269 = vector.extract_strided_slice %211 {offsets = [2, 0], sizes = [1, 128], strides = [1, 1]} : vector<5x128xf32> to vector<1x128xf32>
    %270 = arith.truncf %269 : vector<1x128xf32> to vector<1x128xbf16>
    %c112_179 = arith.constant 112 : index
    %c0_180 = arith.constant 0 : index
    %271 = vector.load %arg6[%c112_179, %c0_180] : memref<512x128xbf16, #tpu.memory_space<vmem>>, vector<128x128xbf16>
    %cst_181 = arith.constant dense<0.000000e+00> : vector<1x128xf32>
    %272 = tpu.matmul %270, %271, %cst_181 {dimension_numbers = #tpu.dot_dimension_numbers<[1], [0], [0], [1], [0, 0, 1, 1], [], []>} : vector<1x128xbf16>, vector<128x128xbf16>, vector<1x128xf32> -> vector<1x128xf32>
    %273 = arith.addf %268, %272 : vector<1x128xf32>
    %274 = vector.extract_strided_slice %211 {offsets = [3, 0], sizes = [1, 128], strides = [1, 1]} : vector<5x128xf32> to vector<1x128xf32>
    %275 = arith.truncf %274 : vector<1x128xf32> to vector<1x128xbf16>
    %c128_182 = arith.constant 128 : index
    %c0_183 = arith.constant 0 : index
    %276 = vector.load %arg6[%c128_182, %c0_183] : memref<512x128xbf16, #tpu.memory_space<vmem>>, vector<128x128xbf16>
    %cst_184 = arith.constant dense<0.000000e+00> : vector<1x128xf32>
    %277 = tpu.matmul %275, %276, %cst_184 {dimension_numbers = #tpu.dot_dimension_numbers<[1], [0], [0], [1], [0, 0, 1, 1], [], []>} : vector<1x128xbf16>, vector<128x128xbf16>, vector<1x128xf32> -> vector<1x128xf32>
    %278 = arith.addf %273, %277 : vector<1x128xf32>
    %279 = vector.extract_strided_slice %211 {offsets = [4, 0], sizes = [1, 128], strides = [1, 1]} : vector<5x128xf32> to vector<1x128xf32>
    %280 = arith.truncf %279 : vector<1x128xf32> to vector<1x128xbf16>
    %c144_185 = arith.constant 144 : index
    %c0_186 = arith.constant 0 : index
    %281 = vector.load %arg6[%c144_185, %c0_186] : memref<512x128xbf16, #tpu.memory_space<vmem>>, vector<128x128xbf16>
    %cst_187 = arith.constant dense<0.000000e+00> : vector<1x128xf32>
    %282 = tpu.matmul %280, %281, %cst_187 {dimension_numbers = #tpu.dot_dimension_numbers<[1], [0], [0], [1], [0, 0, 1, 1], [], []>} : vector<1x128xbf16>, vector<128x128xbf16>, vector<1x128xf32> -> vector<1x128xf32>
    %283 = arith.addf %278, %282 : vector<1x128xf32>
    %284 = vector.extract_strided_slice %218 {offsets = [0, 0], sizes = [1, 128], strides = [1, 1]} : vector<5x128xf32> to vector<1x128xf32>
    %285 = arith.truncf %284 : vector<1x128xf32> to vector<1x128xbf16>
    %c160_188 = arith.constant 160 : index
    %c0_189 = arith.constant 0 : index
    %286 = vector.load %arg6[%c160_188, %c0_189] : memref<512x128xbf16, #tpu.memory_space<vmem>>, vector<128x128xbf16>
    %cst_190 = arith.constant dense<0.000000e+00> : vector<1x128xf32>
    %287 = tpu.matmul %285, %286, %cst_190 {dimension_numbers = #tpu.dot_dimension_numbers<[1], [0], [0], [1], [0, 0, 1, 1], [], []>} : vector<1x128xbf16>, vector<128x128xbf16>, vector<1x128xf32> -> vector<1x128xf32>
    %288 = arith.addf %283, %287 : vector<1x128xf32>
    %289 = vector.extract_strided_slice %218 {offsets = [1, 0], sizes = [1, 128], strides = [1, 1]} : vector<5x128xf32> to vector<1x128xf32>
    %290 = arith.truncf %289 : vector<1x128xf32> to vector<1x128xbf16>
    %c176_191 = arith.constant 176 : index
    %c0_192 = arith.constant 0 : index
    %291 = vector.load %arg6[%c176_191, %c0_192] : memref<512x128xbf16, #tpu.memory_space<vmem>>, vector<128x128xbf16>
    %cst_193 = arith.constant dense<0.000000e+00> : vector<1x128xf32>
    %292 = tpu.matmul %290, %291, %cst_193 {dimension_numbers = #tpu.dot_dimension_numbers<[1], [0], [0], [1], [0, 0, 1, 1], [], []>} : vector<1x128xbf16>, vector<128x128xbf16>, vector<1x128xf32> -> vector<1x128xf32>
    %293 = arith.addf %288, %292 : vector<1x128xf32>
    %294 = vector.extract_strided_slice %218 {offsets = [2, 0], sizes = [1, 128], strides = [1, 1]} : vector<5x128xf32> to vector<1x128xf32>
    %295 = arith.truncf %294 : vector<1x128xf32> to vector<1x128xbf16>
    %c192_194 = arith.constant 192 : index
    %c0_195 = arith.constant 0 : index
    %296 = vector.load %arg6[%c192_194, %c0_195] : memref<512x128xbf16, #tpu.memory_space<vmem>>, vector<128x128xbf16>
    %cst_196 = arith.constant dense<0.000000e+00> : vector<1x128xf32>
    %297 = tpu.matmul %295, %296, %cst_196 {dimension_numbers = #tpu.dot_dimension_numbers<[1], [0], [0], [1], [0, 0, 1, 1], [], []>} : vector<1x128xbf16>, vector<128x128xbf16>, vector<1x128xf32> -> vector<1x128xf32>
    %298 = arith.addf %293, %297 : vector<1x128xf32>
    %299 = vector.extract_strided_slice %218 {offsets = [3, 0], sizes = [1, 128], strides = [1, 1]} : vector<5x128xf32> to vector<1x128xf32>
    %300 = arith.truncf %299 : vector<1x128xf32> to vector<1x128xbf16>
    %c208_197 = arith.constant 208 : index
    %c0_198 = arith.constant 0 : index
    %301 = vector.load %arg6[%c208_197, %c0_198] : memref<512x128xbf16, #tpu.memory_space<vmem>>, vector<128x128xbf16>
    %cst_199 = arith.constant dense<0.000000e+00> : vector<1x128xf32>
    %302 = tpu.matmul %300, %301, %cst_199 {dimension_numbers = #tpu.dot_dimension_numbers<[1], [0], [0], [1], [0, 0, 1, 1], [], []>} : vector<1x128xbf16>, vector<128x128xbf16>, vector<1x128xf32> -> vector<1x128xf32>
    %303 = arith.addf %298, %302 : vector<1x128xf32>
    %304 = vector.extract_strided_slice %218 {offsets = [4, 0], sizes = [1, 128], strides = [1, 1]} : vector<5x128xf32> to vector<1x128xf32>
    %305 = arith.truncf %304 : vector<1x128xf32> to vector<1x128xbf16>
    %c224_200 = arith.constant 224 : index
    %c0_201 = arith.constant 0 : index
    %306 = vector.load %arg6[%c224_200, %c0_201] : memref<512x128xbf16, #tpu.memory_space<vmem>>, vector<128x128xbf16>
    %cst_202 = arith.constant dense<0.000000e+00> : vector<1x128xf32>
    %307 = tpu.matmul %305, %306, %cst_202 {dimension_numbers = #tpu.dot_dimension_numbers<[1], [0], [0], [1], [0, 0, 1, 1], [], []>} : vector<1x128xbf16>, vector<128x128xbf16>, vector<1x128xf32> -> vector<1x128xf32>
    %308 = arith.addf %303, %307 : vector<1x128xf32>
    %309 = vector.extract_strided_slice %225 {offsets = [0, 0], sizes = [1, 128], strides = [1, 1]} : vector<5x128xf32> to vector<1x128xf32>
    %310 = arith.truncf %309 : vector<1x128xf32> to vector<1x128xbf16>
    %c240_203 = arith.constant 240 : index
    %c0_204 = arith.constant 0 : index
    %311 = vector.load %arg6[%c240_203, %c0_204] : memref<512x128xbf16, #tpu.memory_space<vmem>>, vector<128x128xbf16>
    %cst_205 = arith.constant dense<0.000000e+00> : vector<1x128xf32>
    %312 = tpu.matmul %310, %311, %cst_205 {dimension_numbers = #tpu.dot_dimension_numbers<[1], [0], [0], [1], [0, 0, 1, 1], [], []>} : vector<1x128xbf16>, vector<128x128xbf16>, vector<1x128xf32> -> vector<1x128xf32>
    %313 = arith.addf %308, %312 : vector<1x128xf32>
    %314 = vector.extract_strided_slice %225 {offsets = [1, 0], sizes = [1, 128], strides = [1, 1]} : vector<5x128xf32> to vector<1x128xf32>
    %315 = arith.truncf %314 : vector<1x128xf32> to vector<1x128xbf16>
    %c256_206 = arith.constant 256 : index
    %c0_207 = arith.constant 0 : index
    %316 = vector.load %arg6[%c256_206, %c0_207] : memref<512x128xbf16, #tpu.memory_space<vmem>>, vector<128x128xbf16>
    %cst_208 = arith.constant dense<0.000000e+00> : vector<1x128xf32>
    %317 = tpu.matmul %315, %316, %cst_208 {dimension_numbers = #tpu.dot_dimension_numbers<[1], [0], [0], [1], [0, 0, 1, 1], [], []>} : vector<1x128xbf16>, vector<128x128xbf16>, vector<1x128xf32> -> vector<1x128xf32>
    %318 = arith.addf %313, %317 : vector<1x128xf32>
    %319 = vector.extract_strided_slice %225 {offsets = [2, 0], sizes = [1, 128], strides = [1, 1]} : vector<5x128xf32> to vector<1x128xf32>
    %320 = arith.truncf %319 : vector<1x128xf32> to vector<1x128xbf16>
    %c272_209 = arith.constant 272 : index
    %c0_210 = arith.constant 0 : index
    %321 = vector.load %arg6[%c272_209, %c0_210] : memref<512x128xbf16, #tpu.memory_space<vmem>>, vector<128x128xbf16>
    %cst_211 = arith.constant dense<0.000000e+00> : vector<1x128xf32>
    %322 = tpu.matmul %320, %321, %cst_211 {dimension_numbers = #tpu.dot_dimension_numbers<[1], [0], [0], [1], [0, 0, 1, 1], [], []>} : vector<1x128xbf16>, vector<128x128xbf16>, vector<1x128xf32> -> vector<1x128xf32>
    %323 = arith.addf %318, %322 : vector<1x128xf32>
    %324 = vector.extract_strided_slice %225 {offsets = [3, 0], sizes = [1, 128], strides = [1, 1]} : vector<5x128xf32> to vector<1x128xf32>
    %325 = arith.truncf %324 : vector<1x128xf32> to vector<1x128xbf16>
    %c288_212 = arith.constant 288 : index
    %c0_213 = arith.constant 0 : index
    %326 = vector.load %arg6[%c288_212, %c0_213] : memref<512x128xbf16, #tpu.memory_space<vmem>>, vector<128x128xbf16>
    %cst_214 = arith.constant dense<0.000000e+00> : vector<1x128xf32>
    %327 = tpu.matmul %325, %326, %cst_214 {dimension_numbers = #tpu.dot_dimension_numbers<[1], [0], [0], [1], [0, 0, 1, 1], [], []>} : vector<1x128xbf16>, vector<128x128xbf16>, vector<1x128xf32> -> vector<1x128xf32>
    %328 = arith.addf %323, %327 : vector<1x128xf32>
    %329 = vector.extract_strided_slice %225 {offsets = [4, 0], sizes = [1, 128], strides = [1, 1]} : vector<5x128xf32> to vector<1x128xf32>
    %330 = arith.truncf %329 : vector<1x128xf32> to vector<1x128xbf16>
    %c304_215 = arith.constant 304 : index
    %c0_216 = arith.constant 0 : index
    %331 = vector.load %arg6[%c304_215, %c0_216] : memref<512x128xbf16, #tpu.memory_space<vmem>>, vector<128x128xbf16>
    %cst_217 = arith.constant dense<0.000000e+00> : vector<1x128xf32>
    %332 = tpu.matmul %330, %331, %cst_217 {dimension_numbers = #tpu.dot_dimension_numbers<[1], [0], [0], [1], [0, 0, 1, 1], [], []>} : vector<1x128xbf16>, vector<128x128xbf16>, vector<1x128xf32> -> vector<1x128xf32>
    %333 = arith.addf %328, %332 : vector<1x128xf32>
    %334 = vector.extract_strided_slice %232 {offsets = [0, 0], sizes = [1, 128], strides = [1, 1]} : vector<5x128xf32> to vector<1x128xf32>
    %335 = arith.truncf %334 : vector<1x128xf32> to vector<1x128xbf16>
    %c320_218 = arith.constant 320 : index
    %c0_219 = arith.constant 0 : index
    %336 = vector.load %arg6[%c320_218, %c0_219] : memref<512x128xbf16, #tpu.memory_space<vmem>>, vector<128x128xbf16>
    %cst_220 = arith.constant dense<0.000000e+00> : vector<1x128xf32>
    %337 = tpu.matmul %335, %336, %cst_220 {dimension_numbers = #tpu.dot_dimension_numbers<[1], [0], [0], [1], [0, 0, 1, 1], [], []>} : vector<1x128xbf16>, vector<128x128xbf16>, vector<1x128xf32> -> vector<1x128xf32>
    %338 = arith.addf %333, %337 : vector<1x128xf32>
    %339 = vector.extract_strided_slice %232 {offsets = [1, 0], sizes = [1, 128], strides = [1, 1]} : vector<5x128xf32> to vector<1x128xf32>
    %340 = arith.truncf %339 : vector<1x128xf32> to vector<1x128xbf16>
    %c336_221 = arith.constant 336 : index
    %c0_222 = arith.constant 0 : index
    %341 = vector.load %arg6[%c336_221, %c0_222] : memref<512x128xbf16, #tpu.memory_space<vmem>>, vector<128x128xbf16>
    %cst_223 = arith.constant dense<0.000000e+00> : vector<1x128xf32>
    %342 = tpu.matmul %340, %341, %cst_223 {dimension_numbers = #tpu.dot_dimension_numbers<[1], [0], [0], [1], [0, 0, 1, 1], [], []>} : vector<1x128xbf16>, vector<128x128xbf16>, vector<1x128xf32> -> vector<1x128xf32>
    %343 = arith.addf %338, %342 : vector<1x128xf32>
    %344 = vector.extract_strided_slice %232 {offsets = [2, 0], sizes = [1, 128], strides = [1, 1]} : vector<5x128xf32> to vector<1x128xf32>
    %345 = arith.truncf %344 : vector<1x128xf32> to vector<1x128xbf16>
    %c352_224 = arith.constant 352 : index
    %c0_225 = arith.constant 0 : index
    %346 = vector.load %arg6[%c352_224, %c0_225] : memref<512x128xbf16, #tpu.memory_space<vmem>>, vector<128x128xbf16>
    %cst_226 = arith.constant dense<0.000000e+00> : vector<1x128xf32>
    %347 = tpu.matmul %345, %346, %cst_226 {dimension_numbers = #tpu.dot_dimension_numbers<[1], [0], [0], [1], [0, 0, 1, 1], [], []>} : vector<1x128xbf16>, vector<128x128xbf16>, vector<1x128xf32> -> vector<1x128xf32>
    %348 = arith.addf %343, %347 : vector<1x128xf32>
    %349 = vector.extract_strided_slice %232 {offsets = [3, 0], sizes = [1, 128], strides = [1, 1]} : vector<5x128xf32> to vector<1x128xf32>
    %350 = arith.truncf %349 : vector<1x128xf32> to vector<1x128xbf16>
    %c368_227 = arith.constant 368 : index
    %c0_228 = arith.constant 0 : index
    %351 = vector.load %arg6[%c368_227, %c0_228] : memref<512x128xbf16, #tpu.memory_space<vmem>>, vector<128x128xbf16>
    %cst_229 = arith.constant dense<0.000000e+00> : vector<1x128xf32>
    %352 = tpu.matmul %350, %351, %cst_229 {dimension_numbers = #tpu.dot_dimension_numbers<[1], [0], [0], [1], [0, 0, 1, 1], [], []>} : vector<1x128xbf16>, vector<128x128xbf16>, vector<1x128xf32> -> vector<1x128xf32>
    %353 = arith.addf %348, %352 : vector<1x128xf32>
    %354 = vector.extract_strided_slice %232 {offsets = [4, 0], sizes = [1, 128], strides = [1, 1]} : vector<5x128xf32> to vector<1x128xf32>
    %355 = arith.truncf %354 : vector<1x128xf32> to vector<1x128xbf16>
    %c384_230 = arith.constant 384 : index
    %c0_231 = arith.constant 0 : index
    %356 = vector.load %arg6[%c384_230, %c0_231] : memref<512x128xbf16, #tpu.memory_space<vmem>>, vector<128x128xbf16>
    %cst_232 = arith.constant dense<0.000000e+00> : vector<1x128xf32>
    %357 = tpu.matmul %355, %356, %cst_232 {dimension_numbers = #tpu.dot_dimension_numbers<[1], [0], [0], [1], [0, 0, 1, 1], [], []>} : vector<1x128xbf16>, vector<128x128xbf16>, vector<1x128xf32> -> vector<1x128xf32>
    %358 = arith.addf %353, %357 : vector<1x128xf32>
    %c0_233 = arith.constant 0 : index
    %c0_234 = arith.constant 0 : index
    %359 = vector.load %arg7[%c0_233, %c0_234] : memref<1x128xf32, #tpu.memory_space<vmem>>, vector<1x128xf32>
    %360 = arith.addf %358, %359 : vector<1x128xf32>
    %cst_235 = arith.constant 0.000000e+00 : f32
    %361 = vector.broadcast %cst_235 : f32 to vector<1x128xf32>
    %362 = arith.maximumf %360, %361 : vector<1x128xf32>
    %363 = arith.truncf %362 : vector<1x128xf32> to vector<1x128xbf16>
    %c0_236 = arith.constant 0 : index
    %c0_237 = arith.constant 0 : index
    %364 = vector.load %arg8[%c0_236, %c0_237] : memref<128x128xbf16, #tpu.memory_space<vmem>>, vector<128x128xbf16>
    %cst_238 = arith.constant dense<0.000000e+00> : vector<1x128xf32>
    %365 = tpu.matmul %363, %364, %cst_238 {dimension_numbers = #tpu.dot_dimension_numbers<[1], [0], [0], [1], [0, 0, 1, 1], [], []>} : vector<1x128xbf16>, vector<128x128xbf16>, vector<1x128xf32> -> vector<1x128xf32>
    %c0_239 = arith.constant 0 : index
    %c0_240 = arith.constant 0 : index
    %366 = vector.load %arg9[%c0_239, %c0_240] : memref<1x128xf32, #tpu.memory_space<vmem>>, vector<1x128xf32>
    %367 = arith.addf %365, %366 : vector<1x128xf32>
    %cst_241 = arith.constant 0.000000e+00 : f32
    %368 = vector.broadcast %cst_241 : f32 to vector<1x128xf32>
    %369 = arith.maximumf %367, %368 : vector<1x128xf32>
    %370 = arith.truncf %369 : vector<1x128xf32> to vector<1x128xbf16>
    %c0_242 = arith.constant 0 : index
    %c0_243 = arith.constant 0 : index
    %371 = vector.load %arg10[%c0_242, %c0_243] : memref<128x128xbf16, #tpu.memory_space<vmem>>, vector<128x128xbf16>
    %cst_244 = arith.constant dense<0.000000e+00> : vector<1x128xf32>
    %372 = tpu.matmul %370, %371, %cst_244 {dimension_numbers = #tpu.dot_dimension_numbers<[1], [0], [0], [1], [0, 0, 1, 1], [], []>} : vector<1x128xbf16>, vector<128x128xbf16>, vector<1x128xf32> -> vector<1x128xf32>
    %c0_245 = arith.constant 0 : index
    %c0_246 = arith.constant 0 : index
    %373 = vector.load %arg11[%c0_245, %c0_246] : memref<1x128xf32, #tpu.memory_space<vmem>>, vector<1x128xf32>
    %374 = arith.addf %372, %373 : vector<1x128xf32>
    %375 = vector.shape_cast %374 : vector<1x128xf32> to vector<1x128xf32>
    %376 = vector.broadcast %375 : vector<1x128xf32> to vector<8x128xf32>
    %c0_247 = arith.constant 0 : index
    %c0_248 = arith.constant 0 : index
    %c0_249 = arith.constant 0 : index
    %377 = vector.load %arg12[%c0_247, %c0_248, %c0_249] : memref<1x8x128xf32, #tpu.memory_space<vmem>>, vector<1x8x128xf32>
    %378 = vector.shape_cast %377 : vector<1x8x128xf32> to vector<8x128xf32>
    %379 = vector.shape_cast %376 : vector<8x128xf32> to vector<1x8x128xf32>
    tpu.vector_store %arg12[%c0_247, %c0_248, %c0_249], %379 {strides = array<i32>} : memref<1x8x128xf32, #tpu.memory_space<vmem>>, vector<1x8x128xf32>,
    return
  }
  func.func @transform_0(%arg0: i32) -> (i32, i32) {
    %c0_i32 = arith.constant 0 : i32
    %c0_i32_0 = arith.constant 0 : i32
    return %arg0, %c0_i32 : i32, i32
  }
  func.func @transform_1(%arg0: i32) -> (i32, i32) {
    %c0_i32 = arith.constant 0 : i32
    %c0_i32_0 = arith.constant 0 : i32
    %c0_i32_1 = arith.constant 0 : i32
    return %c0_i32, %c0_i32_0 : i32, i32
  }
  func.func @transform_2(%arg0: i32) -> (i32, i32) {
    %c0_i32 = arith.constant 0 : i32
    %c0_i32_0 = arith.constant 0 : i32
    %c0_i32_1 = arith.constant 0 : i32
    return %c0_i32, %c0_i32_0 : i32, i32
  }
  func.func @transform_3(%arg0: i32) -> (i32, i32) {
    %c0_i32 = arith.constant 0 : i32
    %c0_i32_0 = arith.constant 0 : i32
    %c0_i32_1 = arith.constant 0 : i32
    return %c0_i32, %c0_i32_0 : i32, i32
  }
  func.func @transform_4(%arg0: i32) -> (i32, i32) {
    %c0_i32 = arith.constant 0 : i32
    %c0_i32_0 = arith.constant 0 : i32
    %c0_i32_1 = arith.constant 0 : i32
    return %c0_i32, %c0_i32_0 : i32, i32
  }
  func.func @transform_5(%arg0: i32) -> (i32, i32) {
    %c0_i32 = arith.constant 0 : i32
    %c0_i32_0 = arith.constant 0 : i32
    %c0_i32_1 = arith.constant 0 : i32
    return %c0_i32, %c0_i32_0 : i32, i32
  }
  func.func @transform_6(%arg0: i32) -> (i32, i32) {
    %c0_i32 = arith.constant 0 : i32
    %c0_i32_0 = arith.constant 0 : i32
    %c0_i32_1 = arith.constant 0 : i32
    return %c0_i32, %c0_i32_0 : i32, i32
  }
  func.func @transform_7(%arg0: i32) -> (i32, i32) {
    %c0_i32 = arith.constant 0 : i32
    %c0_i32_0 = arith.constant 0 : i32
    %c0_i32_1 = arith.constant 0 : i32
    return %c0_i32, %c0_i32_0 : i32, i32
  }
  func.func @transform_8(%arg0: i32) -> (i32, i32) {
    %c0_i32 = arith.constant 0 : i32
    %c0_i32_0 = arith.constant 0 : i32
    %c0_i32_1 = arith.constant 0 : i32
    return %c0_i32, %c0_i32_0 : i32, i32
  }
  func.func @transform_9(%arg0: i32) -> (i32, i32) {
    %c0_i32 = arith.constant 0 : i32
    %c0_i32_0 = arith.constant 0 : i32
    %c0_i32_1 = arith.constant 0 : i32
    return %c0_i32, %c0_i32_0 : i32, i32
  }
  func.func @transform_10(%arg0: i32) -> (i32, i32) {
    %c0_i32 = arith.constant 0 : i32
    %c0_i32_0 = arith.constant 0 : i32
    %c0_i32_1 = arith.constant 0 : i32
    return %c0_i32, %c0_i32_0 : i32, i32
  }
  func.func @transform_11(%arg0: i32) -> (i32, i32, i32) {
    %c0_i32 = arith.constant 0 : i32
    %c0_i32_0 = arith.constant 0 : i32
    %c0_i32_1 = arith.constant 0 : i32
    return %arg0, %c0_i32, %c0_i32_0 : i32, i32, i32
  }
}

</mosaic_0001>

<bundles_post_ra>
// kernel: net_forward.1
= control target key start
LH: loop header
LB: loop body
LE: loop exit
PB: predicated region body
PF: predicated region fallthrough
CT: control target
= control target key end

     0   :  { %s10327_s17 = smov 0   ;;  %s15158_s0 = inlined_call_operand.vmem [shape: bf16[1568,128], index: 0, kind: input, shape index: {}]   ;;  %s15159_s1 = inlined_call_operand.vmem [shape: bf16[128,128], index: 1, kind: input, shape index: {}]   ;;  %s15160_s2 = inlined_call_operand.vmem [shape: f32[1,128], index: 2, kind: input, shape index: {}]   ;;  %s15161_s3 = inlined_call_operand.vmem [shape: bf16[128,512], index: 3, kind: input, shape index: {}]   ;;  %s15162_s4 = inlined_call_operand.vmem [shape: f32[1,128], index: 4, kind: input, shape index: {}]   ;;  %s15163_s5 = inlined_call_operand.vmem [shape: bf16[512,128], index: 5, kind: input, shape index: {}]   ;;  %s15164_s6 = inlined_call_operand.vmem [shape: f32[1,128], index: 6, kind: input, shape index: {}]   ;;  %s15165_s7 = inlined_call_operand.vmem [shape: bf16[128,128], index: 7, kind: input, shape index: {}]   ;;  %s15166_s8 = inlined_call_operand.vmem [shape: f32[1,128], index: 8, kind: input, shape index: {}]   ;;  %s15167_s9 = inlined_call_operand.vmem [shape: bf16[128,128], index: 9, kind: input, shape index: {}]   ;;  %s15168_s10 = inlined_call_operand.vmem [shape: f32[1,128], index: 10, kind: input, shape index: {}]   ;;  %s15169_s11 = inlined_call_operand.vmem [shape: f32[2,8,128], index: 11, kind: output, shape index: {}]  }
   0x1 LB: > { %s10333_s18 = sadd.s32 4294967295, %s10255_s17   ;;  %p8424_p0 = scmp.ge.s32.totalorder %s10255_s17, 1  ;;  %s10255_s17 = sphi %s10327_s17, %s21_s17  }
   0x2   : > { %p338_p1 = scmp.lt.s32.totalorder %s10255_s17, 3 }
   0x4   : > { %p339_p2 = pnand %p8424_p0, %p338_p1 }
   0x6   : > { %342 = sbr.rel (%p339_p2) target bundleno = 2254 (0x8ce), region = 64 }
   0xd   : > { %v9870_v0 = vld [vmem:[%s15159_s1] sm:$0xff]   ;;  %v10257_v1 = vmov 0.0   ;;  %v9871_v2 = vld [vmem:[%s15159_s1 + $0x8] sm:$0xff]   ;;  %vm10258_vm0 = vmmov 0   ;;  %s377_s23 = smul.u32 98, %s10333_s18  ;;  %v9872_v3 = vld [vmem:[%s15159_s1 + $0x10] sm:$0xff]  }
   0xe   : > { %9100 = vmatprep.subr.bf16.mxu0 %v10257_v1  ;;  %417 = vst [vmem:[#allocation5] sm:$0xff] %v10257_v1  ;;  %418 = vst [vmem:[#allocation5 + $0x8] sm:$0xff] %v10257_v1  ;;  %9116 = vmatprep.mubr.msk.bf16.mxu0 %vm10258_vm0, %v10257_v1  ;;  %v9873_v4 = vld [vmem:[%s15159_s1 + $0x18] sm:$0xff]   ;;  %v9874_v5 = vld [vmem:[%s15159_s1 + $0x20] sm:$0xff]   ;;  %v15171_v35 = vmov 0   ;;  %vm2798_vm1 = vcmask 1046528  }
   0xf   : > { %419 = vst [vmem:[#allocation5 + $0x10] sm:$0xff] %v10257_v1  ;;  %420 = vst [vmem:[#allocation5 + $0x18] sm:$0xff] %v10257_v1  ;;  %9101 = vmatpush3.bf16.msra.mxu0 %v9870_v0  ;;  %p378_p3 = scmp.lt.s32.totalorder %s377_s23, 195  ;;  %v9875_v6 = vld [vmem:[%s15159_s1 + $0x28] sm:$0xff]   ;;  %v9876_v7 = vld [vmem:[%s15159_s1 + $0x30] sm:$0xff]   ;;  %2309 = vmatprep.mubr.bf16.mxu1 %v15171_v35  ;;  %s10260_s25 = smov 112  }
  0x10   : > { %421 = vst [vmem:[#allocation5 + $0x20] sm:$0xff] %v10257_v1  ;;  %422 = vst [vmem:[#allocation5 + $0x28] sm:$0xff] %v10257_v1  ;;  %9102 = vmatprep.subr.bf16.mxu0 %v10257_v1  ;;  %v9877_v8 = vld [vmem:[%s15159_s1 + $0x38] sm:$0xff]   ;;  %v9908_v23 = vld [vmem:[%s15161_s3 + $0x4] ss:$16 sps:$4 sm:$0xff]   ;;  %vm2924_vm2 = vcmask 1045504  }
  0x11   : > { %423 = vst [vmem:[#allocation5 + $0x30] sm:$0xff] %v10257_v1  ;;  %424 = vst [vmem:[#allocation5 + $0x38] sm:$0xff] %v10257_v1  ;;  %s15741_s23 = smov (!%p378_p3, %s377_s23), 195  ;;  %v9910_v24 = vld [vmem:[%s15161_s3] ss:$16 sps:$4 sm:$0xff]   ;;  %2277 = vmatprep.subr.bf16.mxu1 %v9908_v23  ;;  %s10261_s14 = smov 96  }
  0x12   : > { %425 = vst [vmem:[#allocation5 + $0x40] sm:$0xff] %v10257_v1  ;;  %426 = vst [vmem:[#allocation5 + $0x48] sm:$0xff] %v10257_v1  ;;  %s8425_s26 = sshll.u32 %s15741_s23, 2  ;;  %2278 = vmatpush1.bf16.msra.mxu1 %v9910_v24  ;;  %v9911_v25 = vld [vmem:[%s15161_s3 + $0x24] ss:$16 sps:$4 sm:$0xff]   ;;  %vm3050_vm3 = vcmask 1044480  }
  0x13   : > { %427 = vst [vmem:[#allocation5 + $0x50] sm:$0xff] %v10257_v1  ;;  %428 = vst [vmem:[#allocation5 + $0x58] sm:$0xff] %v10257_v1  ;;  %9103 = vmatpush3.bf16.msra.mxu0 %v9871_v2  ;;  %s10375_s29 = scalar_lea.vmem %s15158_s0, %s8425_s26  ;;  %v9913_v27 = vld [vmem:[%s15161_s3 + $0x20] ss:$16 sps:$4 sm:$0xff]   ;;  %2279 = vmatprep.subr.bf16.mxu1 %v9911_v25  ;;  %v9915_v28 = vld [vmem:[%s15161_s3 + $0x44] ss:$16 sps:$4 sm:$0xff]  }
  0x14   : > { %429 = vst [vmem:[#allocation5 + $0x60] sm:$0xff] %v10257_v1  ;;  %430 = vst [vmem:[#allocation5 + $0x68] sm:$0xff] %v10257_v1  ;;  %9104 = vmatprep.subr.bf16.mxu0 %v10257_v1  ;;  %v9878_v9 = vld [vmem:[%s10375_s29] sm:$0xff]   ;;  %v9879_v10 = vld [vmem:[%s10375_s29 + $0x8] sm:$0xff]   ;;  %s10262_s19 = smov 80   ;;  %vm3176_vm4 = vcmask 1043456  }
  0x15   : > { %431 = vst [vmem:[#allocation5 + $0x70] sm:$0xff] %v10257_v1  ;;  %432 = vst [vmem:[#allocation5 + $0x78] sm:$0xff] %v10257_v1  ;;  %v9880_v11 = vld [vmem:[%s10375_s29 + $0x10] sm:$0xff]   ;;  %v9881_v12 = vld [vmem:[%s10375_s29 + $0x18] sm:$0xff]   ;;  %s10263_s20 = smov 64   ;;  %s10265_s12 = smov 32  }
  0x16   : > { %433 = vst [vmem:[#allocation5 + $0x80] sm:$0xff] %v10257_v1  ;;  %434 = vst [vmem:[#allocation5 + $0x88] sm:$0xff] %v10257_v1  ;;  %v9882_v13 = vld [vmem:[%s10375_s29 + $0x20] sm:$0xff]   ;;  %v9883_v14 = vld [vmem:[%s10375_s29 + $0x28] sm:$0xff]   ;;  %2280 = vmatpush1.bf16.msra.mxu1 %v9913_v27  ;;  %s10266_s13 = smov 16   ;;  %vm5444_vm5 = vcmask 130048  }
  0x17   : > { %435 = vst [vmem:[#allocation5 + $0x90] sm:$0xff] %v10257_v1  ;;  %436 = vst [vmem:[#allocation5 + $0x98] sm:$0xff] %v10257_v1  ;;  %9105 = vmatpush3.bf16.msra.mxu0 %v9872_v3  ;;  %v9884_v15 = vld [vmem:[%s10375_s29 + $0x30] sm:$0xff]   ;;  %v9885_v16 = vld [vmem:[%s10375_s29 + $0x38] sm:$0xff]   ;;  %2281 = vmatprep.subr.bf16.mxu1 %v9915_v28  ;;  %p383_p4 = scmp.lt.s32.totalorder %s10333_s18, 1 }
  0x18   : > { %9106 = vmatprep.subr.bf16.mxu0 %v10257_v1  ;;  %v9886_v17 = vld [vmem:[%s10375_s29 + $0x40] sm:$0xff]   ;;  %v9887_v18 = vld [vmem:[%s10375_s29 + $0x48] sm:$0xff]   ;;  %v9888_v19 = vld [vmem:[%s10375_s29 + $0x50] sm:$0xff]   ;;  %388 = vst [vmem:[#allocation3] sm:$0xf] %v15171_v35 }
  0x19   : > { %v9889_v20 = vld [vmem:[%s10375_s29 + $0x58] sm:$0xff]   ;;  %v9890_v21 = vld [vmem:[%s10375_s29 + $0x60] sm:$0xff]   ;;  %v9891_v22 = vld [vmem:[%s10375_s29 + $0x68] sm:$0xff]   ;;  %389 = vst [vmem:[#allocation3 + $0x4] sm:$0xf] %v15171_v35  ;;  %s15743_s18 = smov (!%p383_p4, %s10333_s18), 1 }
  0x1a   : > { %v9892_v26 = vld [vmem:[%s10375_s29 + $0x70] sm:$0xff]   ;;  %v9893_v31 = vld [vmem:[%s10375_s29 + $0x78] sm:$0xff]   ;;  %390 = vst [vmem:[#allocation3 + $0x8] sm:$0xf] %v15171_v35  ;;  %391 = vst [vmem:[#allocation3 + $0xc] sm:$0xf] %v15171_v35 }
  0x1b   : > { %9107 = vmatpush3.bf16.msra.mxu0 %v9873_v4  ;;  %v9917_v29 = vld [vmem:[%s15161_s3 + $0x40] ss:$16 sps:$4 sm:$0xff]   ;;  %v9918_v30 = vld [vmem:[%s15161_s3 + $0x64] ss:$16 sps:$4 sm:$0xff]   ;;  %392 = vst [vmem:[#allocation3 + $0x10] sm:$0xf] %v15171_v35 }
  0x1c   : > { %9108 = vmatprep.subr.bf16.mxu0 %v10257_v1  ;;  %2282 = vmatpush1.bf16.msra.mxu1 %v9917_v29  ;;  %v9920_v32 = vld [vmem:[%s15161_s3 + $0x60] ss:$16 sps:$4 sm:$0xff]   ;;  %v9922_v33 = vld [vmem:[%s15161_s3 + $0x84] ss:$16 sps:$4 sm:$0xff]   ;;  %393 = vst [vmem:[#allocation3 + $0x14] sm:$0xf] %v15171_v35 }
  0x1d   : > { %2283 = vmatprep.subr.bf16.mxu1 %v9918_v30  ;;  %v9924_v34 = vld [vmem:[%s15161_s3 + $0x80] ss:$16 sps:$4 sm:$0xff]   ;;  %394 = vst [vmem:[#allocation3 + $0x18] sm:$0xf] %v15171_v35  ;;  %395 = vst [vmem:[#allocation3 + $0x1c] sm:$0xf] %v15171_v35 }
  0x1e   : > { %396 = vst [vmem:[#allocation3 + $0x20] sm:$0xf] %v15171_v35  ;;  %397 = vst [vmem:[#allocation3 + $0x24] sm:$0xf] %v15171_v35  ;;  %v10504_v36 = vld [vmem:[#allocation5] sm:$0xff]  ;;  %v9896_v45 = vld [vmem:[%s10375_s29 + $0x90] sm:$0xff]  }
  0x1f   : > { %9109 = vmatpush3.bf16.msra.mxu0 %v9874_v5  ;;  %398 = vst [vmem:[#allocation3 + $0x28] sm:$0xf] %v15171_v35  ;;  %399 = vst [vmem:[#allocation3 + $0x2c] sm:$0xf] %v15171_v35  ;;  %v9925_v37 = vld [vmem:[%s15161_s3 + $0xa4] ss:$16 sps:$4 sm:$0xff]  }
  0x20   : > { %9110 = vmatprep.subr.bf16.mxu0 %v10257_v1  ;;  %2284 = vmatpush1.bf16.msra.mxu1 %v9920_v32  ;;  %400 = vst [vmem:[#allocation3 + $0x30] sm:$0xf] %v15171_v35  ;;  %401 = vst [vmem:[#allocation3 + $0x34] sm:$0xf] %v15171_v35  ;;  %v9894_v38 = vld [vmem:[%s10375_s29 + $0x80] sm:$0xff]   ;;  %v9895_v43 = vld [vmem:[%s10375_s29 + $0x88] sm:$0xff]  }
  0x21   : > { %2285 = vmatprep.subr.bf16.mxu1 %v9922_v33  ;;  %402 = vst [vmem:[#allocation3 + $0x38] sm:$0xf] %v15171_v35  ;;  %403 = vst [vmem:[#allocation3 + $0x3c] sm:$0xf] %v15171_v35  ;;  %v9927_v39 = vld [vmem:[%s15161_s3 + $0xa0] ss:$16 sps:$4 sm:$0xff]  }
  0x22   : > { %404 = vst [vmem:[#allocation3 + $0x40] sm:$0xf] %v15171_v35  ;;  %405 = vst [vmem:[#allocation3 + $0x44] sm:$0xf] %v15171_v35  ;;  %v9929_v40 = vld [vmem:[%s15161_s3 + $0xc4] ss:$16 sps:$4 sm:$0xff]  }
  0x23   : > { %9111 = vmatpush3.bf16.msra.mxu0 %v9875_v6  ;;  %406 = vst [vmem:[#allocation3 + $0x48] sm:$0xf] %v15171_v35  ;;  %407 = vst [vmem:[#allocation3 + $0x4c] sm:$0xf] %v15171_v35  ;;  %v9931_v41 = vld [vmem:[%s15161_s3 + $0xc0] ss:$16 sps:$4 sm:$0xff]  }
  0x24   : > { %9112 = vmatprep.subr.bf16.mxu0 %v10257_v1  ;;  %408 = vst [vmem:[#allocation3 + $0x50] sm:$0xf] %v15171_v35  ;;  %409 = vst [vmem:[#allocation3 + $0x54] sm:$0xf] %v15171_v35  ;;  %2286 = vmatpush1.bf16.msra.mxu1 %v9924_v34  ;;  %v9932_v42 = vld [vmem:[%s15161_s3 + $0xe4] ss:$16 sps:$4 sm:$0xff]  }
  0x25   : > { %410 = vst [vmem:[#allocation3 + $0x58] sm:$0xf] %v15171_v35  ;;  %411 = vst [vmem:[#allocation3 + $0x5c] sm:$0xf] %v15171_v35  ;;  %2287 = vmatprep.subr.bf16.mxu1 %v9925_v37  ;;  %v9934_v44 = vld [vmem:[%s15161_s3 + $0xe0] ss:$16 sps:$4 sm:$0xff]  }
  0x26   : > { %412 = vst [vmem:[#allocation3 + $0x60] sm:$0xf] %v15171_v35  ;;  %413 = vst [vmem:[#allocation3 + $0x64] sm:$0xf] %v15171_v35  ;;  %v9897_v46 = vld [vmem:[%s10375_s29 + $0x98] sm:$0xff]   ;;  %v9898_v47 = vld [vmem:[%s10375_s29 + $0xa0] sm:$0xff]  }
  0x27   : > { %9113 = vmatpush3.bf16.msra.mxu0 %v9876_v7  ;;  %414 = vst [vmem:[#allocation3 + $0x68] sm:$0xf] %v15171_v35  ;;  %415 = vst [vmem:[#allocation3 + $0x6c] sm:$0xf] %v15171_v35  ;;  %v9899_v48 = vld [vmem:[%s10375_s29 + $0xa8] sm:$0xff]   ;;  %v9900_v49 = vld [vmem:[%s10375_s29 + $0xb0] sm:$0xff]  }
  0x28   : > { %9114 = vmatprep.subr.bf16.mxu0 %v10257_v1  ;;  %416 = vst [vmem:[#allocation3 + $0x70] sm:$0xf] %v15171_v35  ;;  %2288 = vmatpush1.bf16.msra.mxu1 %v9927_v39  ;;  %v9901_v50 = vld [vmem:[%s10375_s29 + $0xb8] sm:$0xff]   ;;  %v9902_v51 = vld [vmem:[%s10375_s29 + $0xc0] sm:$0xff]   ;;  %v9903_v52 = vld [vmem:[%s10375_s29 + $0xc8] sm:$0xff]  }
  0x29   : > { %2289 = vmatprep.subr.bf16.mxu1 %v9929_v40  ;;  %v9904_v53 = vld [vmem:[%s10375_s29 + $0xd0] sm:$0xff]   ;;  %v10560_v54 = vld [vmem:[%s15160_s2] ss:$0 sm:$0xff]  ;;  %v9905_v58 = vld [vmem:[%s10375_s29 + $0xd8] sm:$0xff]  }
  0x2a   : > { %v9906_v3 = vld [vmem:[%s10375_s29 + $0xe0] sm:$0xff]   ;;  %v9921_v40 = vld [vmem:[%s10375_s29 + $0xf8] sm:$0xff]  }
  0x2b   : > { %9115 = vmatpush3.bf16.msra.mxu0 %v9877_v8 }
  0x2c   : > { %9412 = vmatprep.subr.bf16.mxu0 %v10257_v1  ;;  %2290 = vmatpush1.bf16.msra.mxu1 %v9931_v41 }
  0x2d   : > { %2291 = vmatprep.subr.bf16.mxu1 %v9932_v42 }
  0x2e   : > { %9117 = vmatmul.mubr.bf16.vlgmr.msra.gmra.mrb[0].mxu0 %v9878_v9 }
  0x2f   : > { %9120 = vmatprep.mubr.msk.bf16.mxu0 %vm10258_vm0, %v10257_v1 }
  0x30   : > { %2292 = vmatpush1.bf16.msra.mxu1 %v9934_v44 }
  0x36   : > { %9121 = vmatmul.mubr.bf16.gmra.mrb[4].mxu0 %v9879_v10 }
  0x37   : > { %9124 = vmatprep.mubr.msk.bf16.mxu0 %vm10258_vm0, %v10257_v1 }
  0x3e   : > { %9125 = vmatmul.mubr.bf16.gmra.mrb[8].mxu0 %v9880_v11 }
  0x3f   : > { %9128 = vmatprep.mubr.msk.bf16.mxu0 %vm10258_vm0, %v10257_v1 }
  0x46   : > { %9129 = vmatmul.mubr.bf16.gmra.mrb[12].mxu0 %v9881_v12  ;;  %v9907_v12 = vld [vmem:[%s10375_s29 + $0xe8] sm:$0xff]  }
  0x47   : > { %9132 = vmatprep.mubr.msk.bf16.mxu0 %vm10258_vm0, %v10257_v1 }
  0x4e   : > { %9133 = vmatmul.mubr.bf16.gmra.mrb[16].mxu0 %v9882_v13 }
  0x4f   : > { %9136 = vmatprep.mubr.msk.bf16.mxu0 %vm10258_vm0, %v10257_v1 }
  0x56   : > { %9137 = vmatmul.mubr.bf16.gmra.mrb[20].mxu0 %v9883_v14 }
  0x57   : > { %9140 = vmatprep.mubr.msk.bf16.mxu0 %vm10258_vm0, %v10257_v1 }
  0x5e   : > { %9141 = vmatmul.mubr.bf16.gmra.mrb[24].mxu0 %v9884_v15 }
  0x5f   : > { %9144 = vmatprep.mubr.msk.bf16.mxu0 %vm10258_vm0, %v10257_v1 }
  0x66   : > { %9145 = vmatmul.mubr.bf16.gmra.mrb[28].mxu0 %v9885_v16 }
  0x67   : > { %9148 = vmatprep.mubr.msk.bf16.mxu0 %vm10258_vm0, %v10257_v1 }
  0x6e   : > { %9149 = vmatmul.mubr.bf16.gmra.mrb[32].mxu0 %v9886_v17 }
  0x6f   : > { %9152 = vmatprep.mubr.msk.bf16.mxu0 %vm10258_vm0, %v10257_v1 }
  0x76   : > { %9153 = vmatmul.mubr.bf16.gmra.mrb[36].mxu0 %v9887_v18 }
  0x77   : > { %9156 = vmatprep.mubr.msk.bf16.mxu0 %vm10258_vm0, %v10257_v1 }
  0x7e   : > { %9157 = vmatmul.mubr.bf16.gmra.mrb[40].mxu0 %v9888_v19 }
  0x7f   : > { %9160 = vmatprep.mubr.msk.bf16.mxu0 %vm10258_vm0, %v10257_v1 }
  0x86   : > { %9161 = vmatmul.mubr.bf16.gmra.mrb[44].mxu0 %v9889_v20 }
  0x87   : > { %9164 = vmatprep.mubr.msk.bf16.mxu0 %vm10258_vm0, %v10257_v1 }
  0x8e   : > { %9165 = vmatmul.mubr.bf16.gmra.mrb[48].mxu0 %v9890_v21  ;;  %v9914_v21 = vld [vmem:[%s10375_s29 + $0xf0] sm:$0xff]  }
  0x8f   : > { %9168 = vmatprep.mubr.msk.bf16.mxu0 %vm10258_vm0, %v10257_v1 }
  0x96   : > { %9169 = vmatmul.mubr.bf16.gmra.mrb[52].mxu0 %v9891_v22 }
  0x97   : > { %9172 = vmatprep.mubr.msk.bf16.mxu0 %vm10258_vm0, %v10257_v1 }
  0x9e   : > { %9173 = vmatmul.mubr.bf16.gmra.mrb[56].mxu0 %v9892_v26 }
  0x9f   : > { %9176 = vmatprep.mubr.msk.bf16.mxu0 %vm10258_vm0, %v10257_v1 }
  0xa6   : > { %9177 = vmatmul.mubr.bf16.gmra.mrb[60].mxu0 %v9893_v31 }
  0xa7   : > { %9180 = vmatprep.mubr.msk.bf16.mxu0 %vm10258_vm0, %v10504_v36 }
  0xae   : > { %9181 = vmatmul.mubr.bf16.gmra.mrb[64].mxu0 %v9894_v38 }
  0xaf   : > { %9184 = vmatprep.mubr.msk.bf16.mxu0 %vm10258_vm0, %v10504_v36 }
  0xb6   : > { %9185 = vmatmul.mubr.bf16.gmra.mrb[68].mxu0 %v9895_v43 }
  0xb7   : > { %9188 = vmatprep.mubr.msk.bf16.mxu0 %vm10258_vm0, %v10504_v36 }
  0xbe   : > { %9189 = vmatmul.mubr.bf16.gmra.mrb[72].mxu0 %v9896_v45 }
  0xbf   : > { %9192 = vmatprep.mubr.msk.bf16.mxu0 %vm10258_vm0, %v10504_v36 }
  0xc6   : > { %9193 = vmatmul.mubr.bf16.gmra.mrb[76].mxu0 %v9897_v46 }
  0xc7   : > { %9196 = vmatprep.mubr.msk.bf16.mxu0 %vm10258_vm0, %v10504_v36 }
  0xce   : > { %9197 = vmatmul.mubr.bf16.gmra.mrb[80].mxu0 %v9898_v47 }
  0xcf   : > { %9200 = vmatprep.mubr.msk.bf16.mxu0 %vm10258_vm0, %v10504_v36 }
  0xd6   : > { %9201 = vmatmul.mubr.bf16.gmra.mrb[84].mxu0 %v9899_v48 }
  0xd7   : > { %9204 = vmatprep.mubr.msk.bf16.mxu0 %vm10258_vm0, %v10504_v36 }
  0xde   : > { %9205 = vmatmul.mubr.bf16.gmra.mrb[88].mxu0 %v9900_v49 }
  0xdf   : > { %9208 = vmatprep.mubr.msk.bf16.mxu0 %vm10258_vm0, %v10504_v36 }
  0xe6   : > { %9209 = vmatmul.mubr.bf16.gmra.mrb[92].mxu0 %v9901_v50 }
  0xe7   : > { %9212 = vmatprep.mubr.msk.bf16.mxu0 %vm10258_vm0, %v10504_v36 }
  0xee   : > { %9213 = vmatmul.mubr.bf16.gmra.mrb[96].mxu0 %v9902_v51 }
  0xef   : > { %9216 = vmatprep.mubr.msk.bf16.mxu0 %vm10258_vm0, %v10504_v36 }
  0xf6   : > { %9217 = vmatmul.mubr.bf16.gmra.mrb[100].mxu0 %v9903_v52 }
  0xf7   : > { %9220 = vmatprep.mubr.msk.bf16.mxu0 %vm10258_vm0, %v10504_v36 }
  0xfe   : > { %9221 = vmatmul.mubr.bf16.gmra.mrb[104].mxu0 %v9904_v53 }
  0xff   : > { %9224 = vmatprep.mubr.msk.bf16.mxu0 %vm10258_vm0, %v10504_v36 }
 0x101   : > { %v934_v55 = vpop.f32.mrb[0].mxu0 }
 0x102   : > { %v935_v56 = vadd.f32 %v10560_v54, %v934_v55  ;;  %v9118_v57 = vpop.f32.mrb[1].mxu0 }
 0x103   : > { %v937_v59 = vpop.f32.mrb[2].mxu0 }
 0x104   : > { %v1325_v60 = vmax.f32 %v935_v56, 0.0  ;;  %v938_v61 = vadd.f32 %v10560_v54, %v937_v59  ;;  %v9119_v62 = vpop.f32.mrb[3].mxu0 }
 0x106   : > { %1423 = vst [vmem:[#allocation2] sm:$0xff] %v1325_v60  ;;  %v1326_v63 = vmax.f32 %v938_v61, 0.0  ;;  %9225 = vmatmul.mubr.bf16.gmra.mrb[108].mxu0 %v9905_v58  ;;  %v9928_v58 = vld [vmem:[%s10375_s29 + $0x100] sm:$0xff]  }
 0x107   : > { %9228 = vmatprep.mubr.msk.bf16.mxu0 %vm10258_vm0, %v10504_v36 }
 0x108   : > { %1424 = vst [vmem:[#allocation2 + $0x8] sm:$0xff] %v1326_v63 }
 0x109   : > { %v942_v0 = vpop.f32.mrb[4].mxu0 }
 0x10a   : > { %v943_v1 = vadd.f32 %v10560_v54, %v942_v0  ;;  %v9122_v2 = vpop.f32.mrb[5].mxu0 }
 0x10b   : > { %v945_v4 = vpop.f32.mrb[6].mxu0 }
 0x10c   : > { %v1327_v5 = vmax.f32 %v943_v1, 0.0  ;;  %v946_v6 = vadd.f32 %v10560_v54, %v945_v4  ;;  %v9123_v7 = vpop.f32.mrb[7].mxu0 }
 0x10e   : > { %1425 = vst [vmem:[#allocation2 + $0x10] sm:$0xff] %v1327_v5  ;;  %v1328_v8 = vmax.f32 %v946_v6, 0.0  ;;  %9229 = vmatmul.mubr.bf16.gmra.mrb[112].mxu0 %v9906_v3  ;;  %v9935_v3 = vld [vmem:[%s10375_s29 + $0x108] sm:$0xff]  }
 0x10f   : > { %9232 = vmatprep.mubr.msk.bf16.mxu0 %vm10258_vm0, %v10504_v36  ;;  %v1521_v26 = vld [vmem:[#allocation2] ss:$2 sm:$0xff]  ;;  %v1525_v27 = vld [vmem:[#allocation2 + $0x1] ss:$2 sm:$0xff] }
 0x110   : > { %1426 = vst [vmem:[#allocation2 + $0x18] sm:$0xff] %v1328_v8  ;;  %v1536_v31 = vmax.f32 %v1521_v26, %v1525_v27 }
 0x111   : > { %v950_v9 = vpop.f32.mrb[8].mxu0 }
 0x112   : > { %v951_v10 = vadd.f32 %v10560_v54, %v950_v9  ;;  %v9126_v11 = vpop.f32.mrb[9].mxu0 }
 0x113   : > { %v953_v13 = vpop.f32.mrb[10].mxu0 }
 0x114   : > { %v1329_v14 = vmax.f32 %v951_v10, 0.0  ;;  %v954_v15 = vadd.f32 %v10560_v54, %v953_v13  ;;  %v9127_v16 = vpop.f32.mrb[11].mxu0 }
 0x116   : > { %1427 = vst [vmem:[#allocation2 + $0x20] sm:$0xff] %v1329_v14  ;;  %v1330_v17 = vmax.f32 %v954_v15, 0.0  ;;  %9233 = vmatmul.mubr.bf16.gmra.mrb[116].mxu0 %v9907_v12  ;;  %v9937_v14 = vld [vmem:[%s10375_s29 + $0x110] sm:$0xff]  }
 0x117   : > { %9236 = vmatprep.mubr.msk.bf16.mxu0 %vm10258_vm0, %v10504_v36  ;;  %v1523_v34 = vld [vmem:[#allocation2 + $0x10] ss:$2 sm:$0x3f]  ;;  %v1527_v41 = vld [vmem:[#allocation2 + $0x11] ss:$2 sm:$0x3f] }
 0x118   : > { %1428 = vst [vmem:[#allocation2 + $0x28] sm:$0xff] %v1330_v17  ;;  %v1537_v49 = vmax.f32 %v1523_v34, %v1527_v41 }
 0x119   : > { %v958_v18 = vpop.f32.mrb[12].mxu0 }
 0x11a   : > { %v959_v19 = vadd.f32 %v10560_v54, %v958_v18  ;;  %v9130_v20 = vpop.f32.mrb[13].mxu0 }
 0x11b   : > { %v961_v22 = vpop.f32.mrb[14].mxu0 }
 0x11c   : > { %v1331_v23 = vmax.f32 %v959_v19, 0.0  ;;  %v962_v24 = vadd.f32 %v10560_v54, %v961_v22  ;;  %v9131_v25 = vpop.f32.mrb[15].mxu0 }
 0x11e   : > { %1429 = vst [vmem:[#allocation2 + $0x30] sm:$0xff] %v1331_v23  ;;  %v1332_v28 = vmax.f32 %v962_v24, 0.0  ;;  %9237 = vmatmul.mubr.bf16.gmra.mrb[120].mxu0 %v9914_v21 }
 0x11f   : > { %v1529_v29 = vld [vmem:[#allocation2 + $0x1c] ss:$2 sm:$0xff]  ;;  %v1533_v30 = vld [vmem:[#allocation2 + $0x1d] ss:$2 sm:$0xff]  ;;  %9240 = vmatprep.mubr.msk.bf16.mxu0 %vm10258_vm0, %v10504_v36 }
 0x120   : > { %v1538_v32 = vmax.f32 %v1529_v29, %v1533_v30  ;;  %1430 = vst [vmem:[#allocation2 + $0x38] sm:$0xff] %v1332_v28 }
 0x121   : > { %v966_v33 = vpop.f32.mrb[16].mxu0 }
 0x122   : > { %v1540_v37 = vmax.f32 %v1536_v31, %v1538_v32  ;;  %v967_v38 = vadd.f32 %v10560_v54, %v966_v33  ;;  %v9134_v39 = vpop.f32.mrb[17].mxu0 }
 0x123   : > { %v969_v42 = vpop.f32.mrb[18].mxu0  ;;  %v9938_v39 = vld [vmem:[%s10375_s29 + $0x118] sm:$0xff]  }
 0x124   : > { %v8772_v43 = vpack.c.bf16 %v1540_v37, %v1540_v37  ;;  %v1333_v44 = vmax.f32 %v967_v38, 0.0  ;;  %v970_v45 = vadd.f32 %v10560_v54, %v969_v42  ;;  %v9135_v46 = vpop.f32.mrb[19].mxu0 }
 0x125   : > { %v1531_v47 = vld [vmem:[#allocation2 + $0x2c] ss:$2 sm:$0x3f]  ;;  %v1535_v48 = vld [vmem:[#allocation2 + $0x2d] ss:$2 sm:$0x3f] }
 0x126   : > { %v1539_v50 = vmax.f32 %v1531_v47, %v1535_v48  ;;  %1431 = vst [vmem:[#allocation2 + $0x40] sm:$0xff] %v1333_v44  ;;  %v1334_v51 = vmax.f32 %v970_v45, 0.0  ;;  %9241 = vmatmul.mubr.bf16.gmra.mrb[124].mxu0 %v9921_v40  ;;  %1550 = vst [vmem:[#allocation3] sm:$0xf] %v8772_v43 }
 0x127   : > { %9244 = vmatprep.mubr.msk.bf16.mxu0 %vm10258_vm0, %v10504_v36 }
 0x128   : > { %v1541_v52 = vmax.f32 %v1537_v49, %v1539_v50  ;;  %1432 = vst [vmem:[#allocation2 + $0x48] sm:$0xff] %v1334_v51  ;;  %v9939_v49 = vld [vmem:[%s10375_s29 + $0x120] sm:$0xff]  }
 0x129   : > { %v974_v53 = vpop.f32.mrb[20].mxu0 }
 0x12a   : > { %v8773_v55 = vpack.c.bf16 %v1541_v52, %v1541_v52  ;;  %v975_v56 = vadd.f32 %v10560_v54, %v974_v53  ;;  %v9138_v57 = vpop.f32.mrb[21].mxu0 }
 0x12b   : > { %v977_v59 = vpop.f32.mrb[22].mxu0 }
 0x12c   : > { %v1335_v60 = vmax.f32 %v975_v56, 0.0  ;;  %v978_v61 = vadd.f32 %v10560_v54, %v977_v59  ;;  %v9139_v62 = vpop.f32.mrb[23].mxu0  ;;  %1551 = vst [vmem:[#allocation3 + $0x4] sm:$0x7] %v8773_v55 }
 0x12d   : > { %v1553_v11 = vld [vmem:[#allocation2 + $0x38] ss:$2 sm:$0xff]  ;;  %v1557_v15 = vld [vmem:[#allocation2 + $0x39] ss:$2 sm:$0xff] }
 0x12e   : > { %1433 = vst [vmem:[#allocation2 + $0x50] sm:$0xff] %v1335_v60  ;;  %v1336_v63 = vmax.f32 %v978_v61, 0.0  ;;  %9245 = vmatmul.mubr.bf16.gmra.mrb[128].mxu0 %v9928_v58  ;;  %v1568_v24 = vmax.f32 %v1553_v11, %v1557_v15  ;;  %v9941_v60 = vld [vmem:[%s10375_s29 + $0x128] sm:$0xff]  }
 0x12f   : > { %9248 = vmatprep.mubr.msk.bf16.mxu0 %vm10258_vm0, %v10504_v36 }
 0x130   : > { %1434 = vst [vmem:[#allocation2 + $0x58] sm:$0xff] %v1336_v63 }
 0x131   : > { %v982_v0 = vpop.f32.mrb[24].mxu0 }
 0x132   : > { %v983_v1 = vadd.f32 %v10560_v54, %v982_v0  ;;  %v9142_v2 = vpop.f32.mrb[25].mxu0 }
 0x133   : > { %v985_v4 = vpop.f32.mrb[26].mxu0  ;;  %v9936_v5 = vld [vmem:[#allocation3] sm:$0xff]  }
 0x134   : > { %v1337_v6 = vmax.f32 %v983_v1, 0.0  ;;  %v986_v7 = vadd.f32 %v10560_v54, %v985_v4  ;;  %v9143_v8 = vpop.f32.mrb[27].mxu0  ;;  %2310 = vmatmul.mubr.bf16.vlgmr.msra.gmra.mrb[0].mxu1 %v9936_v5 }
 0x135   : > { %2319 = vmatprep.mubr.bf16.mxu1 %v15171_v35  ;;  %v1555_v16 = vld [vmem:[#allocation2 + $0x48] ss:$2 sm:$0x3f]  ;;  %v1559_v18 = vld [vmem:[#allocation2 + $0x49] ss:$2 sm:$0x3f] }
 0x136   : > { %1435 = vst [vmem:[#allocation2 + $0x60] sm:$0xff] %v1337_v6  ;;  %v1338_v9 = vmax.f32 %v986_v7, 0.0  ;;  %9249 = vmatmul.mubr.bf16.gmra.mrb[132].mxu0 %v9935_v3  ;;  %v1569_v29 = vmax.f32 %v1555_v16, %v1559_v18 }
 0x137   : > { %9252 = vmatprep.mubr.msk.bf16.mxu0 %vm10258_vm0, %v10504_v36 }
 0x138   : > { %1436 = vst [vmem:[#allocation2 + $0x68] sm:$0xff] %v1338_v9 }
 0x139   : > { %v990_v10 = vpop.f32.mrb[28].mxu0 }
 0x13a   : > { %v991_v12 = vadd.f32 %v10560_v54, %v990_v10  ;;  %v9146_v13 = vpop.f32.mrb[29].mxu0 }
 0x13b   : > { %v993_v17 = vpop.f32.mrb[30].mxu0 }
 0x13c   : > { %v1339_v19 = vmax.f32 %v991_v12, 0.0  ;;  %v994_v20 = vadd.f32 %v10560_v54, %v993_v17  ;;  %v9147_v21 = vpop.f32.mrb[31].mxu0  ;;  %v9942_v12 = vld [vmem:[%s10375_s29 + $0x130] sm:$0xff]  }
 0x13d   : > { %v1561_v22 = vld [vmem:[#allocation2 + $0x54] ss:$2 sm:$0xff]  ;;  %v1565_v23 = vld [vmem:[#allocation2 + $0x55] ss:$2 sm:$0xff] }
 0x13e   : > { %v1570_v25 = vmax.f32 %v1561_v22, %v1565_v23  ;;  %1437 = vst [vmem:[#allocation2 + $0x70] sm:$0xff] %v1339_v19  ;;  %v1340_v26 = vmax.f32 %v994_v20, 0.0  ;;  %9253 = vmatmul.mubr.bf16.gmra.mrb[136].mxu0 %v9937_v14 }
 0x13f   : > { %v1563_v27 = vld [vmem:[#allocation2 + $0x64] ss:$2 sm:$0x3f]  ;;  %v1567_v28 = vld [vmem:[#allocation2 + $0x65] ss:$2 sm:$0x3f]  ;;  %9256 = vmatprep.mubr.msk.bf16.mxu0 %vm10258_vm0, %v10504_v36 }
 0x140   : > { %v1572_v30 = vmax.f32 %v1568_v24, %v1570_v25  ;;  %v1571_v31 = vmax.f32 %v1563_v27, %v1567_v28  ;;  %1438 = vst [vmem:[#allocation2 + $0x78] sm:$0xff] %v1340_v26 }
 0x141   : > { %v998_v32 = vpop.f32.mrb[32].mxu0 }
 0x142   : > { %v8774_v33 = vpack.c.bf16 %v1572_v30, %v1572_v30  ;;  %v1573_v34 = vmax.f32 %v1569_v29, %v1571_v31  ;;  %v999_v37 = vadd.f32 %v10560_v54, %v998_v32  ;;  %v9150_v38 = vpop.f32.mrb[33].mxu0  ;;  %v9943_v30 = vld [vmem:[%s10375_s29 + $0x138] sm:$0xff]  }
 0x143   : > { %v1001_v40 = vpop.f32.mrb[34].mxu0 }
 0x144   : > { %v8775_v41 = vpack.c.bf16 %v1573_v34, %v1573_v34  ;;  %1582 = vst [vmem:[#allocation3 + $0x8] sm:$0xf] %v8774_v33  ;;  %v1341_v42 = vmax.f32 %v999_v37, 0.0  ;;  %v1002_v43 = vadd.f32 %v10560_v54, %v1001_v40  ;;  %v9151_v44 = vpop.f32.mrb[35].mxu0 }
 0x146   : > { %1583 = vst [vmem:[#allocation3 + $0xc] sm:$0x7] %v8775_v41  ;;  %1439 = vst [vmem:[#allocation2 + $0x80] sm:$0xff] %v1341_v42  ;;  %v1342_v45 = vmax.f32 %v1002_v43, 0.0  ;;  %9257 = vmatmul.mubr.bf16.gmra.mrb[140].mxu0 %v9938_v39  ;;  %v9944_v41 = vld [vmem:[%s10375_s29 + $0x140] sm:$0xff]  }
 0x147   : > { %9260 = vmatprep.mubr.msk.bf16.mxu0 %vm10258_vm0, %v10504_v36  ;;  %v1585_v1 = vld [vmem:[#allocation2 + $0x70] ss:$2 sm:$0xff]  ;;  %v1589_v2 = vld [vmem:[#allocation2 + $0x71] ss:$2 sm:$0xff] }
 0x148   : > { %1440 = vst [vmem:[#allocation2 + $0x88] sm:$0xff] %v1342_v45  ;;  %v1600_v6 = vmax.f32 %v1585_v1, %v1589_v2 }
 0x149   : > { %v1006_v46 = vpop.f32.mrb[36].mxu0 }
 0x14a   : > { %v1007_v47 = vadd.f32 %v10560_v54, %v1006_v46  ;;  %v9154_v48 = vpop.f32.mrb[37].mxu0 }
 0x14b   : > { %v1009_v50 = vpop.f32.mrb[38].mxu0 }
 0x14c   : > { %v1343_v51 = vmax.f32 %v1007_v47, 0.0  ;;  %v1010_v52 = vadd.f32 %v10560_v54, %v1009_v50  ;;  %v9155_v53 = vpop.f32.mrb[39].mxu0  ;;  %v9946_v50 = vld [vmem:[%s10375_s29 + $0x148] sm:$0xff]  }
 0x14d   : > { %v9940_v55 = vld [vmem:[#allocation3 + $0x8] sm:$0xff]  }
 0x14e   : > { %1441 = vst [vmem:[#allocation2 + $0x90] sm:$0xff] %v1343_v51  ;;  %v1344_v56 = vmax.f32 %v1010_v52, 0.0  ;;  %9261 = vmatmul.mubr.bf16.gmra.mrb[144].mxu0 %v9939_v49  ;;  %2320 = vmatmul.mubr.bf16.gmra.mrb[4].mxu1 %v9940_v55 }
 0x14f   : > { %9264 = vmatprep.mubr.msk.bf16.mxu0 %vm10258_vm0, %v10504_v36  ;;  %2329 = vmatprep.mubr.bf16.mxu1 %v15171_v35  ;;  %v1587_v9 = vld [vmem:[#allocation2 + $0x80] ss:$2 sm:$0x3f]  ;;  %v1591_v14 = vld [vmem:[#allocation2 + $0x81] ss:$2 sm:$0x3f] }
 0x150   : > { %1442 = vst [vmem:[#allocation2 + $0x98] sm:$0xff] %v1344_v56  ;;  %v1601_v22 = vmax.f32 %v1587_v9, %v1591_v14 }
 0x151   : > { %v1014_v57 = vpop.f32.mrb[40].mxu0 }
 0x152   : > { %v1015_v58 = vadd.f32 %v10560_v54, %v1014_v57  ;;  %v9158_v59 = vpop.f32.mrb[41].mxu0 }
 0x153   : > { %v1017_v61 = vpop.f32.mrb[42].mxu0 }
 0x154   : > { %v1345_v62 = vmax.f32 %v1015_v58, 0.0  ;;  %v1018_v63 = vadd.f32 %v10560_v54, %v1017_v61  ;;  %v9159_v0 = vpop.f32.mrb[43].mxu0 }
 0x156   : > { %1443 = vst [vmem:[#allocation2 + $0xa0] sm:$0xff] %v1345_v62  ;;  %v1346_v3 = vmax.f32 %v1018_v63, 0.0  ;;  %9265 = vmatmul.mubr.bf16.gmra.mrb[148].mxu0 %v9941_v60 }
 0x157   : > { %v1593_v4 = vld [vmem:[#allocation2 + $0x8c] ss:$2 sm:$0xff]  ;;  %v1597_v5 = vld [vmem:[#allocation2 + $0x8d] ss:$2 sm:$0xff]  ;;  %9268 = vmatprep.mubr.msk.bf16.mxu0 %vm10258_vm0, %v10504_v36 }
 0x158   : > { %v1602_v7 = vmax.f32 %v1593_v4, %v1597_v5  ;;  %1444 = vst [vmem:[#allocation2 + $0xa8] sm:$0xff] %v1346_v3 }
 0x159   : > { %v1022_v8 = vpop.f32.mrb[44].mxu0 }
 0x15a   : > { %v1604_v10 = vmax.f32 %v1600_v6, %v1602_v7  ;;  %v1023_v11 = vadd.f32 %v10560_v54, %v1022_v8  ;;  %v9162_v13 = vpop.f32.mrb[45].mxu0 }
 0x15b   : > { %v1025_v15 = vpop.f32.mrb[46].mxu0 }
 0x15c   : > { %v8776_v16 = vpack.c.bf16 %v1604_v10, %v1604_v10  ;;  %v1347_v17 = vmax.f32 %v1023_v11, 0.0  ;;  %v1026_v18 = vadd.f32 %v10560_v54, %v1025_v15  ;;  %v9163_v19 = vpop.f32.mrb[47].mxu0 }
 0x15d   : > { %v1595_v20 = vld [vmem:[#allocation2 + $0x9c] ss:$2 sm:$0x3f]  ;;  %v1599_v21 = vld [vmem:[#allocation2 + $0x9d] ss:$2 sm:$0x3f] }
 0x15e   : > { %1614 = vst [vmem:[#allocation3 + $0x10] sm:$0xf] %v8776_v16  ;;  %v1603_v23 = vmax.f32 %v1595_v20, %v1599_v21  ;;  %1445 = vst [vmem:[#allocation2 + $0xb0] sm:$0xff] %v1347_v17  ;;  %9269 = vmatmul.mubr.bf16.gmra.mrb[152].mxu0 %v9942_v12  ;;  %v1348_v24 = vmax.f32 %v1026_v18, 0.0  ;;  %v9947_v12 = vld [vmem:[%s10375_s29 + $0x150] sm:$0xff]  }
 0x15f   : > { %9272 = vmatprep.mubr.msk.bf16.mxu0 %vm10258_vm0, %v10504_v36 }
 0x160   : > { %v1605_v25 = vmax.f32 %v1601_v22, %v1603_v23  ;;  %1446 = vst [vmem:[#allocation2 + $0xb8] sm:$0xff] %v1348_v24  ;;  %v9948_v22 = vld [vmem:[%s10375_s29 + $0x158] sm:$0xff]  }
 0x161   : > { %v1030_v26 = vpop.f32.mrb[48].mxu0 }
 0x162   : > { %v8777_v27 = vpack.c.bf16 %v1605_v25, %v1605_v25  ;;  %v1031_v28 = vadd.f32 %v10560_v54, %v1030_v26  ;;  %v9166_v29 = vpop.f32.mrb[49].mxu0 }
 0x163   : > { %v1033_v31 = vpop.f32.mrb[50].mxu0 }
 0x164   : > { %1615 = vst [vmem:[#allocation3 + $0x14] sm:$0x7] %v8777_v27  ;;  %v1349_v32 = vmax.f32 %v1031_v28, 0.0  ;;  %v1034_v33 = vadd.f32 %v10560_v54, %v1033_v31  ;;  %v9167_v34 = vpop.f32.mrb[51].mxu0  ;;  %v9950_v31 = vld [vmem:[%s10375_s29 + $0x160] sm:$0xff]  }
 0x165   : > { %v1617_v49 = vld [vmem:[#allocation2 + $0xa8] ss:$2 sm:$0xff]  ;;  %v1621_v53 = vld [vmem:[#allocation2 + $0xa9] ss:$2 sm:$0xff] }
 0x166   : > { %1447 = vst [vmem:[#allocation2 + $0xc0] sm:$0xff] %v1349_v32  ;;  %9273 = vmatmul.mubr.bf16.gmra.mrb[156].mxu0 %v9943_v30  ;;  %v1350_v37 = vmax.f32 %v1034_v33, 0.0  ;;  %v1632_v63 = vmax.f32 %v1617_v49, %v1621_v53 }
 0x167   : > { %9276 = vmatprep.mubr.msk.bf16.mxu0 %vm10258_vm0, %v10504_v36 }
 0x168   : > { %1448 = vst [vmem:[#allocation2 + $0xc8] sm:$0xff] %v1350_v37 }
 0x169   : > { %v1038_v38 = vpop.f32.mrb[52].mxu0 }
 0x16a   : > { %v1039_v39 = vadd.f32 %v10560_v54, %v1038_v38  ;;  %v9170_v40 = vpop.f32.mrb[53].mxu0 }
 0x16b   : > { %v1041_v42 = vpop.f32.mrb[54].mxu0  ;;  %v9945_v43 = vld [vmem:[#allocation3 + $0x10] sm:$0xff]  }
 0x16c   : > { %v1351_v44 = vmax.f32 %v1039_v39, 0.0  ;;  %v1042_v45 = vadd.f32 %v10560_v54, %v1041_v42  ;;  %v9171_v46 = vpop.f32.mrb[55].mxu0  ;;  %2330 = vmatmul.mubr.bf16.gmra.mrb[8].mxu1 %v9945_v43 }
 0x16d   : > { %2339 = vmatprep.mubr.bf16.mxu1 %v15171_v35  ;;  %v1619_v55 = vld [vmem:[#allocation2 + $0xb8] ss:$2 sm:$0x3f]  ;;  %v1623_v57 = vld [vmem:[#allocation2 + $0xb9] ss:$2 sm:$0x3f] }
 0x16e   : > { %1449 = vst [vmem:[#allocation2 + $0xd0] sm:$0xff] %v1351_v44  ;;  %v1352_v47 = vmax.f32 %v1042_v45, 0.0  ;;  %9277 = vmatmul.mubr.bf16.gmra.mrb[160].mxu0 %v9944_v41  ;;  %v1633_v4 = vmax.f32 %v1619_v55, %v1623_v57  ;;  %v10656_v44 = vld [vmem:[#allocation5] sm:$0xff] }
 0x16f   : > { %9280 = vmatprep.mubr.msk.bf16.mxu0 %vm10258_vm0, %v10504_v36 }
 0x170   : > { %1450 = vst [vmem:[#allocation2 + $0xd8] sm:$0xff] %v1352_v47 }
 0x171   : > { %v1046_v48 = vpop.f32.mrb[56].mxu0 }
 0x172   : > { %v1047_v51 = vadd.f32 %v10560_v54, %v1046_v48  ;;  %v9174_v52 = vpop.f32.mrb[57].mxu0 }
 0x173   : > { %v1049_v56 = vpop.f32.mrb[58].mxu0 }
 0x174   : > { %v1353_v58 = vmax.f32 %v1047_v51, 0.0  ;;  %v1050_v59 = vadd.f32 %v10560_v54, %v1049_v56  ;;  %v9175_v60 = vpop.f32.mrb[59].mxu0 }
 0x175   : > { %v1625_v61 = vld [vmem:[#allocation2 + $0xc4] ss:$2 sm:$0xff]  ;;  %v1629_v62 = vld [vmem:[#allocation2 + $0xc5] ss:$2 sm:$0xff] }
 0x176   : > { %v1634_v0 = vmax.f32 %v1625_v61, %v1629_v62  ;;  %9281 = vmatmul.mubr.bf16.gmra.mrb[164].mxu0 %v9946_v50  ;;  %1451 = vst [vmem:[#allocation2 + $0xe0] sm:$0xff] %v1353_v58  ;;  %v1354_v1 = vmax.f32 %v1050_v59, 0.0  ;;  %v9951_v50 = vld [vmem:[%s10375_s29 + $0x168] sm:$0xff]  }
 0x177   : > { %v1627_v2 = vld [vmem:[#allocation2 + $0xd4] ss:$2 sm:$0x3f]  ;;  %v1631_v3 = vld [vmem:[#allocation2 + $0xd5] ss:$2 sm:$0x3f]  ;;  %9284 = vmatprep.mubr.msk.bf16.mxu0 %vm10258_vm0, %v10504_v36 }
 0x178   : > { %v1636_v5 = vmax.f32 %v1632_v63, %v1634_v0  ;;  %v1635_v6 = vmax.f32 %v1627_v2, %v1631_v3  ;;  %1452 = vst [vmem:[#allocation2 + $0xe8] sm:$0xff] %v1354_v1 }
 0x179   : > { %v1054_v7 = vpop.f32.mrb[60].mxu0 }
 0x17a   : > { %v8778_v8 = vpack.c.bf16 %v1636_v5, %v1636_v5  ;;  %v1637_v9 = vmax.f32 %v1633_v4, %v1635_v6  ;;  %v1055_v10 = vadd.f32 %v10560_v54, %v1054_v7  ;;  %v9178_v11 = vpop.f32.mrb[61].mxu0  ;;  %v9952_v5 = vld [vmem:[%s10375_s29 + $0x170] sm:$0xff]  }
 0x17b   : > { %v1057_v13 = vpop.f32.mrb[62].mxu0 }
 0x17c   : > { %1646 = vst [vmem:[#allocation3 + $0x18] sm:$0xf] %v8778_v8  ;;  %v8779_v14 = vpack.c.bf16 %v1637_v9, %v1637_v9  ;;  %v1355_v15 = vmax.f32 %v1055_v10, 0.0  ;;  %v1058_v16 = vadd.f32 %v10560_v54, %v1057_v13  ;;  %v9179_v17 = vpop.f32.mrb[63].mxu0 }
 0x17e   : > { %1647 = vst [vmem:[#allocation3 + $0x1c] sm:$0x7] %v8779_v14  ;;  %1453 = vst [vmem:[#allocation2 + $0xf0] sm:$0xff] %v1355_v15  ;;  %9285 = vmatmul.mubr.bf16.gmra.mrb[168].mxu0 %v9947_v12  ;;  %v1356_v18 = vmax.f32 %v1058_v16, 0.0  ;;  %v9953_v14 = vld [vmem:[%s10375_s29 + $0x178] sm:$0xff]  }
 0x17f   : > { %9288 = vmatprep.mubr.msk.bf16.mxu0 %vm10258_vm0, %v10504_v36  ;;  %v1649_v33 = vld [vmem:[#allocation2 + $0xe0] ss:$2 sm:$0xff]  ;;  %v1653_v34 = vld [vmem:[#allocation2 + $0xe1] ss:$2 sm:$0xff] }
 0x180   : > { %1454 = vst [vmem:[#allocation2 + $0xf8] sm:$0xff] %v1356_v18  ;;  %v1664_v41 = vmax.f32 %v1649_v33, %v1653_v34 }
 0x181   : > { %v1062_v19 = vpop.f32.mrb[64].mxu0 }
 0x182   : > { %v1063_v20 = vadd.f32 %v10560_v54, %v1062_v19  ;;  %v9182_v21 = vpop.f32.mrb[65].mxu0 }
 0x183   : > { %v1065_v23 = vpop.f32.mrb[66].mxu0  ;;  %v9955_v21 = vld [vmem:[%s10375_s29 + $0x180] sm:$0xff]   ;;  %s10264_s29 = smov 48  }
 0x184   : > { %v1357_v24 = vmax.f32 %v1063_v20, 0.0  ;;  %v1066_v25 = vadd.f32 %v10560_v54, %v1065_v23  ;;  %v9183_v26 = vpop.f32.mrb[67].mxu0 }
 0x185   : > { %v9949_v27 = vld [vmem:[#allocation3 + $0x18] sm:$0xff]  }
 0x186   : > { %1455 = vst [vmem:[#allocation2 + $0x100] sm:$0xff] %v1357_v24  ;;  %v1358_v28 = vmax.f32 %v1066_v25, 0.0  ;;  %9289 = vmatmul.mubr.bf16.gmra.mrb[172].mxu0 %v9948_v22  ;;  %2340 = vmatmul.mubr.bf16.gmra.mrb[12].mxu1 %v9949_v27 }
 0x187   : > { %9292 = vmatprep.mubr.msk.bf16.mxu0 %vm10258_vm0, %v10504_v36  ;;  %2349 = vmatprep.mubr.bf16.mxu1 %v15171_v35  ;;  %v1651_v45 = vld [vmem:[#allocation2 + $0xf0] ss:$2 sm:$0x3f]  ;;  %v1655_v47 = vld [vmem:[#allocation2 + $0xf1] ss:$2 sm:$0x3f] }
 0x188   : > { %1456 = vst [vmem:[#allocation2 + $0x108] sm:$0xff] %v1358_v28  ;;  %v1665_v55 = vmax.f32 %v1651_v45, %v1655_v47 }
 0x189   : > { %v1070_v29 = vpop.f32.mrb[68].mxu0 }
 0x18a   : > { %v1071_v30 = vadd.f32 %v10560_v54, %v1070_v29  ;;  %v9186_v32 = vpop.f32.mrb[69].mxu0 }
 0x18b   : > { %v1073_v37 = vpop.f32.mrb[70].mxu0 }
 0x18c   : > { %v1359_v38 = vmax.f32 %v1071_v30, 0.0  ;;  %v1074_v39 = vadd.f32 %v10560_v54, %v1073_v37  ;;  %v9187_v40 = vpop.f32.mrb[71].mxu0 }
 0x18e   : > { %1457 = vst [vmem:[#allocation2 + $0x110] sm:$0xff] %v1359_v38  ;;  %9293 = vmatmul.mubr.bf16.gmra.mrb[176].mxu0 %v9950_v31  ;;  %v1360_v36 = vmax.f32 %v1074_v39, 0.0 }
 0x18f   : > { %v1657_v42 = vld [vmem:[#allocation2 + $0xfc] ss:$2 sm:$0xff]  ;;  %v1661_v43 = vld [vmem:[#allocation2 + $0xfd] ss:$2 sm:$0xff]  ;;  %9296 = vmatprep.mubr.msk.bf16.mxu0 %vm10258_vm0, %v10656_v44 }
 0x190   : > { %v1666_v46 = vmax.f32 %v1657_v42, %v1661_v43  ;;  %1458 = vst [vmem:[#allocation2 + $0x118] sm:$0xff] %v1360_v36 }
 0x191   : > { %v1078_v48 = vpop.f32.mrb[72].mxu0 }
 0x192   : > { %v1668_v49 = vmax.f32 %v1664_v41, %v1666_v46  ;;  %v1079_v51 = vadd.f32 %v10560_v54, %v1078_v48  ;;  %v9190_v52 = vpop.f32.mrb[73].mxu0 }
 0x193   : > { %v1081_v53 = vpop.f32.mrb[74].mxu0 }
 0x194   : > { %v8780_v56 = vpack.c.bf16 %v1668_v49, %v1668_v49  ;;  %v1361_v57 = vmax.f32 %v1079_v51, 0.0  ;;  %v1082_v58 = vadd.f32 %v10560_v54, %v1081_v53  ;;  %v9191_v59 = vpop.f32.mrb[75].mxu0 }
 0x195   : > { %v1659_v60 = vld [vmem:[#allocation2 + $0x10c] ss:$2 sm:$0x3f]  ;;  %v1663_v61 = vld [vmem:[#allocation2 + $0x10d] ss:$2 sm:$0x3f] }
 0x196   : > { %1678 = vst [vmem:[#allocation3 + $0x20] sm:$0xf] %v8780_v56  ;;  %v1667_v62 = vmax.f32 %v1659_v60, %v1663_v61  ;;  %9297 = vmatmul.mubr.bf16.gmra.mrb[180].mxu0 %v9951_v50  ;;  %1459 = vst [vmem:[#allocation2 + $0x120] sm:$0xff] %v1361_v57  ;;  %v1362_v63 = vmax.f32 %v1082_v58, 0.0 }
 0x197   : > { %9300 = vmatprep.mubr.msk.bf16.mxu0 %vm10258_vm0, %v10656_v44 }
 0x198   : > { %v1669_v0 = vmax.f32 %v1665_v55, %v1667_v62  ;;  %1460 = vst [vmem:[#allocation2 + $0x128] sm:$0xff] %v1362_v63 }
 0x199   : > { %v1086_v1 = vpop.f32.mrb[76].mxu0 }
 0x19a   : > { %v8781_v2 = vpack.c.bf16 %v1669_v0, %v1669_v0  ;;  %v1087_v3 = vadd.f32 %v10560_v54, %v1086_v1  ;;  %v9194_v4 = vpop.f32.mrb[77].mxu0 }
 0x19b   : > { %v1089_v6 = vpop.f32.mrb[78].mxu0 }
 0x19c   : > { %1679 = vst [vmem:[#allocation3 + $0x24] sm:$0x7] %v8781_v2  ;;  %v1363_v7 = vmax.f32 %v1087_v3, 0.0  ;;  %v1090_v8 = vadd.f32 %v10560_v54, %v1089_v6  ;;  %v9195_v9 = vpop.f32.mrb[79].mxu0 }
 0x19d   : > { %v1681_v23 = vld [vmem:[#allocation2 + $0x118] ss:$2 sm:$0xff]  ;;  %v1685_v27 = vld [vmem:[#allocation2 + $0x119] ss:$2 sm:$0xff] }
 0x19e   : > { %1461 = vst [vmem:[#allocation2 + $0x130] sm:$0xff] %v1363_v7  ;;  %9301 = vmatmul.mubr.bf16.gmra.mrb[184].mxu0 %v9952_v5  ;;  %v1364_v10 = vmax.f32 %v1090_v8, 0.0  ;;  %v1696_v37 = vmax.f32 %v1681_v23, %v1685_v27 }
 0x19f   : > { %9304 = vmatprep.mubr.msk.bf16.mxu0 %vm10258_vm0, %v10656_v44 }
 0x1a0   : > { %1462 = vst [vmem:[#allocation2 + $0x138] sm:$0xff] %v1364_v10 }
 0x1a1   : > { %v1094_v11 = vpop.f32.mrb[80].mxu0 }
 0x1a2   : > { %v1095_v12 = vadd.f32 %v10560_v54, %v1094_v11  ;;  %v9198_v13 = vpop.f32.mrb[81].mxu0 }
 0x1a3   : > { %v1097_v15 = vpop.f32.mrb[82].mxu0  ;;  %v9954_v16 = vld [vmem:[#allocation3 + $0x20] sm:$0xff]  }
 0x1a4   : > { %v1365_v17 = vmax.f32 %v1095_v12, 0.0  ;;  %v1098_v18 = vadd.f32 %v10560_v54, %v1097_v15  ;;  %v9199_v19 = vpop.f32.mrb[83].mxu0  ;;  %2350 = vmatmul.mubr.bf16.gmra.mrb[16].mxu1 %v9954_v16 }
 0x1a5   : > { %2359 = vmatprep.mubr.bf16.mxu1 %v15171_v35  ;;  %v1683_v24 = vld [vmem:[#allocation2 + $0x128] ss:$2 sm:$0x3f]  ;;  %v1687_v28 = vld [vmem:[#allocation2 + $0x129] ss:$2 sm:$0x3f] }
 0x1a6   : > { %1463 = vst [vmem:[#allocation2 + $0x140] sm:$0xff] %v1365_v17  ;;  %v1366_v20 = vmax.f32 %v1098_v18, 0.0  ;;  %9305 = vmatmul.mubr.bf16.gmra.mrb[188].mxu0 %v9953_v14  ;;  %v1697_v38 = vmax.f32 %v1683_v24, %v1687_v28 }
 0x1a7   : > { %9308 = vmatprep.mubr.msk.bf16.mxu0 %vm10258_vm0, %v10656_v44 }
 0x1a8   : > { %1464 = vst [vmem:[#allocation2 + $0x148] sm:$0xff] %v1366_v20 }
 0x1a9   : > { %v1102_v22 = vpop.f32.mrb[84].mxu0 }
 0x1aa   : > { %v1103_v25 = vadd.f32 %v10560_v54, %v1102_v22  ;;  %v9202_v26 = vpop.f32.mrb[85].mxu0 }
 0x1ab   : > { %v1105_v29 = vpop.f32.mrb[86].mxu0 }
 0x1ac   : > { %v1367_v30 = vmax.f32 %v1103_v25, 0.0  ;;  %v1106_v31 = vadd.f32 %v10560_v54, %v1105_v29  ;;  %v9203_v32 = vpop.f32.mrb[87].mxu0 }
 0x1ad   : > { %v1689_v33 = vld [vmem:[#allocation2 + $0x134] ss:$2 sm:$0xff]  ;;  %v1693_v34 = vld [vmem:[#allocation2 + $0x135] ss:$2 sm:$0xff] }
 0x1ae   : > { %v1698_v39 = vmax.f32 %v1689_v33, %v1693_v34  ;;  %9309 = vmatmul.mubr.bf16.gmra.mrb[192].mxu0 %v9955_v21  ;;  %1465 = vst [vmem:[#allocation2 + $0x150] sm:$0xff] %v1367_v30  ;;  %v1368_v40 = vmax.f32 %v1106_v31, 0.0 }
 0x1af   : > { %v1691_v41 = vld [vmem:[#allocation2 + $0x144] ss:$2 sm:$0x3f]  ;;  %v1695_v36 = vld [vmem:[#allocation2 + $0x145] ss:$2 sm:$0x3f]  ;;  %9428 = vmatprep.mubr.msk.bf16.mxu0 %vm10258_vm0, %v10656_v44 }
 0x1b0   : > { %v1700_v42 = vmax.f32 %v1696_v37, %v1698_v39  ;;  %v1699_v43 = vmax.f32 %v1691_v41, %v1695_v36  ;;  %1466 = vst [vmem:[#allocation2 + $0x158] sm:$0xff] %v1368_v40 }
 0x1b1   : > { %v1110_v45 = vpop.f32.mrb[88].mxu0 }
 0x1b2   : > { %v8782_v46 = vpack.c.bf16 %v1700_v42, %v1700_v42  ;;  %v1701_v47 = vmax.f32 %v1697_v38, %v1699_v43  ;;  %v1111_v48 = vadd.f32 %v10560_v54, %v1110_v45  ;;  %v9206_v49 = vpop.f32.mrb[89].mxu0 }
 0x1b3   : > { %v1113_v50 = vpop.f32.mrb[90].mxu0 }
 0x1b4   : > { %1710 = vst [vmem:[#allocation3 + $0x28] sm:$0xf] %v8782_v46  ;;  %v8783_v51 = vpack.c.bf16 %v1701_v47, %v1701_v47  ;;  %v1369_v52 = vmax.f32 %v1111_v48, 0.0  ;;  %v1114_v53 = vadd.f32 %v10560_v54, %v1113_v50  ;;  %v9207_v55 = vpop.f32.mrb[91].mxu0 }
 0x1b6   : > { %1711 = vst [vmem:[#allocation3 + $0x2c] sm:$0x7] %v8783_v51  ;;  %1467 = vst [vmem:[#allocation2 + $0x160] sm:$0xff] %v1369_v52  ;;  %v1370_v56 = vmax.f32 %v1114_v53, 0.0  ;;  %v9961_v52 = vld [vmem:[%s15161_s3 + $0x8] ss:$16 sps:$4 sm:$0xff]  }
 0x1b7   : > { %v1713_v5 = vld [vmem:[#allocation2 + $0x150] ss:$2 sm:$0xff]  ;;  %v1717_v6 = vld [vmem:[#allocation2 + $0x151] ss:$2 sm:$0xff] }
 0x1b8   : > { %1468 = vst [vmem:[#allocation2 + $0x168] sm:$0xff] %v1370_v56  ;;  %v1728_v11 = vmax.f32 %v1713_v5, %v1717_v6  ;;  %v9963_v53 = vld [vmem:[%s15161_s3 + $0xc] ss:$16 sps:$4 sm:$0xff]  }
 0x1b9   : > { %v1118_v57 = vpop.f32.mrb[92].mxu0  ;;  %2458 = vmatprep.subr.bf16.mxu1 %v9963_v53  ;;  %v9967_v56 = vld [vmem:[%s15161_s3 + $0x2c] ss:$16 sps:$4 sm:$0xff]  }
 0x1ba   : > { %v1119_v58 = vadd.f32 %v10560_v54, %v1118_v57  ;;  %v9210_v59 = vpop.f32.mrb[93].mxu0  ;;  %2459 = vmatpush1.bf16.msra.mxu1 %v9961_v52 }
 0x1bb   : > { %v1121_v60 = vpop.f32.mrb[94].mxu0  ;;  %2460 = vmatprep.subr.bf16.mxu1 %v9967_v56 }
 0x1bc   : > { %v1371_v61 = vmax.f32 %v1119_v58, 0.0  ;;  %v1122_v62 = vadd.f32 %v10560_v54, %v1121_v60  ;;  %v9211_v63 = vpop.f32.mrb[95].mxu0  ;;  %v10710_v60 = vld [vmem:[%s15160_s2] ss:$0 sm:$0xff] }
 0x1bd   : > { %v9956_v0 = vld [vmem:[#allocation3 + $0x28] sm:$0xff]  }
 0x1be   : > { %1469 = vst [vmem:[#allocation2 + $0x170] sm:$0xff] %v1371_v61  ;;  %v1372_v1 = vmax.f32 %v1122_v62, 0.0  ;;  %2360 = vmatmul.mubr.bf16.gmra.mrb[20].mxu1 %v9956_v0 }
 0x1bf   : > { %2369 = vmatprep.mubr.bf16.mxu1 %v15171_v35  ;;  %v1715_v15 = vld [vmem:[#allocation2 + $0x160] ss:$2 sm:$0x3f]  ;;  %v1719_v17 = vld [vmem:[#allocation2 + $0x161] ss:$2 sm:$0x3f] }
 0x1c0   : > { %1470 = vst [vmem:[#allocation2 + $0x178] sm:$0xff] %v1372_v1  ;;  %v1729_v23 = vmax.f32 %v1715_v15, %v1719_v17 }
 0x1c1   : > { %v1126_v2 = vpop.f32.mrb[96].mxu0 }
 0x1c2   : > { %v1127_v3 = vadd.f32 %v10560_v54, %v1126_v2  ;;  %v9214_v4 = vpop.f32.mrb[97].mxu0 }
 0x1c3   : > { %v1129_v7 = vpop.f32.mrb[98].mxu0 }
 0x1c4   : > { %v1373_v8 = vmax.f32 %v1127_v3, 0.0  ;;  %v1130_v9 = vadd.f32 %v10560_v54, %v1129_v7  ;;  %v9215_v10 = vpop.f32.mrb[99].mxu0 }
 0x1c6   : > { %1471 = vst [vmem:[#allocation2 + $0x180] sm:$0xff] %v1373_v8  ;;  %v1374_v12 = vmax.f32 %v1130_v9, 0.0 }
 0x1c7   : > { %v1721_v13 = vld [vmem:[#allocation2 + $0x16c] ss:$2 sm:$0xff]  ;;  %v1725_v14 = vld [vmem:[#allocation2 + $0x16d] ss:$2 sm:$0xff] }
 0x1c8   : > { %v1730_v16 = vmax.f32 %v1721_v13, %v1725_v14  ;;  %1472 = vst [vmem:[#allocation2 + $0x188] sm:$0xff] %v1374_v12 }
 0x1c9   : > { %v1134_v18 = vpop.f32.mrb[100].mxu0 }
 0x1ca   : > { %v1732_v19 = vmax.f32 %v1728_v11, %v1730_v16  ;;  %v1135_v20 = vadd.f32 %v10560_v54, %v1134_v18  ;;  %v9218_v21 = vpop.f32.mrb[101].mxu0 }
 0x1cb   : > { %v1137_v22 = vpop.f32.mrb[102].mxu0 }
 0x1cc   : > { %v8784_v24 = vpack.c.bf16 %v1732_v19, %v1732_v19  ;;  %v1375_v25 = vmax.f32 %v1135_v20, 0.0  ;;  %v1138_v26 = vadd.f32 %v10560_v54, %v1137_v22  ;;  %v9219_v27 = vpop.f32.mrb[103].mxu0 }
 0x1cd   : > { %v1723_v28 = vld [vmem:[#allocation2 + $0x17c] ss:$2 sm:$0x3f]  ;;  %v1727_v29 = vld [vmem:[#allocation2 + $0x17d] ss:$2 sm:$0x3f] }
 0x1ce   : > { %1742 = vst [vmem:[#allocation3 + $0x30] sm:$0xf] %v8784_v24  ;;  %v1731_v30 = vmax.f32 %v1723_v28, %v1727_v29  ;;  %1473 = vst [vmem:[#allocation2 + $0x190] sm:$0xff] %v1375_v25  ;;  %v1376_v31 = vmax.f32 %v1138_v26, 0.0 }
 0x1d0   : > { %v1733_v32 = vmax.f32 %v1729_v23, %v1731_v30  ;;  %1474 = vst [vmem:[#allocation2 + $0x198] sm:$0xff] %v1376_v31 }
 0x1d1   : > { %v1142_v33 = vpop.f32.mrb[104].mxu0 }
 0x1d2   : > { %v8785_v34 = vpack.c.bf16 %v1733_v32, %v1733_v32  ;;  %v1143_v37 = vadd.f32 %v10560_v54, %v1142_v33  ;;  %v9222_v38 = vpop.f32.mrb[105].mxu0 }
 0x1d3   : > { %v1145_v39 = vpop.f32.mrb[106].mxu0  ;;  %v9970_v38 = vld [vmem:[%s15161_s3 + $0x4c] ss:$16 sps:$4 sm:$0xff]  }
 0x1d4   : > { %1743 = vst [vmem:[#allocation3 + $0x34] sm:$0x7] %v8785_v34  ;;  %v1377_v40 = vmax.f32 %v1143_v37, 0.0  ;;  %v1146_v41 = vadd.f32 %v10560_v54, %v1145_v39  ;;  %v9223_v36 = vpop.f32.mrb[107].mxu0  ;;  %v9968_v37 = vld [vmem:[%s15161_s3 + $0x48] ss:$16 sps:$4 sm:$0xff]  }
 0x1d5   : > { %v1745_v58 = vld [vmem:[#allocation2 + $0x188] ss:$2 sm:$0xff]  ;;  %v1749_v63 = vld [vmem:[#allocation2 + $0x189] ss:$2 sm:$0xff] }
 0x1d6   : > { %1475 = vst [vmem:[#allocation2 + $0x1a0] sm:$0xff] %v1377_v40  ;;  %v1378_v42 = vmax.f32 %v1146_v41, 0.0  ;;  %v1760_v7 = vmax.f32 %v1745_v58, %v1749_v63 }
 0x1d8   : > { %1476 = vst [vmem:[#allocation2 + $0x1a8] sm:$0xff] %v1378_v42 }
 0x1d9   : > { %v1150_v43 = vpop.f32.mrb[108].mxu0 }
 0x1da   : > { %v1151_v45 = vadd.f32 %v10560_v54, %v1150_v43  ;;  %v9226_v46 = vpop.f32.mrb[109].mxu0 }
 0x1db   : > { %v1153_v47 = vpop.f32.mrb[110].mxu0  ;;  %v9957_v48 = vld [vmem:[#allocation3 + $0x30] sm:$0xff]  }
 0x1dc   : > { %v1379_v49 = vmax.f32 %v1151_v45, 0.0  ;;  %v1154_v50 = vadd.f32 %v10560_v54, %v1153_v47  ;;  %v9227_v51 = vpop.f32.mrb[111].mxu0  ;;  %2370 = vmatmul.mubr.bf16.gmra.mrb[24].mxu1 %v9957_v48  ;;  %v9965_v54 = vld [vmem:[%s15161_s3 + $0x28] ss:$16 sps:$4 sm:$0xff]  }
 0x1dd   : > { %2379 = vmatprep.mubr.bf16.mxu1 %v15171_v35  ;;  %v1747_v59 = vld [vmem:[#allocation2 + $0x198] ss:$2 sm:$0x3f]  ;;  %v1751_v0 = vld [vmem:[#allocation2 + $0x199] ss:$2 sm:$0x3f]  ;;  %2461 = vmatpush1.bf16.msra.mxu1 %v9965_v54 }
 0x1de   : > { %1477 = vst [vmem:[#allocation2 + $0x1b0] sm:$0xff] %v1379_v49  ;;  %v1380_v55 = vmax.f32 %v1154_v50, 0.0  ;;  %v1761_v8 = vmax.f32 %v1747_v59, %v1751_v0  ;;  %2462 = vmatprep.subr.bf16.mxu1 %v9970_v38  ;;  %v9972_v48 = vld [vmem:[%s15161_s3 + $0x68] ss:$16 sps:$4 sm:$0xff]   ;;  %v9974_v49 = vld [vmem:[%s15161_s3 + $0x6c] ss:$16 sps:$4 sm:$0xff]  }
 0x1e0   : > { %1478 = vst [vmem:[#allocation2 + $0x1b8] sm:$0xff] %v1380_v55 }
 0x1e1   : > { %v1158_v57 = vpop.f32.mrb[112].mxu0  ;;  %2463 = vmatpush1.bf16.msra.mxu1 %v9968_v37 }
 0x1e2   : > { %v1159_v61 = vadd.f32 %v10710_v60, %v1158_v57  ;;  %v9230_v62 = vpop.f32.mrb[113].mxu0  ;;  %2464 = vmatprep.subr.bf16.mxu1 %v9974_v49 }
 0x1e3   : > { %v1161_v1 = vpop.f32.mrb[114].mxu0 }
 0x1e4   : > { %v1381_v2 = vmax.f32 %v1159_v61, 0.0  ;;  %v1162_v3 = vadd.f32 %v10710_v60, %v1161_v1  ;;  %v9231_v4 = vpop.f32.mrb[115].mxu0 }
 0x1e5   : > { %v1753_v5 = vld [vmem:[#allocation2 + $0x1a4] ss:$2 sm:$0xff]  ;;  %v1757_v6 = vld [vmem:[#allocation2 + $0x1a5] ss:$2 sm:$0xff]  ;;  %2465 = vmatpush1.bf16.msra.mxu1 %v9972_v48 }
 0x1e6   : > { %v1762_v9 = vmax.f32 %v1753_v5, %v1757_v6  ;;  %1479 = vst [vmem:[#allocation2 + $0x1c0] sm:$0xff] %v1381_v2  ;;  %v1382_v10 = vmax.f32 %v1162_v3, 0.0 }
 0x1e7   : > { %v1755_v11 = vld [vmem:[#allocation2 + $0x1b4] ss:$2 sm:$0x3f]  ;;  %v1759_v12 = vld [vmem:[#allocation2 + $0x1b5] ss:$2 sm:$0x3f] }
 0x1e8   : > { %v1764_v13 = vmax.f32 %v1760_v7, %v1762_v9  ;;  %v1763_v14 = vmax.f32 %v1755_v11, %v1759_v12  ;;  %1480 = vst [vmem:[#allocation2 + $0x1c8] sm:$0xff] %v1382_v10 }
 0x1e9   : > { %v1166_v15 = vpop.f32.mrb[116].mxu0 }
 0x1ea   : > { %v8786_v16 = vpack.c.bf16 %v1764_v13, %v1764_v13  ;;  %v1765_v17 = vmax.f32 %v1761_v8, %v1763_v14  ;;  %v1167_v18 = vadd.f32 %v10710_v60, %v1166_v15  ;;  %v9234_v19 = vpop.f32.mrb[117].mxu0 }
 0x1eb   : > { %v1169_v20 = vpop.f32.mrb[118].mxu0 }
 0x1ec   : > { %1774 = vst [vmem:[#allocation3 + $0x38] sm:$0xf] %v8786_v16  ;;  %v8787_v21 = vpack.c.bf16 %v1765_v17, %v1765_v17  ;;  %v1383_v22 = vmax.f32 %v1167_v18, 0.0  ;;  %v1170_v23 = vadd.f32 %v10710_v60, %v1169_v20  ;;  %v9235_v24 = vpop.f32.mrb[119].mxu0 }
 0x1ee   : > { %1775 = vst [vmem:[#allocation3 + $0x3c] sm:$0x7] %v8787_v21  ;;  %1481 = vst [vmem:[#allocation2 + $0x1d0] sm:$0xff] %v1383_v22  ;;  %v1384_v25 = vmax.f32 %v1170_v23, 0.0 }
 0x1ef   : > { %v1777_v36 = vld [vmem:[#allocation2 + $0x1c0] ss:$2 sm:$0xff]  ;;  %v1781_v42 = vld [vmem:[#allocation2 + $0x1c1] ss:$2 sm:$0xff] }
 0x1f0   : > { %1482 = vst [vmem:[#allocation2 + $0x1d8] sm:$0xff] %v1384_v25  ;;  %v1792_v50 = vmax.f32 %v1777_v36, %v1781_v42  ;;  %v9977_v36 = vld [vmem:[%s15161_s3 + $0x8c] ss:$16 sps:$4 sm:$0xff]  }
 0x1f1   : > { %v1174_v26 = vpop.f32.mrb[120].mxu0  ;;  %2466 = vmatprep.subr.bf16.mxu1 %v9977_v36 }
 0x1f2   : > { %v1175_v27 = vadd.f32 %v10710_v60, %v1174_v26  ;;  %v9238_v28 = vpop.f32.mrb[121].mxu0 }
 0x1f3   : > { %v1177_v29 = vpop.f32.mrb[122].mxu0 }
 0x1f4   : > { %v1385_v30 = vmax.f32 %v1175_v27, 0.0  ;;  %v1178_v31 = vadd.f32 %v10710_v60, %v1177_v29  ;;  %v9239_v32 = vpop.f32.mrb[123].mxu0 }
 0x1f5   : > { %v9958_v33 = vld [vmem:[#allocation3 + $0x38] sm:$0xff]  }
 0x1f6   : > { %1483 = vst [vmem:[#allocation2 + $0x1e0] sm:$0xff] %v1385_v30  ;;  %v1386_v34 = vmax.f32 %v1178_v31, 0.0  ;;  %2380 = vmatmul.mubr.bf16.gmra.mrb[28].mxu1 %v9958_v33 }
 0x1f7   : > { %2389 = vmatprep.mubr.bf16.mxu1 %v15171_v35  ;;  %v1779_v55 = vld [vmem:[#allocation2 + $0x1d0] ss:$2 sm:$0x3f]  ;;  %v1783_v54 = vld [vmem:[#allocation2 + $0x1d1] ss:$2 sm:$0x3f] }
 0x1f8   : > { %1484 = vst [vmem:[#allocation2 + $0x1e8] sm:$0xff] %v1386_v34  ;;  %v1793_v63 = vmax.f32 %v1779_v55, %v1783_v54 }
 0x1f9   : > { %v1182_v39 = vpop.f32.mrb[124].mxu0 }
 0x1fa   : > { %v1183_v40 = vadd.f32 %v10710_v60, %v1182_v39  ;;  %v9242_v41 = vpop.f32.mrb[125].mxu0 }
 0x1fb   : > { %v1185_v43 = vpop.f32.mrb[126].mxu0  ;;  %v9975_v41 = vld [vmem:[%s15161_s3 + $0x88] ss:$16 sps:$4 sm:$0xff]  }
 0x1fc   : > { %v1387_v45 = vmax.f32 %v1183_v40, 0.0  ;;  %v1186_v46 = vadd.f32 %v10710_v60, %v1185_v43  ;;  %v9243_v47 = vpop.f32.mrb[127].mxu0  ;;  %2467 = vmatpush1.bf16.msra.mxu1 %v9975_v41 }
 0x1fe   : > { %1485 = vst [vmem:[#allocation2 + $0x1f0] sm:$0xff] %v1387_v45  ;;  %v1388_v51 = vmax.f32 %v1186_v46, 0.0  ;;  %v9981_v45 = vld [vmem:[%s15161_s3 + $0xac] ss:$16 sps:$4 sm:$0xff]  }
 0x1ff   : > { %v1785_v52 = vld [vmem:[#allocation2 + $0x1dc] ss:$2 sm:$0xff]  ;;  %v1789_v53 = vld [vmem:[#allocation2 + $0x1dd] ss:$2 sm:$0xff]  ;;  %2468 = vmatprep.subr.bf16.mxu1 %v9981_v45 }
 0x200   : > { %v1794_v56 = vmax.f32 %v1785_v52, %v1789_v53  ;;  %1486 = vst [vmem:[#allocation2 + $0x1f8] sm:$0xff] %v1388_v51  ;;  %v9987_v45 = vld [vmem:[%s15161_s3 + $0xe8] ss:$16 sps:$4 sm:$0xff]  }
 0x201   : > { %v1190_v57 = vpop.f32.mrb[128].mxu0 }
 0x202   : > { %v1796_v58 = vmax.f32 %v1792_v50, %v1794_v56  ;;  %v1191_v59 = vadd.f32 %v10710_v60, %v1190_v57  ;;  %v9246_v61 = vpop.f32.mrb[129].mxu0  ;;  %v9979_v50 = vld [vmem:[%s15161_s3 + $0xa8] ss:$16 sps:$4 sm:$0xff]  }
 0x203   : > { %v1193_v62 = vpop.f32.mrb[130].mxu0  ;;  %2469 = vmatpush1.bf16.msra.mxu1 %v9979_v50 }
 0x204   : > { %v8788_v0 = vpack.c.bf16 %v1796_v58, %v1796_v58  ;;  %v1389_v1 = vmax.f32 %v1191_v59, 0.0  ;;  %v1194_v2 = vadd.f32 %v10710_v60, %v1193_v62  ;;  %v9247_v3 = vpop.f32.mrb[131].mxu0 }
 0x205   : > { %v1787_v4 = vld [vmem:[#allocation2 + $0x1ec] ss:$2 sm:$0x3f]  ;;  %v1791_v5 = vld [vmem:[#allocation2 + $0x1ed] ss:$2 sm:$0x3f] }
 0x206   : > { %1806 = vst [vmem:[#allocation3 + $0x40] sm:$0xf] %v8788_v0  ;;  %v1795_v6 = vmax.f32 %v1787_v4, %v1791_v5  ;;  %1487 = vst [vmem:[#allocation2 + $0x200] sm:$0xff] %v1389_v1  ;;  %v1390_v7 = vmax.f32 %v1194_v2, 0.0 }
 0x207   : > { %v2311_v9 = vpop.f32.mrb[0].mxu1 }
 0x208   : > { %v1797_v8 = vmax.f32 %v1793_v63, %v1795_v6  ;;  %1488 = vst [vmem:[#allocation2 + $0x208] sm:$0xff] %v1390_v7  ;;  %2639 = vst [vmem:[#allocation4] sm:$0xff] %v2311_v9  ;;  %v2313_v10 = vpop.f32.mrb[1].mxu1 }
 0x209   : > { %v1198_v11 = vpop.f32.mrb[132].mxu0  ;;  %v10735_v13 = vpop.f32.mrb[2].mxu1 }
 0x20a   : > { %v8789_v12 = vpack.c.bf16 %v1797_v8, %v1797_v8  ;;  %v1199_v14 = vadd.f32 %v10710_v60, %v1198_v11  ;;  %v9250_v15 = vpop.f32.mrb[133].mxu0  ;;  %2643 = vst [vmem:[#allocation4 + $0x20] sm:$0xff] %v10735_v13  ;;  %v2317_v16 = vpop.f32.mrb[3].mxu1  ;;  %v2800_v26 = vrot.slane %v10735_v13, 1  ;;  %v2926_v39 = vrot.slane %v10735_v13, 2 }
 0x20b   : > { %v1201_v17 = vpop.f32.mrb[134].mxu0  ;;  %v3052_v48 = vrot.slane %v10735_v13, 3  ;;  %v3178_v1 = vrot.slane %v10735_v13, 4  ;;  %v9983_v11 = vld [vmem:[%s15161_s3 + $0xc8] ss:$16 sps:$4 sm:$0xff]  }
 0x20c   : > { %1807 = vst [vmem:[#allocation3 + $0x44] sm:$0x7] %v8789_v12  ;;  %v1391_v18 = vmax.f32 %v1199_v14, 0.0  ;;  %v1202_v19 = vadd.f32 %v10710_v60, %v1201_v17  ;;  %v9251_v20 = vpop.f32.mrb[135].mxu0  ;;  %v9985_v12 = vld [vmem:[%s15161_s3 + $0xcc] ss:$16 sps:$4 sm:$0xff]  }
 0x20d   : > { %v1809_v47 = vld [vmem:[#allocation2 + $0x1f8] ss:$2 sm:$0xff]  ;;  %v1813_v51 = vld [vmem:[#allocation2 + $0x1f9] ss:$2 sm:$0xff]  ;;  %2470 = vmatprep.subr.bf16.mxu1 %v9985_v12 }
 0x20e   : > { %1489 = vst [vmem:[#allocation2 + $0x210] sm:$0xff] %v1391_v18  ;;  %v1392_v21 = vmax.f32 %v1202_v19, 0.0  ;;  %v1824_v2 = vmax.f32 %v1809_v47, %v1813_v51  ;;  %2471 = vmatpush1.bf16.msra.mxu1 %v9983_v11 }
 0x20f   : > { %v2775_v22 = vld [vmem:[#allocation4] sm:$0xfe] }
 0x210   : > { %1490 = vst [vmem:[#allocation2 + $0x218] sm:$0xff] %v1392_v21  ;;  %v2920_v23 = vld [vmem:[#allocation4] sm:$0xfc]  ;;  %v2799_v25 = vrot.slane %v2775_v22, 1 }
 0x211   : > { %v1206_v24 = vpop.f32.mrb[136].mxu0  ;;  %v2925_v32 = vrot.slane %v2920_v23, 2  ;;  %v3046_v37 = vld [vmem:[#allocation4] sm:$0xf8] }
 0x212   : > { %v1207_v27 = vadd.f32 %v10710_v60, %v1206_v24  ;;  %v9254_v28 = vpop.f32.mrb[137].mxu0  ;;  %v2801_v31 = vsel %vm2798_vm1, %v2799_v25, %v2800_v26  ;;  %v3051_v43 = vrot.slane %v3046_v37, 3  ;;  %v3172_v46 = vld [vmem:[#allocation4] sm:$0xf0] }
 0x213   : > { %v1209_v29 = vpop.f32.mrb[138].mxu0  ;;  %v9959_v30 = vld [vmem:[#allocation3 + $0x40] sm:$0xff]   ;;  %2840 = vrot.lane.b32.xlu0 %v2801_v31, %s10260_s25  ;;  %v2927_v42 = vsel %vm2924_vm2, %v2925_v32, %v2926_v39  ;;  %v3177_v57 = vrot.slane %v3172_v46, 4  ;;  %v9989_v46 = vld [vmem:[%s15161_s3 + $0xec] ss:$16 sps:$4 sm:$0xff]  }
 0x214   : > { %v1393_v33 = vmax.f32 %v1207_v27, 0.0  ;;  %v1210_v34 = vadd.f32 %v10710_v60, %v1209_v29  ;;  %v9255_v38 = vpop.f32.mrb[139].mxu0  ;;  %2390 = vmatmul.mubr.bf16.gmra.mrb[32].mxu1 %v9959_v30  ;;  %v3053_v54 = vsel %vm3050_vm3, %v3051_v43, %v3052_v48  ;;  %2472 = vmatprep.subr.bf16.mxu1 %v9989_v46 }
 0x215   : > { %2399 = vmatprep.mubr.bf16.mxu1 %v15171_v35  ;;  %v1811_v52 = vld [vmem:[#allocation2 + $0x208] ss:$2 sm:$0x3f]  ;;  %v1815_v56 = vld [vmem:[#allocation2 + $0x209] ss:$2 sm:$0x3f]  ;;  %v3179_v8 = vsel %vm3176_vm4, %v3177_v57, %v3178_v1  ;;  %2473 = vmatpush1.bf16.msra.mxu1 %v9987_v45 }
 0x216   : > { %1491 = vst [vmem:[#allocation2 + $0x220] sm:$0xff] %v1393_v33  ;;  %v1394_v40 = vmax.f32 %v1210_v34, 0.0  ;;  %v1825_v3 = vmax.f32 %v1811_v52, %v1815_v56  ;;  %9312 = vmatprep.subr.bf16.mxu1 %v10656_v44 }
 0x217   : > { %2966 = vrot.lane.b32.xlu0 %v2927_v42, %s10261_s14 }
 0x218   : > { %1492 = vst [vmem:[#allocation2 + $0x228] sm:$0xff] %v1394_v40 }
 0x219   : > { %v1214_v49 = vpop.f32.mrb[140].mxu0 }
 0x21a   : > { %v1215_v53 = vadd.f32 %v10710_v60, %v1214_v49  ;;  %v9258_v55 = vpop.f32.mrb[141].mxu0 }
 0x21b   : > { %v1217_v58 = vpop.f32.mrb[142].mxu0  ;;  %3092 = vrot.lane.b32.xlu0 %v3053_v54, %s10262_s19 }
 0x21c   : > { %v1395_v59 = vmax.f32 %v1215_v53, 0.0  ;;  %v1218_v61 = vadd.f32 %v10710_v60, %v1217_v58  ;;  %v9259_v62 = vpop.f32.mrb[143].mxu0 }
 0x21d   : > { %v1817_v63 = vld [vmem:[#allocation2 + $0x214] ss:$2 sm:$0xff]  ;;  %v1821_v0 = vld [vmem:[#allocation2 + $0x215] ss:$2 sm:$0xff] }
 0x21e   : > { %v1826_v4 = vmax.f32 %v1817_v63, %v1821_v0  ;;  %1493 = vst [vmem:[#allocation2 + $0x230] sm:$0xff] %v1395_v59  ;;  %v1396_v5 = vmax.f32 %v1218_v61, 0.0 }
 0x21f   : > { %v1819_v6 = vld [vmem:[#allocation2 + $0x224] ss:$2 sm:$0x3f]  ;;  %v1823_v7 = vld [vmem:[#allocation2 + $0x225] ss:$2 sm:$0x3f]  ;;  %3218 = vrot.lane.b32.xlu0 %v3179_v8, %s10263_s20 }
 0x220   : > { %v1828_v9 = vmax.f32 %v1824_v2, %v1826_v4  ;;  %v1827_v10 = vmax.f32 %v1819_v6, %v1823_v7  ;;  %1494 = vst [vmem:[#allocation2 + $0x238] sm:$0xff] %v1396_v5 }
 0x221   : > { %v1222_v14 = vpop.f32.mrb[144].mxu0  ;;  %v2321_v17 = vpop.f32.mrb[4].mxu1 }
 0x222   : > { %v8790_v15 = vpack.c.bf16 %v1828_v9, %v1828_v9  ;;  %v1829_v16 = vmax.f32 %v1825_v3, %v1827_v10  ;;  %v1223_v18 = vadd.f32 %v10710_v60, %v1222_v14  ;;  %v9262_v19 = vpop.f32.mrb[145].mxu0  ;;  %2647 = vst [vmem:[#allocation4 + $0x40] sm:$0xff] %v2321_v17  ;;  %v2323_v20 = vpop.f32.mrb[5].mxu1  ;;  %v2802_v22 = vrot.slane %v2321_v17, 1 }
 0x223   : > { %v1225_v21 = vpop.f32.mrb[146].mxu0  ;;  %v2928_v23 = vrot.slane %v2321_v17, 2  ;;  %v3054_v24 = vrot.slane %v2321_v17, 3  ;;  %v3180_v25 = vrot.slane %v2321_v17, 4  ;;  %2648 = vst [vmem:[#allocation4 + $0x48] sm:$0xff] %v2323_v20  ;;  %v10782_v29 = vpop.f32.mrb[6].mxu1  ;;  %3302 = vrot.lane.b32.xlu0 %v2321_v17, %s10264_s29 }
 0x224   : > { %1838 = vst [vmem:[#allocation3 + $0x48] sm:$0xf] %v8790_v15  ;;  %v8791_v27 = vpack.c.bf16 %v1829_v16, %v1829_v16  ;;  %v1397_v28 = vmax.f32 %v1223_v18, 0.0  ;;  %v1226_v30 = vadd.f32 %v10710_v60, %v1225_v21  ;;  %v9263_v31 = vpop.f32.mrb[147].mxu0  ;;  %2651 = vst [vmem:[#allocation4 + $0x60] sm:$0xff] %v10782_v29  ;;  %v10787_v32 = vpop.f32.mrb[7].mxu1  ;;  %3304 = vrot.lane.b32.xlu1 %v10782_v29, %s10264_s29 }
 0x225   : > { %v2803_v33 = vsel %vm2798_vm1, %v2800_v26, %v2802_v22  ;;  %v2929_v34 = vsel %vm2924_vm2, %v2926_v39, %v2928_v23  ;;  %v10798_v37 = vrot.slane %v10782_v29, 2  ;;  %v3055_v38 = vsel %vm3050_vm3, %v3052_v48, %v3054_v24 }
 0x226   : > { %1839 = vst [vmem:[#allocation3 + $0x4c] sm:$0x7] %v8791_v27  ;;  %1495 = vst [vmem:[#allocation2 + $0x240] sm:$0xff] %v1397_v28  ;;  %v1398_v40 = vmax.f32 %v1226_v30, 0.0  ;;  %v3056_v41 = vrot.slane %v10782_v29, 3  ;;  %v3181_v36 = vsel %vm3176_vm4, %v3178_v1, %v3180_v25  ;;  %v3182_v26 = vrot.slane %v10782_v29, 4 }
 0x227   : > { %v2931_v42 = vsel %vm2924_vm2, %v2928_v23, %v10798_v37  ;;  %v10809_v39 = vrot.slane %v10782_v29, 1  ;;  %2842 = vrot.lane.b32.xlu0 %v2803_v33, %s10260_s25  ;;  %v1841_v62 = vld [vmem:[#allocation2 + $0x230] ss:$2 sm:$0xff]  ;;  %v1845_v44 = vld [vmem:[#allocation2 + $0x231] ss:$2 sm:$0xff]  ;;  %v3694_v23 = vrot.slane %v10787_v32, 4 }
 0x228   : > { %1496 = vst [vmem:[#allocation2 + $0x248] sm:$0xff] %v1398_v40  ;;  %v3057_v13 = vsel %vm3050_vm3, %v3054_v24, %v3056_v41  ;;  %v3183_v43 = vsel %vm3176_vm4, %v3180_v25, %v3182_v26  ;;  %2968 = vrot.lane.b32.xlu1 %v2929_v34, %s10261_s14  ;;  %v1856_v5 = vmax.f32 %v1841_v62, %v1845_v44 }
 0x229   : > { %v1230_v47 = vpop.f32.mrb[148].mxu0  ;;  %v2805_v48 = vsel %vm2798_vm1, %v2802_v22, %v10809_v39  ;;  %v3382_v57 = vld [vmem:[#allocation4 + $0x40] sm:$0xfe] }
 0x22a   : > { %v1231_v49 = vadd.f32 %v10710_v60, %v1230_v47  ;;  %v9266_v50 = vpop.f32.mrb[149].mxu0  ;;  %v3386_v0 = vrot.slane %v3382_v57, 1  ;;  %v3474_v4 = vld [vmem:[#allocation4 + $0x40] sm:$0xfc]  ;;  %v3689_v14 = vld [vmem:[#allocation4 + $0x48] sm:$0xf0] }
 0x22b   : > { %v1233_v51 = vpop.f32.mrb[150].mxu0  ;;  %2970 = vrot.lane.b32.xlu0 %v2931_v42, %s10261_s14  ;;  %v3478_v10 = vrot.slane %v3474_v4, 2  ;;  %v3693_v22 = vrot.slane %v3689_v14, 4 }
 0x22c   : > { %v1399_v52 = vmax.f32 %v1231_v49, 0.0  ;;  %v1234_v53 = vadd.f32 %v10710_v60, %v1233_v51  ;;  %v9267_v55 = vpop.f32.mrb[151].mxu0  ;;  %3094 = vrot.lane.b32.xlu1 %v3055_v38, %s10262_s19  ;;  %v3387_v9 = vsel %vm2798_vm1, %v3386_v0, %v10809_v39 }
 0x22d   : > { %v9960_v56 = vld [vmem:[#allocation3 + $0x48] sm:$0xff]   ;;  %v3479_v21 = vsel %vm2924_vm2, %v3478_v10, %v10798_v37  ;;  %v3695_v40 = vsel %vm3176_vm4, %v3693_v22, %v3694_v23 }
 0x22e   : > { %1497 = vst [vmem:[#allocation2 + $0x250] sm:$0xff] %v1399_v52  ;;  %v1400_v54 = vmax.f32 %v1234_v53, 0.0  ;;  %2400 = vmatmul.mubr.bf16.gmra.mrb[36].mxu1 %v9960_v56 }
 0x22f   : > { %3096 = vrot.lane.b32.xlu0 %v3057_v13, %s10262_s19  ;;  %2409 = vmatprep.mubr.bf16.mxu1 %v15171_v35  ;;  %v1843_v11 = vld [vmem:[#allocation2 + $0x240] ss:$2 sm:$0x3f]  ;;  %v1847_v15 = vld [vmem:[#allocation2 + $0x241] ss:$2 sm:$0x3f] }
 0x230   : > { %1498 = vst [vmem:[#allocation2 + $0x258] sm:$0xff] %v1400_v54  ;;  %3220 = vrot.lane.b32.xlu1 %v3181_v36, %s10263_s20  ;;  %v1857_v24 = vmax.f32 %v1843_v11, %v1847_v15  ;;  %v15170_v13 = vrot.slane %v10787_v32, 3 }
 0x231   : > { %v1238_v58 = vpop.f32.mrb[152].mxu0 }
 0x232   : > { %v1239_v59 = vadd.f32 %v10710_v60, %v1238_v58  ;;  %v9270_v61 = vpop.f32.mrb[153].mxu0 }
 0x233   : > { %v1241_v63 = vpop.f32.mrb[154].mxu0  ;;  %3222 = vrot.lane.b32.xlu0 %v3183_v43, %s10263_s20 }
 0x234   : > { %v1401_v1 = vmax.f32 %v1239_v59, 0.0  ;;  %v1242_v2 = vadd.f32 %v10710_v60, %v1241_v63  ;;  %v9271_v3 = vpop.f32.mrb[155].mxu0  ;;  %2844 = vrot.lane.b32.xlu1 %v2805_v48, %s10260_s25 }
 0x236   : > { %1499 = vst [vmem:[#allocation2 + $0x260] sm:$0xff] %v1401_v1  ;;  %v1402_v6 = vmax.f32 %v1242_v2, 0.0 }
 0x237   : > { %v1849_v7 = vld [vmem:[#allocation2 + $0x24c] ss:$2 sm:$0xff]  ;;  %v1853_v8 = vld [vmem:[#allocation2 + $0x24d] ss:$2 sm:$0xff]  ;;  %3394 = vrot.lane.b32.xlu0 %v3387_v9, %s10265_s12 }
 0x238   : > { %v1858_v12 = vmax.f32 %v1849_v7, %v1853_v8  ;;  %1500 = vst [vmem:[#allocation2 + $0x268] sm:$0xff] %v1402_v6 }
 0x239   : > { %v1246_v16 = vpop.f32.mrb[156].mxu0 }
 0x23a   : > { %v1860_v17 = vmax.f32 %v1856_v5, %v1858_v12  ;;  %v1247_v18 = vadd.f32 %v10710_v60, %v1246_v16  ;;  %v9274_v19 = vpop.f32.mrb[157].mxu0 }
 0x23b   : > { %v1249_v20 = vpop.f32.mrb[158].mxu0  ;;  %3486 = vrot.lane.b32.xlu0 %v3479_v21, %s10266_s13 }
 0x23c   : > { %v8792_v25 = vpack.c.bf16 %v1860_v17, %v1860_v17  ;;  %v1403_v27 = vmax.f32 %v1247_v18, 0.0  ;;  %v1250_v28 = vadd.f32 %v10710_v60, %v1249_v20  ;;  %v9275_v30 = vpop.f32.mrb[159].mxu0 }
 0x23d   : > { %v1851_v31 = vld [vmem:[#allocation2 + $0x25c] ss:$2 sm:$0x3f]  ;;  %v1855_v33 = vld [vmem:[#allocation2 + $0x25d] ss:$2 sm:$0x3f] }
 0x23e   : > { %1870 = vst [vmem:[#allocation3 + $0x50] sm:$0xf] %v8792_v25  ;;  %v1859_v34 = vmax.f32 %v1851_v31, %v1855_v33  ;;  %1501 = vst [vmem:[#allocation2 + $0x270] sm:$0xff] %v1403_v27  ;;  %v1404_v38 = vmax.f32 %v1250_v28, 0.0 }
 0x23f   : > { %v2331_v42 = vpop.f32.mrb[8].mxu1  ;;  %3734 = vrot.lane.b32.xlu0 %v3695_v40, %s10260_s25 }
 0x240   : > { %v1861_v36 = vmax.f32 %v1857_v24, %v1859_v34  ;;  %1502 = vst [vmem:[#allocation2 + $0x278] sm:$0xff] %v1404_v38  ;;  %2655 = vst [vmem:[#allocation4 + $0x80] sm:$0xff] %v2331_v42  ;;  %v2333_v43 = vpop.f32.mrb[9].mxu1  ;;  %v2806_v46 = vrot.slane %v2331_v42, 1  ;;  %v2932_v47 = vrot.slane %v2331_v42, 2  ;;  %v3058_v48 = vrot.slane %v2331_v42, 3 }
 0x241   : > { %v1254_v45 = vpop.f32.mrb[160].mxu0  ;;  %v3184_v49 = vrot.slane %v2331_v42, 4  ;;  %2656 = vst [vmem:[#allocation4 + $0x88] sm:$0xff] %v2333_v43  ;;  %v10851_v51 = vpop.f32.mrb[10].mxu1  ;;  %v3611_v55 = vrot.slane %v2333_v43, 3  ;;  %v3696_v56 = vrot.slane %v2333_v43, 4 }
 0x242   : > { %v8793_v50 = vpack.c.bf16 %v1861_v36, %v1861_v36  ;;  %v1255_v52 = vadd.f32 %v10710_v60, %v1254_v45  ;;  %v9278_v53 = vpop.f32.mrb[161].mxu0  ;;  %2659 = vst [vmem:[#allocation4 + $0xa0] sm:$0xff] %v10851_v51  ;;  %v10855_v54 = vpop.f32.mrb[11].mxu1  ;;  %3308 = vrot.lane.b32.xlu1 %v10851_v51, %s10264_s29  ;;  %v10861_v58 = vsel %vm2798_vm1, %v10809_v39, %v2806_v46  ;;  %v2808_v61 = vrot.slane %v10851_v51, 1 }
 0x243   : > { %v1257_v57 = vpop.f32.mrb[162].mxu0  ;;  %v10865_v59 = vsel %vm2924_vm2, %v10798_v37, %v2932_v47  ;;  %v3059_v62 = vsel %vm3050_vm3, %v3056_v41, %v3058_v48  ;;  %3306 = vrot.lane.b32.xlu0 %v2331_v42, %s10264_s29  ;;  %v2934_v39 = vrot.slane %v10851_v51, 2  ;;  %v3185_v37 = vsel %vm3176_vm4, %v3182_v26, %v3184_v49 }
 0x244   : > { %1871 = vst [vmem:[#allocation3 + $0x54] sm:$0x7] %v8793_v50  ;;  %v1405_v44 = vmax.f32 %v1255_v52, 0.0  ;;  %v1258_v63 = vadd.f32 %v10710_v60, %v1257_v57  ;;  %v9279_v0 = vpop.f32.mrb[163].mxu0  ;;  %v2809_v1 = vsel %vm2798_vm1, %v2806_v46, %v2808_v61  ;;  %v10881_v2 = vsel %vm3176_vm4, %v3694_v23, %v3696_v56 }
 0x245   : > { %v10886_v41 = vsel %vm3050_vm3, %v15170_v13, %v3611_v55  ;;  %v2935_v29 = vsel %vm2924_vm2, %v2932_v47, %v2934_v39  ;;  %v3060_v26 = vrot.slane %v10851_v51, 3  ;;  %v3186_v4 = vrot.slane %v10851_v51, 4  ;;  %v1873_v22 = vld [vmem:[#allocation2 + $0x268] ss:$2 sm:$0xff]  ;;  %v1877_v27 = vld [vmem:[#allocation2 + $0x269] ss:$2 sm:$0xff] }
 0x246   : > { %1503 = vst [vmem:[#allocation2 + $0x280] sm:$0xff] %v1405_v44  ;;  %v1406_v3 = vmax.f32 %v1258_v63, 0.0  ;;  %2846 = vrot.lane.b32.xlu1 %v10861_v58, %s10260_s25  ;;  %v10896_v5 = vrot.slane %v10855_v54, 4  ;;  %v10905_v7 = vrot.slane %v10855_v54, 3  ;;  %v1888_v36 = vmax.f32 %v1873_v22, %v1877_v27 }
 0x247   : > { %3818 = vrot.lane.b32.xlu0 %v2333_v43, %s10261_s14  ;;  %v10902_v6 = vsel %vm3050_vm3, %v3058_v48, %v3060_v26  ;;  %v10910_v9 = vsel %vm3176_vm4, %v3184_v49, %v3186_v4 }
 0x248   : > { %1504 = vst [vmem:[#allocation2 + $0x288] sm:$0xff] %v1406_v3  ;;  %v10914_v10 = vsel %vm3176_vm4, %v3696_v56, %v10896_v5  ;;  %v10919_v14 = vsel %vm3050_vm3, %v3611_v55, %v10905_v7 }
 0x249   : > { %v1262_v8 = vpop.f32.mrb[164].mxu0 }
 0x24a   : > { %v1263_v11 = vadd.f32 %v10710_v60, %v1262_v8  ;;  %v9282_v12 = vpop.f32.mrb[165].mxu0  ;;  %2972 = vrot.lane.b32.xlu1 %v10865_v59, %s10261_s14 }
 0x24b   : > { %v1265_v15 = vpop.f32.mrb[166].mxu0  ;;  %v9964_v16 = vld [vmem:[#allocation3 + $0x50] sm:$0xff]   ;;  %3398 = vrot.lane.b32.xlu0 %v2809_v1, %s10265_s12 }
 0x24c   : > { %v1407_v17 = vmax.f32 %v1263_v11, 0.0  ;;  %v1266_v18 = vadd.f32 %v10710_v60, %v1265_v15  ;;  %v9283_v19 = vpop.f32.mrb[167].mxu0  ;;  %2410 = vmatmul.mubr.bf16.gmra.mrb[40].mxu1 %v9964_v16 }
 0x24d   : > { %2419 = vmatprep.mubr.bf16.mxu1 %v15171_v35  ;;  %v1875_v23 = vld [vmem:[#allocation2 + $0x278] ss:$2 sm:$0x3f]  ;;  %v1879_v28 = vld [vmem:[#allocation2 + $0x279] ss:$2 sm:$0x3f] }
 0x24e   : > { %1505 = vst [vmem:[#allocation2 + $0x290] sm:$0xff] %v1407_v17  ;;  %v1408_v20 = vmax.f32 %v1266_v18, 0.0  ;;  %3098 = vrot.lane.b32.xlu1 %v3059_v62, %s10262_s19  ;;  %v1889_v42 = vmax.f32 %v1875_v23, %v1879_v28  ;;  %v3903_v62 = vrot.slane %v10855_v54, 1  ;;  %v4028_v23 = vrot.slane %v10855_v54, 2 }
 0x24f   : > { %3490 = vrot.lane.b32.xlu0 %v2935_v29, %s10266_s13 }
 0x250   : > { %1506 = vst [vmem:[#allocation2 + $0x298] sm:$0xff] %v1408_v20 }
 0x251   : > { %v1270_v21 = vpop.f32.mrb[168].mxu0 }
 0x252   : > { %v1271_v24 = vadd.f32 %v10710_v60, %v1270_v21  ;;  %v9286_v25 = vpop.f32.mrb[169].mxu0  ;;  %3224 = vrot.lane.b32.xlu1 %v3185_v37, %s10263_s20 }
 0x253   : > { %v1273_v30 = vpop.f32.mrb[170].mxu0  ;;  %2848 = vrot.lane.b32.xlu0 %v2809_v1, %s10260_s25 }
 0x254   : > { %v1409_v31 = vmax.f32 %v1271_v24, 0.0  ;;  %v1274_v33 = vadd.f32 %v10710_v60, %v1273_v30  ;;  %v9287_v34 = vpop.f32.mrb[171].mxu0 }
 0x255   : > { %v1881_v38 = vld [vmem:[#allocation2 + $0x284] ss:$2 sm:$0xff]  ;;  %v1885_v40 = vld [vmem:[#allocation2 + $0x285] ss:$2 sm:$0xff] }
 0x256   : > { %v1890_v43 = vmax.f32 %v1881_v38, %v1885_v40  ;;  %1507 = vst [vmem:[#allocation2 + $0x2a0] sm:$0xff] %v1409_v31  ;;  %v1410_v45 = vmax.f32 %v1274_v33, 0.0  ;;  %3396 = vrot.lane.b32.xlu1 %v10861_v58, %s10265_s12 }
 0x257   : > { %v1883_v46 = vld [vmem:[#allocation2 + $0x294] ss:$2 sm:$0x3f]  ;;  %v1887_v47 = vld [vmem:[#allocation2 + $0x295] ss:$2 sm:$0x3f]  ;;  %2974 = vrot.lane.b32.xlu0 %v2935_v29, %s10261_s14 }
 0x258   : > { %v1892_v48 = vmax.f32 %v1888_v36, %v1890_v43  ;;  %v1891_v49 = vmax.f32 %v1883_v46, %v1887_v47  ;;  %1508 = vst [vmem:[#allocation2 + $0x2a8] sm:$0xff] %v1410_v45 }
 0x259   : > { %v1278_v50 = vpop.f32.mrb[172].mxu0  ;;  %v10935_v55 = vpop.f32.mrb[12].mxu1 }
 0x25a   : > { %v8794_v52 = vpack.c.bf16 %v1892_v48, %v1892_v48  ;;  %v1893_v53 = vmax.f32 %v1889_v42, %v1891_v49  ;;  %v1279_v56 = vadd.f32 %v10710_v60, %v1278_v50  ;;  %v9290_v57 = vpop.f32.mrb[173].mxu0  ;;  %2663 = vst [vmem:[#allocation4 + $0xc0] sm:$0xff] %v10935_v55  ;;  %v10940_v44 = vpop.f32.mrb[13].mxu1  ;;  %3488 = vrot.lane.b32.xlu1 %v10865_v59, %s10266_s13  ;;  %v2810_v63 = vrot.slane %v10935_v55, 1 }
 0x25b   : > { %v1281_v58 = vpop.f32.mrb[174].mxu0  ;;  %v2936_v0 = vrot.slane %v10935_v55, 2  ;;  %v3062_v37 = vrot.slane %v10935_v55, 3  ;;  %v3188_v1 = vrot.slane %v10935_v55, 4  ;;  %v10948_v8 = vpop.f32.mrb[14].mxu1  ;;  %3100 = vrot.lane.b32.xlu0 %v10902_v6, %s10262_s19  ;;  %v3700_v59 = vrot.slane %v10940_v44, 4 }
 0x25c   : > { %1902 = vst [vmem:[#allocation3 + $0x58] sm:$0xf] %v8794_v52  ;;  %v8795_v3 = vpack.c.bf16 %v1893_v53, %v1893_v53  ;;  %v1411_v29 = vmax.f32 %v1279_v56, 0.0  ;;  %v1282_v11 = vadd.f32 %v10710_v60, %v1281_v58  ;;  %v9291_v12 = vpop.f32.mrb[175].mxu0  ;;  %2667 = vst [vmem:[#allocation4 + $0xe0] sm:$0xff] %v10948_v8  ;;  %v10955_v15 = vpop.f32.mrb[15].mxu1  ;;  %v10960_v16 = vsel %vm2798_vm1, %v2808_v61, %v2810_v63 }
 0x25d   : > { %v10965_v17 = vsel %vm2924_vm2, %v2934_v39, %v2936_v0  ;;  %v2812_v18 = vrot.slane %v10948_v8, 1  ;;  %v10971_v6 = vsel %vm3050_vm3, %v3060_v26, %v3062_v37  ;;  %v2938_v20 = vrot.slane %v10948_v8, 2 }
 0x25e   : > { %1903 = vst [vmem:[#allocation3 + $0x5c] sm:$0x7] %v8795_v3  ;;  %1509 = vst [vmem:[#allocation2 + $0x2b0] sm:$0xff] %v1411_v29  ;;  %v1412_v19 = vmax.f32 %v1282_v11, 0.0  ;;  %v10977_v61 = vsel %vm3176_vm4, %v3186_v4, %v3188_v1  ;;  %v3064_v39 = vrot.slane %v10948_v8, 3  ;;  %3820 = vrot.lane.b32.xlu1 %v10855_v54, %s10261_s14  ;;  %v10989_v21 = vsel %vm3176_vm4, %v10896_v5, %v3700_v59 }
 0x25f   : > { %v10985_v26 = vsel %vm2798_vm1, %v2810_v63, %v2812_v18  ;;  %v3190_v22 = vrot.slane %v10948_v8, 4  ;;  %v3905_v51 = vrot.slane %v10940_v44, 1  ;;  %3226 = vrot.lane.b32.xlu0 %v10910_v9, %s10263_s20  ;;  %v3898_v4 = vld [vmem:[#allocation4 + $0x88] sm:$0xfe]  ;;  %v10999_v24 = vsel %vm2924_vm2, %v2936_v0, %v2938_v20 }
 0x260   : > { %1510 = vst [vmem:[#allocation2 + $0x2b8] sm:$0xff] %v1412_v19  ;;  %v11004_v25 = vsel %vm3050_vm3, %v3062_v37, %v3064_v39  ;;  %v4030_v27 = vrot.slane %v10940_v44, 2  ;;  %v3615_v31 = vrot.slane %v10940_v44, 3  ;;  %v3907_v33 = vrot.slane %v10955_v15, 1  ;;  %v4148_v37 = vld [vmem:[#allocation4 + $0x88] sm:$0xf8] }
 0x261   : > { %v1286_v28 = vpop.f32.mrb[176].mxu0  ;;  %v11010_v9 = vsel %vm3176_vm4, %v3188_v1, %v3190_v22  ;;  %v11015_v30 = vsel %vm2798_vm1, %v3903_v62, %v3905_v51  ;;  %v4032_v36 = vrot.slane %v10955_v15, 2  ;;  %v3617_v42 = vrot.slane %v10955_v15, 3  ;;  %v1905_v11 = vld [vmem:[#allocation2 + $0x2a0] ss:$2 sm:$0xff] }
 0x262   : > { %v1287_v34 = vadd.f32 %v10710_v60, %v1286_v28  ;;  %v9294_v38 = vpop.f32.mrb[177].mxu0  ;;  %v11021_v40 = vsel %vm2924_vm2, %v4028_v23, %v4030_v27  ;;  %3736 = vrot.lane.b32.xlu1 %v10881_v2, %s10260_s25  ;;  %v3902_v45 = vrot.slane %v3898_v4, 1  ;;  %v11029_v46 = vsel %vm3050_vm3, %v10905_v7, %v3615_v31  ;;  %v4023_v2 = vld [vmem:[#allocation4 + $0x88] sm:$0xfc] }
 0x263   : > { %v1289_v43 = vpop.f32.mrb[178].mxu0  ;;  %15262 = vst [vmem:[#allocation6_spill] sm:$0xff] %v11029_v46  ;;  %v11034_v47 = vsel %vm2798_vm1, %v3905_v51, %v3907_v33  ;;  %v3702_v48 = vrot.slane %v10955_v15, 4  ;;  %3738 = vrot.lane.b32.xlu0 %v10914_v10, %s10260_s25  ;;  %v11043_v53 = vsel %vm2924_vm2, %v4030_v27, %v4032_v36  ;;  %v11048_v56 = vsel %vm3050_vm3, %v3615_v31, %v3617_v42  ;;  %v1909_v12 = vld [vmem:[#allocation2 + $0x2a1] ss:$2 sm:$0xff] }
 0x264   : > { %v1413_v49 = vmax.f32 %v1287_v34, 0.0  ;;  %v1290_v50 = vadd.f32 %v10710_v60, %v1289_v43  ;;  %v9295_v52 = vpop.f32.mrb[179].mxu0  ;;  %15263 = vst [vmem:[#allocation7_spill] sm:$0xff] %v11048_v56  ;;  %v3904_v63 = vsel %vm2798_vm1, %v3902_v45, %v3903_v62  ;;  %v4027_v0 = vrot.slane %v4023_v2, 2  ;;  %v4240_v27 = vld [vmem:[#allocation4 + $0x88] sm:$0xf0] }
 0x265   : > { %v11050_v57 = vld [vmem:[#allocation3 + $0x58] sm:$0xff]   ;;  %v11055_v58 = vsel %vm3176_vm4, %v3700_v59, %v3702_v48  ;;  %v4152_v59 = vrot.slane %v4148_v37, 3  ;;  %v1920_v28 = vmax.f32 %v1905_v11, %v1909_v12  ;;  %v4244_v43 = vrot.slane %v4240_v27, 4  ;;  %v11079_v2 = vld [vmem:[%s15160_s2] ss:$0 sm:$0xff] }
 0x266   : > { %1511 = vst [vmem:[#allocation2 + $0x2c0] sm:$0xff] %v1413_v49  ;;  %v1414_v10 = vmax.f32 %v1290_v50, 0.0  ;;  %2420 = vmatmul.mubr.bf16.gmra.mrb[44].mxu1 %v11050_v57  ;;  %3312 = vrot.lane.b32.xlu1 %v10948_v8, %s10264_s29  ;;  %v4029_v54 = vsel %vm2924_vm2, %v4027_v0, %v4028_v23 }
 0x267   : > { %3943 = vrot.lane.b32.xlu0 %v3904_v63, %s10262_s19  ;;  %2429 = vmatprep.mubr.bf16.mxu1 %v15171_v35  ;;  %v4153_v23 = vsel %vm3050_vm3, %v4152_v59, %v10905_v7  ;;  %v1907_v45 = vld [vmem:[#allocation2 + $0x2b0] ss:$2 sm:$0x3f]  ;;  %v4245_v0 = vsel %vm3176_vm4, %v4244_v43, %v10896_v5 }
 0x268   : > { %1512 = vst [vmem:[#allocation2 + $0x2c8] sm:$0xff] %v1414_v10 }
 0x269   : > { %v1294_v1 = vpop.f32.mrb[180].mxu0 }
 0x26a   : > { %v1295_v3 = vadd.f32 %v10710_v60, %v1294_v1  ;;  %v9298_v29 = vpop.f32.mrb[181].mxu0  ;;  %3400 = vrot.lane.b32.xlu1 %v10960_v16, %s10265_s12 }
 0x26b   : > { %v1297_v62 = vpop.f32.mrb[182].mxu0  ;;  %4068 = vrot.lane.b32.xlu0 %v4029_v54, %s10263_s20 }
 0x26c   : > { %v1415_v19 = vmax.f32 %v1295_v3, 0.0  ;;  %v1298_v51 = vadd.f32 %v10710_v60, %v1297_v62  ;;  %v9299_v4 = vpop.f32.mrb[183].mxu0  ;;  %v1911_v60 = vld [vmem:[#allocation2 + $0x2b1] ss:$2 sm:$0x3f] }
 0x26d   : > { %v1921_v37 = vmax.f32 %v1907_v45, %v1911_v60 }
 0x26e   : > { %1513 = vst [vmem:[#allocation2 + $0x2d0] sm:$0xff] %v1415_v19  ;;  %v1416_v31 = vmax.f32 %v1298_v51, 0.0  ;;  %3492 = vrot.lane.b32.xlu1 %v10965_v17, %s10266_s13 }
 0x26f   : > { %v1913_v34 = vld [vmem:[#allocation2 + $0x2bc] ss:$2 sm:$0xff]  ;;  %v1917_v38 = vld [vmem:[#allocation2 + $0x2bd] ss:$2 sm:$0xff]  ;;  %4160 = vrot.lane.b32.xlu0 %v4153_v23, %s10264_s29 }
 0x270   : > { %v1922_v49 = vmax.f32 %v1913_v34, %v1917_v38  ;;  %1514 = vst [vmem:[#allocation2 + $0x2d8] sm:$0xff] %v1416_v31 }
 0x271   : > { %v1302_v50 = vpop.f32.mrb[184].mxu0 }
 0x272   : > { %v1924_v52 = vmax.f32 %v1920_v28, %v1922_v49  ;;  %v1303_v10 = vadd.f32 %v11079_v2, %v1302_v50  ;;  %v9302_v7 = vpop.f32.mrb[185].mxu0  ;;  %3824 = vrot.lane.b32.xlu1 %v10955_v15, %s10261_s14 }
 0x273   : > { %v1305_v63 = vpop.f32.mrb[186].mxu0  ;;  %4252 = vrot.lane.b32.xlu0 %v4245_v0, %s10265_s12 }
 0x274   : > { %v8796_v1 = vpack.c.bf16 %v1924_v52, %v1924_v52  ;;  %v1417_v3 = vmax.f32 %v1303_v10, 0.0  ;;  %v1306_v29 = vadd.f32 %v11079_v2, %v1305_v63  ;;  %v9303_v11 = vpop.f32.mrb[187].mxu0 }
 0x275   : > { %v1915_v12 = vld [vmem:[#allocation2 + $0x2cc] ss:$2 sm:$0x3f]  ;;  %v1919_v54 = vld [vmem:[#allocation2 + $0x2cd] ss:$2 sm:$0x3f] }
 0x276   : > { %1934 = vst [vmem:[#allocation3 + $0x60] sm:$0xf] %v8796_v1  ;;  %v1923_v62 = vmax.f32 %v1915_v12, %v1919_v54  ;;  %1515 = vst [vmem:[#allocation2 + $0x2e0] sm:$0xff] %v1417_v3  ;;  %v1418_v59 = vmax.f32 %v1306_v29, 0.0  ;;  %4338 = vrot.lane.b32.xlu1 %v10955_v15, %s10266_s13 }
 0x277   : > { %v11090_v19 = vpop.f32.mrb[16].mxu1  ;;  %3310 = vrot.lane.b32.xlu0 %v10935_v55, %s10264_s29 }
 0x278   : > { %v1925_v5 = vmax.f32 %v1921_v37, %v1923_v62  ;;  %1516 = vst [vmem:[#allocation2 + $0x2e8] sm:$0xff] %v1418_v59  ;;  %2671 = vst [vmem:[#allocation4 + $0x100] sm:$0xff] %v11090_v19  ;;  %v11095_v51 = vpop.f32.mrb[17].mxu1  ;;  %v2814_v27 = vrot.slane %v11090_v19, 1  ;;  %v2940_v28 = vrot.slane %v11090_v19, 2  ;;  %v3066_v31 = vrot.slane %v11090_v19, 3 }
 0x279   : > { %v1310_v4 = vpop.f32.mrb[188].mxu0  ;;  %v3192_v34 = vrot.slane %v11090_v19, 4  ;;  %v11101_v23 = vpop.f32.mrb[18].mxu1  ;;  %v3909_v55 = vrot.slane %v11095_v51, 1  ;;  %v4034_v49 = vrot.slane %v11095_v51, 2  ;;  %v3704_v11 = vrot.slane %v11095_v51, 4 }
 0x27a   : > { %v8797_v38 = vpack.c.bf16 %v1925_v5, %v1925_v5  ;;  %v1311_v43 = vadd.f32 %v11079_v2, %v1310_v4  ;;  %v9306_v45 = vpop.f32.mrb[189].mxu0  ;;  %2675 = vst [vmem:[#allocation4 + $0x120] sm:$0xff] %v11101_v23  ;;  %v11107_v60 = vpop.f32.mrb[19].mxu1  ;;  %2850 = vrot.lane.b32.xlu1 %v10960_v16, %s10260_s25  ;;  %v11114_v52 = vsel %vm2798_vm1, %v2812_v18, %v2814_v27  ;;  %v2942_v37 = vrot.slane %v11101_v23, 2 }
 0x27b   : > { %v1313_v50 = vpop.f32.mrb[190].mxu0  ;;  %v11119_v10 = vsel %vm2924_vm2, %v2938_v20, %v2940_v28  ;;  %v11124_v7 = vsel %vm3050_vm3, %v3064_v39, %v3066_v31  ;;  %v11129_v63 = vsel %vm3176_vm4, %v3190_v22, %v3192_v34  ;;  %3822 = vrot.lane.b32.xlu0 %v10940_v44, %s10261_s14  ;;  %v2816_v20 = vrot.slane %v11101_v23, 1 }
 0x27c   : > { %1935 = vst [vmem:[#allocation3 + $0x64] sm:$0x7] %v8797_v38  ;;  %v1419_v16 = vmax.f32 %v1311_v43, 0.0  ;;  %v1314_v18 = vadd.f32 %v11079_v2, %v1313_v50  ;;  %v9307_v0 = vpop.f32.mrb[191].mxu0  ;;  %v11139_v39 = vsel %vm2798_vm1, %v3907_v33, %v3909_v55  ;;  %v11144_v8 = vsel %vm2924_vm2, %v4032_v36, %v4034_v49 }
 0x27d   : > { %v11149_v1 = vsel %vm2798_vm1, %v2814_v27, %v2816_v20  ;;  %v11154_v3 = vsel %vm2924_vm2, %v2940_v28, %v2942_v37  ;;  %v3068_v33 = vrot.slane %v11101_v23, 3  ;;  %v3619_v36 = vrot.slane %v11095_v51, 3 }
 0x27e   : > { %1517 = vst [vmem:[#allocation2 + $0x2f0] sm:$0xff] %v1419_v16  ;;  %v1420_v22 = vmax.f32 %v1314_v18, 0.0  ;;  %2976 = vrot.lane.b32.xlu1 %v10965_v17, %s10261_s14  ;;  %v3194_v29 = vrot.slane %v11101_v23, 4  ;;  %v3706_v12 = vrot.slane %v11107_v60, 4  ;;  %v3911_v54 = vrot.slane %v11107_v60, 1 }
 0x27f   : > { %4336 = vrot.lane.b32.xlu0 %v10940_v44, %s10266_s13  ;;  %v4036_v62 = vrot.slane %v11107_v60, 2  ;;  %v15174_v17 = vrot.slane %v11107_v60, 3  ;;  %v11171_v5 = vsel %vm3050_vm3, %v3066_v31, %v3068_v33  ;;  %v11176_v4 = vsel %vm3050_vm3, %v3617_v42, %v3619_v36 }
 0x280   : > { %1518 = vst [vmem:[#allocation2 + $0x2f8] sm:$0xff] %v1420_v22  ;;  %15264 = vst [vmem:[#allocation8_spill] sm:$0xff] %v11176_v4  ;;  %v11181_v44 = vsel %vm3176_vm4, %v3192_v34, %v3194_v29  ;;  %v11186_v27 = vsel %vm3176_vm4, %v3702_v48, %v3704_v11  ;;  %v11192_v31 = vsel %vm3176_vm4, %v3704_v11, %v3706_v12 }
 0x281   : > { %v1318_v59 = vpop.f32.mrb[192].mxu0  ;;  %v11197_v42 = vsel %vm2798_vm1, %v3909_v55, %v3911_v54  ;;  %v11202_v15 = vsel %vm2924_vm2, %v4034_v49, %v4036_v62  ;;  %v11211_v43 = vsel %vm3050_vm3, %v3619_v36, %v15174_v17 }
 0x282   : > { %v1319_v28 = vadd.f32 %v11079_v2, %v1318_v59  ;;  %v9310_v38 = vpop.f32.mrb[193].mxu0  ;;  %3102 = vrot.lane.b32.xlu1 %v10971_v6, %s10262_s19  ;;  %15266 = vst [vmem:[#allocation10_spill] sm:$0xff] %v11211_v43  ;;  %v1937_v6 = vld [vmem:[#allocation2 + $0x2d8] ss:$2 sm:$0xff] }
 0x283   : > { %v1321_v48 = vpop.f32.mrb[194].mxu0  ;;  %v11204_v34 = vld [vmem:[#allocation3 + $0x60] sm:$0xff]   ;;  %2852 = vrot.lane.b32.xlu0 %v10985_v26, %s10260_s25 }
 0x284   : > { %15265 = vst [vmem:[#allocation9_spill] sm:$0xff] %v11204_v34  ;;  %v1421_v45 = vmax.f32 %v1319_v28, 0.0  ;;  %v1322_v55 = vadd.f32 %v11079_v2, %v1321_v48  ;;  %v9311_v50 = vpop.f32.mrb[195].mxu0  ;;  %2430 = vmatmul.mubr.bf16.gmra.mrb[48].mxu1 %v11204_v34  ;;  %v1941_v2 = vld [vmem:[#allocation2 + $0x2d9] ss:$2 sm:$0xff] }
 0x285   : > { %v11217_v16 = vpop.permute.xlu0 %2840  ;;  %2439 = vmatprep.mubr.bf16.mxu1 %v15171_v35  ;;  %v1939_v0 = vld [vmem:[#allocation2 + $0x2e8] ss:$2 sm:$0x3f]  ;;  %v1943_v22 = vld [vmem:[#allocation2 + $0x2e9] ss:$2 sm:$0x3f]  ;;  %v1952_v59 = vmax.f32 %v1937_v6, %v1941_v2 }
 0x286   : > { %1519 = vst [vmem:[#allocation2 + $0x300] sm:$0xff] %v1421_v45  ;;  %v1422_v49 = vmax.f32 %v1322_v55, 0.0  ;;  %3228 = vrot.lane.b32.xlu1 %v10977_v61, %s10263_s20  ;;  %v1953_v61 = vmax.f32 %v1939_v0, %v1943_v22 }
 0x287   : > { %2978 = vrot.lane.b32.xlu0 %v10999_v24, %s10261_s14 }
 0x288   : > { %1520 = vst [vmem:[#allocation2 + $0x308] sm:$0xff] %v1422_v49 }
 0x289   : > { %v11224_v18 = vpop.permute.xlu0 %2966 }
 0x28a   : > { %3740 = vrot.lane.b32.xlu1 %v10989_v21, %s10260_s25 }
 0x28b   : > { %3104 = vrot.lane.b32.xlu0 %v11004_v25, %s10262_s19 }
 0x28d   : > { %v1945_v36 = vld [vmem:[#allocation2 + $0x2f4] ss:$2 sm:$0xff]  ;;  %v1949_v11 = vld [vmem:[#allocation2 + $0x2f5] ss:$2 sm:$0xff]  ;;  %v11230_v38 = vpop.permute.xlu0 %3092 }
 0x28e   : > { %v1954_v28 = vmax.f32 %v1945_v36, %v1949_v11  ;;  %3945 = vrot.lane.b32.xlu1 %v11015_v30, %s10262_s19 }
 0x28f   : > { %v1947_v48 = vld [vmem:[#allocation2 + $0x304] ss:$2 sm:$0x3f]  ;;  %v1951_v45 = vld [vmem:[#allocation2 + $0x305] ss:$2 sm:$0x3f]  ;;  %3230 = vrot.lane.b32.xlu0 %v11010_v9, %s10263_s20 }
 0x290   : > { %v1956_v55 = vmax.f32 %v1952_v59, %v1954_v28  ;;  %v1955_v50 = vmax.f32 %v1947_v48, %v1951_v45 }
 0x291   : > { %v11236_v25 = vpop.f32.mrb[20].mxu1  ;;  %v11238_v35 = vpop.permute.xlu0 %3218 }
 0x292   : > { %v8798_v49 = vpack.c.bf16 %v1956_v55, %v1956_v55  ;;  %v1957_v13 = vmax.f32 %v1953_v61, %v1955_v50  ;;  %2679 = vst [vmem:[#allocation4 + $0x140] sm:$0xff] %v11236_v25  ;;  %v11241_v6 = vpop.f32.mrb[21].mxu1  ;;  %4070 = vrot.lane.b32.xlu1 %v11021_v40, %s10263_s20  ;;  %v2818_v30 = vrot.slane %v11236_v25, 1  ;;  %v2944_v2 = vrot.slane %v11236_v25, 2 }
 0x293   : > { %v3070_v0 = vrot.slane %v11236_v25, 3  ;;  %v11248_v22 = vpop.f32.mrb[22].mxu1  ;;  %3402 = vrot.lane.b32.xlu0 %v10985_v26, %s10265_s12  ;;  %v3196_v36 = vrot.slane %v11236_v25, 4  ;;  %v3708_v11 = vrot.slane %v11241_v6, 4  ;;  %v3913_v59 = vrot.slane %v11241_v6, 1 }
 0x294   : > { %1966 = vst [vmem:[#allocation3 + $0x68] sm:$0xf] %v8798_v49  ;;  %v8799_v9 = vpack.c.bf16 %v1957_v13, %v1957_v13  ;;  %2683 = vst [vmem:[#allocation4 + $0x160] sm:$0xff] %v11248_v22  ;;  %v11256_v40 = vpop.f32.mrb[23].mxu1  ;;  %v11261_v61 = vsel %vm2798_vm1, %v2816_v20, %v2818_v30  ;;  %v11266_v13 = vsel %vm2924_vm2, %v2942_v37, %v2944_v2  ;;  %v15173_v26 = vrot.slane %v11248_v22, 1 }
 0x295   : > { %v11272_v28 = vsel %vm3050_vm3, %v3068_v33, %v3070_v0  ;;  %v3303_v48 = vpop.permute.xlu0 %3302  ;;  %v15175_v45 = vrot.slane %v11248_v22, 2  ;;  %v11278_v20 = vsel %vm3176_vm4, %v3194_v29, %v3196_v36  ;;  %v15176_v55 = vrot.slane %v11248_v22, 3 }
 0x296   : > { %1967 = vst [vmem:[#allocation3 + $0x6c] sm:$0x7] %v8799_v9  ;;  %v11284_v37 = vsel %vm3176_vm4, %v3706_v12, %v3708_v11  ;;  %v11286_v50 = vpop.permute.xlu1 %3304  ;;  %4162 = vrot.lane.b32.xlu1 %v11029_v46, %s10264_s29  ;;  %v11293_v33 = vsel %vm2798_vm1, %v2818_v30, %v15173_v26  ;;  %v15178_v29 = vrot.slane %v11248_v22, 4  ;;  %v11299_v49 = vsel %vm2798_vm1, %v3911_v54, %v3913_v59 }
 0x297   : > { %3494 = vrot.lane.b32.xlu0 %v10999_v24, %s10266_s13  ;;  %v11306_v12 = vsel %vm2924_vm2, %v2944_v2, %v15175_v45  ;;  %v11311_v30 = vsel %vm3050_vm3, %v3070_v0, %v15176_v55  ;;  %v4038_v9 = vrot.slane %v11241_v6, 2  ;;  %v3623_v26 = vrot.slane %v11241_v6, 3 }
 0x298   : > { %v11318_v54 = vsel %vm3176_vm4, %v3196_v36, %v15178_v29  ;;  %v15180_v24 = vrot.slane %v11256_v40, 1  ;;  %v15182_v17 = vrot.slane %v11256_v40, 2  ;;  %v15267_v55 = vrot.slane %v11107_v60, 3 }
 0x299   : > { %v11323_v45 = vpop.permute.xlu0 %2842  ;;  %v11328_v0 = vsel %vm2924_vm2, %v4036_v62, %v4038_v9  ;;  %v15181_v36 = vrot.slane %v11256_v40, 4 }
 0x29a   : > { %v11333_v46 = vsel %vm3050_vm3, %v15267_v55, %v3623_v26  ;;  %v11336_v29 = vpop.permute.xlu1 %2968  ;;  %4254 = vrot.lane.b32.xlu1 %v10989_v21, %s10265_s12  ;;  %v11343_v2 = vsel %vm2798_vm1, %v3913_v59, %v15180_v24  ;;  %v11348_v62 = vsel %vm2924_vm2, %v4038_v9, %v15182_v17  ;;  %v15271_v55 = vrot.slane %v11256_v40, 3 }
 0x29b   : > { %15268 = vst [vmem:[#allocation11_spill] sm:$0xff] %v11333_v46  ;;  %15269 = vst [vmem:[#allocation12_spill] sm:$0xff] %v11343_v2  ;;  %3947 = vrot.lane.b32.xlu0 %v11034_v47, %s10262_s19  ;;  %v11360_v21 = vsel %vm3176_vm4, %v3708_v11, %v15181_v36  ;;  %v15275_v9 = vmov 0   ;;  %v11375_v36 = vld [vmem:[#allocation3 + $0x70] ss:$0 sps:$4 sm:$0xff]   ;;  %v10206_v46 = vld [vmem:[#allocation3 + $0x8] sm:$0xff]  }
 0x29c   : > { %15270 = vst [vmem:[#allocation13_spill] sm:$0xff] %v11348_v62  ;;  %v11353_v34 = vsel %vm3050_vm3, %v3623_v26, %v15271_v55  ;;  %15273 = vst [vmem:[#allocation15_spill] sm:$0xff] %v11360_v21  ;;  %v10203_v55 = vld [vmem:[#allocation4] sm:$0xff]  ;;  %v10205_v62 = vld [vmem:[#allocation3] sm:$0xff]  }
 0x29d   : > { %15272 = vst [vmem:[#allocation14_spill] sm:$0xff] %v11353_v34  ;;  %v11362_v59 = vld [vmem:[#allocation3 + $0x68] sm:$0xff]   ;;  %v2971_v24 = vpop.permute.xlu0 %2970  ;;  %v2900_v11 = vadd.f32 %v10203_v55, %v11217_v16  ;;  %15276 = vst [vmem:[#allocation17_spill] sm:$0xff] %v11375_v36  ;;  %v3566_v55 = vld [vmem:[#allocation4 + $0x48] sm:$0xf8] }
 0x29e   : > { %15274 = vst [vmem:[#allocation16_spill] sm:$0xff] %v11362_v59  ;;  %2440 = vmatmul.mubr.bf16.gmra.mrb[52].mxu1 %v11362_v59  ;;  %3316 = vrot.lane.b32.xlu1 %v11101_v23, %s10264_s29  ;;  %v11368_v26 = vpop.permute.xlu1 %3094  ;;  %v10204_v59 = vld [vmem:[#allocation4 + $0x40] sm:$0xff] }
 0x29f   : > { %2449 = vmatprep.mubr.bf16.mxu1 %v15275_v9  ;;  %4072 = vrot.lane.b32.xlu0 %v11043_v53, %s10263_s20  ;;  %v3026_v23 = vadd.f32 %v11224_v18, %v2900_v11 }
 0x2a1   : > { %v11372_v47 = vpop.permute.xlu0 %3096  ;;  %v3152_v53 = vadd.f32 %v11230_v38, %v3026_v23  ;;  %v3608_v38 = vrot.slane %v3566_v55, 3 }
 0x2a2   : > { %4342 = vrot.lane.b32.xlu1 %v11107_v60, %s10266_s13  ;;  %v11382_v17 = vpop.permute.xlu1 %3220 }
 0x2a3   : > { %4164 = vrot.lane.b32.xlu0 %v11048_v56, %s10264_s29  ;;  %v3278_v16 = vadd.f32 %v11238_v35, %v3152_v53 }
 0x2a5   : > { %v11384_v21 = vpop.permute.xlu0 %3222  ;;  %v3362_v11 = vadd.f32 %v3303_v48, %v3278_v16 }
 0x2a6   : > { %2450 = vmatmul.mubr.bf16.gmra.mrb[56].mxu1 %v11375_v36  ;;  %2854 = vrot.lane.b32.xlu1 %v11114_v52, %s10260_s25  ;;  %v2845_v56 = vpop.permute.xlu1 %2844 }
 0x2a7   : > { %2490 = vmatprep.mubr.bf16.mxu1 %v15275_v9  ;;  %4256 = vrot.lane.b32.xlu0 %v11055_v58, %s10265_s12  ;;  %v2902_v34 = vadd.f32 %v10204_v59, %v2845_v56 }
 0x2a9   : > { %v3395_v18 = vpop.permute.xlu0 %3394 }
 0x2aa   : > { %2980 = vrot.lane.b32.xlu1 %v11119_v10, %s10261_s14  ;;  %v3454_v23 = vadd.f32 %v3395_v18, %v3362_v11 }
 0x2ab   : > { %3742 = vrot.lane.b32.xlu0 %v11055_v58, %s10260_s25  ;;  %v15278_v58 = vrot.slane %v10787_v32, 3 }
 0x2ad   : > { %v3487_v36 = vpop.permute.xlu0 %3486  ;;  %v3610_v48 = vsel %vm3050_vm3, %v3608_v38, %v15278_v58  ;;  %v15281_v38 = vrot.slane %v11248_v22, 1  ;;  %v15283_v58 = vrot.slane %v11248_v22, 2 }
 0x2ae   : > { %2491 = vmatmul.mubr.bf16.vlgmr.msra.gmra.mrb[60].mxu1 %v10205_v62  ;;  %v3546_v2 = vadd.f32 %v3487_v36, %v3454_v23  ;;  %3106 = vrot.lane.b32.xlu1 %v11124_v7, %s10262_s19 }
 0x2af   : > { %v11400_v35 = vpop.f32.mrb[24].mxu1  ;;  %2500 = vmatprep.mubr.bf16.mxu1 %v15275_v9  ;;  %3314 = vrot.lane.b32.xlu0 %v11090_v19, %s10264_s29 }
 0x2b0   : > { %15277 = vst [vmem:[#allocation18_spill] sm:$0xff] %v11400_v35  ;;  %2687 = vst [vmem:[#allocation4 + $0x180] sm:$0xff] %v11400_v35  ;;  %v11409_v56 = vpop.f32.mrb[25].mxu1  ;;  %v11411_v62 = vadd.f32 %v3610_v48, %v3546_v2  ;;  %v2822_v36 = vrot.slane %v11400_v35, 1  ;;  %v2948_v7 = vrot.slane %v11400_v35, 2  ;;  %v3074_v59 = vrot.slane %v11400_v35, 3 }
 0x2b1   : > { %v11416_v53 = vpop.f32.mrb[26].mxu1  ;;  %v11418_v16 = vpop.permute.xlu0 %3734  ;;  %v3200_v32 = vrot.slane %v11400_v35, 4  ;;  %v3917_v19 = vrot.slane %v11409_v56, 1  ;;  %v4042_v55 = vrot.slane %v11409_v56, 2  ;;  %v3627_v18 = vrot.slane %v11409_v56, 3 }
 0x2b2   : > { %15279 = vst [vmem:[#allocation19_spill] sm:$0xff] %v11411_v62  ;;  %15280 = vst [vmem:[#allocation20_spill] sm:$0xff] %v11418_v16  ;;  %v3028_v2 = vadd.f32 %v2971_v24, %v2902_v34  ;;  %v11425_v11 = vpop.f32.mrb[27].mxu1  ;;  %3232 = vrot.lane.b32.xlu1 %v11129_v63, %s10263_s20  ;;  %v11432_v23 = vsel %vm2798_vm1, %v15281_v38, %v2822_v36  ;;  %v11437_v48 = vsel %vm2924_vm2, %v15283_v58, %v2948_v7 }
 0x2b3   : > { %2691 = vst [vmem:[#allocation4 + $0x1a0] sm:$0xff] %v11416_v53  ;;  %15282 = vst [vmem:[#allocation21_spill] sm:$0xff] %v11432_v23  ;;  %v15285_v16 = vrot.slane %v11248_v22, 3  ;;  %4340 = vrot.lane.b32.xlu0 %v11095_v51, %s10266_s13  ;;  %v15287_v63 = vrot.slane %v11248_v22, 4  ;;  %v15289_v58 = vrot.slane %v11256_v40, 1  ;;  %v3712_v23 = vrot.slane %v11409_v56, 4 }
 0x2b4   : > { %15284 = vst [vmem:[#allocation22_spill] sm:$0xff] %v11437_v48  ;;  %v11458_v48 = vpop.permute.xlu1 %3308 }
 0x2b5   : > { %v11442_v34 = vsel %vm3050_vm3, %v15285_v16, %v3074_v59  ;;  %v11449_v24 = vsel %vm3176_vm4, %v15287_v63, %v3200_v32  ;;  %v11456_v35 = vsel %vm2798_vm1, %v15289_v58, %v3917_v19  ;;  %15291 = vst [vmem:[#allocation26_spill] sm:$0xff] %v11458_v48  ;;  %v15292_v16 = vrot.slane %v11256_v40, 2 }
 0x2b6   : > { %15286 = vst [vmem:[#allocation23_spill] sm:$0xff] %v11442_v34  ;;  %15288 = vst [vmem:[#allocation24_spill] sm:$0xff] %v11449_v24  ;;  %v15294_v63 = vrot.slane %v11256_v40, 3  ;;  %v3307_v24 = vpop.permute.xlu0 %3306  ;;  %v15296_v58 = vrot.slane %v11416_v53, 1  ;;  %v15297_v48 = vrot.slane %v11416_v53, 2  ;;  %2501 = vmatmul.mubr.bf16.gmra.mrb[64].mxu1 %v10206_v46  ;;  %3404 = vrot.lane.b32.xlu1 %v11114_v52, %s10265_s12  ;;  %v15300_v46 = vrot.slane %v11256_v40, 4 }
 0x2b7   : > { %15290 = vst [vmem:[#allocation25_spill] sm:$0xff] %v11456_v35  ;;  %v11463_v34 = vsel %vm2924_vm2, %v15292_v16, %v4042_v55  ;;  %2510 = vmatprep.mubr.bf16.mxu1 %v15275_v9  ;;  %3826 = vrot.lane.b32.xlu0 %v11095_v51, %s10261_s14 }
 0x2b8   : > { %15293 = vst [vmem:[#allocation27_spill] sm:$0xff] %v11463_v34  ;;  %v11469_v38 = vsel %vm3050_vm3, %v15294_v63, %v3627_v18  ;;  %v11475_v35 = vsel %vm2798_vm1, %v2822_v36, %v15296_v58  ;;  %v11480_v16 = vsel %vm2924_vm2, %v2948_v7, %v15297_v48  ;;  %v15192_v34 = vrot.slane %v11425_v11, 4 }
 0x2b9   : > { %15295 = vst [vmem:[#allocation28_spill] sm:$0xff] %v11469_v38  ;;  %v15298_v63 = vrot.slane %v11416_v53, 3  ;;  %v15299_v36 = vrot.slane %v11416_v53, 4  ;;  %v15193_v7 = vrot.slane %v11425_v11, 1  ;;  %v11503_v52 = vsel %vm3176_vm4, %v15300_v46, %v3712_v23 }
 0x2ba   : > { %v15195_v48 = vrot.slane %v11425_v11, 3  ;;  %v11520_v46 = vpop.permute.xlu0 %3818  ;;  %3496 = vrot.lane.b32.xlu1 %v11119_v10, %s10266_s13 }
 0x2bb   : > { %v11489_v62 = vsel %vm3050_vm3, %v3074_v59, %v15298_v63  ;;  %v11494_v58 = vsel %vm3176_vm4, %v3200_v32, %v15299_v36  ;;  %v11508_v59 = vsel %vm3176_vm4, %v3712_v23, %v15192_v34  ;;  %v15194_v32 = vrot.slane %v11425_v11, 2  ;;  %v11513_v36 = vpop.permute.xlu1 %2846  ;;  %15302 = vst [vmem:[#allocation30_spill] sm:$0xff] %v11520_v46  ;;  %3406 = vrot.lane.b32.xlu0 %v11149_v1, %s10265_s12 }
 0x2bc   : > { %v3154_v63 = vadd.f32 %v11372_v47, %v3028_v2  ;;  %15301 = vst [vmem:[#allocation29_spill] sm:$0xff] %v11513_v36  ;;  %v11518_v51 = vsel %vm2798_vm1, %v3917_v19, %v15193_v7  ;;  %v11530_v34 = vsel %vm3050_vm3, %v3627_v18, %v15195_v48  ;;  %v10207_v47 = vld [vmem:[#allocation4 + $0x20] sm:$0xff] }
 0x2bd   : > { %v11525_v23 = vsel %vm2924_vm2, %v4042_v55, %v15194_v32  ;;  %15303 = vst [vmem:[#allocation31_spill] sm:$0xff] %v11530_v34  ;;  %v2901_v2 = vadd.f32 %v10207_v47, %v11323_v45  ;;  %v10208_v36 = vld [vmem:[#allocation3 + $0x10] sm:$0xff]  }
 0x2be   : > { %v3280_v19 = vadd.f32 %v11384_v21, %v3154_v63  ;;  %v3399_v55 = vpop.permute.xlu0 %3398  ;;  %2511 = vmatmul.mubr.bf16.gmra.mrb[68].mxu1 %v10208_v36  ;;  %3828 = vrot.lane.b32.xlu1 %v11107_v60, %s10261_s14 }
 0x2bf   : > { %v11538_v7 = vpop.permute.xlu1 %2972  ;;  %v3027_v32 = vadd.f32 %v11336_v29, %v2901_v2  ;;  %2520 = vmatprep.mubr.bf16.mxu1 %v15275_v9  ;;  %3498 = vrot.lane.b32.xlu0 %v11154_v3, %s10266_s13 }
 0x2c0   : > { %15304 = vst [vmem:[#allocation32_spill] sm:$0xff] %v11538_v7  ;;  %v3364_v46 = vadd.f32 %v3307_v24, %v3280_v19 }
 0x2c1   : > { %v3153_v18 = vadd.f32 %v11368_v26, %v3027_v32 }
 0x2c2   : > { %v3456_v10 = vadd.f32 %v3399_v55, %v3364_v46  ;;  %v3491_v21 = vpop.permute.xlu0 %3490  ;;  %3949 = vrot.lane.b32.xlu1 %v11139_v39, %s10262_s19  ;;  %v10209_v46 = vld [vmem:[#allocation3 + $0x18] sm:$0xff]  }
 0x2c3   : > { %v11546_v45 = vpop.permute.xlu1 %3098  ;;  %2856 = vrot.lane.b32.xlu0 %v11149_v1, %s10260_s25  ;;  %v3279_v60 = vadd.f32 %v11382_v17, %v3153_v18 }
 0x2c4   : > { %15305 = vst [vmem:[#allocation33_spill] sm:$0xff] %v11546_v45  ;;  %v3548_v63 = vadd.f32 %v3491_v21, %v3456_v10  ;;  %v10211_v45 = vld [vmem:[#allocation3 + $0x28] sm:$0xff]  }
 0x2c5   : > { %v3363_v39 = vadd.f32 %v11286_v50, %v3279_v60 }
 0x2c6   : > { %v11557_v24 = vadd.f32 %v10919_v14, %v3548_v63  ;;  %v11559_v36 = vpop.permute.xlu0 %2848  ;;  %2521 = vmatmul.mubr.bf16.gmra.mrb[72].mxu1 %v10209_v46  ;;  %4074 = vrot.lane.b32.xlu1 %v11144_v8, %s10263_s20  ;;  %v15310_v63 = vrot.slane %v11416_v53, 1 }
 0x2c7   : > { %v11554_v29 = vpop.permute.xlu1 %3224  ;;  %15308 = vst [vmem:[#allocation36_spill] sm:$0xff] %v11559_v36  ;;  %2530 = vmatprep.mubr.bf16.mxu1 %v15275_v9  ;;  %2982 = vrot.lane.b32.xlu0 %v11154_v3, %s10261_s14 }
 0x2c8   : > { %15306 = vst [vmem:[#allocation34_spill] sm:$0xff] %v11554_v29  ;;  %15307 = vst [vmem:[#allocation35_spill] sm:$0xff] %v11557_v24  ;;  %v10210_v29 = vld [vmem:[#allocation3 + $0x20] sm:$0xff]  }
 0x2c9   : > { %v11567_v17 = vpop.f32.mrb[28].mxu1 }
 0x2ca   : > { %v11569_v26 = vpop.permute.xlu0 %2974  ;;  %2695 = vst [vmem:[#allocation4 + $0x1c0] sm:$0xff] %v11567_v17  ;;  %v11572_v14 = vpop.f32.mrb[29].mxu1  ;;  %4166 = vrot.lane.b32.xlu1 %v11176_v4, %s10264_s29  ;;  %v2826_v8 = vrot.slane %v11567_v17, 1  ;;  %v2952_v47 = vrot.slane %v11567_v17, 2  ;;  %v3078_v3 = vrot.slane %v11567_v17, 3  ;;  %v3204_v2 = vrot.slane %v11567_v17, 4 }
 0x2cb   : > { %v3397_v1 = vpop.permute.xlu1 %3396  ;;  %15309 = vst [vmem:[#allocation37_spill] sm:$0xff] %v11569_v26  ;;  %v11579_v50 = vpop.f32.mrb[30].mxu1  ;;  %3108 = vrot.lane.b32.xlu0 %v11171_v5, %s10262_s19  ;;  %v3716_v19 = vrot.slane %v11572_v14, 4  ;;  %v3921_v55 = vrot.slane %v11572_v14, 1  ;;  %v4046_v10 = vrot.slane %v11572_v14, 2  ;;  %v15311_v5 = vrot.slane %v11416_v53, 2 }
 0x2cc   : > { %v3455_v32 = vadd.f32 %v3397_v1, %v3363_v39  ;;  %2699 = vst [vmem:[#allocation4 + $0x1e0] sm:$0xff] %v11579_v50  ;;  %v11588_v21 = vpop.f32.mrb[31].mxu1  ;;  %v11593_v60 = vsel %vm2798_vm1, %v15310_v63, %v2826_v8  ;;  %v15197_v39 = vrot.slane %v11579_v50, 1  ;;  %v15312_v1 = vrot.slane %v11416_v53, 3 }
 0x2cd   : > { %v11598_v46 = vsel %vm2924_vm2, %v15311_v5, %v2952_v47  ;;  %v15198_v26 = vrot.slane %v11579_v50, 2  ;;  %v15314_v63 = vrot.slane %v11416_v53, 4  ;;  %v15199_v5 = vrot.slane %v11579_v50, 3 }
 0x2ce   : > { %v11604_v48 = vsel %vm3050_vm3, %v15312_v1, %v3078_v3  ;;  %v11606_v24 = vpop.permute.xlu0 %3100  ;;  %2531 = vmatmul.mubr.bf16.gmra.mrb[76].mxu1 %v10210_v29  ;;  %4258 = vrot.lane.b32.xlu1 %v11186_v27, %s10265_s12 }
 0x2cf   : > { %v3489_v18 = vpop.permute.xlu1 %3488  ;;  %15313 = vst [vmem:[#allocation38_spill] sm:$0xff] %v11606_v24  ;;  %v11612_v36 = vsel %vm3176_vm4, %v15314_v63, %v3204_v2  ;;  %2540 = vmatprep.mubr.bf16.mxu1 %v15275_v9  ;;  %3234 = vrot.lane.b32.xlu0 %v11181_v44, %s10263_s20  ;;  %v15318_v24 = vrot.slane %v11579_v50, 4 }
 0x2d0   : > { %v3547_v4 = vadd.f32 %v3489_v18, %v3455_v32  ;;  %v11620_v32 = vsel %vm2798_vm1, %v2826_v8, %v15197_v39  ;;  %v15315_v18 = vrot.slane %v11425_v11, 4  ;;  %v11637_v8 = vsel %vm2924_vm2, %v2952_v47, %v15198_v26 }
 0x2d1   : > { %v3631_v39 = vrot.slane %v11572_v14, 3  ;;  %v11650_v44 = vsel %vm3176_vm4, %v3204_v2, %v15318_v24  ;;  %v15320_v47 = vrot.slane %v11425_v11, 2  ;;  %v15202_v24 = vrot.slane %v11588_v21, 2 }
 0x2d2   : > { %v11625_v1 = vsel %vm3176_vm4, %v15315_v18, %v3716_v19  ;;  %v11632_v29 = vadd.f32 %v10886_v41, %v3547_v4  ;;  %v11642_v18 = vsel %vm3050_vm3, %v3078_v3, %v15199_v5  ;;  %v15319_v41 = vrot.slane %v11425_v11, 1  ;;  %v11663_v5 = vpop.permute.xlu0 %3226  ;;  %3744 = vrot.lane.b32.xlu1 %v11186_v27, %s10260_s25 }
 0x2d3   : > { %v11645_v63 = vpop.permute.xlu1 %3820  ;;  %v11660_v26 = vsel %vm2924_vm2, %v15320_v47, %v4046_v10  ;;  %v15200_v3 = vrot.slane %v11588_v21, 1  ;;  %15321 = vst [vmem:[#allocation41_spill] sm:$0xff] %v11663_v5  ;;  %v15201_v2 = vrot.slane %v11588_v21, 3  ;;  %3746 = vrot.lane.b32.xlu0 %v11192_v31, %s10260_s25  ;;  %v15325_v27 = vrot.slane %v11588_v21, 4 }
 0x2d4   : > { %15316 = vst [vmem:[#allocation39_spill] sm:$0xff] %v11632_v29  ;;  %15317 = vst [vmem:[#allocation40_spill] sm:$0xff] %v11645_v63  ;;  %v11655_v4 = vsel %vm2798_vm1, %v15319_v41, %v3921_v55  ;;  %v15322_v63 = vrot.slane %v11425_v11, 3 }
 0x2d5   : > { %v11678_v47 = vsel %vm2798_vm1, %v3921_v55, %v15200_v3  ;;  %v11690_v41 = vsel %vm3050_vm3, %v3631_v39, %v15201_v2  ;;  %v11695_v5 = vsel %vm3176_vm4, %v3716_v19, %v15325_v27  ;;  %v10213_v2 = vld [vmem:[#allocation3 + $0x38] sm:$0xff]  }
 0x2d6   : > { %v11668_v29 = vsel %vm3050_vm3, %v15322_v63, %v3631_v39  ;;  %v11685_v63 = vsel %vm2924_vm2, %v4046_v10, %v15202_v24  ;;  %15324 = vst [vmem:[#allocation43_spill] sm:$0xff] %v11690_v41  ;;  %15326 = vst [vmem:[#allocation44_spill] sm:$0xff] %v11695_v5  ;;  %v11699_v3 = vpop.permute.xlu0 %3738  ;;  %2541 = vmatmul.mubr.bf16.gmra.mrb[80].mxu1 %v10211_v45  ;;  %3320 = vrot.lane.b32.xlu1 %v11248_v22, %s10264_s29  ;;  %v10212_v22 = vld [vmem:[#allocation3 + $0x30] sm:$0xff]   ;;  %v15354_v41 = vrot.slane %v11588_v21, 3 }
 0x2d7   : > { %15323 = vst [vmem:[#allocation42_spill] sm:$0xff] %v11668_v29  ;;  %v11697_v55 = vpop.permute.xlu1 %3736  ;;  %15328 = vst [vmem:[#allocation46_spill] sm:$0xff] %v11699_v3  ;;  %2550 = vmatprep.mubr.bf16.mxu1 %v15275_v9  ;;  %3951 = vrot.lane.b32.xlu0 %v11197_v42, %s10262_s19  ;;  %v15356_v5 = vrot.slane %v11588_v21, 4 }
 0x2d8   : > { %15327 = vst [vmem:[#allocation45_spill] sm:$0xff] %v11697_v55  ;;  %v15341_v55 = vrot.slane %v11579_v50, 1 }
 0x2da   : > { %v11708_v39 = vpop.permute.xlu0 %3943  ;;  %3408 = vrot.lane.b32.xlu1 %v11261_v61, %s10265_s12 }
 0x2db   : > { %v11706_v10 = vpop.permute.xlu1 %3312  ;;  %15330 = vst [vmem:[#allocation48_spill] sm:$0xff] %v11708_v39  ;;  %4076 = vrot.lane.b32.xlu0 %v11202_v15, %s10263_s20 }
 0x2dc   : > { %15329 = vst [vmem:[#allocation47_spill] sm:$0xff] %v11706_v10 }
 0x2de   : > { %v11716_v45 = vpop.permute.xlu0 %4068  ;;  %2551 = vmatmul.mubr.bf16.gmra.mrb[84].mxu1 %v10212_v22  ;;  %3500 = vrot.lane.b32.xlu1 %v11266_v13, %s10266_s13 }
 0x2df   : > { %v11714_v19 = vpop.permute.xlu1 %3400  ;;  %15332 = vst [vmem:[#allocation50_spill] sm:$0xff] %v11716_v45  ;;  %2560 = vmatprep.mubr.bf16.mxu1 %v15275_v9  ;;  %4168 = vrot.lane.b32.xlu0 %v11211_v43, %s10264_s29 }
 0x2e0   : > { %15331 = vst [vmem:[#allocation49_spill] sm:$0xff] %v11714_v19  ;;  %v15345_v19 = vrot.slane %v11579_v50, 3 }
 0x2e2   : > { %v11725_v27 = vpop.permute.xlu0 %4160  ;;  %3832 = vrot.lane.b32.xlu1 %v11256_v40, %s10261_s14 }
 0x2e3   : > { %v11723_v42 = vpop.permute.xlu1 %3492  ;;  %15334 = vst [vmem:[#allocation52_spill] sm:$0xff] %v11725_v27  ;;  %4260 = vrot.lane.b32.xlu0 %v11192_v31, %s10265_s12 }
 0x2e4   : > { %15333 = vst [vmem:[#allocation51_spill] sm:$0xff] %v11723_v42 }
 0x2e6   : > { %v11733_v22 = vpop.permute.xlu0 %4252  ;;  %2561 = vmatmul.mubr.bf16.gmra.mrb[88].mxu1 %v10213_v2  ;;  %4346 = vrot.lane.b32.xlu1 %v11256_v40, %s10266_s13 }
 0x2e7   : > { %v11731_v15 = vpop.permute.xlu1 %3824  ;;  %15336 = vst [vmem:[#allocation54_spill] sm:$0xff] %v11733_v22  ;;  %v11737_v24 = vpop.f32.mrb[32].mxu1  ;;  %2570 = vmatprep.mubr.bf16.mxu1 %v15275_v9  ;;  %3318 = vrot.lane.b32.xlu0 %v11236_v25, %s10264_s29 }
 0x2e8   : > { %15335 = vst [vmem:[#allocation53_spill] sm:$0xff] %v11731_v15  ;;  %15337 = vst [vmem:[#allocation55_spill] sm:$0xff] %v11737_v24  ;;  %v11743_v43 = vpop.f32.mrb[33].mxu1  ;;  %v2830_v22 = vrot.slane %v11737_v24, 1  ;;  %v2956_v2 = vrot.slane %v11737_v24, 2  ;;  %v3082_v27 = vrot.slane %v11737_v24, 3 }
 0x2e9   : > { %2703 = vst [vmem:[#allocation4 + $0x200] sm:$0xff] %v11737_v24  ;;  %15338 = vst [vmem:[#allocation56_spill] sm:$0xff] %v11743_v43  ;;  %v3208_v40 = vrot.slane %v11737_v24, 4  ;;  %v11752_v15 = vpop.f32.mrb[34].mxu1  ;;  %v3925_v25 = vrot.slane %v11743_v43, 1  ;;  %v4050_v3 = vrot.slane %v11743_v43, 2 }
 0x2ea   : > { %2704 = vst [vmem:[#allocation4 + $0x208] sm:$0xff] %v11743_v43  ;;  %v11754_v45 = vpop.permute.xlu0 %3310  ;;  %v3720_v39 = vrot.slane %v11743_v43, 4  ;;  %2707 = vst [vmem:[#allocation4 + $0x220] sm:$0xff] %v11752_v15  ;;  %v11761_v10 = vpop.f32.mrb[35].mxu1  ;;  %2858 = vrot.lane.b32.xlu1 %v11261_v61, %s10260_s25  ;;  %v11768_v42 = vsel %vm2798_vm1, %v15341_v55, %v2830_v22  ;;  %v15347_v61 = vrot.slane %v11579_v50, 4 }
 0x2eb   : > { %v11745_v31 = vpop.permute.xlu1 %4338  ;;  %15340 = vst [vmem:[#allocation58_spill] sm:$0xff] %v11754_v45  ;;  %15342 = vst [vmem:[#allocation59_spill] sm:$0xff] %v11768_v42  ;;  %v15343_v45 = vrot.slane %v11579_v50, 2  ;;  %3830 = vrot.lane.b32.xlu0 %v11241_v6, %s10261_s14 }
 0x2ec   : > { %15339 = vst [vmem:[#allocation57_spill] sm:$0xff] %v11745_v31  ;;  %v3635_v31 = vrot.slane %v11743_v43, 3  ;;  %v11778_v43 = vsel %vm3050_vm3, %v15345_v19, %v3082_v27  ;;  %2708 = vst [vmem:[#allocation4 + $0x228] sm:$0xff] %v11761_v10  ;;  %v11786_v55 = vsel %vm3176_vm4, %v15347_v61, %v3208_v40 }
 0x2ed   : > { %v11773_v24 = vsel %vm2924_vm2, %v15343_v45, %v2956_v2  ;;  %15346 = vst [vmem:[#allocation61_spill] sm:$0xff] %v11778_v43  ;;  %15348 = vst [vmem:[#allocation62_spill] sm:$0xff] %v11786_v55  ;;  %v15352_v43 = vrot.slane %v11588_v21, 2  ;;  %v11810_v45 = vsel %vm3176_vm4, %v15356_v5, %v3720_v39  ;;  %v15358_v55 = vrot.slane %v11752_v15, 1 }
 0x2ee   : > { %15344 = vst [vmem:[#allocation60_spill] sm:$0xff] %v11773_v24  ;;  %v15349_v24 = vrot.slane %v11588_v21, 1  ;;  %v11805_v61 = vsel %vm3050_vm3, %v15354_v41, %v3635_v31  ;;  %15357 = vst [vmem:[#allocation67_spill] sm:$0xff] %v11810_v45  ;;  %v15212_v41 = vrot.slane %v11761_v10, 1  ;;  %2984 = vrot.lane.b32.xlu1 %v11266_v13, %s10261_s14  ;;  %v15215_v13 = vrot.slane %v11752_v15, 3  ;;  %v15387_v45 = vld [vmem:[#allocation24_spill] sm:$0xff] }
 0x2ef   : > { %v11795_v19 = vpop.permute.xlu1 %2850  ;;  %v11800_v7 = vsel %vm2924_vm2, %v15352_v43, %v4050_v3  ;;  %15355 = vst [vmem:[#allocation66_spill] sm:$0xff] %v11805_v61  ;;  %v15359_v43 = vrot.slane %v11752_v15, 2  ;;  %v10214_v61 = vld [vmem:[#allocation3 + $0x40] sm:$0xff]   ;;  %4344 = vrot.lane.b32.xlu0 %v11241_v6, %s10266_s13 }
 0x2f0   : > { %v11793_v42 = vsel %vm2798_vm1, %v15349_v24, %v3925_v25  ;;  %15351 = vst [vmem:[#allocation64_spill] sm:$0xff] %v11795_v19  ;;  %15353 = vst [vmem:[#allocation65_spill] sm:$0xff] %v11800_v7  ;;  %v15211_v24 = vrot.slane %v11761_v10, 4  ;;  %v11818_v19 = vsel %vm2798_vm1, %v2830_v22, %v15358_v55  ;;  %2571 = vmatmul.mubr.bf16.gmra.mrb[92].mxu1 %v10214_v61  ;;  %v15216_v22 = vrot.slane %v11761_v10, 2 }
 0x2f1   : > { %15350 = vst [vmem:[#allocation63_spill] sm:$0xff] %v11793_v42  ;;  %v11813_v42 = vpop.permute.xlu0 %3822  ;;  %v11823_v7 = vsel %vm2924_vm2, %v2956_v2, %v15359_v43  ;;  %v15213_v55 = vrot.slane %v11761_v10, 3  ;;  %2580 = vmatprep.mubr.bf16.mxu1 %v15275_v9  ;;  %v11841_v2 = vsel %vm2798_vm1, %v3925_v25, %v15212_v41  ;;  %v15214_v61 = vrot.slane %v11752_v15, 4 }
 0x2f2   : > { %v11831_v5 = vsel %vm3176_vm4, %v3720_v39, %v15211_v24  ;;  %15361 = vst [vmem:[#allocation69_spill] sm:$0xff] %v11841_v2  ;;  %v11850_v43 = vsel %vm2924_vm2, %v4050_v3, %v15216_v22  ;;  %v11862_v25 = vsel %vm3050_vm3, %v3082_v27, %v15215_v13  ;;  %3110 = vrot.lane.b32.xlu1 %v11272_v28, %s10262_s19  ;;  %v15384_v2 = vld [vmem:[#allocation18_spill] sm:$0xff] }
 0x2f3   : > { %15360 = vst [vmem:[#allocation68_spill] sm:$0xff] %v11831_v5  ;;  %v11845_v39 = vpop.permute.xlu1 %2976  ;;  %15362 = vst [vmem:[#allocation70_spill] sm:$0xff] %v11850_v43  ;;  %v11855_v6 = vsel %vm3050_vm3, %v3635_v31, %v15213_v55  ;;  %v11867_v41 = vsel %vm3176_vm4, %v3208_v40, %v15214_v61  ;;  %2860 = vrot.lane.b32.xlu0 %v11293_v33, %s10260_s25  ;;  %v10215_v55 = vld [vmem:[#allocation3 + $0x48] sm:$0xff]  }
 0x2f4   : > { %15363 = vst [vmem:[#allocation71_spill] sm:$0xff] %v11855_v6  ;;  %15364 = vst [vmem:[#allocation72_spill] sm:$0xff] %v11862_v25  ;;  %v11968_v25 = vld [vmem:[#allocation5] sm:$0xff]  ;;  %v15383_v6 = vld [vmem:[#allocation23_spill] sm:$0xff] }
 0x2f5   : > { %v11857_v24 = vpop.permute.xlu0 %4336  ;;  %15365 = vst [vmem:[#allocation73_spill] sm:$0xff] %v11867_v41  ;;  %v9990_v41 = vld [vmem:[%s15163_s5 + $0x28] sm:$0xff]  }
 0x2f6   : > { %3236 = vrot.lane.b32.xlu1 %v11278_v20, %s10263_s20  ;;  %v10216_v20 = vld [vmem:[#allocation3 + $0x50] sm:$0xff]   ;;  %9413 = vmatpush3.bf16.msra.mxu0 %v9990_v41 }
 0x2f7   : > { %v11873_v3 = vpop.permute.xlu1 %3102  ;;  %2986 = vrot.lane.b32.xlu0 %v11306_v12, %s10261_s14  ;;  %9414 = vmatprep.subr.bf16.mxu0 %v11968_v25 }
 0x2f8   : > { %2581 = vmatmul.mubr.bf16.gmra.mrb[96].mxu1 %v10215_v55 }
 0x2f9   : > { %v11875_v31 = vpop.permute.xlu0 %2852  ;;  %2590 = vmatprep.mubr.bf16.mxu1 %v15275_v9 }
 0x2fa   : > { %15366 = vst [vmem:[#allocation74_spill] sm:$0xff] %v11875_v31  ;;  %3748 = vrot.lane.b32.xlu1 %v11284_v37, %s10260_s25 }
 0x2fb   : > { %v11882_v27 = vpop.permute.xlu1 %3228  ;;  %3112 = vrot.lane.b32.xlu0 %v11311_v30, %s10262_s19 }
 0x2fd   : > { %v11884_v28 = vpop.permute.xlu0 %2978 }
 0x2fe   : > { %15367 = vst [vmem:[#allocation75_spill] sm:$0xff] %v11884_v28  ;;  %3953 = vrot.lane.b32.xlu1 %v11299_v49, %s10262_s19  ;;  %v15377_v28 = vld [vmem:[#allocation21_spill] sm:$0xff] }
 0x2ff   : > { %v11890_v40 = vpop.permute.xlu1 %3740  ;;  %3238 = vrot.lane.b32.xlu0 %v11318_v54, %s10263_s20 }
 0x300   : > { %2591 = vmatmul.mubr.bf16.gmra.mrb[100].mxu1 %v10216_v20 }
 0x301   : > { %v11892_v55 = vpop.permute.xlu0 %3104  ;;  %2600 = vmatprep.mubr.bf16.mxu1 %v15275_v9  ;;  %v2401_v13 = vpop.f32.mrb[36].mxu1 }
 0x302   : > { %15368 = vst [vmem:[#allocation76_spill] sm:$0xff] %v11892_v55  ;;  %2711 = vst [vmem:[#allocation4 + $0x240] sm:$0xff] %v2401_v13  ;;  %v2403_v30 = vpop.f32.mrb[37].mxu1  ;;  %4078 = vrot.lane.b32.xlu1 %v11328_v0, %s10263_s20  ;;  %v15370_v13 = vld [vmem:[#allocation11_spill] sm:$0xff] }
 0x303   : > { %v11899_v61 = vpop.permute.xlu1 %3945  ;;  %2712 = vst [vmem:[#allocation4 + $0x248] sm:$0xff] %v2403_v30  ;;  %v2405_v20 = vpop.f32.mrb[38].mxu1  ;;  %3410 = vrot.lane.b32.xlu0 %v11293_v33, %s10265_s12  ;;  %v15371_v30 = vld [vmem:[#allocation12_spill] sm:$0xff] }
 0x304   : > { %2715 = vst [vmem:[#allocation4 + $0x260] sm:$0xff] %v2405_v20  ;;  %v2407_v49 = vpop.f32.mrb[39].mxu1 }
 0x305   : > { %v11901_v22 = vpop.permute.xlu0 %3230  ;;  %2716 = vst [vmem:[#allocation4 + $0x268] sm:$0xff] %v2407_v49  ;;  %v15372_v49 = vld [vmem:[#allocation9_spill] sm:$0xff] }
 0x306   : > { %15369 = vst [vmem:[#allocation77_spill] sm:$0xff] %v11901_v22  ;;  %4170 = vrot.lane.b32.xlu1 %v15370_v13, %s10264_s29 }
 0x307   : > { %v11907_v55 = vpop.permute.xlu1 %4070  ;;  %3502 = vrot.lane.b32.xlu0 %v11306_v12, %s10266_s13  ;;  %v15373_v12 = vld [vmem:[#allocation13_spill] sm:$0xff] }
 0x308   : > { %2601 = vmatmul.mubr.bf16.gmra.mrb[104].mxu1 %v11050_v57 }
 0x309   : > { %v11909_v54 = vpop.permute.xlu0 %3402  ;;  %2610 = vmatprep.mubr.bf16.mxu1 %v15275_v9 }
 0x30a   : > { %4262 = vrot.lane.b32.xlu1 %v11284_v37, %s10265_s12 }
 0x30b   : > { %v11917_v0 = vpop.permute.xlu1 %4162  ;;  %3955 = vrot.lane.b32.xlu0 %v15371_v30, %s10262_s19  ;;  %v15375_v30 = vld [vmem:[#allocation14_spill] sm:$0xff] }
 0x30d   : > { %v11919_v33 = vpop.permute.xlu0 %3494 }
 0x30e   : > { %3324 = vrot.lane.b32.xlu1 %v11416_v53, %s10264_s29  ;;  %v15376_v53 = vld [vmem:[#allocation16_spill] sm:$0xff] }
 0x30f   : > { %v11925_v20 = vpop.permute.xlu1 %4254  ;;  %4080 = vrot.lane.b32.xlu0 %v15373_v12, %s10263_s20  ;;  %v15378_v12 = vld [vmem:[#allocation15_spill] sm:$0xff] }
 0x310   : > { %2611 = vmatmul.mubr.bf16.gmra.mrb[108].mxu1 %v15372_v49 }
 0x311   : > { %v11927_v57 = vpop.permute.xlu0 %3947  ;;  %2620 = vmatprep.mubr.bf16.mxu1 %v15275_v9 }
 0x312   : > { %4350 = vrot.lane.b32.xlu1 %v11425_v11, %s10266_s13 }
 0x313   : > { %v11935_v13 = vpop.permute.xlu1 %3316  ;;  %4172 = vrot.lane.b32.xlu0 %v15375_v30, %s10264_s29  ;;  %v15380_v30 = vld [vmem:[#allocation22_spill] sm:$0xff] }
 0x314   : > { %15374 = vst [vmem:[#allocation12_spill] sm:$0xff] %v11935_v13 }
 0x315   : > { %v11937_v37 = vpop.permute.xlu0 %4072 }
 0x316   : > { %2862 = vrot.lane.b32.xlu1 %v15377_v28, %s10260_s25 }
 0x317   : > { %v11943_v22 = vpop.permute.xlu1 %4342  ;;  %4264 = vrot.lane.b32.xlu0 %v15378_v12, %s10265_s12 }
 0x318   : > { %2621 = vmatmul.mubr.bf16.gmra.mrb[112].mxu1 %v15376_v53 }
 0x319   : > { %v11945_v49 = vpop.permute.xlu0 %4164  ;;  %2630 = vmatprep.mubr.bf16.mxu1 %v15275_v9 }
 0x31a   : > { %2988 = vrot.lane.b32.xlu1 %v15380_v30, %s10261_s14 }
 0x31b   : > { %v11953_v13 = vpop.permute.xlu1 %2854  ;;  %3750 = vrot.lane.b32.xlu0 %v15378_v12, %s10260_s25 }
 0x31c   : > { %15379 = vst [vmem:[#allocation9_spill] sm:$0xff] %v11953_v13  ;;  %v15382_v13 = vld [vmem:[#allocation17_spill] sm:$0xff] }
 0x31d   : > { %v11955_v31 = vpop.permute.xlu0 %4256 }
 0x31e   : > { %3114 = vrot.lane.b32.xlu1 %v15383_v6, %s10262_s19 }
 0x31f   : > { %v11964_v53 = vpop.permute.xlu1 %2980  ;;  %v2411_v43 = vpop.f32.mrb[40].mxu1  ;;  %3322 = vrot.lane.b32.xlu0 %v15384_v2, %s10264_s29 }
 0x320   : > { %15381 = vst [vmem:[#allocation13_spill] sm:$0xff] %v11964_v53  ;;  %2631 = vmatmul.mubr.bf16.gmra.mrb[116].mxu1 %v15382_v13  ;;  %2719 = vst [vmem:[#allocation4 + $0x280] sm:$0xff] %v2411_v43  ;;  %v2413_v41 = vpop.f32.mrb[41].mxu1 }
 0x321   : > { %v11966_v9 = vpop.permute.xlu0 %3742  ;;  %9328 = vmatprep.mubr.msk.bf16.mxu1 %vm10258_vm0, %v11968_v25  ;;  %2720 = vst [vmem:[#allocation4 + $0x288] sm:$0xff] %v2413_v41  ;;  %v2415_v53 = vpop.f32.mrb[42].mxu1 }
 0x322   : > { %2723 = vst [vmem:[#allocation4 + $0x2a0] sm:$0xff] %v2415_v53  ;;  %v2417_v13 = vpop.f32.mrb[43].mxu1  ;;  %3240 = vrot.lane.b32.xlu1 %v15387_v45, %s10263_s20 }
 0x323   : > { %v11978_v12 = vpop.permute.xlu1 %3106  ;;  %2724 = vst [vmem:[#allocation4 + $0x2a8] sm:$0xff] %v2417_v13  ;;  %4348 = vrot.lane.b32.xlu0 %v11409_v56, %s10266_s13  ;;  %v15391_v13 = vld [vmem:[#allocation25_spill] sm:$0xff] }
 0x324   : > { %15385 = vst [vmem:[#allocation16_spill] sm:$0xff] %v11978_v12  ;;  %v15393_v12 = vld [vmem:[#allocation27_spill] sm:$0xff] }
 0x325   : > { %v11980_v5 = vpop.permute.xlu0 %3314 }
 0x326   : > { %15386 = vst [vmem:[#allocation21_spill] sm:$0xff] %v11980_v5  ;;  %3412 = vrot.lane.b32.xlu1 %v15377_v28, %s10265_s12 }
 0x327   : > { %v11986_v2 = vpop.permute.xlu1 %3232  ;;  %3834 = vrot.lane.b32.xlu0 %v11409_v56, %s10261_s14 }
 0x328   : > { %15388 = vst [vmem:[#allocation15_spill] sm:$0xff] %v11986_v2 }
 0x329   : > { %v11988_v6 = vpop.permute.xlu0 %4340 }
 0x32a   : > { %3504 = vrot.lane.b32.xlu1 %v15380_v30, %s10266_s13 }
 0x32b   : > { %v11994_v43 = vpop.permute.xlu1 %3404  ;;  %3414 = vrot.lane.b32.xlu0 %v11475_v35, %s10265_s12 }
 0x32d   : > { %v11996_v53 = vpop.permute.xlu0 %3826 }
 0x32e   : > { %3836 = vrot.lane.b32.xlu1 %v11425_v11, %s10261_s14 }
 0x32f   : > { %v12002_v45 = vpop.permute.xlu1 %3496  ;;  %3506 = vrot.lane.b32.xlu0 %v11480_v16, %s10266_s13 }
 0x331   : > { %v12004_v41 = vpop.permute.xlu0 %3406 }
 0x332   : > { %15389 = vst [vmem:[#allocation22_spill] sm:$0xff] %v12004_v41  ;;  %3957 = vrot.lane.b32.xlu1 %v15391_v13, %s10262_s19 }
 0x333   : > { %v12010_v56 = vpop.permute.xlu1 %3828  ;;  %2864 = vrot.lane.b32.xlu0 %v11475_v35, %s10260_s25 }
 0x335   : > { %v12012_v28 = vpop.permute.xlu0 %3498 }
 0x336   : > { %15390 = vst [vmem:[#allocation17_spill] sm:$0xff] %v12012_v28  ;;  %4082 = vrot.lane.b32.xlu1 %v15393_v12, %s10263_s20 }
 0x337   : > { %v12018_v30 = vpop.permute.xlu1 %3949  ;;  %2990 = vrot.lane.b32.xlu0 %v11480_v16, %s10261_s14 }
 0x339   : > { %v12020_v2 = vpop.permute.xlu0 %2856  ;;  %v2421_v41 = vpop.f32.mrb[44].mxu1 }
 0x33a   : > { %15392 = vst [vmem:[#allocation23_spill] sm:$0xff] %v12020_v2  ;;  %2727 = vst [vmem:[#allocation4 + $0x2c0] sm:$0xff] %v2421_v41  ;;  %v2423_v13 = vpop.f32.mrb[45].mxu1  ;;  %4174 = vrot.lane.b32.xlu1 %v11469_v38, %s10264_s29 }
 0x33b   : > { %v12026_v11 = vpop.permute.xlu1 %4074  ;;  %2728 = vst [vmem:[#allocation4 + $0x2c8] sm:$0xff] %v2423_v13  ;;  %v2425_v35 = vpop.f32.mrb[46].mxu1  ;;  %3116 = vrot.lane.b32.xlu0 %v11489_v62, %s10262_s19 }
 0x33c   : > { %v2427_v2 = vpop.f32.mrb[47].mxu1 }
 0x33d   : > { %v12028_v28 = vpop.permute.xlu0 %2982  ;;  %2732 = vst [vmem:[#allocation4 + $0x2e8] sm:$0xff] %v2427_v2 }
 0x33e   : > { %15394 = vst [vmem:[#allocation18_spill] sm:$0xff] %v12028_v28  ;;  %4266 = vrot.lane.b32.xlu1 %v11503_v52, %s10265_s12 }
 0x33f   : > { %v12034_v12 = vpop.permute.xlu1 %4166  ;;  %3242 = vrot.lane.b32.xlu0 %v11494_v58, %s10263_s20 }
 0x341   : > { %v12036_v16 = vpop.permute.xlu0 %3108 }
 0x342   : > { %15395 = vst [vmem:[#allocation24_spill] sm:$0xff] %v12036_v16  ;;  %3752 = vrot.lane.b32.xlu1 %v11503_v52, %s10260_s25  ;;  %v9991_v52 = vld [vmem:[%s15163_s5 + $0x30] sm:$0xff]  }
 0x343   : > { %v12042_v41 = vpop.permute.xlu1 %4258  ;;  %3754 = vrot.lane.b32.xlu0 %v11508_v59, %s10260_s25  ;;  %9415 = vmatpush3.bf16.msra.mxu0 %v9991_v52 }
 0x344   : > { %9416 = vmatprep.subr.bf16.mxu0 %v11968_v25 }
 0x345   : > { %v12044_v38 = vpop.permute.xlu0 %3234 }
 0x346   : > { %15396 = vst [vmem:[#allocation25_spill] sm:$0xff] %v12044_v38  ;;  %3328 = vrot.lane.b32.xlu1 %v11579_v50, %s10264_s29 }
 0x347   : > { %v12050_v62 = vpop.permute.xlu1 %3744  ;;  %3959 = vrot.lane.b32.xlu0 %v11518_v51, %s10262_s19 }
 0x349   : > { %v12052_v2 = vpop.permute.xlu0 %3746 }
 0x34a   : > { %15397 = vst [vmem:[#allocation27_spill] sm:$0xff] %v12052_v2  ;;  %3416 = vrot.lane.b32.xlu1 %v11593_v60, %s10265_s12  ;;  %v15442_v2 = vld [vmem:[#allocation62_spill] sm:$0xff] }
 0x34b   : > { %v12058_v58 = vpop.permute.xlu1 %3320  ;;  %4084 = vrot.lane.b32.xlu0 %v11525_v23, %s10263_s20 }
 0x34c   : > { %15398 = vst [vmem:[#allocation78_spill] sm:$0xff] %v12058_v58 }
 0x34d   : > { %v12060_v13 = vpop.permute.xlu0 %3951 }
 0x34e   : > { %3508 = vrot.lane.b32.xlu1 %v11598_v46, %s10266_s13 }
 0x34f   : > { %v12069_v35 = vpop.permute.xlu1 %3408  ;;  %4176 = vrot.lane.b32.xlu0 %v11530_v34, %s10264_s29 }
 0x350   : > { %15399 = vst [vmem:[#allocation79_spill] sm:$0xff] %v12069_v35 }
 0x351   : > { %v12071_v50 = vpop.permute.xlu0 %4076 }
 0x352   : > { %3840 = vrot.lane.b32.xlu1 %v11588_v21, %s10261_s14 }
 0x353   : > { %v12078_v51 = vpop.permute.xlu1 %3500  ;;  %4268 = vrot.lane.b32.xlu0 %v11508_v59, %s10265_s12 }
 0x354   : > { %15400 = vst [vmem:[#allocation80_spill] sm:$0xff] %v12078_v51 }
 0x355   : > { %v12080_v58 = vpop.permute.xlu0 %4168 }
 0x356   : > { %4354 = vrot.lane.b32.xlu1 %v11588_v21, %s10266_s13 }
 0x357   : > { %v12086_v23 = vpop.permute.xlu1 %3832  ;;  %v2431_v38 = vpop.f32.mrb[48].mxu1  ;;  %3326 = vrot.lane.b32.xlu0 %v11567_v17, %s10264_s29 }
 0x358   : > { %15401 = vst [vmem:[#allocation81_spill] sm:$0xff] %v12086_v23  ;;  %v2433_v34 = vpop.f32.mrb[49].mxu1  ;;  %v15429_v23 = vld [vmem:[#allocation60_spill] sm:$0xff] }
 0x359   : > { %v12088_v52 = vpop.permute.xlu0 %4260  ;;  %2736 = vst [vmem:[#allocation4 + $0x308] sm:$0xff] %v2433_v34  ;;  %v2435_v28 = vpop.f32.mrb[50].mxu1 }
 0x35a   : > { %v2437_v35 = vpop.f32.mrb[51].mxu1  ;;  %2866 = vrot.lane.b32.xlu1 %v11593_v60, %s10260_s25 }
 0x35b   : > { %v12094_v16 = vpop.permute.xlu1 %4346  ;;  %2740 = vst [vmem:[#allocation4 + $0x328] sm:$0xff] %v2437_v35  ;;  %3838 = vrot.lane.b32.xlu0 %v11572_v14, %s10261_s14 }
 0x35d   : > { %v12096_v51 = vpop.permute.xlu0 %3318 }
 0x35e   : > { %15402 = vst [vmem:[#allocation82_spill] sm:$0xff] %v12096_v51  ;;  %2992 = vrot.lane.b32.xlu1 %v11598_v46, %s10261_s14 }
 0x35f   : > { %v12102_v59 = vpop.permute.xlu1 %2858  ;;  %4352 = vrot.lane.b32.xlu0 %v11572_v14, %s10266_s13 }
 0x360   : > { %15403 = vst [vmem:[#allocation83_spill] sm:$0xff] %v12102_v59 }
 0x361   : > { %v12104_v38 = vpop.permute.xlu0 %3830 }
 0x362   : > { %15404 = vst [vmem:[#allocation84_spill] sm:$0xff] %v12104_v38  ;;  %3118 = vrot.lane.b32.xlu1 %v11604_v48, %s10262_s19 }
 0x363   : > { %v12110_v34 = vpop.permute.xlu1 %2984  ;;  %2868 = vrot.lane.b32.xlu0 %v11620_v32, %s10260_s25 }
 0x364   : > { %15405 = vst [vmem:[#allocation85_spill] sm:$0xff] %v12110_v34  ;;  %v15420_v34 = vld [vmem:[#allocation32_spill] sm:$0xff] }
 0x365   : > { %v12112_v17 = vpop.permute.xlu0 %4344 }
 0x366   : > { %3244 = vrot.lane.b32.xlu1 %v11612_v36, %s10263_s20 }
 0x367   : > { %v12118_v21 = vpop.permute.xlu1 %3110  ;;  %2994 = vrot.lane.b32.xlu0 %v11637_v8, %s10261_s14 }
 0x368   : > { %15406 = vst [vmem:[#allocation86_spill] sm:$0xff] %v12118_v21  ;;  %v15419_v21 = vld [vmem:[#allocation43_spill] sm:$0xff] }
 0x369   : > { %v12120_v60 = vpop.permute.xlu0 %2860 }
 0x36a   : > { %15407 = vst [vmem:[#allocation87_spill] sm:$0xff] %v12120_v60  ;;  %3756 = vrot.lane.b32.xlu1 %v11625_v1, %s10260_s25 }
 0x36b   : > { %v12126_v14 = vpop.permute.xlu1 %3236  ;;  %3120 = vrot.lane.b32.xlu0 %v11642_v18, %s10262_s19 }
 0x36c   : > { %15408 = vst [vmem:[#allocation88_spill] sm:$0xff] %v12126_v14 }
 0x36d   : > { %v12128_v46 = vpop.permute.xlu0 %2986 }
 0x36e   : > { %15409 = vst [vmem:[#allocation89_spill] sm:$0xff] %v12128_v46  ;;  %3961 = vrot.lane.b32.xlu1 %v11655_v4, %s10262_s19 }
 0x36f   : > { %v12134_v48 = vpop.permute.xlu1 %3748  ;;  %3246 = vrot.lane.b32.xlu0 %v11650_v44, %s10263_s20  ;;  %v9992_v44 = vld [vmem:[%s15163_s5 + $0x38] sm:$0xff]  }
 0x370   : > { %15410 = vst [vmem:[#allocation90_spill] sm:$0xff] %v12134_v48  ;;  %9417 = vmatpush3.bf16.msra.mxu0 %v9992_v44 }
 0x371   : > { %v12136_v28 = vpop.permute.xlu0 %3112  ;;  %v2441_v35 = vpop.f32.mrb[52].mxu1  ;;  %9418 = vmatprep.subr.bf16.mxu0 %v11968_v25 }
 0x372   : > { %15411 = vst [vmem:[#allocation91_spill] sm:$0xff] %v12136_v28  ;;  %v2443_v14 = vpop.f32.mrb[53].mxu1  ;;  %4086 = vrot.lane.b32.xlu1 %v11660_v26, %s10263_s20 }
 0x373   : > { %v12142_v36 = vpop.permute.xlu1 %3953  ;;  %v2445_v18 = vpop.f32.mrb[54].mxu1  ;;  %3418 = vrot.lane.b32.xlu0 %v11620_v32, %s10265_s12 }
 0x374   : > { %v2447_v28 = vpop.f32.mrb[55].mxu1 }
 0x375   : > { %v12144_v46 = vpop.permute.xlu0 %3238 }
 0x376   : > { %15412 = vst [vmem:[#allocation92_spill] sm:$0xff] %v12144_v46  ;;  %4178 = vrot.lane.b32.xlu1 %v11668_v29, %s10264_s29 }
 0x377   : > { %v12150_v60 = vpop.permute.xlu1 %4078  ;;  %3510 = vrot.lane.b32.xlu0 %v11637_v8, %s10266_s13 }
 0x379   : > { %v12152_v4 = vpop.permute.xlu0 %3410  ;;  %v2451_v32 = vpop.f32.mrb[56].mxu1 }
 0x37a   : > { %15413 = vst [vmem:[#allocation93_spill] sm:$0xff] %v12152_v4  ;;  %v2453_v28 = vpop.f32.mrb[57].mxu1  ;;  %4270 = vrot.lane.b32.xlu1 %v11625_v1, %s10265_s12  ;;  %v10218_v1 = vld [vmem:[#allocation4 + $0x60] sm:$0xff] }
 0x37b   : > { %v12161_v26 = vpop.permute.xlu1 %4170  ;;  %v2455_v35 = vpop.f32.mrb[58].mxu1  ;;  %3963 = vrot.lane.b32.xlu0 %v11678_v47, %s10262_s19  ;;  %v15426_v4 = vld [vmem:[#allocation34_spill] sm:$0xff] }
 0x37c   : > { %v2456_v18 = vpop.f32.mrb[59].mxu1  ;;  %v15418_v35 = vld [vmem:[#allocation29_spill] sm:$0xff] }
 0x37d   : > { %v12164_v14 = vpop.permute.xlu0 %3502  ;;  %v2903_v46 = vadd.f32 %v10218_v1, %v15418_v35  ;;  %v15423_v1 = vld [vmem:[#allocation33_spill] sm:$0xff] }
 0x37e   : > { %15414 = vst [vmem:[#allocation94_spill] sm:$0xff] %v12164_v14  ;;  %3332 = vrot.lane.b32.xlu1 %v11752_v15, %s10264_s29 }
 0x37f   : > { %v12170_v29 = vpop.permute.xlu1 %4262  ;;  %4088 = vrot.lane.b32.xlu0 %v11685_v63, %s10263_s20  ;;  %v3029_v14 = vadd.f32 %v15420_v34, %v2903_v46 }
 0x381   : > { %v12172_v8 = vpop.permute.xlu0 %3955  ;;  %v2492_v32 = vpop.f32.mrb[60].mxu1  ;;  %v3155_v35 = vadd.f32 %v15423_v1, %v3029_v14  ;;  %v15430_v1 = vld [vmem:[#allocation26_spill] sm:$0xff] }
 0x382   : > { %15415 = vst [vmem:[#allocation95_spill] sm:$0xff] %v12172_v8  ;;  %v2494_v47 = vpop.f32.mrb[61].mxu1  ;;  %4358 = vrot.lane.b32.xlu1 %v11761_v10, %s10266_s13  ;;  %v9993_v32 = vld [vmem:[%s15163_s5 + $0x8] sm:$0xff]  }
 0x383   : > { %v12178_v44 = vpop.permute.xlu1 %3324  ;;  %v2496_v18 = vpop.f32.mrb[62].mxu1  ;;  %4180 = vrot.lane.b32.xlu0 %v15419_v21, %s10264_s29  ;;  %v15424_v47 = vld [vmem:[#allocation59_spill] sm:$0xff]  ;;  %9313 = vmatpush3.bf16.msra.mxu1 %v9993_v32  ;;  %v3281_v34 = vadd.f32 %v15426_v4, %v3155_v35  ;;  %v10219_v4 = vld [vmem:[#allocation4 + $0xa0] sm:$0xff]  ;;  %v15432_v35 = vld [vmem:[#allocation64_spill] sm:$0xff] }
 0x384   : > { %15416 = vst [vmem:[#allocation96_spill] sm:$0xff] %v12178_v44  ;;  %v2498_v59 = vpop.f32.mrb[63].mxu1  ;;  %v15425_v18 = vld [vmem:[#allocation44_spill] sm:$0xff]  ;;  %9314 = vmatprep.subr.bf16.mxu1 %v11968_v25  ;;  %v10220_v8 = vld [vmem:[#allocation4 + $0x80] sm:$0xff] }
 0x385   : > { %v12180_v28 = vpop.permute.xlu0 %4080  ;;  %v3365_v48 = vadd.f32 %v15430_v1, %v3281_v34  ;;  %v15437_v34 = vld [vmem:[#allocation55_spill] sm:$0xff] }
 0x386   : > { %15417 = vst [vmem:[#allocation97_spill] sm:$0xff] %v12180_v28  ;;  %2870 = vrot.lane.b32.xlu1 %v15424_v47, %s10260_s25  ;;  %v15438_v1 = vld [vmem:[#allocation51_spill] sm:$0xff] }
 0x387   : > { %v12188_v63 = vpop.permute.xlu1 %4350  ;;  %4272 = vrot.lane.b32.xlu0 %v15425_v18, %s10265_s12 }
 0x388   : > { %15421 = vst [vmem:[#allocation29_spill] sm:$0xff] %v12188_v63 }
 0x389   : > { %v12190_v44 = vpop.permute.xlu0 %4172  ;;  %v2502_v46 = vpop.f32.mrb[64].mxu1 }
 0x38a   : > { %15422 = vst [vmem:[#allocation43_spill] sm:$0xff] %v12190_v44  ;;  %v2504_v63 = vpop.f32.mrb[65].mxu1  ;;  %2996 = vrot.lane.b32.xlu1 %v15429_v23, %s10261_s14  ;;  %v15434_v46 = vld [vmem:[#allocation49_spill] sm:$0xff] }
 0x38b   : > { %v12201_v59 = vpop.permute.xlu1 %2862  ;;  %v2506_v14 = vpop.f32.mrb[66].mxu1  ;;  %3758 = vrot.lane.b32.xlu0 %v15425_v18, %s10260_s25  ;;  %v15435_v63 = vld [vmem:[#allocation61_spill] sm:$0xff] }
 0x38c   : > { %15427 = vst [vmem:[#allocation32_spill] sm:$0xff] %v12201_v59  ;;  %v2508_v32 = vpop.f32.mrb[67].mxu1  ;;  %v2905_v59 = vadd.f32 %v10219_v4, %v15432_v35  ;;  %v15436_v14 = vld [vmem:[#allocation36_spill] sm:$0xff]  ;;  %v15440_v4 = vld [vmem:[#allocation37_spill] sm:$0xff] }
 0x38d   : > { %v12204_v51 = vpop.permute.xlu0 %4264  ;;  %v2904_v38 = vadd.f32 %v10220_v8, %v15436_v14  ;;  %v15443_v8 = vld [vmem:[#allocation38_spill] sm:$0xff] }
 0x38e   : > { %15428 = vst [vmem:[#allocation33_spill] sm:$0xff] %v12204_v51  ;;  %v3457_v51 = vadd.f32 %v15434_v46, %v3365_v48  ;;  %3122 = vrot.lane.b32.xlu1 %v15435_v63, %s10262_s19  ;;  %v3031_v18 = vadd.f32 %v11845_v39, %v2905_v59 }
 0x38f   : > { %v12211_v44 = vpop.permute.xlu1 %2988  ;;  %3330 = vrot.lane.b32.xlu0 %v15437_v34, %s10264_s29  ;;  %v3030_v35 = vadd.f32 %v15440_v4, %v2904_v38  ;;  %v15445_v34 = vld [vmem:[#allocation19_spill] sm:$0xff]  ;;  %v15447_v4 = vld [vmem:[#allocation6_spill] sm:$0xff] }
 0x390   : > { %15431 = vst [vmem:[#allocation59_spill] sm:$0xff] %v12211_v44  ;;  %v3549_v32 = vadd.f32 %v15438_v1, %v3457_v51  ;;  %v15444_v51 = vld [vmem:[#allocation56_spill] sm:$0xff] }
 0x391   : > { %v12214_v28 = vpop.permute.xlu0 %3750  ;;  %v2512_v48 = vpop.f32.mrb[68].mxu1  ;;  %v3156_v39 = vadd.f32 %v15443_v8, %v3030_v35  ;;  %v15446_v1 = vld [vmem:[#allocation20_spill] sm:$0xff] }
 0x392   : > { %15433 = vst [vmem:[#allocation44_spill] sm:$0xff] %v12214_v28  ;;  %v3157_v28 = vadd.f32 %v11873_v3, %v3031_v18  ;;  %v2514_v63 = vpop.f32.mrb[69].mxu1  ;;  %3248 = vrot.lane.b32.xlu1 %v15442_v2, %s10263_s20  ;;  %v3794_v38 = vadd.f32 %v15446_v1, %v15445_v34  ;;  %v3672_v3 = vadd.f32 %v15447_v4, %v3549_v32  ;;  %v15451_v2 = vld [vmem:[#allocation45_spill] sm:$0xff]  ;;  %v15455_v32 = vld [vmem:[#allocation47_spill] sm:$0xff] }
 0x393   : > { %v12224_v44 = vpop.permute.xlu1 %3114  ;;  %v2516_v14 = vpop.f32.mrb[70].mxu1  ;;  %4356 = vrot.lane.b32.xlu0 %v15444_v51, %s10266_s13  ;;  %v15449_v63 = vld [vmem:[#allocation41_spill] sm:$0xff] }
 0x394   : > { %15439 = vst [vmem:[#allocation34_spill] sm:$0xff] %v12224_v44  ;;  %v3283_v59 = vadd.f32 %v11882_v27, %v3157_v28  ;;  %v2518_v18 = vpop.f32.mrb[71].mxu1  ;;  %v3282_v44 = vadd.f32 %v15449_v63, %v3156_v39  ;;  %v15453_v27 = vld [vmem:[#allocation30_spill] sm:$0xff]  ;;  %v3797_v8 = vadd.f32 %v11890_v40, %v3672_v3  ;;  %v15456_v39 = vld [vmem:[#allocation48_spill] sm:$0xff] }
 0x395   : > { %v12228_v46 = vpop.permute.xlu0 %3322  ;;  %v3878_v28 = vadd.f32 %v15453_v27, %v3794_v38  ;;  %v15454_v14 = vld [vmem:[#allocation58_spill] sm:$0xff]  ;;  %v15458_v38 = vld [vmem:[#allocation40_spill] sm:$0xff] }
 0x396   : > { %15441 = vst [vmem:[#allocation60_spill] sm:$0xff] %v12228_v46  ;;  %v15450_v46 = vld [vmem:[#allocation39_spill] sm:$0xff]  ;;  %3420 = vrot.lane.b32.xlu1 %v15424_v47, %s10265_s12  ;;  %v3366_v51 = vadd.f32 %v15454_v14, %v3282_v44  ;;  %v3367_v34 = vadd.f32 %v15455_v32, %v3283_v59  ;;  %v15461_v63 = vld [vmem:[#allocation46_spill] sm:$0xff]  ;;  %v15463_v14 = vld [vmem:[#allocation53_spill] sm:$0xff] }
 0x397   : > { %v12239_v48 = vpop.permute.xlu1 %3240  ;;  %v3795_v5 = vadd.f32 %v15451_v2, %v15450_v46  ;;  %3422 = vrot.lane.b32.xlu0 %v11818_v19, %s10265_s12  ;;  %v4003_v1 = vadd.f32 %v15456_v39, %v3878_v28  ;;  %v9994_v46 = vld [vmem:[%s15163_s5 + $0x10] sm:$0xff]   ;;  %v15462_v27 = vld [vmem:[#allocation50_spill] sm:$0xff]  ;;  %v3881_v32 = vadd.f32 %v15463_v14, %v3797_v8 }
 0x398   : > { %15448 = vst [vmem:[#allocation26_spill] sm:$0xff] %v12239_v48  ;;  %v3458_v3 = vadd.f32 %v11909_v54, %v3366_v51  ;;  %v3459_v47 = vadd.f32 %v11994_v43, %v3367_v34  ;;  %v15460_v59 = vld [vmem:[#allocation35_spill] sm:$0xff]  ;;  %9315 = vmatpush3.bf16.msra.mxu1 %v9994_v46  ;;  %v15464_v8 = vld [vmem:[#allocation52_spill] sm:$0xff] }
 0x399   : > { %v12244_v35 = vpop.permute.xlu0 %4348  ;;  %v3879_v40 = vadd.f32 %v15458_v38, %v3795_v5  ;;  %v2522_v44 = vpop.f32.mrb[72].mxu1  ;;  %v3796_v2 = vadd.f32 %v15461_v63, %v15460_v59  ;;  %v4128_v28 = vadd.f32 %v15462_v27, %v4003_v1  ;;  %9316 = vmatprep.subr.bf16.mxu1 %v11968_v25  ;;  %v15469_v59 = vld [vmem:[#allocation7_spill] sm:$0xff] }
 0x39a   : > { %15452 = vst [vmem:[#allocation64_spill] sm:$0xff] %v12244_v35  ;;  %2665 = vst [vmem:[#allocation4 + $0xd0] sm:$0xff] %v2522_v44  ;;  %v2524_v39 = vpop.f32.mrb[73].mxu1  ;;  %3512 = vrot.lane.b32.xlu1 %v15429_v23, %s10266_s13  ;;  %v3550_v54 = vadd.f32 %v11919_v33, %v3458_v3  ;;  %v3551_v43 = vadd.f32 %v12002_v45, %v3459_v47  ;;  %v4006_v33 = vadd.f32 %v12018_v30, %v3881_v32  ;;  %v12287_v45 = vld [vmem:[#allocation4 + $0x240] sm:$0xff]  ;;  %v15468_v44 = vld [vmem:[#allocation63_spill] sm:$0xff] }
 0x39b   : > { %v12255_v4 = vpop.permute.xlu1 %3412  ;;  %v4004_v5 = vadd.f32 %v11899_v61, %v3879_v40  ;;  %v12274_v51 = vpop.f32.mrb[74].mxu1  ;;  %3514 = vrot.lane.b32.xlu0 %v11823_v7, %s10266_s13  ;;  %v4220_v34 = vadd.f32 %v15464_v8, %v4128_v28  ;;  %v3880_v1 = vadd.f32 %v11813_v42, %v3796_v2  ;;  %v15467_v40 = vld [vmem:[#allocation54_spill] sm:$0xff] }
 0x39c   : > { %15457 = vst [vmem:[#allocation49_spill] sm:$0xff] %v12255_v4  ;;  %v2528_v38 = vpop.f32.mrb[75].mxu1  ;;  %v3673_v63 = vadd.f32 %v15469_v59, %v3550_v54  ;;  %v4131_v2 = vadd.f32 %v12026_v11, %v4006_v33 }
 0x39d   : > { %v12263_v18 = vpop.permute.xlu0 %3834  ;;  %v4129_v61 = vadd.f32 %v11907_v55, %v4004_v5  ;;  %v4312_v3 = vadd.f32 %v15467_v40, %v4220_v34  ;;  %v4005_v47 = vadd.f32 %v11927_v57, %v3880_v1  ;;  %v15470_v55 = vld [vmem:[#allocation8_spill] sm:$0xff]  ;;  %v15223_v57 = vrot.slane %v12287_v45, 1 }
 0x39e   : > { %15459 = vst [vmem:[#allocation61_spill] sm:$0xff] %v12263_v18  ;;  %3965 = vrot.lane.b32.xlu1 %v15468_v44, %s10262_s19  ;;  %v3674_v27 = vadd.f32 %v15470_v55, %v3551_v43  ;;  %v4223_v5 = vadd.f32 %v12034_v12, %v4131_v2  ;;  %v4794_v55 = vrot.slane %v12274_v51, 4 }
 0x39f   : > { %v12281_v23 = vpop.permute.xlu1 %3504  ;;  %v4221_v42 = vadd.f32 %v11917_v0, %v4129_v61  ;;  %v12298_v30 = vadd.f32 %v11857_v24, %v4312_v3  ;;  %v4130_v28 = vadd.f32 %v11937_v37, %v4005_v47  ;;  %v3798_v0 = vadd.f32 %v11966_v9, %v3673_v63  ;;  %v15473_v9 = vld [vmem:[#allocation65_spill] sm:$0xff] }
 0x3a0   : > { %15465 = vst [vmem:[#allocation36_spill] sm:$0xff] %v12281_v23  ;;  %v3799_v11 = vadd.f32 %v12050_v62, %v3674_v27  ;;  %v4315_v38 = vadd.f32 %v12042_v41, %v4223_v5  ;;  %v4669_v63 = vrot.slane %v12274_v51, 3 }
 0x3a1   : > { %v12285_v46 = vpop.permute.xlu0 %3414  ;;  %v4313_v39 = vadd.f32 %v11925_v20, %v4221_v42  ;;  %v12309_v54 = vpop.f32.mrb[76].mxu1  ;;  %v4539_v24 = vld [vmem:[#allocation4 + $0xd0] sm:$0xfc]  ;;  %v4222_v8 = vadd.f32 %v11945_v49, %v4130_v28  ;;  %v4544_v20 = vrot.slane %v12274_v51, 2  ;;  %v3882_v62 = vadd.f32 %v11996_v53, %v3798_v0  ;;  %v15475_v0 = vld [vmem:[#allocation66_spill] sm:$0xff] }
 0x3a2   : > { %15466 = vst [vmem:[#allocation55_spill] sm:$0xff] %v12285_v46  ;;  %v4664_v37 = vld [vmem:[#allocation4 + $0xd0] sm:$0xf8]  ;;  %2673 = vst [vmem:[#allocation4 + $0x110] sm:$0xff] %v12309_v54  ;;  %v2534_v34 = vpop.f32.mrb[77].mxu1  ;;  %v4543_v1 = vrot.slane %v4539_v24, 2  ;;  %4090 = vrot.lane.b32.xlu1 %v15473_v9, %s10263_s20  ;;  %v3883_v41 = vadd.f32 %v12010_v56, %v3799_v11 }
 0x3a3   : > { %v12301_v14 = vpop.permute.xlu1 %3836  ;;  %v4546_v12 = vrot.slane %v12309_v54, 2  ;;  %2674 = vst [vmem:[#allocation4 + $0x118] sm:$0xff] %v2534_v34  ;;  %v12321_v61 = vpop.f32.mrb[78].mxu1  ;;  %v4789_v33 = vld [vmem:[#allocation4 + $0xd0] sm:$0xf0]  ;;  %v4671_v49 = vrot.slane %v12309_v54, 3 }
 0x3a4   : > { %15471 = vst [vmem:[#allocation51_spill] sm:$0xff] %v12301_v14  ;;  %v4796_v40 = vrot.slane %v12309_v54, 4  ;;  %v12325_v3 = vpop.f32.mrb[79].mxu1  ;;  %v4545_v47 = vsel %vm2924_vm2, %v4543_v1, %v4544_v20  ;;  %v4668_v44 = vrot.slane %v4664_v37, 3  ;;  %v12331_v59 = vrot.slane %v12321_v61, 2  ;;  %v9995_v28 = vld [vmem:[%s15163_s5 + $0x18] sm:$0xff]  }
 0x3a5   : > { %v12311_v43 = vpop.permute.xlu0 %3506  ;;  %v12334_v53 = vrot.slane %v12321_v61, 3  ;;  %4584 = vrot.lane.b32.xlu0 %v4545_v47, %s10260_s25  ;;  %v4798_v27 = vrot.slane %v12321_v61, 4  ;;  %v4793_v5 = vrot.slane %v4789_v33, 4  ;;  %v12357_v24 = vsel %vm2924_vm2, %v4544_v20, %v4546_v12  ;;  %9317 = vmatpush3.bf16.msra.mxu1 %v9995_v28 }
 0x3a6   : > { %15472 = vst [vmem:[#allocation37_spill] sm:$0xff] %v12311_v43  ;;  %4182 = vrot.lane.b32.xlu1 %v15475_v0, %s10264_s29  ;;  %v12350_v56 = vsel %vm2924_vm2, %v4546_v12, %v12331_v59  ;;  %v4314_v37 = vadd.f32 %v11955_v31, %v4222_v8  ;;  %v12364_v1 = vsel %vm3050_vm3, %v4669_v63, %v4671_v49  ;;  %v15477_v31 = vrot.slane %v11752_v15, 1  ;;  %v4416_v12 = vld [vmem:[#allocation4 + $0xd0] sm:$0xfe] }
 0x3a7   : > { %v12328_v42 = vpop.permute.xlu1 %3957  ;;  %v12354_v11 = vsel %vm3050_vm3, %v4671_v49, %v12334_v53  ;;  %v12361_v34 = vsel %vm3176_vm4, %v4796_v40, %v4798_v27  ;;  %v12367_v9 = vsel %vm3176_vm4, %v4794_v55, %v4796_v40  ;;  %v4007_v33 = vadd.f32 %v12060_v13, %v3882_v62  ;;  %9318 = vmatprep.subr.bf16.mxu1 %v11968_v25  ;;  %v15478_v49 = vld [vmem:[#allocation57_spill] sm:$0xff] }
 0x3a8   : > { %15474 = vst [vmem:[#allocation62_spill] sm:$0xff] %v12328_v42  ;;  %v4008_v47 = vadd.f32 %v12142_v36, %v3883_v41  ;;  %v4670_v32 = vsel %vm3050_vm3, %v4668_v44, %v4669_v63  ;;  %v12379_v8 = vsel %vm2798_vm1, %v15477_v31, %v15223_v57  ;;  %v4397_v40 = vadd.f32 %v15478_v49, %v4313_v39  ;;  %v9996_v39 = vld [vmem:[%s15163_s5 + $0x40] sm:$0xff]  }
 0x3a9   : > { %v12339_v2 = vpop.permute.xlu0 %2864  ;;  %v4398_v13 = vadd.f32 %v11988_v6, %v4314_v37  ;;  %v4399_v36 = vadd.f32 %v11943_v22, %v4315_v38  ;;  %v12385_v62 = vpop.f32.mrb[80].mxu1  ;;  %4709 = vrot.lane.b32.xlu0 %v4670_v32, %s10261_s14  ;;  %v15479_v41 = vrot.slane %v12287_v45, 2  ;;  %v15480_v63 = vrot.slane %v11752_v15, 2  ;;  %v15481_v37 = vld [vmem:[#allocation67_spill] sm:$0xff]  ;;  %9419 = vmatpush3.bf16.msra.mxu0 %v9996_v39 }
 0x3aa   : > { %v4132_v6 = vadd.f32 %v12071_v50, %v4007_v33  ;;  %v4133_v22 = vadd.f32 %v12150_v60, %v4008_v47  ;;  %v2544_v38 = vpop.f32.mrb[81].mxu1  ;;  %v4795_v32 = vsel %vm3176_vm4, %v4793_v5, %v4794_v55  ;;  %4274 = vrot.lane.b32.xlu1 %v15481_v37, %s10265_s12  ;;  %v4550_v31 = vrot.slane %v12385_v62, 2  ;;  %9420 = vmatprep.subr.bf16.mxu0 %v11968_v25 }
 0x3ab   : > { %v12372_v20 = vpop.permute.xlu1 %4082  ;;  %v12395_v28 = vsel %vm2924_vm2, %v15480_v63, %v15479_v41  ;;  %2682 = vst [vmem:[#allocation4 + $0x158] sm:$0xff] %v2544_v38  ;;  %v12406_v49 = vpop.f32.mrb[82].mxu1  ;;  %v4465_v41 = vrot.slane %v12385_v62, 1  ;;  %v4675_v63 = vrot.slane %v12385_v62, 3  ;;  %v4800_v57 = vrot.slane %v12385_v62, 4 }
 0x3ac   : > { %15476 = vst [vmem:[#allocation38_spill] sm:$0xff] %v12372_v20  ;;  %v4458_v50 = vrot.slane %v4416_v12, 1  ;;  %v12411_v60 = vpop.f32.mrb[83].mxu1  ;;  %v12416_v55 = vrot.slane %v12321_v61, 1  ;;  %v12420_v5 = vsel %vm2924_vm2, %v12331_v59, %v4550_v31  ;;  %v4467_v47 = vrot.slane %v12406_v49, 1 }
 0x3ad   : > { %v12388_v44 = vpop.permute.xlu0 %2990  ;;  %v4461_v38 = vrot.slane %v12309_v54, 1  ;;  %v4224_v12 = vadd.f32 %v12080_v58, %v4132_v6  ;;  %4834 = vrot.lane.b32.xlu0 %v4795_v32, %s10262_s19  ;;  %v12431_v14 = vsel %vm3050_vm3, %v12334_v53, %v4675_v63  ;;  %v4552_v48 = vrot.slane %v12406_v49, 2 }
 0x3ae   : > { %v4459_v43 = vrot.slane %v12274_v51, 1  ;;  %v4225_v23 = vadd.f32 %v12161_v26, %v4133_v22  ;;  %3424 = vrot.lane.b32.xlu1 %v12379_v8, %s10265_s12  ;;  %v12439_v46 = vsel %vm2798_vm1, %v4465_v41, %v4467_v47  ;;  %v12442_v58 = vsel %vm3176_vm4, %v4798_v27, %v4800_v57 }
 0x3af   : > { %v12413_v33 = vpop.permute.xlu1 %4174  ;;  %v4677_v6 = vrot.slane %v12406_v49, 3  ;;  %v12446_v32 = vsel %vm2924_vm2, %v4550_v31, %v4552_v48  ;;  %v12450_v4 = vsel %vm2798_vm1, %v12416_v55, %v4465_v41  ;;  %v4802_v26 = vrot.slane %v12406_v49, 4 }
 0x3b0   : > { %15482 = vst [vmem:[#allocation56_spill] sm:$0xff] %v12413_v33  ;;  %v4460_v51 = vsel %vm2798_vm1, %v4458_v50, %v4459_v43  ;;  %v4464_v31 = vsel %vm2798_vm1, %v4461_v38, %v12416_v55  ;;  %v4462_v33 = vsel %vm2798_vm1, %v4459_v43, %v4461_v38  ;;  %v4316_v41 = vadd.f32 %v12088_v52, %v4224_v12 }
 0x3b1   : > { %v12427_v39 = vpop.permute.xlu0 %3116  ;;  %v12457_v18 = vsel %vm3050_vm3, %v4675_v63, %v4677_v6  ;;  %v12460_v27 = vadd.f32 %v4460_v51, %v12298_v30  ;;  %v12466_v20 = vpop.f32.mrb[84].mxu1  ;;  %4918 = vrot.lane.b32.xlu0 %v12309_v54, %s10263_s20  ;;  %v12473_v63 = vsel %vm3176_vm4, %v4800_v57, %v4802_v26  ;;  %v12477_v30 = vadd.f32 %v4462_v33, %v4397_v40 }
 0x3b2   : > { %v4317_v51 = vadd.f32 %v12170_v29, %v4225_v23  ;;  %v2554_v42 = vpop.f32.mrb[85].mxu1  ;;  %3516 = vrot.lane.b32.xlu1 %v12395_v28, %s10266_s13  ;;  %v4469_v52 = vrot.slane %v12466_v20, 1  ;;  %v4554_v43 = vrot.slane %v12466_v20, 2  ;;  %v4679_v54 = vrot.slane %v12466_v20, 3 }
 0x3b3   : > { %v12454_v22 = vpop.permute.xlu1 %4266  ;;  %v4400_v38 = vadd.f32 %v12112_v17, %v4316_v41  ;;  %2690 = vst [vmem:[#allocation4 + $0x198] sm:$0xff] %v2554_v42  ;;  %v12486_v57 = vpop.f32.mrb[86].mxu1  ;;  %v12489_v40 = vadd.f32 %v12450_v4, %v4399_v36  ;;  %v9997_v42 = vld [vmem:[%s15163_s5 + $0x20] sm:$0xff]  }
 0x3b4   : > { %15483 = vst [vmem:[#allocation19_spill] sm:$0xff] %v12454_v22  ;;  %v12475_v22 = vadd.f32 %v4464_v31, %v4398_v13  ;;  %v2558_v13 = vpop.f32.mrb[87].mxu1  ;;  %v12494_v23 = vsel %vm2798_vm1, %v4467_v47, %v4469_v52  ;;  %v12497_v33 = vsel %vm2924_vm2, %v4552_v48, %v4554_v43  ;;  %v12500_v12 = vsel %vm3050_vm3, %v4677_v6, %v4679_v54 }
 0x3b5   : > { %v12470_v50 = vpop.permute.xlu0 %3242  ;;  %2694 = vst [vmem:[#allocation4 + $0x1b8] sm:$0xff] %v2558_v13  ;;  %4588 = vrot.lane.b32.xlu0 %v12350_v56, %s10260_s25  ;;  %v12510_v36 = vadd.f32 %v12439_v46, %v4400_v38  ;;  %v15224_v47 = vrot.slane %v12486_v57, 2  ;;  %v4401_v48 = vadd.f32 %v12094_v16, %v4317_v51  ;;  %v15225_v6 = vrot.slane %v12486_v57, 3  ;;  %9319 = vmatpush3.bf16.msra.mxu1 %v9997_v42  ;;  %v4998_v42 = vld [vmem:[#allocation4 + $0x110] sm:$0xfe] }
 0x3b6   : > { %4920 = vrot.lane.b32.xlu1 %v12321_v61, %s10263_s20  ;;  %v4804_v31 = vrot.slane %v12466_v20, 4  ;;  %v15226_v41 = vrot.slane %v12486_v57, 4  ;;  %9320 = vmatprep.subr.bf16.mxu1 %v11968_v25  ;;  %v15227_v61 = vrot.slane %v12486_v57, 1 }
 0x3b7   : > { %v12491_v29 = vpop.permute.xlu1 %3752  ;;  %15486 = vst [vmem:[#allocation41_spill] sm:$0xff] %v12510_v36  ;;  %v12520_v56 = vsel %vm2924_vm2, %v4554_v43, %v15224_v47  ;;  %v12530_v16 = vsel %vm3050_vm3, %v4679_v54, %v15225_v6  ;;  %v12534_v51 = vadd.f32 %v12494_v23, %v4401_v48 }
 0x3b8   : > { %15484 = vst [vmem:[#allocation20_spill] sm:$0xff] %v12491_v29  ;;  %v12543_v47 = vsel %vm3176_vm4, %v4804_v31, %v15226_v41  ;;  %v12546_v54 = vsel %vm3176_vm4, %v4802_v26, %v4804_v31  ;;  %v5002_v29 = vrot.slane %v4998_v42, 1  ;;  %v5090_v31 = vld [vmem:[#allocation4 + $0x110] sm:$0xfc] }
 0x3b9   : > { %v12504_v17 = vpop.permute.xlu0 %3754  ;;  %15487 = vst [vmem:[#allocation39_spill] sm:$0xff] %v12534_v51  ;;  %v2562_v43 = vpop.f32.mrb[88].mxu1  ;;  %4713 = vrot.lane.b32.xlu0 %v12354_v11, %s10261_s14  ;;  %v12553_v11 = vsel %vm2798_vm1, %v4469_v52, %v15227_v61  ;;  %v5094_v52 = vrot.slane %v5090_v31, 2  ;;  %v10224_v51 = vld [vmem:[#allocation4 + $0x1c0] sm:$0xff] }
 0x3ba   : > { %15485 = vst [vmem:[#allocation6_spill] sm:$0xff] %v12504_v17  ;;  %2697 = vst [vmem:[#allocation4 + $0x1d0] sm:$0xff] %v2562_v43  ;;  %v2564_v6 = vpop.f32.mrb[89].mxu1  ;;  %4586 = vrot.lane.b32.xlu1 %v12357_v24, %s10260_s25  ;;  %v5003_v24 = vsel %vm2798_vm1, %v5002_v29, %v12416_v55 }
 0x3bb   : > { %v12524_v38 = vpop.permute.xlu1 %3328  ;;  %2698 = vst [vmem:[#allocation4 + $0x1d8] sm:$0xff] %v2564_v6  ;;  %v2566_v48 = vpop.f32.mrb[90].mxu1  ;;  %v5095_v55 = vsel %vm2924_vm2, %v5094_v52, %v12331_v59 }
 0x3bc   : > { %2701 = vst [vmem:[#allocation4 + $0x1f0] sm:$0xff] %v2566_v48  ;;  %v2568_v17 = vpop.f32.mrb[91].mxu1 }
 0x3bd   : > { %v12538_v13 = vpop.permute.xlu0 %3959  ;;  %2702 = vst [vmem:[#allocation4 + $0x1f8] sm:$0xff] %v2568_v17  ;;  %4838 = vrot.lane.b32.xlu0 %v12361_v34, %s10262_s19  ;;  %v5182_v17 = vld [vmem:[#allocation4 + $0x110] sm:$0xf8] }
 0x3be   : > { %15488 = vst [vmem:[#allocation45_spill] sm:$0xff] %v12538_v13  ;;  %4711 = vrot.lane.b32.xlu1 %v12364_v1, %s10261_s14  ;;  %v5186_v29 = vrot.slane %v5182_v17, 3 }
 0x3bf   : > { %v12555_v41 = vpop.permute.xlu1 %3416 }
 0x3c0   : > { %15489 = vst [vmem:[#allocation30_spill] sm:$0xff] %v12555_v41  ;;  %v5187_v59 = vsel %vm3050_vm3, %v5186_v29, %v12334_v53 }
 0x3c1   : > { %v12559_v26 = vpop.permute.xlu0 %4084  ;;  %5010 = vrot.lane.b32.xlu0 %v5003_v24, %s10264_s29  ;;  %v12579_v24 = vld [vmem:[%s15163_s5 + $0x28] sm:$0xff]  }
 0x3c2   : > { %15490 = vst [vmem:[#allocation58_spill] sm:$0xff] %v12559_v26  ;;  %4836 = vrot.lane.b32.xlu1 %v12367_v9, %s10262_s19  ;;  %15494 = vst [vmem:[#allocation35_spill] sm:$0xff] %v12579_v24  ;;  %9321 = vmatpush3.bf16.msra.mxu1 %v12579_v24 }
 0x3c3   : > { %v12565_v6 = vpop.permute.xlu1 %3508  ;;  %v2572_v43 = vpop.f32.mrb[92].mxu1  ;;  %9322 = vmatprep.subr.bf16.mxu1 %v11968_v25 }
 0x3c4   : > { %15491 = vst [vmem:[#allocation47_spill] sm:$0xff] %v12565_v6  ;;  %2705 = vst [vmem:[#allocation4 + $0x210] sm:$0xff] %v2572_v43  ;;  %v2574_v34 = vpop.f32.mrb[93].mxu1 }
 0x3c5   : > { %v12568_v42 = vpop.permute.xlu0 %4176  ;;  %2706 = vst [vmem:[#allocation4 + $0x218] sm:$0xff] %v2574_v34  ;;  %v2576_v48 = vpop.f32.mrb[94].mxu1  ;;  %5102 = vrot.lane.b32.xlu0 %v5095_v55, %s10265_s12 }
 0x3c6   : > { %15492 = vst [vmem:[#allocation48_spill] sm:$0xff] %v12568_v42  ;;  %2709 = vst [vmem:[#allocation4 + $0x230] sm:$0xff] %v2576_v48  ;;  %v2578_v1 = vpop.f32.mrb[95].mxu1  ;;  %4924 = vrot.lane.b32.xlu1 %v12406_v49, %s10263_s20  ;;  %v15516_v42 = vld [vmem:[#allocation70_spill] sm:$0xff] }
 0x3c7   : > { %v12574_v31 = vpop.permute.xlu1 %3840  ;;  %2710 = vst [vmem:[#allocation4 + $0x238] sm:$0xff] %v2578_v1 }
 0x3c8   : > { %15493 = vst [vmem:[#allocation40_spill] sm:$0xff] %v12574_v31 }
 0x3c9   : > { %v12582_v43 = vpop.permute.xlu0 %4268  ;;  %5194 = vrot.lane.b32.xlu0 %v5187_v59, %s10266_s13 }
 0x3ca   : > { %15495 = vst [vmem:[#allocation46_spill] sm:$0xff] %v12582_v43  ;;  %4590 = vrot.lane.b32.xlu1 %v12420_v5, %s10260_s25  ;;  %v12735_v43 = vld [vmem:[#allocation4 + $0x288] sm:$0xff] }
 0x3cb   : > { %v12590_v9 = vpop.permute.xlu1 %4354  ;;  %v2582_v52 = vpop.f32.mrb[96].mxu1  ;;  %15515 = vst [vmem:[#allocation100_spill] sm:$0xff] %v12735_v43 }
 0x3cc   : > { %15496 = vst [vmem:[#allocation50_spill] sm:$0xff] %v12590_v9  ;;  %2713 = vst [vmem:[#allocation4 + $0x250] sm:$0xff] %v2582_v52  ;;  %v2584_v34 = vpop.f32.mrb[97].mxu1 }
 0x3cd   : > { %v12593_v17 = vpop.permute.xlu0 %3326  ;;  %2714 = vst [vmem:[#allocation4 + $0x258] sm:$0xff] %v2584_v34  ;;  %v2586_v49 = vpop.f32.mrb[98].mxu1  ;;  %4922 = vrot.lane.b32.xlu0 %v12385_v62, %s10263_s20 }
 0x3ce   : > { %2717 = vst [vmem:[#allocation4 + $0x270] sm:$0xff] %v2586_v49  ;;  %v2588_v48 = vpop.f32.mrb[99].mxu1  ;;  %4715 = vrot.lane.b32.xlu1 %v12431_v14, %s10261_s14 }
 0x3cf   : > { %v12597_v1 = vpop.permute.xlu1 %2866  ;;  %2718 = vst [vmem:[#allocation4 + $0x278] sm:$0xff] %v2588_v48  ;;  %v12618_v48 = vld [vmem:[%s15163_s5 + $0x30] sm:$0xff]  }
 0x3d0   : > { %15499 = vst [vmem:[#allocation54_spill] sm:$0xff] %v12618_v48  ;;  %9323 = vmatpush3.bf16.msra.mxu1 %v12618_v48 }
 0x3d1   : > { %v12601_v53 = vpop.permute.xlu0 %3838  ;;  %5014 = vrot.lane.b32.xlu0 %v12439_v46, %s10264_s29  ;;  %9324 = vmatprep.subr.bf16.mxu1 %v11968_v25 }
 0x3d2   : > { %15497 = vst [vmem:[#allocation53_spill] sm:$0xff] %v12601_v53  ;;  %4840 = vrot.lane.b32.xlu1 %v12442_v58, %s10262_s19 }
 0x3d3   : > { %v12605_v55 = vpop.permute.xlu1 %2992  ;;  %v2592_v29 = vpop.f32.mrb[100].mxu1 }
 0x3d4   : > { %2721 = vst [vmem:[#allocation4 + $0x290] sm:$0xff] %v2592_v29  ;;  %v2594_v52 = vpop.f32.mrb[101].mxu1 }
 0x3d5   : > { %v12609_v59 = vpop.permute.xlu0 %4352  ;;  %2722 = vst [vmem:[#allocation4 + $0x298] sm:$0xff] %v2594_v52  ;;  %v2596_v62 = vpop.f32.mrb[102].mxu1  ;;  %5106 = vrot.lane.b32.xlu0 %v12446_v32, %s10265_s12 }
 0x3d6   : > { %15498 = vst [vmem:[#allocation52_spill] sm:$0xff] %v12609_v59  ;;  %2725 = vst [vmem:[#allocation4 + $0x2b0] sm:$0xff] %v2596_v62  ;;  %v2598_v34 = vpop.f32.mrb[103].mxu1  ;;  %5012 = vrot.lane.b32.xlu1 %v12450_v4, %s10264_s29  ;;  %v10000_v62 = vld [vmem:[%s15163_s5 + $0x48] sm:$0xff]  }
 0x3d7   : > { %v12613_v49 = vpop.permute.xlu1 %3118  ;;  %2726 = vst [vmem:[#allocation4 + $0x2b8] sm:$0xff] %v2598_v34  ;;  %9421 = vmatpush3.bf16.msra.mxu0 %v10000_v62 }
 0x3d8   : > { %9422 = vmatprep.subr.bf16.mxu0 %v11968_v25  ;;  %v12657_v25 = vld [vmem:[%s15163_s5 + $0x38] sm:$0xff]  }
 0x3d9   : > { %v12622_v46 = vpop.permute.xlu0 %2868  ;;  %5198 = vrot.lane.b32.xlu0 %v12457_v18, %s10266_s13  ;;  %15502 = vst [vmem:[#allocation8_spill] sm:$0xff] %v12657_v25  ;;  %9325 = vmatpush3.bf16.msra.mxu1 %v12657_v25 }
 0x3da   : > { %5104 = vrot.lane.b32.xlu1 %v12420_v5, %s10265_s12  ;;  %v2914_v35 = vadd.f32 %v10224_v51, %v12622_v46  ;;  %v15519_v46 = vld [vmem:[#allocation71_spill] sm:$0xff] }
 0x3db   : > { %v12628_v58 = vpop.permute.xlu1 %3244  ;;  %v2602_v29 = vpop.f32.mrb[104].mxu1 }
 0x3dc   : > { %2729 = vst [vmem:[#allocation4 + $0x2d0] sm:$0xff] %v2602_v29  ;;  %v2604_v34 = vpop.f32.mrb[105].mxu1 }
 0x3dd   : > { %v12632_v52 = vpop.permute.xlu0 %2994  ;;  %2730 = vst [vmem:[#allocation4 + $0x2d8] sm:$0xff] %v2604_v34  ;;  %v2606_v4 = vpop.f32.mrb[106].mxu1  ;;  %4592 = vrot.lane.b32.xlu0 %v12446_v32, %s10260_s25 }
 0x3de   : > { %2733 = vst [vmem:[#allocation4 + $0x2f0] sm:$0xff] %v2606_v4  ;;  %v2608_v61 = vpop.f32.mrb[107].mxu1  ;;  %5196 = vrot.lane.b32.xlu1 %v12431_v14, %s10266_s13  ;;  %v3040_v25 = vadd.f32 %v12632_v52, %v2914_v35  ;;  %v15520_v52 = vrot.slane %v11761_v10, 2 }
 0x3df   : > { %v12639_v31 = vpop.permute.xlu1 %3756  ;;  %2734 = vst [vmem:[#allocation4 + $0x2f8] sm:$0xff] %v2608_v61 }
 0x3e0   : > { %15500 = vst [vmem:[#allocation63_spill] sm:$0xff] %v12639_v31 }
 0x3e1   : > { %v12644_v9 = vpop.permute.xlu0 %3120  ;;  %4717 = vrot.lane.b32.xlu0 %v12457_v18, %s10261_s14  ;;  %v12664_v18 = vld [vmem:[#allocation5] sm:$0xff] }
 0x3e2   : > { %4928 = vrot.lane.b32.xlu1 %v12486_v57, %s10263_s20  ;;  %9326 = vmatprep.subr.bf16.mxu1 %v12664_v18 }
 0x3e3   : > { %v12648_v29 = vpop.permute.xlu1 %3961  ;;  %v2612_v5 = vpop.f32.mrb[108].mxu1 }
 0x3e4   : > { %15501 = vst [vmem:[#allocation7_spill] sm:$0xff] %v12648_v29  ;;  %2737 = vst [vmem:[#allocation4 + $0x310] sm:$0xff] %v2612_v5  ;;  %v2614_v32 = vpop.f32.mrb[109].mxu1 }
 0x3e5   : > { %v12652_v62 = vpop.permute.xlu0 %3246  ;;  %2738 = vst [vmem:[#allocation4 + $0x318] sm:$0xff] %v2614_v32  ;;  %v2616_v14 = vpop.f32.mrb[110].mxu1  ;;  %4842 = vrot.lane.b32.xlu0 %v12473_v63, %s10262_s19 }
 0x3e6   : > { %2741 = vst [vmem:[#allocation4 + $0x330] sm:$0xff] %v2616_v14  ;;  %v2618_v61 = vpop.f32.mrb[111].mxu1  ;;  %5016 = vrot.lane.b32.xlu1 %v12494_v23, %s10264_s29  ;;  %v15506_v23 = vld [vmem:[#allocation68_spill] sm:$0xff] }
 0x3e7   : > { %v12662_v34 = vpop.permute.xlu1 %4086  ;;  %2742 = vst [vmem:[#allocation4 + $0x338] sm:$0xff] %v2618_v61 }
 0x3e8   : > { %15503 = vst [vmem:[#allocation65_spill] sm:$0xff] %v12662_v34 }
 0x3e9   : > { %v12669_v4 = vpop.permute.xlu0 %3418  ;;  %4926 = vrot.lane.b32.xlu0 %v12466_v20, %s10263_s20  ;;  %v12689_v20 = vld [vmem:[#allocation4 + $0x248] sm:$0xff] }
 0x3ea   : > { %5108 = vrot.lane.b32.xlu1 %v12497_v33, %s10265_s12  ;;  %v4054_v36 = vrot.slane %v12689_v20, 2 }
 0x3eb   : > { %v12673_v5 = vpop.permute.xlu1 %4178  ;;  %v2622_v32 = vpop.f32.mrb[112].mxu1 }
 0x3ec   : > { %15504 = vst [vmem:[#allocation66_spill] sm:$0xff] %v12673_v5  ;;  %2745 = vst [vmem:[#allocation4 + $0x350] sm:$0xff] %v2622_v32  ;;  %v2624_v31 = vpop.f32.mrb[113].mxu1 }
 0x3ed   : > { %v12677_v14 = vpop.permute.xlu0 %3510  ;;  %2746 = vst [vmem:[#allocation4 + $0x358] sm:$0xff] %v2624_v31  ;;  %v2626_v63 = vpop.f32.mrb[114].mxu1  ;;  %3762 = vrot.lane.b32.xlu0 %v15506_v23, %s10260_s25  ;;  %v10222_v31 = vld [vmem:[#allocation4 + $0x208] sm:$0xff] }
 0x3ee   : > { %2749 = vst [vmem:[#allocation4 + $0x370] sm:$0xff] %v2626_v63  ;;  %v2628_v61 = vpop.f32.mrb[115].mxu1  ;;  %5200 = vrot.lane.b32.xlu1 %v12500_v12, %s10266_s13 }
 0x3ef   : > { %v12681_v6 = vpop.permute.xlu1 %4270  ;;  %2750 = vst [vmem:[#allocation4 + $0x378] sm:$0xff] %v2628_v61 }
 0x3f0   : > { %15505 = vst [vmem:[#allocation57_spill] sm:$0xff] %v12681_v6  ;;  %v10002_v6 = vld [vmem:[%s15163_s5 + $0x40] sm:$0xff]  }
 0x3f1   : > { %v12685_v5 = vpop.permute.xlu0 %3963  ;;  %3842 = vrot.lane.b32.xlu0 %v10222_v31, %s10261_s14  ;;  %9327 = vmatpush3.bf16.msra.mxu1 %v10002_v6 }
 0x3f2   : > { %15507 = vst [vmem:[#allocation67_spill] sm:$0xff] %v12685_v5  ;;  %3760 = vrot.lane.b32.xlu1 %v15481_v37, %s10260_s25  ;;  %9332 = vmatprep.subr.bf16.mxu1 %v12664_v18  ;;  %v12716_v37 = vld [vmem:[#allocation4 + $0x268] sm:$0xff] }
 0x3f3   : > { %v12691_v32 = vpop.permute.xlu1 %3332  ;;  %v2632_v34 = vpop.f32.mrb[116].mxu1 }
 0x3f4   : > { %2753 = vst [vmem:[#allocation4 + $0x390] sm:$0xff] %v2632_v34  ;;  %v2634_v41 = vpop.f32.mrb[117].mxu1  ;;  %v15512_v34 = vrot.slane %v11761_v10, 4 }
 0x3f5   : > { %v12694_v63 = vpop.permute.xlu0 %4088  ;;  %2754 = vst [vmem:[#allocation4 + $0x398] sm:$0xff] %v2634_v41  ;;  %v2636_v29 = vpop.f32.mrb[118].mxu1  ;;  %3846 = vrot.lane.b32.xlu0 %v12689_v20, %s10261_s14  ;;  %v3931_v41 = vrot.slane %v12716_v37, 1 }
 0x3f6   : > { %15508 = vst [vmem:[#allocation68_spill] sm:$0xff] %v12694_v63  ;;  %v2637_v31 = vpop.f32.mrb[119].mxu1  ;;  %v15511_v63 = vrot.slane %v12689_v20, 4  ;;  %v15513_v29 = vld [vmem:[#allocation69_spill] sm:$0xff] }
 0x3f7   : > { %v12702_v5 = vpop.permute.xlu1 %4358 }
 0x3f8   : > { %15509 = vst [vmem:[#allocation98_spill] sm:$0xff] %v12702_v5  ;;  %v12714_v53 = vsel %vm3176_vm4, %v15512_v34, %v15511_v63  ;;  %v3929_v5 = vrot.slane %v12689_v20, 1 }
 0x3f9   : > { %v12707_v61 = vpop.permute.xlu0 %4180  ;;  %3764 = vrot.lane.b32.xlu1 %v12714_v53, %s10260_s25  ;;  %3967 = vrot.lane.b32.xlu0 %v15513_v29, %s10262_s19  ;;  %v4056_v29 = vrot.slane %v12716_v37, 2 }
 0x3fa   : > { %15510 = vst [vmem:[#allocation99_spill] sm:$0xff] %v12707_v61  ;;  %v10223_v61 = vld [vmem:[#allocation4 + $0x228] sm:$0xff]  ;;  %v3932_v63 = vsel %vm2798_vm1, %v3929_v5, %v3931_v41 }
 0x3fb   : > { %v12721_v6 = vpop.permute.xlu1 %2870  ;;  %v4057_v48 = vsel %vm2924_vm2, %v4054_v36, %v4056_v29 }
 0x3fd   : > { %v12725_v31 = vpop.permute.xlu0 %4272  ;;  %3844 = vrot.lane.b32.xlu1 %v10223_v61, %s10261_s14  ;;  %3971 = vrot.lane.b32.xlu0 %v3932_v63, %s10262_s19  ;;  %v15517_v61 = vrot.slane %v11761_v10, 1  ;;  %v15231_v63 = vrot.slane %v12735_v43, 1 }
 0x3fe   : > { %15514 = vst [vmem:[#allocation69_spill] sm:$0xff] %v12725_v31 }
 0x3ff   : > { %v2997_v34 = vpop.permute.xlu1 %2996  ;;  %v3930_v13 = vsel %vm2798_vm1, %v15517_v61, %v3929_v5  ;;  %v3934_v5 = vsel %vm2798_vm1, %v3931_v41, %v15231_v63  ;;  %v3166_v61 = vadd.f32 %v12644_v9, %v3040_v25  ;;  %v15233_v41 = vrot.slane %v12735_v43, 2 }
 0x400   : > { %v3639_v9 = vrot.slane %v12689_v20, 3 }
 0x401   : > { %v12731_v59 = vpop.permute.xlu0 %3758  ;;  %3848 = vrot.lane.b32.xlu1 %v12716_v37, %s10261_s14  ;;  %4092 = vrot.lane.b32.xlu0 %v15516_v42, %s10263_s20  ;;  %v3292_v51 = vadd.f32 %v12652_v62, %v3166_v61  ;;  %v10004_v61 = vld [vmem:[%s15163_s5 + $0x50] sm:$0xff]  }
 0x402   : > { %9423 = vmatpush3.bf16.msra.mxu0 %v10004_v61  ;;  %v15525_v61 = vrot.slane %v12689_v20, 4 }
 0x403   : > { %v3123_v31 = vpop.permute.xlu1 %3122  ;;  %9424 = vmatprep.subr.bf16.mxu0 %v12664_v18 }
 0x405   : > { %v3331_v26 = vpop.permute.xlu0 %3330  ;;  %3969 = vrot.lane.b32.xlu1 %v3930_v13, %s10262_s19  ;;  %4096 = vrot.lane.b32.xlu0 %v4057_v48, %s10263_s20  ;;  %v3641_v13 = vrot.slane %v12716_v37, 3 }
 0x406   : > { %v3376_v63 = vadd.f32 %v3331_v26, %v3292_v51  ;;  %v4059_v26 = vsel %vm2924_vm2, %v4056_v29, %v15233_v41 }
 0x407   : > { %v3249_v24 = vpop.permute.xlu1 %3248  ;;  %v12770_v62 = vsel %vm3050_vm3, %v3639_v9, %v3641_v13 }
 0x408   : > { %15521 = vst [vmem:[#allocation71_spill] sm:$0xff] %v12770_v62 }
 0x409   : > { %v12750_v42 = vpop.permute.xlu0 %4356  ;;  %3973 = vrot.lane.b32.xlu1 %v3934_v5, %s10262_s19  ;;  %4184 = vrot.lane.b32.xlu0 %v15519_v46, %s10264_s29 }
 0x40a   : > { %15518 = vst [vmem:[#allocation70_spill] sm:$0xff] %v12750_v42  ;;  %v4055_v42 = vsel %vm2924_vm2, %v15520_v52, %v4054_v36  ;;  %v15524_v52 = vrot.slane %v11761_v10, 3 }
 0x40b   : > { %v12759_v35 = vpop.permute.xlu1 %3420 }
 0x40c   : > { %v3640_v29 = vsel %vm3050_vm3, %v15524_v52, %v3639_v9 }
 0x40d   : > { %v3423_v48 = vpop.permute.xlu0 %3422  ;;  %4094 = vrot.lane.b32.xlu1 %v4055_v42, %s10263_s20  ;;  %4188 = vrot.lane.b32.xlu0 %v12770_v62, %s10264_s29 }
 0x40e   : > { %v3468_v25 = vadd.f32 %v3423_v48, %v3376_v63  ;;  %v3726_v63 = vrot.slane %v12716_v37, 4 }
 0x40f   : > { %v12772_v5 = vpop.permute.xlu1 %3512 }
 0x411   : > { %v3515_v36 = vpop.permute.xlu0 %3514  ;;  %4098 = vrot.lane.b32.xlu1 %v4059_v26, %s10263_s20  ;;  %4276 = vrot.lane.b32.xlu0 %v15506_v23, %s10265_s12  ;;  %v10225_v23 = vld [vmem:[#allocation4 + $0x1e0] sm:$0xff] }
 0x412   : > { %v3560_v51 = vadd.f32 %v3515_v36, %v3468_v25  ;;  %v15232_v25 = vrot.slane %v12735_v43, 3  ;;  %v12800_v36 = vsel %vm3176_vm4, %v15525_v61, %v3726_v63  ;;  %v15234_v61 = vrot.slane %v12735_v43, 4 }
 0x413   : > { %v12785_v42 = vpop.permute.xlu1 %3965  ;;  %15526 = vst [vmem:[#allocation103_spill] sm:$0xff] %v12800_v36 }
 0x414   : > { %15522 = vst [vmem:[#allocation101_spill] sm:$0xff] %v12785_v42  ;;  %v12788_v48 = vadd.f32 %v15519_v46, %v3560_v51  ;;  %v12809_v10 = vsel %vm3050_vm3, %v3641_v13, %v15232_v25  ;;  %v2915_v46 = vadd.f32 %v10225_v23, %v12721_v6  ;;  %v12828_v6 = vsel %vm3176_vm4, %v3726_v63, %v15234_v61 }
 0x415   : > { %4186 = vrot.lane.b32.xlu1 %v3640_v29, %s10264_s29  ;;  %4280 = vrot.lane.b32.xlu0 %v12800_v36, %s10265_s12  ;;  %15528 = vst [vmem:[#allocation105_spill] sm:$0xff] %v12809_v10  ;;  %15531 = vst [vmem:[#allocation108_spill] sm:$0xff] %v12828_v6 }
 0x416   : > { %15523 = vst [vmem:[#allocation102_spill] sm:$0xff] %v12788_v48  ;;  %v3041_v52 = vadd.f32 %v2997_v34, %v2915_v46  ;;  %v12830_v34 = vld [vmem:[#allocation4 + $0x260] sm:$0xff]  ;;  %v15532_v46 = vrot.slane %v12287_v45, 1 }
 0x417   : > { %v12802_v26 = vpop.permute.xlu1 %4090  ;;  %v4585_v9 = vpop.permute.xlu0 %4584 }
 0x418   : > { %15527 = vst [vmem:[#allocation104_spill] sm:$0xff] %v12802_v26  ;;  %v3167_v13 = vadd.f32 %v3123_v31, %v3041_v52  ;;  %v3086_v26 = vrot.slane %v12287_v45, 3 }
 0x419   : > { %4190 = vrot.lane.b32.xlu1 %v12809_v10, %s10264_s29  ;;  %4360 = vrot.lane.b32.xlu0 %v12689_v20, %s10266_s13  ;;  %v12850_v10 = vld [vmem:[#allocation4 + $0x2a8] sm:$0xff] }
 0x41a   : > { %v3293_v48 = vadd.f32 %v3249_v24, %v3167_v13  ;;  %15533 = vst [vmem:[#allocation109_spill] sm:$0xff] %v12850_v10 }
 0x41b   : > { %v12814_v51 = vpop.permute.xlu1 %4182  ;;  %v4710_v25 = vpop.permute.xlu0 %4709 }
 0x41c   : > { %15529 = vst [vmem:[#allocation106_spill] sm:$0xff] %v12814_v51  ;;  %v3377_v24 = vadd.f32 %v12691_v32, %v3293_v48  ;;  %v12857_v48 = vrot.slane %v12830_v34, 2 }
 0x41d   : > { %4278 = vrot.lane.b32.xlu1 %v12714_v53, %s10265_s12  ;;  %4364 = vrot.lane.b32.xlu0 %v12735_v43, %s10266_s13  ;;  %v12835_v53 = vrot.slane %v12830_v34, 1  ;;  %v5274_v43 = vld [vmem:[#allocation4 + $0x118] sm:$0xf0] }
 0x41e   : > { %15535 = vst [vmem:[#allocation111_spill] sm:$0xff] %v12857_v48 }
 0x41f   : > { %v12821_v41 = vpop.permute.xlu1 %4274  ;;  %v4835_v20 = vpop.permute.xlu0 %4834  ;;  %v12846_v52 = vsel %vm2798_vm1, %v15532_v46, %v12835_v53  ;;  %v15536_v46 = vrot.slane %v12287_v45, 2 }
 0x420   : > { %15530 = vst [vmem:[#allocation107_spill] sm:$0xff] %v12821_v41  ;;  %v15537_v41 = vld [vmem:[#allocation72_spill] sm:$0xff] }
 0x421   : > { %4282 = vrot.lane.b32.xlu1 %v12828_v6, %s10265_s12  ;;  %2872 = vrot.lane.b32.xlu0 %v11818_v19, %s10260_s25  ;;  %v2776_v19 = vld [vmem:[#allocation4 + $0x280] sm:$0x1] }
 0x423   : > { %v3425_v31 = vpop.permute.xlu1 %3424  ;;  %v4919_v63 = vpop.permute.xlu0 %4918 }
 0x424   : > { %v3469_v23 = vadd.f32 %v3425_v31, %v3377_v24  ;;  %v2838_v24 = vrot.slane %v2776_v19, 1 }
 0x425   : > { %4362 = vrot.lane.b32.xlu1 %v12716_v37, %s10266_s13  ;;  %2876 = vrot.lane.b32.xlu0 %v12846_v52, %s10260_s25 }
 0x427   : > { %v3517_v13 = vpop.permute.xlu1 %3516  ;;  %v4589_v32 = vpop.permute.xlu0 %4588 }
 0x428   : > { %v3561_v61 = vadd.f32 %v3517_v13, %v3469_v23  ;;  %v12869_v13 = vsel %vm2924_vm2, %v15536_v46, %v12857_v48 }
 0x429   : > { %4366 = vrot.lane.b32.xlu1 %v12850_v10, %s10266_s13  ;;  %2998 = vrot.lane.b32.xlu0 %v11823_v7, %s10261_s14  ;;  %v2921_v7 = vld [vmem:[#allocation4 + $0x280] sm:$0x3] }
 0x42a   : > { %v12854_v37 = vadd.f32 %v3640_v29, %v3561_v61  ;;  %v2839_v61 = vsel %vm2798_vm1, %v12835_v53, %v2838_v24  ;;  %v2964_v46 = vrot.slane %v2921_v7, 2 }
 0x42b   : > { %v12859_v31 = vpop.permute.xlu1 %4920  ;;  %v4714_v23 = vpop.permute.xlu0 %4713 }
 0x42c   : > { %15534 = vst [vmem:[#allocation110_spill] sm:$0xff] %v12854_v37  ;;  %v3088_v37 = vrot.slane %v12830_v34, 3 }
 0x42d   : > { %2874 = vrot.lane.b32.xlu1 %v12379_v8, %s10260_s25  ;;  %3002 = vrot.lane.b32.xlu0 %v12869_v13, %s10261_s14  ;;  %v4644_v8 = vadd.f32 %v4585_v9, %v12460_v27  ;;  %v2965_v27 = vsel %vm2924_vm2, %v12857_v48, %v2964_v46 }
 0x42f   : > { %v4587_v29 = vpop.permute.xlu1 %4586  ;;  %v4839_v19 = vpop.permute.xlu0 %4838  ;;  %v4769_v51 = vadd.f32 %v4710_v25, %v4644_v8  ;;  %v3214_v8 = vrot.slane %v12830_v34, 4 }
 0x431   : > { %2878 = vrot.lane.b32.xlu1 %v2839_v61, %s10260_s25  ;;  %3124 = vrot.lane.b32.xlu0 %v15537_v41, %s10262_s19  ;;  %v4894_v42 = vadd.f32 %v4835_v20, %v4769_v51  ;;  %v3089_v61 = vsel %vm3050_vm3, %v3086_v26, %v3088_v37  ;;  %v3047_v41 = vld [vmem:[#allocation4 + $0x280] sm:$0x7]  ;;  %v15538_v51 = vld [vmem:[#allocation73_spill] sm:$0xff]  ;;  %v5316_v20 = vrot.slane %v5274_v43, 4 }
 0x432   : > { %v3090_v46 = vrot.slane %v3047_v41, 3  ;;  %v10013_v43 = vld [vmem:[%s15163_s5 + $0x58] sm:$0xff]  }
 0x433   : > { %v4712_v62 = vpop.permute.xlu1 %4711  ;;  %v5011_v24 = vpop.permute.xlu0 %5010  ;;  %v4978_v9 = vadd.f32 %v4919_v63, %v4894_v42  ;;  %v3212_v63 = vrot.slane %v12287_v45, 4  ;;  %9425 = vmatpush3.bf16.msra.mxu0 %v10013_v43  ;;  %v4645_v43 = vadd.f32 %v4587_v29, %v12477_v30 }
 0x434   : > { %v3091_v41 = vsel %vm3050_vm3, %v3088_v37, %v3090_v46  ;;  %9426 = vmatprep.subr.bf16.mxu0 %v12664_v18 }
 0x435   : > { %3000 = vrot.lane.b32.xlu1 %v12395_v28, %s10261_s14  ;;  %3128 = vrot.lane.b32.xlu0 %v3089_v61, %s10262_s19  ;;  %v5070_v7 = vadd.f32 %v5011_v24, %v4978_v9  ;;  %v15539_v61 = vrot.slane %v11752_v15, 3  ;;  %v5317_v24 = vrot.slane %v12325_v3, 4  ;;  %v3215_v48 = vsel %vm3176_vm4, %v3212_v63, %v3214_v8 }
 0x437   : > { %v4837_v6 = vpop.permute.xlu1 %4836  ;;  %v5103_v25 = vpop.permute.xlu0 %5102  ;;  %v3087_v36 = vsel %vm3050_vm3, %v15539_v61, %v3086_v26  ;;  %v12908_v26 = vld [vmem:[%s15162_s4] ss:$0 sm:$0xff]  ;;  %v4646_v61 = vadd.f32 %v4589_v32, %v12475_v22  ;;  %v12927_v32 = vld [vmem:[#allocation4 + $0x280] sm:$0xff] }
 0x438   : > { %v5162_v42 = vadd.f32 %v5103_v25, %v5070_v7  ;;  %v3173_v7 = vld [vmem:[#allocation4 + $0x280] sm:$0xf] }
 0x439   : > { %3004 = vrot.lane.b32.xlu1 %v2965_v27, %s10261_s14  ;;  %3250 = vrot.lane.b32.xlu0 %v15538_v51, %s10263_s20  ;;  %v4771_v46 = vadd.f32 %v4714_v23, %v4646_v61 }
 0x43b   : > { %v12889_v28 = vpop.permute.xlu1 %4924  ;;  %v5195_v27 = vpop.permute.xlu0 %5194  ;;  %v4896_v22 = vadd.f32 %v4839_v19, %v4771_v46 }
 0x43c   : > { %v5254_v9 = vadd.f32 %v5195_v27, %v5162_v42 }
 0x43d   : > { %3126 = vrot.lane.b32.xlu1 %v3087_v36, %s10262_s19  ;;  %v5318_v36 = vsel %vm3176_vm4, %v5316_v20, %v5317_v24  ;;  %3254 = vrot.lane.b32.xlu0 %v3215_v48, %s10263_s20  ;;  %v15540_v48 = vrot.slane %v11752_v15, 4  ;;  %v3216_v20 = vrot.slane %v3173_v7, 4 }
 0x43e   : > { %v5377_v25 = vadd.f32 %v5318_v36, %v5254_v9 }
 0x43f   : > { %v12900_v10 = vpop.permute.xlu1 %4590  ;;  %v4923_v51 = vpop.permute.xlu0 %4922  ;;  %v3213_v37 = vsel %vm3176_vm4, %v15540_v48, %v3212_v63  ;;  %v3217_v15 = vsel %vm3176_vm4, %v3214_v8, %v3216_v20  ;;  %v5276_v63 = vld [vmem:[#allocation4 + $0x158] sm:$0xff] }
 0x440   : > { %v5404_v42 = vadd.f32 %v12908_v26, %v5377_v25  ;;  %v4770_v25 = vadd.f32 %v4712_v62, %v4645_v43  ;;  %v4980_v23 = vadd.f32 %v4923_v51, %v4896_v22  ;;  %v5319_v62 = vrot.slane %v5276_v63, 4 }
 0x441   : > { %3130 = vrot.lane.b32.xlu1 %v3091_v41, %s10262_s19  ;;  %3334 = vrot.lane.b32.xlu0 %v12287_v45, %s10264_s29  ;;  %v12932_v45 = vld [vmem:[#allocation4 + $0x2a0] sm:$0xff]  ;;  %v5321_v51 = vrot.slane %v12411_v60, 4 }
 0x442   : > { %v5424_v9 = vmax.f32 %v5404_v42, 0.0  ;;  %v4895_v30 = vadd.f32 %v4837_v6, %v4770_v25  ;;  %v3390_v7 = vrot.slane %v12932_v45, 1  ;;  %v3388_v42 = vrot.slane %v12927_v32, 1 }
 0x443   : > { %v4716_v27 = vpop.permute.xlu1 %4715  ;;  %v5015_v36 = vpop.permute.xlu0 %5014 }
 0x444   : > { %5445 = vst.msk [vmem:[#allocation5] sm:$0xff] %vm5444_vm5, %v5424_v9  ;;  %v5072_v19 = vadd.f32 %v5015_v36, %v4980_v23  ;;  %v4979_v6 = vadd.f32 %v12859_v31, %v4895_v30  ;;  %v3391_v20 = vsel %vm2798_vm1, %v3388_v42, %v3390_v7  ;;  %v5322_v9 = vsel %vm3176_vm4, %v5319_v62, %v5321_v51  ;;  %v3383_v36 = vld [vmem:[#allocation4 + $0x2c0] sm:$0x1] }
 0x445   : > { %3252 = vrot.lane.b32.xlu1 %v3213_v37, %s10263_s20  ;;  %3338 = vrot.lane.b32.xlu0 %v12927_v32, %s10264_s29  ;;  %v3392_v23 = vrot.slane %v3383_v36, 1  ;;  %v5320_v30 = vsel %vm3176_vm4, %v5317_v24, %v5319_v62  ;;  %v13006_v36 = vld [vmem:[#allocation4 + $0x1f0] sm:$0xff] }
 0x447   : > { %v4841_v41 = vpop.permute.xlu1 %4840  ;;  %v5107_v29 = vpop.permute.xlu0 %5106 }
 0x448   : > { %v5164_v48 = vadd.f32 %v5107_v29, %v5072_v19  ;;  %v4647_v29 = vadd.f32 %v12900_v10, %v12489_v40 }
 0x449   : > { %3256 = vrot.lane.b32.xlu1 %v3217_v15, %s10263_s20  ;;  %3426 = vrot.lane.b32.xlu0 %v12846_v52, %s10265_s12  ;;  %v3389_v15 = vsel %vm2798_vm1, %v12835_v53, %v3388_v42  ;;  %v3393_v53 = vsel %vm2798_vm1, %v3390_v7, %v3392_v23  ;;  %v12981_v7 = vld [vmem:[#allocation4 + $0x198] sm:$0xff]  ;;  %v4475_v23 = vrot.slane %v13006_v36, 1 }
 0x44b   : > { %v5013_v61 = vpop.permute.xlu1 %5012  ;;  %v5199_v8 = vpop.permute.xlu0 %5198 }
 0x44c   : > { %v5256_v37 = vadd.f32 %v5199_v8, %v5164_v48  ;;  %v5071_v52 = vadd.f32 %v5013_v61, %v4979_v6  ;;  %v4772_v48 = vadd.f32 %v4716_v27, %v4647_v29  ;;  %v15245_v6 = vrot.slane %v12981_v7, 4 }
 0x44d   : > { %3336 = vrot.lane.b32.xlu1 %v12830_v34, %s10264_s29  ;;  %3430 = vrot.lane.b32.xlu0 %v3391_v20, %s10265_s12 }
 0x44e   : > { %v5379_v43 = vadd.f32 %v5322_v9, %v5256_v37  ;;  %v4897_v24 = vadd.f32 %v4841_v41, %v4772_v48  ;;  %v10226_v48 = vld [vmem:[#allocation4 + $0x180] sm:$0xff] }
 0x44f   : > { %v5105_v46 = vpop.permute.xlu1 %5104  ;;  %v12948_v34 = vpop.permute.xlu0 %4592 }
 0x450   : > { %v5163_v22 = vadd.f32 %v5105_v46, %v5071_v52  ;;  %v5406_v60 = vadd.f32 %v12908_v26, %v5379_v43  ;;  %v4981_v42 = vadd.f32 %v12889_v28, %v4897_v24  ;;  %v5324_v46 = vsel %vm3176_vm4, %v5321_v51, %v15245_v6 }
 0x451   : > { %3340 = vrot.lane.b32.xlu1 %v12932_v45, %s10264_s29  ;;  %3518 = vrot.lane.b32.xlu0 %v12869_v13, %s10266_s13 }
 0x452   : > { %v5426_v63 = vmax.f32 %v5406_v60, 0.0 }
 0x453   : > { %v5197_v31 = vpop.permute.xlu1 %5196  ;;  %v12961_v19 = vpop.permute.xlu0 %4717 }
 0x454   : > { %v5255_v25 = vadd.f32 %v5197_v31, %v5163_v22  ;;  %5447 = vst.msk [vmem:[#allocation5 + $0x10] sm:$0xff] %vm5444_vm5, %v5426_v63 }
 0x455   : > { %3428 = vrot.lane.b32.xlu1 %v3389_v15, %s10265_s12  ;;  %4596 = vrot.lane.b32.xlu0 %v12520_v56, %s10260_s25 }
 0x456   : > { %v5378_v61 = vadd.f32 %v5320_v30, %v5255_v25 }
 0x457   : > { %v12964_v13 = vpop.permute.xlu1 %4928  ;;  %v12971_v40 = vpop.permute.xlu0 %4842 }
 0x458   : > { %v5405_v3 = vadd.f32 %v12908_v26, %v5378_v61 }
 0x459   : > { %3432 = vrot.lane.b32.xlu1 %v3393_v53, %s10265_s12  ;;  %4721 = vrot.lane.b32.xlu0 %v12530_v16, %s10261_s14 }
 0x45a   : > { %v5425_v62 = vmax.f32 %v5405_v3, 0.0  ;;  %v2912_v3 = vadd.f32 %v10226_v48, %v12339_v2  ;;  %v15548_v2 = vrot.slane %v12486_v57, 4  ;;  %v4685_v48 = vrot.slane %v13006_v36, 3 }
 0x45b   : > { %v5017_v10 = vpop.permute.xlu1 %5016  ;;  %v12978_v27 = vpop.permute.xlu0 %4926 }
 0x45c   : > { %5446 = vst.msk [vmem:[#allocation5 + $0x8] sm:$0xff] %vm5444_vm5, %v5425_v62  ;;  %v5073_v41 = vadd.f32 %v5017_v10, %v4981_v42  ;;  %v4560_v10 = vrot.slane %v13006_v36, 2  ;;  %v3038_v42 = vadd.f32 %v12388_v44, %v2912_v3 }
 0x45d   : > { %4594 = vrot.lane.b32.xlu1 %v12497_v33, %s10260_s25  ;;  %4846 = vrot.lane.b32.xlu0 %v12543_v47, %s10262_s19  ;;  %v12997_v47 = vld [vmem:[#allocation4 + $0x1d0] sm:$0xff] }
 0x45e   : > { %v4558_v22 = vrot.slane %v12997_v47, 2  ;;  %v4683_v25 = vrot.slane %v12997_v47, 3  ;;  %v4473_v30 = vrot.slane %v12997_v47, 1  ;;  %v4808_v61 = vrot.slane %v12997_v47, 4 }
 0x45f   : > { %v5109_v8 = vpop.permute.xlu1 %5108  ;;  %v12988_v37 = vpop.permute.xlu0 %3762 }
 0x460   : > { %15541 = vst [vmem:[#allocation72_spill] sm:$0xff] %v12988_v37  ;;  %v5165_v20 = vadd.f32 %v5109_v8, %v5073_v41  ;;  %v13044_v8 = vsel %vm2798_vm1, %v4473_v30, %v4475_v23 }
 0x461   : > { %4719 = vrot.lane.b32.xlu1 %v12500_v12, %s10261_s14  ;;  %5018 = vrot.lane.b32.xlu0 %v12553_v11, %s10264_s29 }
 0x463   : > { %v5201_v33 = vpop.permute.xlu1 %5200  ;;  %v12999_v12 = vpop.permute.xlu0 %3842  ;;  %v5465_v53 = vld [vmem:[#allocation5] ss:$2 sm:$0x1f]  ;;  %v5467_v24 = vld [vmem:[#allocation5 + $0x1] ss:$2 sm:$0x1f] }
 0x464   : > { %v5257_v28 = vadd.f32 %v5201_v33, %v5165_v20 }
 0x465   : > { %4844 = vrot.lane.b32.xlu1 %v12546_v54, %s10262_s19  ;;  %5110 = vrot.lane.b32.xlu0 %v12520_v56, %s10265_s12  ;;  %v15544_v56 = vrot.slane %v12486_v57, 2 }
 0x466   : > { %v5380_v9 = vadd.f32 %v5324_v46, %v5257_v28  ;;  %v4809_v28 = vsel %vm3176_vm4, %v15548_v2, %v4808_v61  ;;  %v5472_v46 = vmax.f32 %v5465_v53, %v5467_v24  ;;  %v10026_v53 = vld [vmem:[%s15163_s5 + $0x60] sm:$0xff]  }
 0x467   : > { %v13001_v52 = vpop.permute.xlu1 %3760  ;;  %v13011_v51 = vpop.permute.xlu0 %3846  ;;  %v4559_v31 = vsel %vm2924_vm2, %v15544_v56, %v4558_v22  ;;  %9427 = vmatpush3.bf16.msra.mxu0 %v10026_v53  ;;  %v13125_v53 = vld [vmem:[#allocation4 + $0x230] sm:$0xff] }
 0x468   : > { %v5407_v43 = vadd.f32 %v12908_v26, %v5380_v9  ;;  %15542 = vst [vmem:[#allocation73_spill] sm:$0xff] %v13011_v51  ;;  %v3164_v9 = vadd.f32 %v12427_v39, %v3038_v42  ;;  %v10227_v39 = vld [vmem:[#allocation4 + $0x1a0] sm:$0xff]  ;;  %v15549_v42 = vrot.slane %v12486_v57, 1  ;;  %9452 = vmatprep.subr.bf16.mxu0 %v12664_v18 }
 0x469   : > { %4932 = vrot.lane.b32.xlu1 %v13006_v36, %s10263_s20  ;;  %5202 = vrot.lane.b32.xlu0 %v12530_v16, %s10266_s13  ;;  %v15545_v16 = vrot.slane %v12486_v57, 3  ;;  %v2913_v24 = vadd.f32 %v10227_v39, %v12597_v1  ;;  %v10229_v39 = vld [vmem:[%s15163_s5 + $0x10] sm:$0xff]  }
 0x46a   : > { %v5427_v54 = vmax.f32 %v5407_v43, 0.0  ;;  %v3290_v56 = vadd.f32 %v12470_v50, %v3164_v9  ;;  %v13074_v50 = vsel %vm2798_vm1, %v15549_v42, %v4473_v30 }
 0x46b   : > { %v13013_v60 = vpop.permute.xlu1 %3764  ;;  %v13023_v15 = vpop.permute.xlu0 %3967  ;;  %v4684_v29 = vsel %vm3050_vm3, %v15545_v16, %v4683_v25  ;;  %v4561_v16 = vsel %vm2924_vm2, %v4558_v22, %v4560_v10  ;;  %v3039_v1 = vadd.f32 %v12605_v55, %v2913_v24 }
 0x46c   : > { %15543 = vst [vmem:[#allocation112_spill] sm:$0xff] %v13013_v60  ;;  %5448 = vst.msk [vmem:[#allocation5 + $0x18] sm:$0xff] %vm5444_vm5, %v5427_v54  ;;  %v3374_v22 = vadd.f32 %v12593_v17, %v3290_v56  ;;  %v4686_v17 = vsel %vm3050_vm3, %v4683_v25, %v4685_v48  ;;  %v4810_v56 = vrot.slane %v13006_v36, 4  ;;  %v10010_v36 = vld [vmem:[%s15163_s5 + $0x38] sm:$0xff]  }
 0x46d   : > { %4598 = vrot.lane.b32.xlu1 %v4559_v31, %s10260_s25  ;;  %4930 = vrot.lane.b32.xlu0 %v12997_v47, %s10263_s20  ;;  %v10230_v47 = vld [vmem:[%s15163_s5 + $0x18] sm:$0xff]  }
 0x46e   : > { %v3466_v30 = vadd.f32 %v12669_v4, %v3374_v22 }
 0x46f   : > { %v13026_v63 = vpop.permute.xlu1 %3844  ;;  %v13037_v62 = vpop.permute.xlu0 %3971 }
 0x470   : > { %15546 = vst [vmem:[#allocation113_spill] sm:$0xff] %v13037_v62  ;;  %v3558_v55 = vadd.f32 %v12677_v14, %v3466_v30  ;;  %v10228_v14 = vld [vmem:[%s15163_s5 + $0x8] sm:$0xff]   ;;  %v3482_v30 = vrot.slane %v12932_v45, 2 }
 0x471   : > { %4723 = vrot.lane.b32.xlu1 %v4684_v29, %s10261_s14  ;;  %5022 = vrot.lane.b32.xlu0 %v13044_v8, %s10264_s29 }
 0x473   : > { %v13046_v41 = vpop.permute.xlu1 %3848  ;;  %v5469_v20 = vld [vmem:[#allocation5 + $0x10] ss:$2 sm:$0x1f]  ;;  %v5471_v33 = vld [vmem:[#allocation5 + $0x11] ss:$2 sm:$0x1f]  ;;  %v13057_v43 = vpop.permute.xlu0 %4092 }
 0x474   : > { %15547 = vst [vmem:[#allocation114_spill] sm:$0xff] %v13046_v41  ;;  %v5473_v44 = vmax.f32 %v5469_v20, %v5471_v33  ;;  %v10003_v33 = vld [vmem:[%s15163_s5] sm:$0xff]   ;;  %v10016_v41 = vld [vmem:[%s15163_s5 + $0x28] sm:$0xff]  }
 0x475   : > { %4848 = vrot.lane.b32.xlu1 %v4809_v28, %s10262_s19  ;;  %5114 = vrot.lane.b32.xlu0 %v4561_v16, %s10265_s12 }
 0x476   : > { %v5474_v54 = vmax.f32 %v5472_v46, %v5473_v44  ;;  %v3165_v46 = vadd.f32 %v12613_v49, %v3039_v1  ;;  %v3681_v49 = vadd.f32 %v15419_v21, %v3558_v55 }
 0x477   : > { %v13064_v3 = vpop.permute.xlu1 %3969  ;;  %v13085_v2 = vpop.permute.xlu0 %4096 }
 0x478   : > { %v13076_v20 = vpack.c.bf16 %v5474_v54, %v5474_v54  ;;  %15550 = vst [vmem:[#allocation115_spill] sm:$0xff] %v13085_v2  ;;  %v3291_v4 = vadd.f32 %v12628_v58, %v3165_v46  ;;  %v13113_v58 = vld [vmem:[#allocation4 + $0x210] sm:$0xff]  ;;  %v3806_v54 = vadd.f32 %v12731_v59, %v3681_v49  ;;  %v15589_v2 = vld [vmem:[#allocation9_spill] sm:$0xff] }
 0x479   : > { %5020 = vrot.lane.b32.xlu1 %v13074_v50, %s10264_s29  ;;  %5206 = vrot.lane.b32.xlu0 %v4686_v17, %s10266_s13  ;;  %v4562_v22 = vrot.slane %v13113_v58, 2  ;;  %v4687_v55 = vrot.slane %v13113_v58, 3 }
 0x47a   : > { %v15246_v57 = vshrl.u32 %v13076_v20, 16 }
 0x47b   : > { %v13093_v28 = vpop.permute.xlu1 %3973  ;;  %v4185_v44 = vpop.permute.xlu0 %4184 }
 0x47c   : > { %15551 = vst [vmem:[#allocation116_spill] sm:$0xff] %v13093_v28  ;;  %9329 = vmatmul.mubr.bf16.vlgmr.msra.gmra.mrb[120].mxu1 %v15246_v57 }
 0x47d   : > { %9333 = vmatpush3.bf16.msra.mxu1 %v10003_v33  ;;  %5112 = vrot.lane.b32.xlu1 %v4559_v31, %s10265_s12  ;;  %v3375_v31 = vadd.f32 %v12524_v38, %v3291_v4  ;;  %v3890_v38 = vadd.f32 %v12999_v12, %v3806_v54  ;;  %v4811_v12 = vsel %vm3176_vm4, %v4808_v61, %v4810_v56  ;;  %v13157_v61 = vld [vmem:[#allocation4 + $0x270] sm:$0xff]  ;;  %v3480_v4 = vrot.slane %v12927_v32, 2 }
 0x47e   : > { %9334 = vmatprep.subr.bf16.mxu1 %v12664_v18  ;;  %9348 = vmatprep.mubr.msk.bf16.mxu1 %vm10258_vm0, %v12664_v18  ;;  %v4483_v45 = vrot.slane %v13157_v61, 1 }
 0x47f   : > { %v13105_v25 = vpop.permute.xlu1 %4094  ;;  %4600 = vrot.lane.b32.xlu0 %v4561_v16, %s10260_s25  ;;  %v13116_v9 = vpop.permute.xlu0 %4188  ;;  %v3467_v16 = vadd.f32 %v12759_v35, %v3375_v31  ;;  %v4015_v35 = vadd.f32 %v13023_v15, %v3890_v38  ;;  %v3483_v54 = vsel %vm2924_vm2, %v3480_v4, %v3482_v30  ;;  %v4688_v38 = vsel %vm3050_vm3, %v4685_v48, %v4687_v55  ;;  %v13211_v48 = vld [vmem:[#allocation4 + $0x290] sm:$0xff] }
 0x480   : > { %15552 = vst [vmem:[#allocation117_spill] sm:$0xff] %v13116_v9 }
 0x481   : > { %9335 = vmatpush3.bf16.msra.mxu1 %v10228_v14  ;;  %5204 = vrot.lane.b32.xlu1 %v4684_v29, %s10266_s13  ;;  %v4477_v29 = vrot.slane %v13113_v58, 1  ;;  %v3559_v59 = vadd.f32 %v12772_v5, %v3467_v16  ;;  %v4140_v15 = vadd.f32 %v13057_v43, %v4015_v35 }
 0x482   : > { %9336 = vmatprep.subr.bf16.mxu1 %v12664_v18 }
 0x483   : > { %v13121_v21 = vpop.permute.xlu1 %4098  ;;  %4725 = vrot.lane.b32.xlu0 %v4686_v17, %s10261_s14  ;;  %v4277_v24 = vpop.permute.xlu0 %4276  ;;  %v13148_v5 = vsel %vm2798_vm1, %v4475_v23, %v4477_v29  ;;  %v3682_v33 = vadd.f32 %v15475_v0, %v3559_v59  ;;  %v4232_v23 = vadd.f32 %v4185_v44, %v4140_v15  ;;  %v13166_v17 = vld [vmem:[#allocation4 + $0x250] sm:$0xff]  ;;  %v13176_v0 = vsel %vm2924_vm2, %v4560_v10, %v4562_v22  ;;  %v3475_v59 = vld [vmem:[#allocation4 + $0x2c0] sm:$0x3] }
 0x484   : > { %15553 = vst [vmem:[#allocation118_spill] sm:$0xff] %v13121_v21  ;;  %v15247_v10 = vrot.slane %v13166_v17, 1  ;;  %v13369_v21 = vld [vmem:[#allocation5 + $0x20] sm:$0xff] }
 0x485   : > { %9337 = vmatpush3.bf16.msra.mxu1 %v10229_v39  ;;  %4936 = vrot.lane.b32.xlu1 %v13125_v53, %s10263_s20  ;;  %v3807_v46 = vadd.f32 %v13001_v52, %v3682_v33  ;;  %v4324_v44 = vadd.f32 %v4277_v24, %v4232_v23  ;;  %v10231_v52 = vld [vmem:[%s15163_s5 + $0x20] sm:$0xff]   ;;  %v15556_v39 = vld [vmem:[#allocation35_spill] sm:$0xff] }
 0x486   : > { %9338 = vmatprep.subr.bf16.mxu1 %v12664_v18  ;;  %v15561_v23 = vld [vmem:[#allocation103_spill] sm:$0xff] }
 0x487   : > { %v4187_v42 = vpop.permute.xlu1 %4186  ;;  %4850 = vrot.lane.b32.xlu0 %v4811_v12, %s10262_s19  ;;  %v13160_v1 = vpop.permute.xlu0 %4280  ;;  %v3891_v49 = vadd.f32 %v13026_v63, %v3807_v46  ;;  %v13200_v63 = vsel %vm2798_vm1, %v15247_v10, %v4483_v45  ;;  %v15559_v12 = vld [vmem:[#allocation109_spill] sm:$0xff]  ;;  %v15562_v46 = vld [vmem:[#allocation111_spill] sm:$0xff] }
 0x488   : > { %15554 = vst [vmem:[#allocation119_spill] sm:$0xff] %v13160_v1  ;;  %v13214_v15 = vrot.slane %v15559_v12, 4  ;;  %v15581_v1 = vld [vmem:[#allocation76_spill] sm:$0xff] }
 0x489   : > { %9339 = vmatpush3.bf16.msra.mxu1 %v10230_v47  ;;  %5024 = vrot.lane.b32.xlu1 %v13148_v5, %s10264_s29  ;;  %v4016_v16 = vadd.f32 %v13064_v3, %v3891_v49  ;;  %v15244_v49 = vrot.slane %v13211_v48, 1 }
 0x48a   : > { %9340 = vmatprep.subr.bf16.mxu1 %v12664_v18 }
 0x48b   : > { %v13164_v43 = vpop.permute.xlu1 %4190  ;;  %4934 = vrot.lane.b32.xlu0 %v13113_v58, %s10263_s20  ;;  %v4361_v14 = vpop.permute.xlu0 %4360  ;;  %v4141_v24 = vadd.f32 %v13105_v25, %v4016_v16  ;;  %v15563_v25 = vld [vmem:[#allocation54_spill] sm:$0xff] }
 0x48c   : > { %15555 = vst [vmem:[#allocation120_spill] sm:$0xff] %v13164_v43  ;;  %v4408_v31 = vadd.f32 %v4361_v14, %v4324_v44  ;;  %v3481_v44 = vsel %vm2924_vm2, %v15562_v46, %v3480_v4  ;;  %v4564_v4 = vrot.slane %v13125_v53, 2 }
 0x48d   : > { %9341 = vmatpush3.bf16.msra.mxu1 %v10231_v52  ;;  %5116 = vrot.lane.b32.xlu1 %v13176_v0, %s10265_s12  ;;  %v4233_v33 = vadd.f32 %v4187_v42, %v4141_v24  ;;  %v3484_v52 = vrot.slane %v3475_v59, 2  ;;  %v15564_v42 = vld [vmem:[#allocation100_spill] sm:$0xff] }
 0x48e   : > { %9342 = vmatprep.subr.bf16.mxu1 %v12664_v18  ;;  %v13205_v3 = vadd.f32 %v13200_v63, %v4408_v31 }
 0x48f   : > { %v4279_v32 = vpop.permute.xlu1 %4278  ;;  %3522 = vrot.lane.b32.xlu0 %v3483_v54, %s10266_s13  ;;  %v13208_v35 = vpop.permute.xlu0 %4364  ;;  %v15565_v54 = vrot.slane %v15564_v42, 4  ;;  %v3485_v24 = vsel %vm2924_vm2, %v3482_v30, %v3484_v52  ;;  %v4565_v30 = vsel %vm2924_vm2, %v4562_v22, %v4564_v4  ;;  %v4689_v52 = vrot.slane %v13125_v53, 3 }
 0x490   : > { %15557 = vst [vmem:[#allocation35_spill] sm:$0xff] %v13205_v3  ;;  %15558 = vst [vmem:[#allocation121_spill] sm:$0xff] %v13208_v35  ;;  %v4325_v14 = vadd.f32 %v4279_v32, %v4233_v33  ;;  %v15566_v32 = vld [vmem:[#allocation8_spill] sm:$0xff]  ;;  %v15579_v35 = vld [vmem:[#allocation75_spill] sm:$0xff] }
 0x491   : > { %9343 = vmatpush3.bf16.msra.mxu1 %v15556_v39  ;;  %5208 = vrot.lane.b32.xlu1 %v4688_v38, %s10266_s13  ;;  %v13232_v16 = vsel %vm3176_vm4, %v15565_v54, %v13214_v15  ;;  %v10005_v33 = vld [vmem:[%s15163_s5 + $0x10] sm:$0xff]   ;;  %v4690_v22 = vsel %vm3050_vm3, %v4687_v55, %v4689_v52 }
 0x492   : > { %9344 = vmatprep.subr.bf16.mxu1 %v12664_v18  ;;  %v15594_v3 = vld [vmem:[#allocation16_spill] sm:$0xff] }
 0x493   : > { %v13216_v47 = vpop.permute.xlu1 %4282  ;;  %3766 = vrot.lane.b32.xlu0 %v15561_v23, %s10260_s25  ;;  %v13225_v31 = vpop.permute.xlu0 %2872  ;;  %v13246_v23 = vsel %vm2798_vm1, %v4483_v45, %v15244_v49  ;;  %v15569_v45 = vld [vmem:[#allocation108_spill] sm:$0xff] }
 0x494   : > { %15560 = vst [vmem:[#allocation109_spill] sm:$0xff] %v13216_v47 }
 0x495   : > { %9345 = vmatpush3.bf16.msra.mxu1 %v15563_v25  ;;  %3520 = vrot.lane.b32.xlu1 %v3481_v44, %s10266_s13 }
 0x496   : > { %9346 = vmatprep.subr.bf16.mxu1 %v12664_v18 }
 0x497   : > { %v4363_v39 = vpop.permute.xlu1 %4362  ;;  %3770 = vrot.lane.b32.xlu0 %v13232_v16, %s10260_s25  ;;  %v13248_v46 = vpop.permute.xlu0 %2876 }
 0x498   : > { %v4409_v59 = vadd.f32 %v4363_v39, %v4325_v14  ;;  %v10006_v14 = vld [vmem:[%s15163_s5 + $0x18] sm:$0xff]   ;;  %v4814_v39 = vrot.slane %v13125_v53, 4 }
 0x499   : > { %9347 = vmatpush3.bf16.msra.mxu1 %v15566_v32  ;;  %3524 = vrot.lane.b32.xlu1 %v3485_v24, %s10266_s13  ;;  %v4812_v24 = vrot.slane %v13113_v58, 4  ;;  %v10007_v32 = vld [vmem:[%s15163_s5 + $0x20] sm:$0xff]  }
 0x49a   : > { %9352 = vmatprep.subr.bf16.mxu1 %v12664_v18  ;;  %v13252_v44 = vadd.f32 %v13246_v23, %v4409_v59 }
 0x49b   : > { %v13258_v25 = vpop.permute.xlu1 %4366  ;;  %4604 = vrot.lane.b32.xlu0 %v4565_v30, %s10260_s25  ;;  %v13267_v54 = vpop.permute.xlu0 %2998  ;;  %v4815_v55 = vsel %vm3176_vm4, %v4812_v24, %v4814_v39 }
 0x49c   : > { %15567 = vst [vmem:[#allocation103_spill] sm:$0xff] %v13252_v44  ;;  %15568 = vst [vmem:[#allocation111_spill] sm:$0xff] %v13258_v25  ;;  %9349 = vmatmul.mubr.bf16.vlgmr.msra.gmra.mrb[124].mxu1 %v13076_v20  ;;  %v15248_v25 = vrot.slane %v13157_v61, 2 }
 0x49d   : > { %9353 = vmatpush3.bf16.msra.mxu1 %v10005_v33  ;;  %3768 = vrot.lane.b32.xlu1 %v15569_v45, %s10260_s25  ;;  %v4479_v45 = vrot.slane %v13125_v53, 1 }
 0x49e   : > { %9354 = vmatprep.subr.bf16.mxu1 %v12664_v18  ;;  %9368 = vmatprep.mubr.msk.bf16.mxu1 %vm10258_vm0, %v12664_v18 }
 0x49f   : > { %v13276_v59 = vpop.permute.xlu1 %2874  ;;  %4729 = vrot.lane.b32.xlu0 %v4690_v22, %s10261_s14  ;;  %v13285_v33 = vpop.permute.xlu0 %3002  ;;  %v13303_v6 = vsel %vm2798_vm1, %v4477_v29, %v4479_v45 }
 0x4a1   : > { %9355 = vmatpush3.bf16.msra.mxu1 %v10006_v14  ;;  %4602 = vrot.lane.b32.xlu1 %v13176_v0, %s10260_s25  ;;  %v10008_v0 = vld [vmem:[%s15163_s5 + $0x28] sm:$0xff]  }
 0x4a2   : > { %9356 = vmatprep.subr.bf16.mxu1 %v12664_v18 }
 0x4a3   : > { %v13290_v49 = vpop.permute.xlu1 %2878  ;;  %4854 = vrot.lane.b32.xlu0 %v4815_v55, %s10262_s19  ;;  %v13297_v14 = vpop.permute.xlu0 %3124  ;;  %v4566_v55 = vrot.slane %v13166_v17, 2 }
 0x4a5   : > { %9357 = vmatpush3.bf16.msra.mxu1 %v10007_v32  ;;  %4727 = vrot.lane.b32.xlu1 %v4688_v38, %s10261_s14  ;;  %v4813_v38 = vsel %vm3176_vm4, %v4810_v56, %v4812_v24  ;;  %v10009_v32 = vld [vmem:[%s15163_s5 + $0x30] sm:$0xff]  }
 0x4a6   : > { %9358 = vmatprep.subr.bf16.mxu1 %v12664_v18 }
 0x4a7   : > { %v13305_v53 = vpop.permute.xlu1 %3000  ;;  %5026 = vrot.lane.b32.xlu0 %v13303_v6, %s10264_s29  ;;  %v13316_v58 = vpop.permute.xlu0 %3128 }
 0x4a9   : > { %9359 = vmatpush3.bf16.msra.mxu1 %v10008_v0  ;;  %4852 = vrot.lane.b32.xlu1 %v4813_v38, %s10262_s19  ;;  %v4691_v0 = vrot.slane %v13166_v17, 3  ;;  %v10011_v38 = vld [vmem:[%s15163_s5 + $0x40] sm:$0xff]  }
 0x4aa   : > { %9360 = vmatprep.subr.bf16.mxu1 %v12664_v18 }
 0x4ab   : > { %v13319_v29 = vpop.permute.xlu1 %3004  ;;  %5118 = vrot.lane.b32.xlu0 %v4565_v30, %s10265_s12  ;;  %v13328_v56 = vpop.permute.xlu0 %3250  ;;  %v4567_v30 = vsel %vm2924_vm2, %v4564_v4, %v4566_v55  ;;  %v4692_v4 = vsel %vm3050_vm3, %v4689_v52, %v4691_v0 }
 0x4ad   : > { %9361 = vmatpush3.bf16.msra.mxu1 %v10009_v32  ;;  %4940 = vrot.lane.b32.xlu1 %v13157_v61, %s10263_s20 }
 0x4ae   : > { %9362 = vmatprep.subr.bf16.mxu1 %v12664_v18 }
 0x4af   : > { %v13331_v24 = vpop.permute.xlu1 %3126  ;;  %5210 = vrot.lane.b32.xlu0 %v4690_v22, %s10266_s13  ;;  %v13340_v32 = vpop.permute.xlu0 %3254  ;;  %v4816_v22 = vrot.slane %v13166_v17, 4 }
 0x4b0   : > { %15570 = vst [vmem:[#allocation54_spill] sm:$0xff] %v13331_v24 }
 0x4b1   : > { %9363 = vmatpush3.bf16.msra.mxu1 %v10010_v36  ;;  %4606 = vrot.lane.b32.xlu1 %v4567_v30, %s10260_s25  ;;  %v10012_v36 = vld [vmem:[%s15163_s5 + $0x48] sm:$0xff]   ;;  %v4817_v52 = vsel %vm3176_vm4, %v4814_v39, %v4816_v22  ;;  %v15249_v39 = vrot.slane %v13157_v61, 3 }
 0x4b2   : > { %9364 = vmatprep.subr.bf16.mxu1 %v12664_v18 }
 0x4b3   : > { %v13343_v57 = vpop.permute.xlu1 %3130  ;;  %4938 = vrot.lane.b32.xlu0 %v13166_v17, %s10263_s20  ;;  %v13353_v10 = vpop.permute.xlu0 %3334 }
 0x4b4   : > { %15571 = vst [vmem:[#allocation100_spill] sm:$0xff] %v13343_v57 }
 0x4b5   : > { %9365 = vmatpush3.bf16.msra.mxu1 %v10011_v38  ;;  %4731 = vrot.lane.b32.xlu1 %v4692_v4, %s10261_s14  ;;  %v10014_v38 = vld [vmem:[%s15163_s5 + $0x18] sm:$0xff]  }
 0x4b6   : > { %9366 = vmatprep.subr.bf16.mxu1 %v12664_v18  ;;  %v5693_v18 = vrot.slane %v13076_v20, 1 }
 0x4b7   : > { %v13357_v47 = vpop.permute.xlu1 %3252  ;;  %5030 = vrot.lane.b32.xlu0 %v13200_v63, %s10264_s29  ;;  %v13366_v43 = vpop.permute.xlu0 %3338  ;;  %v4569_v63 = vsel %vm2924_vm2, %v4566_v55, %v15248_v25  ;;  %v10015_v55 = vld [vmem:[%s15163_s5 + $0x20] sm:$0xff]  }
 0x4b8   : > { %15572 = vst [vmem:[#allocation8_spill] sm:$0xff] %v13357_v47  ;;  %15573 = vst [vmem:[#allocation108_spill] sm:$0xff] %v13366_v43  ;;  %v15600_v47 = vld [vmem:[#allocation84_spill] sm:$0xff] }
 0x4b9   : > { %9367 = vmatpush3.bf16.msra.mxu1 %v10012_v36  ;;  %4856 = vrot.lane.b32.xlu1 %v4817_v52, %s10262_s19  ;;  %v15575_v52 = vrot.slane %v13166_v17, 1  ;;  %v4694_v17 = vsel %vm3050_vm3, %v4691_v0, %v15249_v39 }
 0x4ba   : > { %9372 = vmatprep.subr.bf16.mxu1 %v13369_v21 }
 0x4bb   : > { %v13376_v36 = vpop.permute.xlu1 %3256  ;;  %5122 = vrot.lane.b32.xlu0 %v4569_v63, %s10265_s12  ;;  %v13382_v28 = vsel %vm2798_vm1, %v4479_v45, %v15575_v52  ;;  %v13389_v25 = vpop.permute.xlu0 %3426 }
 0x4bc   : > { %15574 = vst [vmem:[#allocation122_spill] sm:$0xff] %v13376_v36  ;;  %9369 = vmatmul.mubr.bf16.vlgmr.msra.gmra.mrb[128].mxu1 %v5693_v18  ;;  %v15577_v18 = vld [vmem:[#allocation74_spill] sm:$0xff] }
 0x4bd   : > { %9373 = vmatpush3.bf16.msra.mxu1 %v10014_v38  ;;  %5028 = vrot.lane.b32.xlu1 %v13382_v28, %s10264_s29  ;;  %v10233_v38 = vld [vmem:[#allocation4 + $0xc0] sm:$0xff] }
 0x4be   : > { %9374 = vmatprep.subr.bf16.mxu1 %v13369_v21  ;;  %9388 = vmatprep.mubr.msk.bf16.mxu1 %vm10258_vm0, %v13369_v21  ;;  %v2906_v52 = vadd.f32 %v10233_v38, %v15577_v18  ;;  %v15583_v38 = vld [vmem:[#allocation77_spill] sm:$0xff] }
 0x4bf   : > { %v13397_v45 = vpop.permute.xlu1 %3336  ;;  %5214 = vrot.lane.b32.xlu0 %v4694_v17, %s10266_s13  ;;  %v13405_v60 = vpop.permute.xlu0 %3430 }
 0x4c0   : > { %15576 = vst [vmem:[#allocation123_spill] sm:$0xff] %v13397_v45  ;;  %15578 = vst [vmem:[#allocation74_spill] sm:$0xff] %v13405_v60  ;;  %v3032_v0 = vadd.f32 %v15579_v35, %v2906_v52  ;;  %v15250_v35 = vrot.slane %v13157_v61, 4  ;;  %v15598_v45 = vrot.slane %v13211_v48, 3 }
 0x4c1   : > { %9375 = vmatpush3.bf16.msra.mxu1 %v10015_v55  ;;  %5120 = vrot.lane.b32.xlu1 %v4567_v30, %s10265_s12  ;;  %v10017_v30 = vld [vmem:[%s15163_s5 + $0x30] sm:$0xff]  }
 0x4c2   : > { %9376 = vmatprep.subr.bf16.mxu1 %v13369_v21  ;;  %v3158_v9 = vadd.f32 %v15581_v1, %v3032_v0  ;;  %v13425_v1 = vld [vmem:[#allocation4 + $0x2b0] sm:$0xff] }
 0x4c3   : > { %v13409_v39 = vpop.permute.xlu1 %3340  ;;  %4608 = vrot.lane.b32.xlu0 %v4569_v63, %s10260_s25  ;;  %v13417_v55 = vpop.permute.xlu0 %3518  ;;  %v10018_v63 = vld [vmem:[%s15163_s5 + $0x38] sm:$0xff]  }
 0x4c4   : > { %15580 = vst [vmem:[#allocation75_spill] sm:$0xff] %v13409_v39  ;;  %15582 = vst [vmem:[#allocation76_spill] sm:$0xff] %v13417_v55  ;;  %v3284_v18 = vadd.f32 %v15583_v38, %v3158_v9  ;;  %v15586_v9 = vld [vmem:[#allocation22_spill] sm:$0xff]  ;;  %v15608_v55 = vld [vmem:[#allocation80_spill] sm:$0xff] }
 0x4c5   : > { %9377 = vmatpush3.bf16.msra.mxu1 %v10016_v41  ;;  %5212 = vrot.lane.b32.xlu1 %v4692_v4, %s10266_s13  ;;  %v15585_v41 = vld [vmem:[#allocation21_spill] sm:$0xff] }
 0x4c6   : > { %9378 = vmatprep.subr.bf16.mxu1 %v13369_v21  ;;  %v3368_v4 = vadd.f32 %v15585_v41, %v3284_v18  ;;  %v15588_v18 = vld [vmem:[#allocation17_spill] sm:$0xff] }
 0x4c7   : > { %v13422_v52 = vpop.permute.xlu1 %3428  ;;  %4733 = vrot.lane.b32.xlu0 %v4694_v17, %s10261_s14  ;;  %v13433_v0 = vpop.permute.xlu0 %4596  ;;  %v4819_v17 = vsel %vm3176_vm4, %v4816_v22, %v15250_v35  ;;  %v15590_v35 = vld [vmem:[#allocation13_spill] sm:$0xff] }
 0x4c8   : > { %15584 = vst [vmem:[#allocation77_spill] sm:$0xff] %v13422_v52  ;;  %v3460_v38 = vadd.f32 %v15586_v9, %v3368_v4  ;;  %v10019_v4 = vld [vmem:[%s15163_s5 + $0x40] sm:$0xff]  }
 0x4c9   : > { %9379 = vmatpush3.bf16.msra.mxu1 %v10017_v30  ;;  %4944 = vrot.lane.b32.xlu1 %v13425_v1, %s10263_s20  ;;  %v10234_v9 = vld [vmem:[#allocation4 + $0xe0] sm:$0xff] }
 0x4ca   : > { %9380 = vmatprep.subr.bf16.mxu1 %v13369_v21  ;;  %v3552_v41 = vadd.f32 %v15588_v18, %v3460_v38  ;;  %v2907_v62 = vadd.f32 %v10234_v9, %v15589_v2  ;;  %v15593_v18 = vld [vmem:[#allocation10_spill] sm:$0xff]  ;;  %v15596_v2 = vld [vmem:[#allocation41_spill] sm:$0xff] }
 0x4cb   : > { %v13440_v44 = vpop.permute.xlu1 %3432  ;;  %4858 = vrot.lane.b32.xlu0 %v4819_v17, %s10262_s19  ;;  %v13451_v22 = vpop.permute.xlu0 %4721 }
 0x4cc   : > { %15587 = vst [vmem:[#allocation21_spill] sm:$0xff] %v13440_v44  ;;  %v3033_v30 = vadd.f32 %v15590_v35, %v2907_v62  ;;  %v3675_v9 = vadd.f32 %v15593_v18, %v3552_v41  ;;  %v10020_v62 = vld [vmem:[%s15163_s5 + $0x48] sm:$0xff]   ;;  %v4648_v41 = vadd.f32 %v12948_v34, %v15596_v2  ;;  %v10021_v34 = vld [vmem:[%s15163_s5 + $0x50] sm:$0xff]  }
 0x4cd   : > { %9381 = vmatpush3.bf16.msra.mxu1 %v10018_v63  ;;  %5032 = vrot.lane.b32.xlu1 %v13246_v23, %s10264_s29  ;;  %v15591_v23 = vrot.slane %v13211_v48, 2  ;;  %v15592_v63 = vrot.slane %v13157_v61, 2  ;;  %v3690_v35 = vld [vmem:[#allocation4 + $0x2c8] sm:$0xf] }
 0x4ce   : > { %9382 = vmatprep.subr.bf16.mxu1 %v13369_v21  ;;  %v3159_v51 = vadd.f32 %v15594_v3, %v3033_v30  ;;  %v15597_v18 = vld [vmem:[#allocation15_spill] sm:$0xff]  ;;  %v15599_v3 = vrot.slane %v13157_v61, 3  ;;  %v3732_v39 = vrot.slane %v3690_v35, 4 }
 0x4cf   : > { %v13454_v17 = vpop.permute.xlu1 %4594  ;;  %4942 = vrot.lane.b32.xlu0 %v13211_v48, %s10263_s20  ;;  %v13464_v38 = vsel %vm2924_vm2, %v15592_v63, %v15591_v23  ;;  %v13474_v37 = vpop.permute.xlu0 %4846  ;;  %v15595_v23 = vld [vmem:[#allocation27_spill] sm:$0xff] }
 0x4d0   : > { %v3800_v63 = vadd.f32 %v15595_v23, %v3675_v9  ;;  %v3285_v52 = vadd.f32 %v15597_v18, %v3159_v51  ;;  %v10235_v44 = vld [vmem:[#allocation4 + $0x288] sm:$0xff]  ;;  %v13489_v30 = vsel %vm3050_vm3, %v15599_v3, %v15598_v45  ;;  %v4773_v23 = vadd.f32 %v12961_v19, %v4648_v41  ;;  %v15603_v3 = vld [vmem:[#allocation97_spill] sm:$0xff] }
 0x4d1   : > { %9383 = vmatpush3.bf16.msra.mxu1 %v10019_v4  ;;  %5124 = vrot.lane.b32.xlu1 %v13464_v38, %s10265_s12  ;;  %v13501_v35 = vld [vmem:[#allocation4 + $0x2c8] sm:$0xff]  ;;  %v3733_v41 = vsel %vm3176_vm4, %v13214_v15, %v3732_v39  ;;  %v15605_v39 = vshrl.u32 %v13076_v20, 16 }
 0x4d2   : > { %9384 = vmatprep.subr.bf16.mxu1 %v13369_v21  ;;  %v3884_v9 = vadd.f32 %v15600_v47, %v3800_v63  ;;  %v4898_v45 = vadd.f32 %v12971_v40, %v4773_v23  ;;  %v3935_v47 = vrot.slane %v15559_v12, 1  ;;  %v13511_v18 = vld [vmem:[#allocation4 + $0x2e8] sm:$0xff]  ;;  %v13515_v23 = vld [vmem:[#allocation4 + $0x1b8] sm:$0xff] }
 0x4d3   : > { %v13480_v4 = vpop.permute.xlu1 %4719  ;;  %3850 = vrot.lane.b32.xlu0 %v10235_v44, %s10261_s14  ;;  %v5019_v51 = vpop.permute.xlu0 %5018  ;;  %v15601_v44 = vld [vmem:[#allocation95_spill] sm:$0xff]  ;;  %v5800_v36 = vrot.slane %v15605_v39, 1 }
 0x4d4   : > { %v4009_v2 = vadd.f32 %v15601_v44, %v3884_v9  ;;  %v4982_v40 = vadd.f32 %v12978_v27, %v4898_v45  ;;  %v15604_v44 = vld [vmem:[#allocation79_spill] sm:$0xff] }
 0x4d5   : > { %9385 = vmatpush3.bf16.msra.mxu1 %v10020_v62  ;;  %5216 = vrot.lane.b32.xlu1 %v13489_v30, %s10266_s13  ;;  %v15602_v62 = vld [vmem:[#allocation12_spill] sm:$0xff] }
 0x4d6   : > { %9386 = vmatprep.subr.bf16.mxu1 %v13369_v21  ;;  %v3369_v63 = vadd.f32 %v15602_v62, %v3285_v52  ;;  %v4134_v9 = vadd.f32 %v15603_v3, %v4009_v2  ;;  %v10022_v52 = vld [vmem:[%s15163_s5 + $0x20] sm:$0xff]   ;;  %v15606_v2 = vld [vmem:[#allocation43_spill] sm:$0xff]  ;;  %v5074_v27 = vadd.f32 %v5019_v51, %v4982_v40  ;;  %v3937_v51 = vrot.slane %v13501_v35, 1 }
 0x4d7   : > { %v13504_v19 = vpop.permute.xlu1 %4844  ;;  %3854 = vrot.lane.b32.xlu0 %v13501_v35, %s10261_s14  ;;  %v5111_v60 = vpop.permute.xlu0 %5110 }
 0x4d8   : > { %v3461_v62 = vadd.f32 %v15604_v44, %v3369_v63  ;;  %v4226_v3 = vadd.f32 %v15606_v2, %v4134_v9  ;;  %v5325_v63 = vrot.slane %v13515_v23, 4  ;;  %v15609_v44 = vld [vmem:[#allocation33_spill] sm:$0xff]  ;;  %v5166_v57 = vadd.f32 %v5111_v60, %v5074_v27  ;;  %v10023_v9 = vld [vmem:[%s15163_s5 + $0x28] sm:$0xff]  }
 0x4d9   : > { %9387 = vmatpush3.bf16.msra.mxu1 %v10021_v34  ;;  %3772 = vrot.lane.b32.xlu1 %v3733_v41, %s10260_s25  ;;  %v15607_v34 = vrot.slane %v15564_v42, 1  ;;  %v3939_v41 = vrot.slane %v13511_v18, 1  ;;  %v15627_v23 = vrot.slane %v13211_v48, 2 }
 0x4da   : > { %9392 = vmatprep.subr.bf16.mxu1 %v13369_v21  ;;  %v3553_v43 = vadd.f32 %v15608_v55, %v3461_v62  ;;  %v4318_v39 = vadd.f32 %v15609_v44, %v4226_v3  ;;  %v15611_v3 = vld [vmem:[#allocation11_spill] sm:$0xff] }
 0x4db   : > { %v3936_v45 = vsel %vm2798_vm1, %v15607_v34, %v3935_v47  ;;  %v13530_v24 = vpop.permute.xlu1 %4932  ;;  %v5203_v40 = vpop.permute.xlu0 %5202  ;;  %v3940_v60 = vsel %vm2798_vm1, %v3937_v51, %v3939_v41  ;;  %v15612_v34 = vrot.slane %v12981_v7, 4 }
 0x4dc   : > { %3975 = vrot.lane.b32.xlu0 %v3936_v45, %s10262_s19  ;;  %9389 = vmatmul.mubr.bf16.vlgmr.msra.gmra.mrb[132].mxu1 %v5800_v36  ;;  %v15610_v36 = vld [vmem:[#allocation64_spill] sm:$0xff]  ;;  %v5258_v62 = vadd.f32 %v5203_v40, %v5166_v57  ;;  %v3676_v27 = vadd.f32 %v15611_v3, %v3553_v43  ;;  %v3899_v43 = vld [vmem:[#allocation4 + $0x308] sm:$0x1]  ;;  %v3938_v3 = vsel %vm2798_vm1, %v3935_v47, %v3937_v51 }
 0x4dd   : > { %9393 = vmatpush3.bf16.msra.mxu1 %v10022_v52  ;;  %3852 = vrot.lane.b32.xlu1 %v15559_v12, %s10261_s14  ;;  %v4402_v55 = vadd.f32 %v15610_v36, %v4318_v39  ;;  %v4060_v52 = vrot.slane %v15559_v12, 2  ;;  %v5326_v45 = vsel %vm3176_vm4, %v15612_v34, %v5325_v63  ;;  %v10024_v57 = vld [vmem:[%s15163_s5 + $0x30] sm:$0xff]   ;;  %v15613_v12 = vld [vmem:[#allocation90_spill] sm:$0xff] }
 0x4de   : > { %9394 = vmatprep.subr.bf16.mxu1 %v13369_v21  ;;  %9408 = vmatprep.mubr.msk.bf16.mxu1 %vm10258_vm0, %v13369_v21  ;;  %v5381_v39 = vadd.f32 %v5326_v45, %v5258_v62  ;;  %v3801_v40 = vadd.f32 %v15613_v12, %v3676_v27  ;;  %v3941_v27 = vrot.slane %v3899_v43, 1  ;;  %v15616_v12 = vld [vmem:[#allocation39_spill] sm:$0xff] }
 0x4df   : > { %v13548_v2 = vpop.permute.xlu1 %4598  ;;  %v4525_v44 = vadd.f32 %v12553_v11, %v4402_v55  ;;  %v4931_v36 = vpop.permute.xlu0 %4930  ;;  %v15614_v11 = vrot.slane %v15564_v42, 2  ;;  %v4064_v55 = vrot.slane %v13511_v18, 2  ;;  %v10236_v51 = vld [vmem:[#allocation4 + $0x2a8] sm:$0xff] }
 0x4e0   : > { %3979 = vrot.lane.b32.xlu0 %v3940_v60, %s10262_s19  ;;  %v5408_v60 = vadd.f32 %v12908_v26, %v5381_v39  ;;  %v10025_v26 = vld [vmem:[%s15163_s5 + $0x38] sm:$0xff]  }
 0x4e1   : > { %9395 = vmatpush3.bf16.msra.mxu1 %v10023_v9  ;;  %3856 = vrot.lane.b32.xlu1 %v13511_v18, %s10261_s14  ;;  %v4650_v7 = vadd.f32 %v13433_v0, %v4525_v44  ;;  %v4061_v9 = vsel %vm2924_vm2, %v15614_v11, %v4060_v52  ;;  %v4062_v0 = vrot.slane %v13501_v35, 2  ;;  %v15615_v44 = vld [vmem:[#allocation81_spill] sm:$0xff]  ;;  %v4649_v11 = vadd.f32 %v13454_v17, %v15616_v12 }
 0x4e2   : > { %9396 = vmatprep.subr.bf16.mxu1 %v13369_v21  ;;  %v5428_v45 = vmax.f32 %v5408_v60, 0.0  ;;  %v3885_v39 = vadd.f32 %v15615_v44, %v3801_v40  ;;  %v3942_v17 = vsel %vm2798_vm1, %v3939_v41, %v3941_v27  ;;  %v15619_v44 = vld [vmem:[#allocation38_spill] sm:$0xff]  ;;  %v15620_v41 = vrot.slane %v15564_v42, 3  ;;  %v5280_v27 = vld [vmem:[#allocation4 + $0x1d8] sm:$0xff] }
 0x4e3   : > { %v13571_v62 = vpop.permute.xlu1 %4723  ;;  %v4775_v34 = vadd.f32 %v13451_v22, %v4650_v7  ;;  %v4065_v47 = vsel %vm2924_vm2, %v4062_v0, %v4064_v55  ;;  %v15618_v7 = vld [vmem:[#allocation62_spill] sm:$0xff]  ;;  %v4774_v40 = vadd.f32 %v13480_v4, %v4649_v11  ;;  %v4154_v42 = vrot.slane %v13501_v35, 3 }
 0x4e4   : > { %4100 = vrot.lane.b32.xlu0 %v4061_v9, %s10263_s20  ;;  %v5023_v9 = vpop.permute.xlu0 %5022  ;;  %5449 = vst.msk [vmem:[#allocation5 + $0x20] sm:$0xff] %vm5444_vm5, %v5428_v45  ;;  %v4010_v60 = vadd.f32 %v15618_v7, %v3885_v39  ;;  %v4024_v45 = vld [vmem:[#allocation4 + $0x308] sm:$0x3]  ;;  %v4063_v7 = vsel %vm2924_vm2, %v4060_v52, %v4062_v0 }
 0x4e5   : > { %9397 = vmatpush3.bf16.msra.mxu1 %v10024_v57  ;;  %3977 = vrot.lane.b32.xlu1 %v3938_v3, %s10262_s19  ;;  %v4900_v22 = vadd.f32 %v13474_v37, %v4775_v34  ;;  %v13588_v57 = vrot.slane %v10236_v51, 3  ;;  %v13596_v37 = vld [vmem:[#allocation4 + $0x1f8] sm:$0xff]  ;;  %v4899_v39 = vadd.f32 %v13504_v19, %v4774_v40  ;;  %v10028_v40 = vld [vmem:[%s15163_s5 + $0x48] sm:$0xff]  }
 0x4e6   : > { %9398 = vmatprep.subr.bf16.mxu1 %v13369_v21  ;;  %v10027_v34 = vld [vmem:[%s15163_s5 + $0x40] sm:$0xff]   ;;  %v4135_v12 = vadd.f32 %v15619_v44, %v4010_v60  ;;  %v5329_v19 = vrot.slane %v13596_v37, 4  ;;  %v5327_v44 = vrot.slane %v5280_v27, 4 }
 0x4e7   : > { %15617 = vst [vmem:[#allocation22_spill] sm:$0xff] %v13588_v57  ;;  %v13590_v43 = vpop.permute.xlu1 %4848  ;;  %v4984_v3 = vadd.f32 %v4931_v36, %v4900_v22  ;;  %v13609_v36 = vsel %vm3050_vm3, %v15620_v41, %v13588_v57  ;;  %v4983_v41 = vadd.f32 %v12964_v13, %v4899_v39  ;;  %v10029_v13 = vld [vmem:[%s15163_s5 + $0x50] sm:$0xff]   ;;  %v4149_v39 = vld [vmem:[#allocation4 + $0x308] sm:$0x7] }
 0x4e8   : > { %4104 = vrot.lane.b32.xlu0 %v4065_v47, %s10263_s20  ;;  %v5115_v4 = vpop.permute.xlu0 %5114  ;;  %v15621_v47 = vld [vmem:[#allocation56_spill] sm:$0xff] }
 0x4e9   : > { %9399 = vmatpush3.bf16.msra.mxu1 %v10025_v26  ;;  %3981 = vrot.lane.b32.xlu1 %v3942_v17, %s10262_s19  ;;  %v5076_v11 = vadd.f32 %v5023_v9, %v4984_v3  ;;  %v4156_v26 = vrot.slane %v13511_v18, 3  ;;  %v4227_v51 = vadd.f32 %v15621_v47, %v4135_v12  ;;  %v4066_v9 = vrot.slane %v4024_v45, 2  ;;  %v15622_v17 = vld [vmem:[#allocation19_spill] sm:$0xff]  ;;  %v15623_v47 = vld [vmem:[#allocation29_spill] sm:$0xff] }
 0x4ea   : > { %9400 = vmatprep.subr.bf16.mxu1 %v13369_v21  ;;  %v5330_v45 = vsel %vm3176_vm4, %v5327_v44, %v5329_v19 }
 0x4eb   : > { %v5021_v22 = vpop.permute.xlu1 %5020  ;;  %v5168_v60 = vadd.f32 %v5115_v4, %v5076_v11  ;;  %v4319_v3 = vadd.f32 %v15622_v17, %v4227_v51  ;;  %v4157_v0 = vsel %vm3050_vm3, %v4154_v42, %v4156_v26  ;;  %v4067_v11 = vsel %vm2924_vm2, %v4064_v55, %v4066_v9  ;;  %v10237_v17 = vld [vmem:[#allocation4 + $0x100] sm:$0xff]  ;;  %v13645_v55 = vld [vmem:[%s15162_s4] ss:$0 sm:$0xff] }
 0x4ec   : > { %4192 = vrot.lane.b32.xlu0 %v13609_v36, %s10264_s29  ;;  %v5207_v12 = vpop.permute.xlu0 %5206  ;;  %v5075_v4 = vadd.f32 %v5021_v22, %v4983_v41  ;;  %v15624_v22 = vld [vmem:[#allocation23_spill] sm:$0xff] }
 0x4ed   : > { %9401 = vmatpush3.bf16.msra.mxu1 %v10027_v34  ;;  %4102 = vrot.lane.b32.xlu1 %v4063_v7, %s10263_s20  ;;  %v5260_v52 = vadd.f32 %v5207_v12, %v5168_v60  ;;  %v4403_v51 = vadd.f32 %v15623_v47, %v4319_v3  ;;  %v2908_v12 = vadd.f32 %v10237_v17, %v15624_v22  ;;  %v15252_v22 = vrot.slane %v13501_v35, 4 }
 0x4ee   : > { %9402 = vmatprep.subr.bf16.mxu1 %v13369_v21 }
 0x4ef   : > { %v5113_v34 = vpop.permute.xlu1 %5112  ;;  %v5383_v27 = vadd.f32 %v5330_v45, %v5260_v52  ;;  %v4526_v3 = vadd.f32 %v13074_v50, %v4403_v51  ;;  %v15625_v45 = vld [vmem:[#allocation18_spill] sm:$0xff]  ;;  %v10030_v50 = vld [vmem:[%s15163_s5 + $0x58] sm:$0xff]  }
 0x4f0   : > { %4196 = vrot.lane.b32.xlu0 %v4157_v0, %s10264_s29  ;;  %v5167_v60 = vadd.f32 %v5113_v34, %v5075_v4  ;;  %v4155_v0 = vsel %vm3050_vm3, %v13588_v57, %v4154_v42  ;;  %v4158_v34 = vrot.slane %v4149_v39, 3  ;;  %v3034_v4 = vadd.f32 %v15625_v45, %v2908_v12  ;;  %v15626_v39 = vld [vmem:[#allocation24_spill] sm:$0xff]  ;;  %v15628_v12 = vld [vmem:[#allocation25_spill] sm:$0xff] }
 0x4f1   : > { %9403 = vmatpush3.bf16.msra.mxu1 %v10028_v40  ;;  %4106 = vrot.lane.b32.xlu1 %v4067_v11, %s10263_s20  ;;  %v13638_v7 = vpop.permute.xlu0 %4600  ;;  %v5410_v9 = vadd.f32 %v13645_v55, %v5383_v27  ;;  %v4572_v40 = vrot.slane %v13425_v1, 2  ;;  %v5328_v27 = vsel %vm3176_vm4, %v5325_v63, %v5327_v44  ;;  %v15255_v44 = vrot.slane %v13425_v1, 3 }
 0x4f2   : > { %9404 = vmatprep.subr.bf16.mxu1 %v13369_v21  ;;  %v3160_v51 = vadd.f32 %v15626_v39, %v3034_v4  ;;  %v4159_v17 = vsel %vm3050_vm3, %v4156_v26, %v4158_v34  ;;  %v15629_v26 = vld [vmem:[#allocation82_spill] sm:$0xff]  ;;  %v15630_v45 = vrot.slane %v13211_v48, 3 }
 0x4f3   : > { %v5205_v41 = vpop.permute.xlu1 %5204  ;;  %v5430_v11 = vmax.f32 %v5410_v9, 0.0  ;;  %v13673_v63 = vsel %vm2924_vm2, %v15627_v23, %v4572_v40  ;;  %v10239_v39 = vld [vmem:[#allocation4 + $0x120] sm:$0xff] }
 0x4f4   : > { %4284 = vrot.lane.b32.xlu0 %v13232_v16, %s10265_s12  ;;  %v5259_v52 = vadd.f32 %v5205_v41, %v5167_v60  ;;  %v4651_v16 = vadd.f32 %v13548_v2, %v4526_v3  ;;  %v3286_v9 = vadd.f32 %v15628_v12, %v3160_v51  ;;  %v13702_v4 = vsel %vm3050_vm3, %v15630_v45, %v15255_v44  ;;  %v15632_v51 = vld [vmem:[#allocation83_spill] sm:$0xff]  ;;  %v15635_v45 = vld [vmem:[#allocation86_spill] sm:$0xff] }
 0x4f5   : > { %9405 = vmatpush3.bf16.msra.mxu1 %v10029_v13  ;;  %4194 = vrot.lane.b32.xlu1 %v4155_v0, %s10264_s29  ;;  %v13663_v47 = vpop.permute.xlu0 %4725  ;;  %5451 = vst.msk [vmem:[#allocation5 + $0x30] sm:$0xff] %vm5444_vm5, %v5430_v11  ;;  %v5907_v0 = vrot.slane %v13076_v20, 2  ;;  %v15254_v11 = vrot.slane %v13425_v1, 4  ;;  %v4247_v20 = vsel %vm3176_vm4, %v13214_v15, %v15252_v22  ;;  %v2909_v23 = vadd.f32 %v10239_v39, %v15632_v51  ;;  %v13723_v15 = vld [vmem:[#allocation4 + $0x218] sm:$0xff]  ;;  %v10240_v39 = vld [vmem:[#allocation4 + $0x140] sm:$0xff]  ;;  %v15636_v51 = vld [vmem:[#allocation87_spill] sm:$0xff] }
 0x4f6   : > { %v5382_v42 = vadd.f32 %v5328_v27, %v5259_v52  ;;  %9406 = vmatprep.subr.bf16.mxu1 %v13369_v21  ;;  %v4776_v2 = vadd.f32 %v13571_v62, %v4651_v16  ;;  %v10031_v62 = vld [vmem:[%s15163_s5 + $0x30] sm:$0xff]   ;;  %v3370_v34 = vadd.f32 %v15629_v26, %v3286_v9  ;;  %v4820_v16 = vrot.slane %v13211_v48, 4 }
 0x4f7   : > { %v13676_v13 = vpop.permute.xlu1 %4936 }
 0x4f8   : > { %4612 = vrot.lane.b32.xlu0 %v13673_v63, %s10260_s25  ;;  %v5409_v60 = vadd.f32 %v13645_v55, %v5382_v42  ;;  %v4901_v41 = vadd.f32 %v13590_v43, %v4776_v2  ;;  %v15631_v43 = vld [vmem:[#allocation93_spill] sm:$0xff]  ;;  %v4823_v9 = vsel %vm3176_vm4, %v4820_v16, %v15254_v11  ;;  %v15662_v11 = vld [vmem:[#allocation34_spill] sm:$0xff] }
 0x4f9   : > { %9407 = vmatpush3.bf16.msra.mxu1 %v10030_v50  ;;  %4198 = vrot.lane.b32.xlu1 %v4159_v17, %s10264_s29  ;;  %v13692_v52 = vpop.permute.xlu0 %4850  ;;  %v3462_v50 = vadd.f32 %v15631_v43, %v3370_v34  ;;  %v10032_v42 = vld [vmem:[%s15163_s5 + $0x38] sm:$0xff]   ;;  %v15633_v17 = vld [vmem:[#allocation94_spill] sm:$0xff] }
 0x4fa   : > { %v5429_v3 = vmax.f32 %v5409_v60, 0.0  ;;  %9432 = vmatprep.subr.bf16.mxu1 %v13369_v21  ;;  %v4985_v60 = vadd.f32 %v13530_v24, %v4901_v41  ;;  %v15251_v41 = vrot.slane %v13723_v15, 4  ;;  %v10033_v34 = vld [vmem:[%s15163_s5 + $0x40] sm:$0xff]  }
 0x4fb   : > { %v5025_v27 = vpop.permute.xlu1 %5024  ;;  %v3554_v12 = vadd.f32 %v15633_v17, %v3462_v50 }
 0x4fc   : > { %5450 = vst.msk [vmem:[#allocation5 + $0x28] sm:$0xff] %vm5444_vm5, %v5429_v3  ;;  %4737 = vrot.lane.b32.xlu0 %v13702_v4, %s10261_s14  ;;  %9409 = vmatmul.mubr.bf16.vlgmr.msra.gmra.mrb[136].mxu1 %v5907_v0  ;;  %v15634_v0 = vld [vmem:[#allocation85_spill] sm:$0xff]  ;;  %v5077_v24 = vadd.f32 %v5025_v27, %v4985_v60  ;;  %v2910_v27 = vadd.f32 %v10240_v39, %v15636_v51  ;;  %v15643_v51 = vld [vmem:[#allocation91_spill] sm:$0xff] }
 0x4fd   : > { %9433 = vmatpush3.bf16.msra.mxu1 %v10031_v62  ;;  %4286 = vrot.lane.b32.xlu1 %v4247_v20, %s10265_s12  ;;  %v13719_v2 = vpop.permute.xlu0 %4934  ;;  %v15253_v62 = vrot.slane %v13425_v1, 1  ;;  %v3035_v26 = vadd.f32 %v15634_v0, %v2909_v23 }
 0x4fe   : > { %9434 = vmatprep.subr.bf16.mxu1 %v13369_v21  ;;  %9448 = vmatprep.mubr.msk.bf16.mxu1 %vm10258_vm0, %v13369_v21 }
 0x4ff   : > { %v5117_v3 = vpop.permute.xlu1 %5116  ;;  %v3161_v20 = vadd.f32 %v15635_v45, %v3035_v26  ;;  %v15641_v26 = vld [vmem:[#allocation89_spill] sm:$0xff]  ;;  %v15642_v45 = vld [vmem:[#allocation44_spill] sm:$0xff] }
 0x500   : > { %4862 = vrot.lane.b32.xlu0 %v4823_v9, %s10262_s19  ;;  %v5169_v50 = vadd.f32 %v5117_v3, %v5077_v24  ;;  %v15640_v9 = vld [vmem:[#allocation88_spill] sm:$0xff]  ;;  %v3036_v24 = vadd.f32 %v15641_v26, %v2910_v27  ;;  %v15648_v26 = vld [vmem:[#allocation45_spill] sm:$0xff] }
 0x501   : > { %9435 = vmatpush3.bf16.msra.mxu1 %v10032_v42  ;;  %4610 = vrot.lane.b32.xlu1 %v13464_v38, %s10260_s25  ;;  %v13741_v43 = vpop.permute.xlu0 %3522  ;;  %v15637_v42 = vld [vmem:[#allocation14_spill] sm:$0xff]  ;;  %v15638_v38 = vrot.slane %v13211_v48, 1  ;;  %v3287_v0 = vadd.f32 %v15640_v9, %v3161_v20  ;;  %v5332_v48 = vsel %vm3176_vm4, %v5329_v19, %v15251_v41  ;;  %v15645_v19 = vrot.slane %v13157_v61, 4  ;;  %v15649_v61 = vld [vmem:[#allocation60_spill] sm:$0xff] }
 0x502   : > { %9436 = vmatprep.subr.bf16.mxu1 %v13369_v21  ;;  %v3677_v23 = vadd.f32 %v15637_v42, %v3554_v12  ;;  %v10034_v12 = vld [vmem:[%s15163_s5 + $0x48] sm:$0xff]   ;;  %v3162_v27 = vadd.f32 %v15643_v51, %v3036_v24  ;;  %v15644_v42 = vld [vmem:[#allocation61_spill] sm:$0xff]  ;;  %v13785_v24 = vld [vmem:[#allocation4 + $0x2d0] sm:$0xff] }
 0x503   : > { %v13751_v60 = vsel %vm2798_vm1, %v15638_v38, %v15253_v62  ;;  %v5209_v17 = vpop.permute.xlu1 %5208  ;;  %v15646_v38 = vld [vmem:[#allocation92_spill] sm:$0xff]  ;;  %v15647_v9 = vld [vmem:[#allocation78_spill] sm:$0xff] }
 0x504   : > { %15639 = vst [vmem:[#allocation17_spill] sm:$0xff] %v13751_v60  ;;  %5034 = vrot.lane.b32.xlu0 %v13751_v60, %s10264_s29  ;;  %v5261_v3 = vadd.f32 %v5209_v17, %v5169_v50  ;;  %v3802_v39 = vadd.f32 %v15642_v45, %v3677_v23  ;;  %v3288_v17 = vadd.f32 %v15646_v38, %v3162_v27  ;;  %v15651_v51 = vld [vmem:[#allocation58_spill] sm:$0xff] }
 0x505   : > { %9437 = vmatpush3.bf16.msra.mxu1 %v10033_v34  ;;  %4735 = vrot.lane.b32.xlu1 %v13489_v30, %s10261_s14  ;;  %v13768_v20 = vpop.permute.xlu0 %3766  ;;  %v4821_v34 = vsel %vm3176_vm4, %v15645_v19, %v4820_v16  ;;  %v5476_v41 = vld [vmem:[#allocation5 + $0x20] ss:$2 sm:$0x1f]  ;;  %v5478_v22 = vld [vmem:[#allocation5 + $0x21] ss:$2 sm:$0x1f] }
 0x506   : > { %v5384_v50 = vadd.f32 %v5332_v48, %v5261_v3  ;;  %9438 = vmatprep.subr.bf16.mxu1 %v13369_v21  ;;  %v3886_v23 = vadd.f32 %v15644_v42, %v3802_v39  ;;  %v3371_v3 = vadd.f32 %v15647_v9, %v3287_v0  ;;  %v3372_v16 = vadd.f32 %v15649_v61, %v3288_v17  ;;  %v13801_v42 = vld [vmem:[#allocation4 + $0x2f0] sm:$0xff]  ;;  %v15656_v61 = vld [vmem:[#allocation37_spill] sm:$0xff] }
 0x507   : > { %v13773_v37 = vpop.permute.xlu1 %3520  ;;  %v15654_v17 = vld [vmem:[#allocation48_spill] sm:$0xff] }
 0x508   : > { %5126 = vrot.lane.b32.xlu0 %v13673_v63, %s10265_s12  ;;  %v5411_v30 = vadd.f32 %v13645_v55, %v5384_v50  ;;  %v4011_v45 = vadd.f32 %v15648_v26, %v3886_v23  ;;  %v10035_v63 = vld [vmem:[%s15163_s5 + $0x50] sm:$0xff]   ;;  %v15650_v50 = vld [vmem:[#allocation49_spill] sm:$0xff]  ;;  %v4574_v23 = vrot.slane %v13785_v24, 2 }
 0x509   : > { %9439 = vmatpush3.bf16.msra.mxu1 %v10034_v12  ;;  %4860 = vrot.lane.b32.xlu1 %v4821_v34, %s10262_s19  ;;  %v13790_v48 = vpop.permute.xlu0 %3770  ;;  %v3463_v0 = vadd.f32 %v15650_v50, %v3371_v3  ;;  %v15653_v34 = vld [vmem:[#allocation36_spill] sm:$0xff]  ;;  %v15657_v50 = vld [vmem:[#allocation46_spill] sm:$0xff] }
 0x50a   : > { %v5431_v39 = vmax.f32 %v5411_v30, 0.0  ;;  %9440 = vmatprep.subr.bf16.mxu1 %v13369_v21  ;;  %v4136_v27 = vadd.f32 %v15651_v51, %v4011_v45  ;;  %v15652_v30 = vld [vmem:[#allocation55_spill] sm:$0xff]  ;;  %v10036_v3 = vld [vmem:[%s15163_s5 + $0x58] sm:$0xff]  }
 0x50b   : > { %v13796_v12 = vpop.permute.xlu1 %3524  ;;  %v3464_v19 = vadd.f32 %v15652_v30, %v3372_v16  ;;  %v3555_v38 = vadd.f32 %v15653_v34, %v3463_v0  ;;  %v15655_v45 = vld [vmem:[#allocation32_spill] sm:$0xff]  ;;  %v13827_v30 = vsel %vm2924_vm2, %v4572_v40, %v4574_v23  ;;  %v4699_v34 = vrot.slane %v13785_v24, 3 }
 0x50c   : > { %5452 = vst.msk [vmem:[#allocation5 + $0x38] sm:$0xff] %vm5444_vm5, %v5431_v39  ;;  %5218 = vrot.lane.b32.xlu0 %v13702_v4, %s10266_s13  ;;  %v4228_v9 = vadd.f32 %v15654_v17, %v4136_v27  ;;  %v10241_v4 = vld [vmem:[#allocation4 + $0x160] sm:$0xff]  ;;  %v15659_v17 = vld [vmem:[#allocation59_spill] sm:$0xff]  ;;  %v15663_v27 = vld [vmem:[#allocation20_spill] sm:$0xff] }
 0x50d   : > { %9441 = vmatpush3.bf16.msra.mxu1 %v10035_v63  ;;  %4948 = vrot.lane.b32.xlu1 %v13801_v42, %s10263_s20  ;;  %v13812_v26 = vpop.permute.xlu0 %4604  ;;  %v2911_v39 = vadd.f32 %v10241_v4, %v15655_v45  ;;  %v3556_v16 = vadd.f32 %v15656_v61, %v3464_v19  ;;  %v15257_v63 = vrot.slane %v13801_v42, 1  ;;  %v10037_v19 = vld [vmem:[%s15163_s5 + $0x60] sm:$0xff]   ;;  %v15660_v4 = vld [vmem:[#allocation28_spill] sm:$0xff] }
 0x50e   : > { %9442 = vmatprep.subr.bf16.mxu1 %v13369_v21  ;;  %v4320_v0 = vadd.f32 %v15657_v50, %v4228_v9  ;;  %v3678_v45 = vadd.f32 %v15660_v4, %v3555_v38  ;;  %v15661_v61 = vld [vmem:[#allocation52_spill] sm:$0xff] }
 0x50f   : > { %v13819_v51 = vpop.permute.xlu1 %3768  ;;  %v3037_v9 = vadd.f32 %v15659_v17, %v2911_v39  ;;  %v15664_v17 = vld [vmem:[#allocation31_spill] sm:$0xff] }
 0x510   : > { %15658 = vst [vmem:[#allocation9_spill] sm:$0xff] %v13819_v51  ;;  %4946 = vrot.lane.b32.xlu0 %v13785_v24, %s10263_s20  ;;  %v4404_v50 = vadd.f32 %v15661_v61, %v4320_v0  ;;  %v3803_v39 = vadd.f32 %v15663_v27, %v3678_v45  ;;  %v3679_v38 = vadd.f32 %v15664_v17, %v3556_v16  ;;  %v4824_v16 = vrot.slane %v13785_v24, 4  ;;  %v15668_v17 = vld [vmem:[#allocation6_spill] sm:$0xff] }
 0x511   : > { %9443 = vmatpush3.bf16.msra.mxu1 %v10036_v3  ;;  %4614 = vrot.lane.b32.xlu1 %v13827_v30, %s10260_s25  ;;  %v13838_v40 = vpop.permute.xlu0 %4729  ;;  %v3163_v44 = vadd.f32 %v15662_v11, %v3037_v9  ;;  %v15665_v3 = vrot.slane %v13785_v24, 1  ;;  %v15667_v11 = vrot.slane %v13425_v1, 3  ;;  %v5483_v9 = vmax.f32 %v5476_v41, %v5478_v22  ;;  %v15670_v41 = vld [vmem:[#allocation53_spill] sm:$0xff] }
 0x512   : > { %9444 = vmatprep.subr.bf16.mxu1 %v13369_v21  ;;  %v3804_v62 = vadd.f32 %v15668_v17, %v3679_v38 }
 0x513   : > { %v13850_v0 = vsel %vm2798_vm1, %v15665_v3, %v15257_v63  ;;  %v13852_v4 = vpop.permute.xlu1 %4602  ;;  %v5480_v61 = vld [vmem:[#allocation5 + $0x30] ss:$2 sm:$0x1f]  ;;  %v5482_v60 = vld [vmem:[#allocation5 + $0x31] ss:$2 sm:$0x1f]  ;;  %v13859_v27 = vsel %vm3050_vm3, %v15667_v11, %v4699_v34  ;;  %v4527_v3 = vadd.f32 %v13044_v8, %v4404_v50 }
 0x514   : > { %15666 = vst [vmem:[#allocation13_spill] sm:$0xff] %v13850_v0  ;;  %5038 = vrot.lane.b32.xlu0 %v13850_v0, %s10264_s29  ;;  %v5484_v45 = vmax.f32 %v5480_v61, %v5482_v60  ;;  %v10038_v63 = vld [vmem:[%s15163_s5 + $0x68] sm:$0xff]   ;;  %v3888_v60 = vadd.f32 %v15670_v41, %v3804_v62  ;;  %v15671_v8 = vrot.slane %v13801_v42, 2  ;;  %v15675_v41 = vld [vmem:[#allocation96_spill] sm:$0xff] }
 0x515   : > { %9445 = vmatpush3.bf16.msra.mxu1 %v10037_v19  ;;  %4739 = vrot.lane.b32.xlu1 %v13859_v27, %s10261_s14  ;;  %v15669_v0 = vld [vmem:[#allocation26_spill] sm:$0xff]  ;;  %v13870_v11 = vpop.permute.xlu0 %4854  ;;  %v4652_v38 = vadd.f32 %v13638_v7, %v4527_v3  ;;  %v15673_v7 = vrot.slane %v13425_v1, 4 }
 0x516   : > { %v3289_v51 = vadd.f32 %v15669_v0, %v3163_v44  ;;  %9446 = vmatprep.subr.bf16.mxu1 %v13369_v21  ;;  %v5485_v22 = vmax.f32 %v5483_v9, %v5484_v45  ;;  %v13878_v19 = vsel %vm2924_vm2, %v4574_v23, %v15671_v8  ;;  %v10039_v44 = vld [vmem:[%s15163_s5 + $0x38] sm:$0xff]   ;;  %v15672_v0 = vld [vmem:[#allocation51_spill] sm:$0xff] }
 0x517   : > { %v13881_v61 = vpop.permute.xlu1 %4727  ;;  %v3887_v17 = vadd.f32 %v15672_v0, %v3803_v39  ;;  %v4825_v62 = vsel %vm3176_vm4, %v15673_v7, %v4824_v16  ;;  %v15674_v9 = vld [vmem:[#allocation67_spill] sm:$0xff]  ;;  %v4777_v3 = vadd.f32 %v13663_v47, %v4652_v38  ;;  %v10040_v39 = vld [vmem:[%s15163_s5 + $0x40] sm:$0xff]   ;;  %v15678_v38 = vrot.slane %v13801_v42, 3 }
 0x518   : > { %5130 = vrot.lane.b32.xlu0 %v13878_v19, %s10265_s12  ;;  %v13894_v23 = vpack.c.bf16 %v5485_v22, %v5485_v22  ;;  %v4013_v45 = vadd.f32 %v15674_v9, %v3888_v60  ;;  %v3373_v8 = vadd.f32 %v15675_v41, %v3289_v51  ;;  %v15676_v0 = vld [vmem:[#allocation7_spill] sm:$0xff]  ;;  %v15677_v60 = vld [vmem:[#allocation68_spill] sm:$0xff]  ;;  %v15261_v51 = vrot.slane %v13511_v18, 4  ;;  %v15679_v9 = vld [vmem:[#allocation30_spill] sm:$0xff] }
 0x519   : > { %9447 = vmatpush3.bf16.msra.mxu1 %v10038_v63  ;;  %4864 = vrot.lane.b32.xlu1 %v4825_v62, %s10262_s19  ;;  %v4012_v50 = vadd.f32 %v15676_v0, %v3887_v17  ;;  %v5027_v57 = vpop.permute.xlu0 %5026  ;;  %v4902_v63 = vadd.f32 %v13692_v52, %v4777_v3  ;;  %v13912_v7 = vsel %vm3050_vm3, %v4699_v34, %v15678_v38  ;;  %v10041_v62 = vld [vmem:[%s15163_s5 + $0x40] sm:$0xff]   ;;  %v15681_v34 = vld [vmem:[#allocation99_spill] sm:$0xff] }
 0x51a   : > { %9429 = vmatmul.mubr.bf16.vlgmr.msra.gmra.mrb[196].mxu0 %v13894_v23  ;;  %9472 = vmatprep.subr.bf16.mxu1 %v13369_v21  ;;  %v15260_v22 = vshrl.u32 %v13894_v23, 16  ;;  %v4138_v47 = vadd.f32 %v15677_v60, %v4013_v45  ;;  %v3465_v45 = vadd.f32 %v15679_v9, %v3373_v8  ;;  %v15680_v52 = vld [vmem:[#allocation65_spill] sm:$0xff]  ;;  %v15682_v60 = vrot.slane %v13785_v24, 1  ;;  %v10042_v38 = vld [vmem:[%s15163_s5 + $0x48] sm:$0xff]  }
 0x51b   : > { %9453 = vmatpush3.bf16.msra.mxu0 %v10039_v44  ;;  %v13915_v17 = vpop.permute.xlu1 %4852  ;;  %9468 = vmatprep.mubr.msk.bf16.mxu0 %vm10258_vm0, %v13369_v21  ;;  %v4137_v3 = vadd.f32 %v15680_v52, %v4012_v50  ;;  %v4986_v41 = vadd.f32 %v13719_v2, %v4902_v63  ;;  %v13930_v0 = vld [vmem:[#allocation4 + $0x238] sm:$0xff]  ;;  %v15683_v8 = vrot.slane %v13425_v1, 1  ;;  %v15684_v9 = vld [vmem:[#allocation47_spill] sm:$0xff]  ;;  %v15685_v52 = vld [vmem:[#allocation66_spill] sm:$0xff] }
 0x51c   : > { %5222 = vrot.lane.b32.xlu0 %v13912_v7, %s10266_s13  ;;  %9449 = vmatmul.mubr.bf16.vlgmr.msra.gmra.mrb[140].mxu1 %v15260_v22  ;;  %v4230_v44 = vadd.f32 %v15681_v34, %v4138_v47  ;;  %v3557_v47 = vadd.f32 %v15684_v9, %v3465_v45  ;;  %v15686_v63 = vld [vmem:[#allocation69_spill] sm:$0xff]  ;;  %v10043_v45 = vld [vmem:[%s15163_s5 + $0x48] sm:$0xff]  }
 0x51d   : > { %9473 = vmatpush3.bf16.msra.mxu1 %v10040_v39  ;;  %9454 = vmatprep.subr.bf16.mxu0 %v13369_v21  ;;  %v13938_v50 = vsel %vm2798_vm1, %v15683_v8, %v15682_v60  ;;  %v4229_v2 = vadd.f32 %v15685_v52, %v4137_v3  ;;  %v5119_v39 = vpop.permute.xlu0 %5118  ;;  %v5078_v1 = vadd.f32 %v5027_v57, %v4986_v41  ;;  %v15687_v60 = vrot.slane %v13501_v35, 4  ;;  %v15688_v3 = vld [vmem:[#allocation57_spill] sm:$0xff]  ;;  %v10044_v52 = vld [vmem:[%s15163_s5 + $0x50] sm:$0xff]  }
 0x51e   : > { %5036 = vrot.lane.b32.xlu1 %v13938_v50, %s10264_s29  ;;  %9474 = vmatprep.subr.bf16.mxu1 %v13369_v21  ;;  %v4322_v34 = vadd.f32 %v15686_v63, %v4230_v44  ;;  %v5333_v57 = vrot.slane %v13930_v0, 4  ;;  %v15689_v44 = vld [vmem:[#allocation70_spill] sm:$0xff]  ;;  %v10057_v0 = vld [vmem:[%s15163_s5 + $0x50] sm:$0xff]  }
 0x51f   : > { %v4249_v8 = vsel %vm3176_vm4, %v15687_v60, %v15261_v51  ;;  %9455 = vmatpush3.bf16.msra.mxu0 %v10041_v62  ;;  %v13954_v22 = vpop.permute.xlu1 %4940  ;;  %9488 = vmatprep.mubr.msk.bf16.mxu1 %vm10258_vm0, %v13369_v21  ;;  %v4321_v9 = vadd.f32 %v15688_v3, %v4229_v2  ;;  %v5170_v62 = vadd.f32 %v5119_v39, %v5078_v1  ;;  %v15690_v63 = vld [vmem:[#allocation42_spill] sm:$0xff]  ;;  %v13973_v2 = vld [vmem:[#allocation4 + $0x310] sm:$0xff]  ;;  %v15691_v39 = vld [vmem:[#allocation63_spill] sm:$0xff] }
 0x520   : > { %4288 = vrot.lane.b32.xlu0 %v4249_v8, %s10265_s12  ;;  %9456 = vmatprep.subr.bf16.mxu0 %v13369_v21  ;;  %v4406_v41 = vadd.f32 %v15689_v44, %v4322_v34  ;;  %v3680_v60 = vadd.f32 %v15690_v63, %v3557_v47  ;;  %v15692_v1 = vld [vmem:[#allocation50_spill] sm:$0xff] }
 0x521   : > { %9475 = vmatpush3.bf16.msra.mxu1 %v10042_v38  ;;  %v5211_v51 = vpop.permute.xlu0 %5210  ;;  %v10045_v38 = vld [vmem:[%s15163_s5 + $0x50] sm:$0xff]   ;;  %v4405_v47 = vadd.f32 %v15692_v1, %v4321_v9  ;;  %v4493_v9 = vrot.slane %v13973_v2, 1 }
 0x522   : > { %5128 = vrot.lane.b32.xlu1 %v13827_v30, %s10265_s12  ;;  %9476 = vmatprep.subr.bf16.mxu1 %v13369_v21  ;;  %v5262_v8 = vadd.f32 %v5211_v51, %v5170_v62  ;;  %v3805_v34 = vadd.f32 %v15691_v39, %v3680_v60  ;;  %v15693_v30 = vrot.slane %v13723_v15, 4  ;;  %v4529_v51 = vadd.f32 %v13303_v6, %v4406_v41  ;;  %v10046_v62 = vld [vmem:[%s15163_s5 + $0x58] sm:$0xff]   ;;  %v4332_v60 = vld [vmem:[#allocation4 + $0x308] sm:$0xff] }
 0x523   : > { %9457 = vmatpush3.bf16.msra.mxu0 %v10043_v45  ;;  %v13975_v3 = vpop.permute.xlu1 %4606  ;;  %v10047_v41 = vld [vmem:[%s15163_s5 + $0x58] sm:$0xff]   ;;  %v4528_v39 = vadd.f32 %v13148_v5, %v4405_v47  ;;  %v4578_v5 = vrot.slane %v13973_v2, 2 }
 0x524   : > { %v5334_v44 = vsel %vm3176_vm4, %v15693_v30, %v5333_v57  ;;  %4368 = vrot.lane.b32.xlu0 %v13501_v35, %s10266_s13  ;;  %9458 = vmatprep.subr.bf16.mxu0 %v13369_v21  ;;  %v4654_v35 = vadd.f32 %v13812_v26, %v4529_v51  ;;  %v15696_v47 = vld [vmem:[#allocation101_spill] sm:$0xff] }
 0x525   : > { %v5385_v45 = vadd.f32 %v5334_v44, %v5262_v8  ;;  %9477 = vmatpush3.bf16.msra.mxu1 %v10044_v52  ;;  %v4939_v63 = vpop.permute.xlu0 %4938  ;;  %v15694_v52 = vld [vmem:[#allocation40_spill] sm:$0xff]  ;;  %v4653_v44 = vadd.f32 %v13852_v4, %v4528_v39 }
 0x526   : > { %5220 = vrot.lane.b32.xlu1 %v13859_v27, %s10266_s13  ;;  %9478 = vmatprep.subr.bf16.mxu1 %v13369_v21  ;;  %v3889_v8 = vadd.f32 %v15694_v52, %v3805_v34  ;;  %v4779_v26 = vadd.f32 %v13838_v40, %v4654_v35  ;;  %v10048_v34 = vld [vmem:[%s15163_s5 + $0x60] sm:$0xff]   ;;  %v15697_v35 = vld [vmem:[#allocation104_spill] sm:$0xff] }
 0x527   : > { %v5412_v15 = vadd.f32 %v13645_v55, %v5385_v45  ;;  %9459 = vmatpush3.bf16.msra.mxu0 %v10045_v38  ;;  %v14000_v6 = vpop.permute.xlu1 %4731  ;;  %v15695_v38 = vrot.slane %v13801_v42, 1  ;;  %v4778_v4 = vadd.f32 %v13881_v61, %v4653_v44  ;;  %v10050_v61 = vld [vmem:[%s15163_s5 + $0x68] sm:$0xff]  }
 0x528   : > { %4372 = vrot.lane.b32.xlu0 %v4332_v60, %s10266_s13  ;;  %9460 = vmatprep.subr.bf16.mxu0 %v13369_v21  ;;  %v4014_v30 = vadd.f32 %v15696_v47, %v3889_v8  ;;  %v4904_v51 = vadd.f32 %v13870_v11, %v4779_v26  ;;  %v14038_v11 = vld [vmem:[#allocation4 + $0x278] sm:$0xff]  ;;  %v4703_v8 = vrot.slane %v13973_v2, 3  ;;  %v4826_v47 = vrot.slane %v13801_v42, 4  ;;  %v10051_v44 = vld [vmem:[%s15163_s5 + $0x68] sm:$0xff]  }
 0x529   : > { %v5432_v27 = vmax.f32 %v5412_v15, 0.0  ;;  %9479 = vmatpush3.bf16.msra.mxu1 %v10046_v62  ;;  %v14015_v1 = vsel %vm2798_vm1, %v15695_v38, %v4493_v9  ;;  %v5031_v40 = vpop.permute.xlu0 %5030  ;;  %v10049_v62 = vld [vmem:[%s15163_s5 + $0x60] sm:$0xff]  }
 0x52a   : > { %5040 = vrot.lane.b32.xlu1 %v14015_v1, %s10264_s29  ;;  %9480 = vmatprep.subr.bf16.mxu1 %v13369_v21  ;;  %v4139_v15 = vadd.f32 %v15697_v35, %v4014_v30  ;;  %v4988_v60 = vadd.f32 %v4939_v63, %v4904_v51  ;;  %v4903_v63 = vadd.f32 %v13915_v17, %v4778_v4  ;;  %v15700_v51 = vld [vmem:[#allocation107_spill] sm:$0xff]  ;;  %v5337_v17 = vrot.slane %v14038_v11, 4 }
 0x52b   : > { %5453 = vst.msk [vmem:[#allocation5 + $0x40] sm:$0xff] %vm5444_vm5, %v5432_v27  ;;  %9461 = vmatpush3.bf16.msra.mxu0 %v10047_v41  ;;  %v14028_v45 = vpop.permute.xlu1 %4856  ;;  %v15698_v41 = vrot.slane %v13801_v42, 2  ;;  %v4241_v27 = vld [vmem:[#allocation4 + $0x308] sm:$0xf]  ;;  %v10052_v4 = vld [vmem:[%s15163_s5 + $0x70] sm:$0xff]  }
 0x52c   : > { %4616 = vrot.lane.b32.xlu0 %v13878_v19, %s10260_s25  ;;  %9462 = vmatprep.subr.bf16.mxu0 %v13369_v21  ;;  %v15699_v19 = vld [vmem:[#allocation106_spill] sm:$0xff]  ;;  %v5080_v38 = vadd.f32 %v5031_v40, %v4988_v60  ;;  %v15701_v40 = vrot.slane %v13801_v42, 3  ;;  %v4250_v60 = vrot.slane %v4241_v27, 4  ;;  %v4827_v27 = vsel %vm3176_vm4, %v4824_v16, %v4826_v47 }
 0x52d   : > { %9481 = vmatpush3.bf16.msra.mxu1 %v10048_v34  ;;  %v14045_v52 = vsel %vm2924_vm2, %v15698_v41, %v4578_v5  ;;  %v4231_v39 = vadd.f32 %v15699_v19, %v4139_v15  ;;  %v5123_v26 = vpop.permute.xlu0 %5122  ;;  %v5284_v34 = vld [vmem:[#allocation4 + $0x258] sm:$0xff]  ;;  %v4987_v19 = vadd.f32 %v13676_v13, %v4903_v63  ;;  %v10053_v63 = vld [vmem:[%s15163_s5 + $0x70] sm:$0xff]  }
 0x52e   : > { %5132 = vrot.lane.b32.xlu1 %v14045_v52, %s10265_s12  ;;  %9482 = vmatprep.subr.bf16.mxu1 %v13369_v21  ;;  %v5172_v15 = vadd.f32 %v5123_v26, %v5080_v38  ;;  %v5335_v41 = vrot.slane %v5284_v34, 4  ;;  %v15702_v34 = vld [vmem:[#allocation98_spill] sm:$0xff] }
 0x52f   : > { %9463 = vmatpush3.bf16.msra.mxu0 %v10049_v62  ;;  %v5029_v30 = vpop.permute.xlu1 %5028  ;;  %v4323_v35 = vadd.f32 %v15700_v51, %v4231_v39  ;;  %v14070_v62 = vsel %vm3050_vm3, %v15701_v40, %v4703_v8  ;;  %v10243_v39 = vld [vmem:[#allocation4 + $0x200] sm:$0xff] }
 0x530   : > { %4741 = vrot.lane.b32.xlu0 %v13912_v7, %s10261_s14  ;;  %9464 = vmatprep.subr.bf16.mxu0 %v13369_v21  ;;  %v14078_v21 = vld [vmem:[#allocation5 + $0x48] sm:$0xff]  ;;  %v2916_v26 = vadd.f32 %v10243_v39, %v13225_v31  ;;  %v5338_v40 = vsel %vm3176_vm4, %v5335_v41, %v5337_v17  ;;  %v5079_v31 = vadd.f32 %v5029_v30, %v4987_v19 }
 0x531   : > { %9483 = vmatpush3.bf16.msra.mxu1 %v10050_v61  ;;  %v5215_v7 = vpop.permute.xlu0 %5214  ;;  %v14081_v61 = vld [vmem:[#allocation4 + $0x330] sm:$0xff]  ;;  %v4407_v51 = vadd.f32 %v15702_v34, %v4323_v35 }
 0x532   : > { %5224 = vrot.lane.b32.xlu1 %v14070_v62, %s10266_s13  ;;  %9484 = vmatprep.subr.bf16.mxu1 %v14078_v21  ;;  %v5264_v38 = vadd.f32 %v5215_v7, %v5172_v15  ;;  %v3042_v24 = vadd.f32 %v13267_v54, %v2916_v26  ;;  %v14103_v7 = vrot.slane %v14081_v61, 2  ;;  %v10054_v35 = vld [vmem:[%s15163_s5 + $0x78] sm:$0xff]   ;;  %v10244_v54 = vld [vmem:[#allocation4 + $0x240] sm:$0xff] }
 0x533   : > { %9465 = vmatpush3.bf16.msra.mxu0 %v10051_v44  ;;  %v5121_v13 = vpop.permute.xlu1 %5120  ;;  %v15703_v44 = vrot.slane %v13511_v18, 4 }
 0x534   : > { %4866 = vrot.lane.b32.xlu0 %v4827_v27, %s10262_s19  ;;  %9466 = vmatprep.subr.bf16.mxu0 %v14078_v21  ;;  %v5387_v16 = vadd.f32 %v5338_v40, %v5264_v38  ;;  %v5171_v30 = vadd.f32 %v5121_v13, %v5079_v31  ;;  %v3168_v19 = vadd.f32 %v13297_v14, %v3042_v24  ;;  %v10055_v38 = vld [vmem:[%s15163_s5 + $0x48] sm:$0xff]   ;;  %v6230_v14 = vrot.slane %v13894_v23, 1 }
 0x535   : > { %9485 = vmatpush3.bf16.msra.mxu1 %v10052_v4  ;;  %v4251_v15 = vsel %vm3176_vm4, %v15703_v44, %v4250_v60  ;;  %v14108_v39 = vpop.permute.xlu0 %4608  ;;  %v2918_v4 = vadd.f32 %v10244_v54, %v13248_v46  ;;  %v4530_v27 = vadd.f32 %v13382_v28, %v4407_v51  ;;  %v5336_v13 = vsel %vm3176_vm4, %v5333_v57, %v5335_v41  ;;  %v10245_v57 = vld [vmem:[#allocation4 + $0x260] sm:$0xff]  ;;  %v4333_v54 = vld [vmem:[#allocation4 + $0x328] sm:$0xff] }
 0x536   : > { %4290 = vrot.lane.b32.xlu1 %v4251_v15, %s10265_s12  ;;  %9486 = vmatprep.subr.bf16.mxu1 %v14078_v21  ;;  %v5414_v60 = vadd.f32 %v13645_v55, %v5387_v16  ;;  %v3294_v34 = vadd.f32 %v13328_v56, %v3168_v19  ;;  %v14132_v28 = vsel %vm2924_vm2, %v4578_v5, %v14103_v7  ;;  %v15704_v5 = vshrl.u32 %v13894_v23, 16  ;;  %v10246_v24 = vld [vmem:[#allocation4 + $0x220] sm:$0xff] }
 0x537   : > { %9467 = vmatpush3.bf16.msra.mxu0 %v10053_v63  ;;  %v5213_v26 = vpop.permute.xlu1 %5212  ;;  %v3044_v63 = vadd.f32 %v13285_v33, %v2918_v4  ;;  %v2919_v41 = vadd.f32 %v10245_v57, %v13290_v49  ;;  %v4655_v51 = vadd.f32 %v13975_v3, %v4530_v27  ;;  %v2917_v16 = vadd.f32 %v10246_v24, %v13276_v59  ;;  %v15705_v4 = vld [vmem:[#allocation100_spill] sm:$0xff] }
 0x538   : > { %4950 = vrot.lane.b32.xlu0 %v13973_v2, %s10263_s20  ;;  %v5263_v46 = vadd.f32 %v5213_v26, %v5171_v30  ;;  %9492 = vmatprep.subr.bf16.mxu0 %v14078_v21  ;;  %v5434_v40 = vmax.f32 %v5414_v60, 0.0  ;;  %v6337_v31 = vrot.slane %v15704_v5, 1  ;;  %v3378_v15 = vadd.f32 %v13353_v10, %v3294_v34  ;;  %v15707_v27 = vld [vmem:[#allocation76_spill] sm:$0xff] }
 0x539   : > { %9487 = vmatpush3.bf16.msra.mxu1 %v10054_v35  ;;  %v14139_v33 = vpop.permute.xlu0 %4733  ;;  %v3170_v44 = vadd.f32 %v13316_v58, %v3044_v63  ;;  %v14150_v49 = vrot.slane %v14081_v61, 3  ;;  %v3045_v59 = vadd.f32 %v13319_v29, %v2919_v41  ;;  %v4780_v58 = vadd.f32 %v14000_v6, %v4655_v51  ;;  %v10059_v29 = vld [vmem:[%s15163_s5 + $0x58] sm:$0xff]   ;;  %v15708_v63 = vld [vmem:[#allocation54_spill] sm:$0xff] }
 0x53a   : > { %v5386_v56 = vadd.f32 %v5336_v13, %v5263_v46  ;;  %9469 = vmatmul.mubr.bf16.vlgmr.msra.gmra.mrb[200].mxu0 %v6230_v14  ;;  %4370 = vrot.lane.b32.xlu1 %v13511_v18, %s10266_s13  ;;  %5455 = vst.msk [vmem:[#allocation5 + $0x50] sm:$0xff] %vm5444_vm5, %v5434_v40  ;;  %v10056_v18 = vld [vmem:[%s15163_s5 + $0x50] sm:$0xff]   ;;  %v3470_v30 = vadd.f32 %v13389_v25, %v3378_v15  ;;  %v10058_v14 = vld [vmem:[%s15163_s5 + $0x58] sm:$0xff]   ;;  %v15709_v40 = vld [vmem:[#allocation122_spill] sm:$0xff]  ;;  %v4828_v41 = vrot.slane %v13973_v2, 4 }
 0x53b   : > { %9493 = vmatpush3.bf16.msra.mxu0 %v10055_v38  ;;  %v14152_v3 = vpop.permute.xlu1 %4944  ;;  %9512 = vmatprep.subr.bf16.mxu1 %v14078_v21  ;;  %v3296_v35 = vadd.f32 %v13340_v32, %v3170_v44  ;;  %v3043_v6 = vadd.f32 %v13305_v53, %v2917_v16  ;;  %v3171_v19 = vadd.f32 %v15705_v4, %v3045_v59  ;;  %v15706_v25 = vld [vmem:[#allocation108_spill] sm:$0xff]  ;;  %v10061_v51 = vld [vmem:[%s15163_s5 + $0x60] sm:$0xff]  }
 0x53c   : > { %4620 = vrot.lane.b32.xlu0 %v14132_v28, %s10260_s25  ;;  %v5413_v10 = vadd.f32 %v13645_v55, %v5386_v56  ;;  %9489 = vmatmul.mubr.bf16.vlgmr.msra.gmra.mrb[144].mxu1 %v6337_v31  ;;  %v4905_v60 = vadd.f32 %v14028_v45, %v4780_v58  ;;  %v3562_v13 = vadd.f32 %v15707_v27, %v3470_v30  ;;  %v4830_v45 = vrot.slane %v14081_v61, 4  ;;  %v15711_v56 = vld [vmem:[#allocation8_spill] sm:$0xff]  ;;  %v15712_v31 = vld [vmem:[#allocation75_spill] sm:$0xff]  ;;  %v14211_v15 = vld [vmem:[#allocation4 + $0x298] sm:$0xff] }
 0x53d   : > { %9494 = vmatprep.subr.bf16.mxu0 %v14078_v21  ;;  %9513 = vmatpush3.bf16.msra.mxu1 %v10057_v0  ;;  %v14172_v38 = vpop.permute.xlu0 %4858  ;;  %v3380_v32 = vadd.f32 %v15706_v25, %v3296_v35  ;;  %v14182_v53 = vsel %vm3050_vm3, %v4703_v8, %v14150_v49  ;;  %v3169_v34 = vadd.f32 %v15708_v63, %v3043_v6  ;;  %v15710_v8 = vld [vmem:[#allocation74_spill] sm:$0xff]  ;;  %v15713_v58 = vld [vmem:[#allocation71_spill] sm:$0xff]  ;;  %v15716_v27 = vld [vmem:[#allocation77_spill] sm:$0xff] }
 0x53e   : > { %v5433_v26 = vmax.f32 %v5413_v10, 0.0  ;;  %4374 = vrot.lane.b32.xlu1 %v4333_v54, %s10266_s13  ;;  %9514 = vmatprep.subr.bf16.mxu1 %v14078_v21  ;;  %v3297_v0 = vadd.f32 %v15709_v40, %v3171_v19  ;;  %v4989_v44 = vadd.f32 %v13954_v22, %v4905_v60  ;;  %v3685_v10 = vadd.f32 %v15713_v58, %v3562_v13  ;;  %v10060_v54 = vld [vmem:[%s15163_s5 + $0x60] sm:$0xff]   ;;  %v10063_v25 = vld [vmem:[%s15163_s5 + $0x68] sm:$0xff]   ;;  %v10067_v58 = vld [vmem:[%s15163_s5 + $0x78] sm:$0xff]  }
 0x53f   : > { %9495 = vmatpush3.bf16.msra.mxu0 %v10056_v18  ;;  %v5033_v46 = vpop.permute.xlu1 %5032  ;;  %9508 = vmatprep.mubr.msk.bf16.mxu0 %vm10258_vm0, %v14078_v21  ;;  %v3472_v57 = vadd.f32 %v15710_v8, %v3380_v32  ;;  %v3295_v5 = vadd.f32 %v15711_v56, %v3169_v34  ;;  %v3586_v18 = vld [vmem:[#allocation4 + $0x2c8] sm:$0x7]  ;;  %v4831_v35 = vsel %vm3176_vm4, %v4828_v41, %v4830_v45  ;;  %v14221_v22 = vrot.slane %v14081_v61, 1 }
 0x540   : > { %5454 = vst.msk [vmem:[#allocation5 + $0x48] sm:$0xff] %vm5444_vm5, %v5433_v26  ;;  %4745 = vrot.lane.b32.xlu0 %v14182_v53, %s10261_s14  ;;  %9496 = vmatprep.subr.bf16.mxu0 %v14078_v21  ;;  %v3381_v24 = vadd.f32 %v15712_v31, %v3297_v0  ;;  %v5081_v19 = vadd.f32 %v5033_v46, %v4989_v44  ;;  %v5339_v26 = vrot.slane %v14211_v15, 4  ;;  %v3647_v32 = vrot.slane %v3586_v18, 3 }
 0x541   : > { %9515 = vmatpush3.bf16.msra.mxu1 %v10059_v29  ;;  %9528 = vmatprep.mubr.msk.bf16.mxu1 %vm10258_vm0, %v14078_v21  ;;  %v14205_v16 = vpop.permute.xlu0 %4942  ;;  %v3564_v59 = vadd.f32 %v13741_v43, %v3472_v57  ;;  %v15714_v29 = vld [vmem:[#allocation123_spill] sm:$0xff]  ;;  %v15715_v43 = vld [vmem:[#allocation21_spill] sm:$0xff]  ;;  %v3810_v60 = vadd.f32 %v13768_v20, %v3685_v10  ;;  %v14245_v40 = vsel %vm2798_vm1, %v4493_v9, %v14221_v22  ;;  %v15717_v57 = vld [vmem:[#allocation22_spill] sm:$0xff] }
 0x542   : > { %4952 = vrot.lane.b32.xlu1 %v14081_v61, %s10263_s20  ;;  %9516 = vmatprep.subr.bf16.mxu1 %v14078_v21  ;;  %v3379_v6 = vadd.f32 %v15714_v29, %v3295_v5  ;;  %v3473_v4 = vadd.f32 %v15715_v43, %v3381_v24  ;;  %v5340_v9 = vsel %vm3176_vm4, %v5337_v17, %v5339_v26  ;;  %v10064_v17 = vld [vmem:[%s15163_s5 + $0x70] sm:$0xff]   ;;  %v15718_v24 = vld [vmem:[#allocation105_spill] sm:$0xff]  ;;  %v10074_v61 = vld [vmem:[%s15163_s5 + $0x68] sm:$0xff]  }
 0x543   : > { %9497 = vmatpush3.bf16.msra.mxu0 %v10058_v14  ;;  %v5125_v30 = vpop.permute.xlu1 %5124  ;;  %v3687_v20 = vadd.f32 %v13609_v36, %v3564_v59  ;;  %v15719_v10 = vld [vmem:[#allocation9_spill] sm:$0xff]  ;;  %v14298_v43 = vld [vmem:[#allocation4 + $0x350] sm:$0xff] }
 0x544   : > { %4870 = vrot.lane.b32.xlu0 %v4831_v35, %s10262_s19  ;;  %9498 = vmatprep.subr.bf16.mxu0 %v14078_v21  ;;  %v3471_v13 = vadd.f32 %v15716_v27, %v3379_v6  ;;  %v3565_v14 = vadd.f32 %v13796_v12, %v3473_v4  ;;  %v5173_v34 = vadd.f32 %v5125_v30, %v5081_v19  ;;  %v10062_v12 = vld [vmem:[%s15163_s5 + $0x68] sm:$0xff]   ;;  %v14296_v6 = vld [vmem:[#allocation4 + $0x370] sm:$0xff] }
 0x545   : > { %9517 = vmatpush3.bf16.msra.mxu1 %v10061_v51  ;;  %v3851_v63 = vpop.permute.xlu0 %3850  ;;  %v3812_v36 = vadd.f32 %v13790_v48, %v3687_v20  ;;  %v3648_v51 = vsel %vm3050_vm3, %v15717_v57, %v3647_v32  ;;  %v10071_v57 = vld [vmem:[%s15163_s5 + $0x58] sm:$0xff]  }
 0x546   : > { %4618 = vrot.lane.b32.xlu1 %v14045_v52, %s10260_s25  ;;  %9518 = vmatprep.subr.bf16.mxu1 %v14078_v21  ;;  %v3894_v46 = vadd.f32 %v3851_v63, %v3810_v60  ;;  %v3563_v8 = vadd.f32 %v13773_v37, %v3471_v13  ;;  %v10065_v37 = vld [vmem:[%s15163_s5 + $0x70] sm:$0xff]   ;;  %v3688_v48 = vadd.f32 %v3648_v51, %v3565_v14  ;;  %v10069_v60 = vld [vmem:[%s15163_s5 + $0x80] sm:$0xff]   ;;  %v5006_v13 = vrot.slane %v14296_v6, 1 }
 0x547   : > { %9499 = vmatpush3.bf16.msra.mxu0 %v10060_v54  ;;  %v5217_v0 = vpop.permute.xlu1 %5216  ;;  %v10068_v63 = vld [vmem:[%s15163_s5 + $0x80] sm:$0xff]   ;;  %v4790_v51 = vld [vmem:[#allocation4 + $0x350] sm:$0xf] }
 0x548   : > { %5042 = vrot.lane.b32.xlu0 %v14245_v40, %s10264_s29  ;;  %v5265_v52 = vadd.f32 %v5217_v0, %v5173_v34  ;;  %9500 = vmatprep.subr.bf16.mxu0 %v14078_v21  ;;  %v3686_v44 = vadd.f32 %v15718_v24, %v3563_v8  ;;  %v5004_v34 = vrot.slane %v14298_v43, 1  ;;  %v10070_v0 = vld [vmem:[%s15163_s5 + $0x88] sm:$0xff]  }
 0x549   : > { %9519 = vmatpush3.bf16.msra.mxu1 %v10063_v25  ;;  %v3855_v56 = vpop.permute.xlu0 %3854  ;;  %v4665_v25 = vld [vmem:[#allocation4 + $0x350] sm:$0x7]  ;;  %v5487_v8 = vld [vmem:[#allocation5 + $0x40] ss:$2 sm:$0x1f] }
 0x54a   : > { %v5388_v5 = vadd.f32 %v5340_v9, %v5265_v52  ;;  %4743 = vrot.lane.b32.xlu1 %v14070_v62, %s10261_s14  ;;  %9520 = vmatprep.subr.bf16.mxu1 %v14078_v21  ;;  %v3896_v31 = vadd.f32 %v3855_v56, %v3812_v36  ;;  %v4829_v62 = vsel %vm3176_vm4, %v4826_v47, %v4828_v41  ;;  %v10066_v47 = vld [vmem:[%s15163_s5 + $0x78] sm:$0xff]   ;;  %v5489_v52 = vld [vmem:[#allocation5 + $0x41] ss:$2 sm:$0x1f]  ;;  %v5098_v9 = vrot.slane %v14296_v6, 2 }
 0x54b   : > { %9501 = vmatpush3.bf16.msra.mxu0 %v10062_v12  ;;  %v3773_v11 = vpop.permute.xlu1 %3772  ;;  %v3811_v35 = vadd.f32 %v15719_v10, %v3686_v44  ;;  %v5007_v56 = vsel %vm2798_vm1, %v5004_v34, %v5006_v13  ;;  %v5494_v24 = vmax.f32 %v5487_v8, %v5489_v52 }
 0x54c   : > { %5134 = vrot.lane.b32.xlu0 %v14132_v28, %s10265_s12  ;;  %v5415_v18 = vadd.f32 %v13645_v55, %v5388_v5  ;;  %v3813_v59 = vadd.f32 %v3773_v11, %v3688_v48  ;;  %9502 = vmatprep.subr.bf16.mxu0 %v14078_v21  ;;  %v4540_v55 = vld [vmem:[#allocation4 + $0x350] sm:$0x3] }
 0x54d   : > { %9521 = vmatpush3.bf16.msra.mxu1 %v10065_v37  ;;  %v4582_v19 = vrot.slane %v4540_v55, 2  ;;  %v10072_v55 = vld [vmem:[%s15163_s5 + $0x60] sm:$0xff]  }
 0x54e   : > { %v5435_v30 = vmax.f32 %v5415_v18, 0.0  ;;  %v3976_v28 = vpop.permute.xlu0 %3975  ;;  %4868 = vrot.lane.b32.xlu1 %v4829_v62, %s10262_s19  ;;  %9522 = vmatprep.subr.bf16.mxu1 %v14078_v21  ;;  %v5096_v18 = vrot.slane %v14298_v43, 2  ;;  %v4832_v62 = vrot.slane %v4790_v51, 4 }
 0x54f   : > { %v4019_v54 = vadd.f32 %v3976_v28, %v3894_v46  ;;  %9503 = vmatpush3.bf16.msra.mxu0 %v10064_v17  ;;  %v3853_v2 = vpop.permute.xlu1 %3852  ;;  %v14287_v42 = vpop.f32.mrb[120].mxu1  ;;  %v4707_v46 = vrot.slane %v4665_v25, 3  ;;  %v4583_v12 = vsel %vm2924_vm2, %v14103_v7, %v4582_v19  ;;  %v6444_v17 = vrot.slane %v13894_v23, 2 }
 0x550   : > { %5456 = vst.msk [vmem:[#allocation5 + $0x58] sm:$0xff] %vm5444_vm5, %v5435_v30  ;;  %5226 = vrot.lane.b32.xlu0 %v14182_v53, %s10266_s13  ;;  %v3895_v41 = vadd.f32 %v3853_v2, %v3811_v35  ;;  %v9330_v29 = vpop.f32.mrb[121].mxu1  ;;  %9504 = vmatprep.subr.bf16.mxu0 %v14078_v21  ;;  %v5190_v35 = vrot.slane %v14296_v6, 3  ;;  %v5099_v23 = vsel %vm2924_vm2, %v5096_v18, %v5098_v9 }
 0x551   : > { %v5627_v4 = vpop.f32.mrb[122].mxu1  ;;  %9523 = vmatpush3.bf16.msra.mxu1 %v10067_v58  ;;  %v4833_v29 = vsel %vm3176_vm4, %v4830_v45, %v4832_v62  ;;  %v10075_v45 = vld [vmem:[%s15163_s5 + $0x68] sm:$0xff]  }
 0x552   : > { %v3980_v32 = vpop.permute.xlu0 %3979  ;;  %4956 = vrot.lane.b32.xlu1 %v14296_v6, %s10263_s20  ;;  %v9331_v53 = vpop.f32.mrb[123].mxu1  ;;  %9524 = vmatprep.subr.bf16.mxu1 %v14078_v21  ;;  %v15726_v6 = vld [vmem:[#allocation103_spill] sm:$0xff] }
 0x553   : > { %v4021_v27 = vadd.f32 %v3980_v32, %v3896_v31  ;;  %9505 = vmatpush3.bf16.msra.mxu0 %v10066_v47  ;;  %v3857_v14 = vpop.permute.xlu1 %3856  ;;  %v5005_v53 = vsel %vm2798_vm1, %v14221_v22, %v5004_v34 }
 0x554   : > { %4954 = vrot.lane.b32.xlu0 %v14298_v43, %s10263_s20  ;;  %v3897_v20 = vadd.f32 %v3857_v14, %v3813_v59  ;;  %9506 = vmatprep.subr.bf16.mxu0 %v14078_v21  ;;  %v4708_v59 = vsel %vm3050_vm3, %v14150_v49, %v4707_v46  ;;  %v5097_v46 = vsel %vm2924_vm2, %v14103_v7, %v5096_v18  ;;  %v5183_v18 = vld [vmem:[#allocation4 + $0x390] sm:$0x7] }
 0x555   : > { %9525 = vmatpush3.bf16.msra.mxu1 %v10069_v60 }
 0x556   : > { %v4101_v36 = vpop.permute.xlu0 %4100  ;;  %4622 = vrot.lane.b32.xlu1 %v4583_v12, %s10260_s25  ;;  %9526 = vmatprep.subr.bf16.mxu1 %v14078_v21  ;;  %v4999_v12 = vld [vmem:[#allocation4 + $0x390] sm:$0x1] }
 0x557   : > { %v4144_v37 = vadd.f32 %v4101_v36, %v4019_v54  ;;  %9507 = vmatpush3.bf16.msra.mxu0 %v10068_v63  ;;  %v3978_v5 = vpop.permute.xlu1 %3977  ;;  %v5491_v48 = vld [vmem:[#allocation5 + $0x50] ss:$2 sm:$0x1f]  ;;  %v5493_v31 = vld [vmem:[#allocation5 + $0x51] ss:$2 sm:$0x1f] }
 0x558   : > { %5046 = vrot.lane.b32.xlu0 %v5007_v56, %s10264_s29  ;;  %v4020_v11 = vadd.f32 %v3978_v5, %v3895_v41  ;;  %9532 = vmatprep.subr.bf16.mxu0 %v14078_v21  ;;  %v5495_v44 = vmax.f32 %v5491_v48, %v5493_v31  ;;  %v10073_v54 = vld [vmem:[%s15163_s5 + $0x60] sm:$0xff]   ;;  %v5188_v41 = vrot.slane %v14298_v43, 3  ;;  %v10077_v43 = vld [vmem:[%s15163_s5 + $0x70] sm:$0xff]   ;;  %v10078_v36 = vld [vmem:[%s15163_s5 + $0x78] sm:$0xff]  }
 0x559   : > { %9527 = vmatpush3.bf16.msra.mxu1 %v10070_v0  ;;  %v5091_v5 = vld [vmem:[#allocation4 + $0x390] sm:$0x3]  ;;  %v10080_v31 = vld [vmem:[%s15163_s5 + $0x80] sm:$0xff]  }
 0x55a   : > { %v4105_v58 = vpop.permute.xlu0 %4104  ;;  %9509 = vmatmul.mubr.bf16.vlgmr.msra.gmra.mrb[204].mxu0 %v6444_v17  ;;  %4747 = vrot.lane.b32.xlu1 %v4708_v59, %s10261_s14  ;;  %v5496_v10 = vmax.f32 %v5494_v24, %v5495_v44  ;;  %v5191_v60 = vsel %vm3050_vm3, %v5188_v41, %v5190_v35  ;;  %v5189_v7 = vsel %vm3050_vm3, %v14150_v49, %v5188_v41  ;;  %v5100_v24 = vrot.slane %v5091_v5, 2  ;;  %v15728_v5 = vld [vmem:[#allocation119_spill] sm:$0xff] }
 0x55b   : > { %v4146_v30 = vadd.f32 %v4105_v58, %v4021_v27  ;;  %9533 = vmatpush3.bf16.msra.mxu0 %v10071_v57  ;;  %v3982_v28 = vpop.permute.xlu1 %3981  ;;  %9552 = vmatprep.subr.bf16.mxu1 %v14078_v21  ;;  %v10079_v57 = vld [vmem:[%s15163_s5 + $0x78] sm:$0xff]   ;;  %v10082_v58 = vld [vmem:[%s15163_s5 + $0x88] sm:$0xff]  }
 0x55c   : > { %5138 = vrot.lane.b32.xlu0 %v5099_v23, %s10265_s12  ;;  %v4022_v2 = vadd.f32 %v3982_v28, %v3897_v20  ;;  %9534 = vmatprep.subr.bf16.mxu0 %v14078_v21  ;;  %v14350_v47 = vpack.c.bf16 %v5496_v10, %v5496_v10  ;;  %v10076_v20 = vld [vmem:[%s15163_s5 + $0x70] sm:$0xff]   ;;  %v10083_v10 = vld [vmem:[%s15163_s5 + $0x88] sm:$0xff]   ;;  %v5101_v41 = vsel %vm2924_vm2, %v5098_v9, %v5100_v24 }
 0x55d   : > { %9548 = vmatprep.mubr.msk.bf16.mxu0 %vm10258_vm0, %v14078_v21  ;;  %v15720_v28 = vld [vmem:[#allocation102_spill] sm:$0xff]  ;;  %v10085_v9 = vld [vmem:[%s15163_s5 + $0x90] sm:$0xff]  }
 0x55e   : > { %v4193_v4 = vpop.permute.xlu0 %4192  ;;  %4872 = vrot.lane.b32.xlu1 %v4833_v29, %s10262_s19  ;;  %9529 = vmatmul.mubr.bf16.vlgmr.msra.gmra.mrb[148].mxu1 %v14350_v47  ;;  %v5192_v29 = vrot.slane %v5183_v18, 3 }
 0x55f   : > { %v4236_v19 = vadd.f32 %v4193_v4, %v4144_v37  ;;  %9535 = vmatpush3.bf16.msra.mxu0 %v10072_v55  ;;  %9553 = vmatpush3.bf16.msra.mxu1 %v10073_v54  ;;  %v4103_v25 = vpop.permute.xlu1 %4102  ;;  %v5008_v37 = vrot.slane %v4999_v12, 1  ;;  %v15721_v55 = vld [vmem:[#allocation72_spill] sm:$0xff] }
 0x560   : > { %5230 = vrot.lane.b32.xlu0 %v5191_v60, %s10266_s13  ;;  %v4145_v32 = vadd.f32 %v4103_v25, %v4020_v11  ;;  %9536 = vmatprep.subr.bf16.mxu0 %v14078_v21  ;;  %v10081_v11 = vld [vmem:[%s15163_s5 + $0x80] sm:$0xff]   ;;  %v3808_v54 = vadd.f32 %v15721_v55, %v15720_v28  ;;  %v15723_v25 = vld [vmem:[#allocation35_spill] sm:$0xff]  ;;  %v10086_v12 = vld [vmem:[%s15163_s5 + $0x98] sm:$0xff]  }
 0x561   : > { %9554 = vmatprep.subr.bf16.mxu1 %v14078_v21  ;;  %9568 = vmatprep.mubr.msk.bf16.mxu1 %vm10258_vm0, %v14078_v21  ;;  %v5009_v49 = vsel %vm2798_vm1, %v5006_v13, %v5008_v37 }
 0x562   : > { %v4197_v27 = vpop.permute.xlu0 %4196  ;;  %5044 = vrot.lane.b32.xlu1 %v5005_v53, %s10264_s29  ;;  %v15724_v53 = vld [vmem:[#allocation113_spill] sm:$0xff] }
 0x563   : > { %v14379_v14 = vadd.f32 %v4197_v27, %v4146_v30  ;;  %9537 = vmatpush3.bf16.msra.mxu0 %v10074_v61  ;;  %9555 = vmatpush3.bf16.msra.mxu1 %v10075_v45  ;;  %v4107_v63 = vpop.permute.xlu1 %4106  ;;  %v4656_v61 = vadd.f32 %v14108_v39, %v15723_v25  ;;  %v5193_v39 = vsel %vm3050_vm3, %v5190_v35, %v5192_v29  ;;  %v15730_v29 = vld [vmem:[#allocation17_spill] sm:$0xff] }
 0x564   : > { %v4147_v34 = vadd.f32 %v4107_v63, %v4022_v2  ;;  %9538 = vmatprep.subr.bf16.mxu0 %v14078_v21  ;;  %9556 = vmatprep.subr.bf16.mxu1 %v14078_v21 }
 0x565   : > { %v4781_v63 = vadd.f32 %v14139_v33, %v4656_v61  ;;  %v10087_v33 = vld [vmem:[%s15163_s5 + $0x68] sm:$0xff]   ;;  %v14518_v61 = vld [vmem:[%s15162_s4] ss:$0 sm:$0xff] }
 0x566   : > { %v4285_v0 = vpop.permute.xlu0 %4284  ;;  %5136 = vrot.lane.b32.xlu1 %v5097_v46, %s10265_s12 }
 0x567   : > { %v14392_v8 = vadd.f32 %v4285_v0, %v4236_v19  ;;  %9539 = vmatpush3.bf16.msra.mxu0 %v10076_v20  ;;  %9557 = vmatpush3.bf16.msra.mxu1 %v10077_v43  ;;  %v4195_v52 = vpop.permute.xlu1 %4194  ;;  %v15722_v19 = vld [vmem:[#allocation73_spill] sm:$0xff]  ;;  %v15725_v43 = vld [vmem:[#allocation115_spill] sm:$0xff]  ;;  %v4906_v46 = vadd.f32 %v14172_v38, %v4781_v63 }
 0x568   : > { %v4237_v51 = vadd.f32 %v4195_v52, %v4145_v32  ;;  %9540 = vmatprep.subr.bf16.mxu0 %v14078_v21  ;;  %9558 = vmatprep.subr.bf16.mxu1 %v14078_v21  ;;  %v3892_v60 = vadd.f32 %v15722_v19, %v3808_v54  ;;  %v10084_v32 = vld [vmem:[%s15163_s5 + $0x90] sm:$0xff]   ;;  %v6658_v52 = vshrl.u32 %v14350_v47, 16  ;;  %v15727_v38 = vld [vmem:[#allocation117_spill] sm:$0xff] }
 0x56a   : > { %v14404_v56 = vpop.permute.xlu0 %4612  ;;  %5228 = vrot.lane.b32.xlu1 %v5189_v7, %s10266_s13  ;;  %v4017_v27 = vadd.f32 %v15724_v53, %v3892_v60 }
 0x56b   : > { %9541 = vmatpush3.bf16.msra.mxu0 %v10078_v36  ;;  %9559 = vmatpush3.bf16.msra.mxu1 %v10079_v57  ;;  %v4199_v48 = vpop.permute.xlu1 %4198  ;;  %v4990_v57 = vadd.f32 %v14205_v16, %v4906_v46  ;;  %v10089_v16 = vld [vmem:[%s15163_s5 + $0x70] sm:$0xff]  }
 0x56c   : > { %v14413_v17 = vadd.f32 %v4199_v48, %v4147_v34  ;;  %9542 = vmatprep.subr.bf16.mxu0 %v14078_v21  ;;  %9560 = vmatprep.subr.bf16.mxu1 %v14078_v21  ;;  %v4142_v34 = vadd.f32 %v15725_v43, %v4017_v27 }
 0x56e   : > { %v14420_v44 = vpop.permute.xlu0 %4737  ;;  %5048 = vrot.lane.b32.xlu1 %v5009_v49, %s10264_s29  ;;  %v4234_v36 = vadd.f32 %v15727_v38, %v4142_v34  ;;  %v10088_v49 = vld [vmem:[%s15163_s5 + $0x70] sm:$0xff]   ;;  %v15735_v38 = vld [vmem:[#allocation118_spill] sm:$0xff]  ;;  %s8426_s29 = sshll.u32 %s15743_s18, 3 }
 0x56f   : > { %v5670_v59 = vpop.f32.mrb[124].mxu1  ;;  %9543 = vmatpush3.bf16.msra.mxu0 %v10080_v31  ;;  %9561 = vmatpush3.bf16.msra.mxu1 %v10081_v11  ;;  %v4287_v62 = vpop.permute.xlu1 %4286  ;;  %s386_s20 = scalar_lea.vmem %s15169_s11, %s8426_s29 }
 0x570   : > { %v14430_v13 = vadd.f32 %v5670_v59, %v14287_v42  ;;  %v14432_v30 = vadd.f32 %v4287_v62, %v4237_v51  ;;  %v9350_v23 = vpop.f32.mrb[125].mxu1  ;;  %9544 = vmatprep.subr.bf16.mxu0 %v14078_v21  ;;  %9562 = vmatprep.subr.bf16.mxu1 %v14078_v21  ;;  %v14475_v51 = vld [vmem:[#allocation4 + $0x2b8] sm:$0xff]  ;;  %v4326_v48 = vadd.f32 %v15728_v5, %v4234_v36  ;;  %v6767_v59 = vrot.slane %v14350_v47, 1  ;;  %v10096_v5 = vld [vmem:[%s15163_s5 + $0x90] sm:$0xff]  }
 0x571   : > { %v5673_v2 = vpop.f32.mrb[126].mxu1  ;;  %v5341_v24 = vrot.slane %v14475_v51, 4  ;;  %v15729_v62 = vld [vmem:[#allocation121_spill] sm:$0xff] }
 0x572   : > { %v14441_v4 = vpop.permute.xlu0 %4862  ;;  %5140 = vrot.lane.b32.xlu1 %v5101_v41, %s10265_s12  ;;  %v9351_v42 = vpop.f32.mrb[127].mxu1  ;;  %v10090_v2 = vld [vmem:[%s15163_s5 + $0x78] sm:$0xff]  }
 0x573   : > { %9545 = vmatpush3.bf16.msra.mxu0 %v10082_v58  ;;  %9563 = vmatpush3.bf16.msra.mxu1 %v10083_v10  ;;  %v4611_v45 = vpop.permute.xlu1 %4610  ;;  %v4410_v58 = vadd.f32 %v15729_v62, %v4326_v48  ;;  %v10091_v41 = vld [vmem:[%s15163_s5 + $0x78] sm:$0xff]   ;;  %v10097_v48 = vld [vmem:[%s15163_s5 + $0x90] sm:$0xff]  }
 0x574   : > { %9546 = vmatprep.subr.bf16.mxu0 %v14078_v21  ;;  %9564 = vmatprep.subr.bf16.mxu1 %v14078_v21  ;;  %v4657_v35 = vadd.f32 %v4611_v45, %v15726_v6  ;;  %v10092_v45 = vld [vmem:[%s15163_s5 + $0x80] sm:$0xff]  }
 0x575   : > { %v4533_v42 = vadd.f32 %v15730_v29, %v4410_v58  ;;  %v14548_v6 = vld [vmem:[#allocation4 + $0x2f8] sm:$0xff] }
 0x576   : > { %v5035_v20 = vpop.permute.xlu0 %5034  ;;  %5232 = vrot.lane.b32.xlu1 %v5193_v39, %s10266_s13  ;;  %v15737_v62 = vld [vmem:[#allocation109_spill] sm:$0xff] }
 0x577   : > { %9547 = vmatpush3.bf16.msra.mxu0 %v10084_v32  ;;  %9565 = vmatpush3.bf16.msra.mxu1 %v10085_v9  ;;  %v4736_v0 = vpop.permute.xlu1 %4735  ;;  %v5082_v31 = vadd.f32 %v5035_v20, %v4990_v57  ;;  %v4658_v25 = vadd.f32 %v14404_v56, %v4533_v42  ;;  %v10093_v32 = vld [vmem:[%s15163_s5 + $0x80] sm:$0xff]   ;;  %v15732_v9 = vld [vmem:[#allocation112_spill] sm:$0xff] }
 0x578   : > { %9566 = vmatprep.subr.bf16.mxu1 %v14078_v21  ;;  %9572 = vmatprep.subr.bf16.mxu0 %v14078_v21  ;;  %v4782_v37 = vadd.f32 %v4736_v0, %v4657_v35  ;;  %v15731_v56 = vld [vmem:[#allocation110_spill] sm:$0xff] }
 0x579   : > { %v3809_v53 = vadd.f32 %v15732_v9, %v15731_v56  ;;  %v4783_v27 = vadd.f32 %v14420_v44, %v4658_v25  ;;  %v15733_v20 = vld [vmem:[#allocation114_spill] sm:$0xff] }
 0x57a   : > { %v5127_v7 = vpop.permute.xlu0 %5126  ;;  %9549 = vmatmul.mubr.bf16.vlgmr.msra.gmra.mrb[208].mxu0 %v6658_v52  ;;  %v10094_v0 = vld [vmem:[%s15163_s5 + $0x88] sm:$0xff]   ;;  %v10101_v9 = vld [vmem:[%s15163_s5 + $0xa0] sm:$0xff]  }
 0x57b   : > { %9567 = vmatpush3.bf16.msra.mxu1 %v10086_v12  ;;  %9573 = vmatpush3.bf16.msra.mxu0 %v10087_v33  ;;  %v4861_v11 = vpop.permute.xlu1 %4860  ;;  %v5174_v10 = vadd.f32 %v5127_v7, %v5082_v31  ;;  %v3893_v43 = vadd.f32 %v15733_v20, %v3809_v53  ;;  %v4908_v34 = vadd.f32 %v14441_v4, %v4783_v27  ;;  %v10095_v44 = vld [vmem:[%s15163_s5 + $0x88] sm:$0xff]   ;;  %v15734_v12 = vld [vmem:[#allocation116_spill] sm:$0xff]  ;;  %v5288_v7 = vld [vmem:[#allocation4 + $0x2d8] sm:$0xff]  ;;  %v5345_v31 = vrot.slane %v14548_v6, 4 }
 0x57c   : > { %v4907_v18 = vadd.f32 %v4861_v11, %v4782_v37  ;;  %9574 = vmatprep.subr.bf16.mxu0 %v14078_v21  ;;  %9592 = vmatprep.subr.bf16.mxu1 %v14078_v21  ;;  %v15736_v11 = vld [vmem:[#allocation120_spill] sm:$0xff] }
 0x57d   : > { %9588 = vmatprep.mubr.msk.bf16.mxu0 %vm10258_vm0, %v14078_v21  ;;  %v4018_v4 = vadd.f32 %v15734_v12, %v3893_v43 }
 0x57e   : > { %v5219_v23 = vpop.permute.xlu0 %5218  ;;  %9569 = vmatmul.mubr.bf16.vlgmr.msra.gmra.mrb[152].mxu1 %v6767_v59  ;;  %v14494_v28 = vadd.f32 %v14152_v3, %v4907_v18  ;;  %v5342_v3 = vsel %vm3176_vm4, %v5339_v26, %v5341_v24  ;;  %v5343_v18 = vrot.slane %v5288_v7, 4 }
 0x57f   : > { %v5266_v55 = vadd.f32 %v5219_v23, %v5174_v10  ;;  %9575 = vmatpush3.bf16.msra.mxu0 %v10088_v49  ;;  %9593 = vmatpush3.bf16.msra.mxu1 %v10089_v16  ;;  %v14496_v54 = vpop.permute.xlu1 %4948  ;;  %v4143_v36 = vadd.f32 %v15735_v38, %v4018_v4 }
 0x580   : > { %9576 = vmatprep.subr.bf16.mxu0 %v14078_v21  ;;  %9594 = vmatprep.subr.bf16.mxu1 %v14078_v21 }
 0x581   : > { %v5389_v19 = vadd.f32 %v5342_v3, %v5266_v55  ;;  %9608 = vmatprep.mubr.msk.bf16.mxu1 %vm10258_vm0, %v14078_v21  ;;  %v4235_v49 = vadd.f32 %v15736_v11, %v4143_v36  ;;  %v10098_v55 = vld [vmem:[%s15163_s5 + $0x98] sm:$0xff]  }
 0x582   : > { %v4947_v60 = vpop.permute.xlu0 %4946 }
 0x583   : > { %v5416_v15 = vadd.f32 %v14518_v61, %v5389_v19  ;;  %9577 = vmatpush3.bf16.msra.mxu0 %v10090_v2  ;;  %9595 = vmatpush3.bf16.msra.mxu1 %v10091_v41  ;;  %v14521_v26 = vpop.permute.xlu1 %4614  ;;  %v4992_v33 = vadd.f32 %v4947_v60, %v4908_v34  ;;  %v4327_v58 = vadd.f32 %v15737_v62, %v4235_v49  ;;  %v10099_v2 = vld [vmem:[%s15163_s5 + $0x98] sm:$0xff]   ;;  %v15738_v19 = vld [vmem:[#allocation111_spill] sm:$0xff] }
 0x584   : > { %9578 = vmatprep.subr.bf16.mxu0 %v14078_v21  ;;  %9596 = vmatprep.subr.bf16.mxu1 %v14078_v21  ;;  %v5346_v41 = vsel %vm3176_vm4, %v5343_v18, %v5345_v31  ;;  %v10109_v62 = vld [vmem:[%s15163_s5 + $0x90] sm:$0xff]  }
 0x585   : > { %v5436_v63 = vmax.f32 %v5416_v15, 0.0  ;;  %v4411_v60 = vadd.f32 %v15738_v19, %v4327_v58  ;;  %v14663_v19 = vld [vmem:[#allocation5 + $0x78] sm:$0xff] }
 0x586   : > { %v5039_v39 = vpop.permute.xlu0 %5038 }
 0x587   : > { %5457 = vst.msk [vmem:[#allocation5 + $0x60] sm:$0xff] %vm5444_vm5, %v5436_v63  ;;  %9579 = vmatpush3.bf16.msra.mxu0 %v10092_v45  ;;  %9597 = vmatpush3.bf16.msra.mxu1 %v10093_v32  ;;  %v14537_v46 = vpop.permute.xlu1 %4739  ;;  %v5084_v57 = vadd.f32 %v5039_v39, %v4992_v33  ;;  %v4534_v27 = vadd.f32 %v13938_v50, %v4411_v60  ;;  %v10103_v50 = vld [vmem:[%s15163_s5 + $0x78] sm:$0xff]  }
 0x588   : > { %9580 = vmatprep.subr.bf16.mxu0 %v14078_v21  ;;  %9598 = vmatprep.subr.bf16.mxu1 %v14078_v21  ;;  %v5344_v33 = vsel %vm3176_vm4, %v5341_v24, %v5343_v18 }
 0x589   : > { %v4659_v43 = vadd.f32 %v14521_v26, %v4534_v27  ;;  %v10114_v27 = vld [vmem:[%s15163_s5 + $0xa8] sm:$0xff]  }
 0x58a   : > { %v5131_v35 = vpop.permute.xlu0 %5130 }
 0x58b   : > { %9581 = vmatpush3.bf16.msra.mxu0 %v10094_v0  ;;  %9599 = vmatpush3.bf16.msra.mxu1 %v10095_v44  ;;  %v4865_v37 = vpop.permute.xlu1 %4864  ;;  %v5176_v16 = vadd.f32 %v5131_v35, %v5084_v57  ;;  %v10102_v0 = vld [vmem:[%s15163_s5 + $0xa8] sm:$0xff]   ;;  %v4784_v26 = vadd.f32 %v14537_v46, %v4659_v43  ;;  %v10105_v46 = vld [vmem:[%s15163_s5 + $0x80] sm:$0xff]   ;;  %v6981_v57 = vrot.slane %v14350_v47, 2 }
 0x58c   : > { %9582 = vmatprep.subr.bf16.mxu0 %v14078_v21  ;;  %9600 = vmatprep.subr.bf16.mxu1 %v14078_v21  ;;  %v10106_v47 = vld [vmem:[%s15163_s5 + $0x88] sm:$0xff]  }
 0x58d   : > { %v4909_v35 = vadd.f32 %v4865_v37, %v4784_v26 }
 0x58e   : > { %v5223_v59 = vpop.permute.xlu0 %5222 }
 0x58f   : > { %v5268_v10 = vadd.f32 %v5223_v59, %v5176_v16  ;;  %v5777_v23 = vpop.f32.mrb[128].mxu1  ;;  %9583 = vmatpush3.bf16.msra.mxu0 %v10096_v5  ;;  %9601 = vmatpush3.bf16.msra.mxu1 %v10097_v48  ;;  %v4993_v37 = vadd.f32 %v14496_v54, %v4909_v35  ;;  %v10107_v5 = vld [vmem:[%s15163_s5 + $0x88] sm:$0xff]   ;;  %v14631_v48 = vld [vmem:[#allocation4 + $0x318] sm:$0xff]  ;;  %v10108_v59 = vld [vmem:[%s15163_s5 + $0x90] sm:$0xff]  }
 0x590   : > { %v14572_v3 = vadd.f32 %v5777_v23, %v14430_v13  ;;  %v5037_v29 = vpop.permute.xlu1 %5036  ;;  %v9370_v42 = vpop.f32.mrb[129].mxu1  ;;  %9584 = vmatprep.subr.bf16.mxu0 %v14078_v21  ;;  %9602 = vmatprep.subr.bf16.mxu1 %v14078_v21  ;;  %v10100_v13 = vld [vmem:[%s15163_s5 + $0xa0] sm:$0xff]   ;;  %v5347_v16 = vrot.slane %v14631_v48, 4 }
 0x591   : > { %v5391_v25 = vadd.f32 %v5346_v41, %v5268_v10  ;;  %v5780_v15 = vpop.f32.mrb[130].mxu1  ;;  %v5083_v39 = vadd.f32 %v5037_v29, %v14494_v28  ;;  %v6874_v28 = vrot.slane %v6658_v52, 1  ;;  %v10104_v52 = vld [vmem:[%s15163_s5 + $0x80] sm:$0xff]   ;;  %v10110_v41 = vld [vmem:[%s15163_s5 + $0x98] sm:$0xff]  }
 0x592   : > { %v14577_v45 = vpop.permute.xlu0 %4288  ;;  %v9371_v32 = vpop.f32.mrb[131].mxu1  ;;  %v10111_v29 = vld [vmem:[%s15163_s5 + $0x98] sm:$0xff]   ;;  %v10113_v15 = vld [vmem:[%s15163_s5 + $0xa0] sm:$0xff]  }
 0x593   : > { %v5418_v56 = vadd.f32 %v14518_v61, %v5391_v25  ;;  %9585 = vmatpush3.bf16.msra.mxu0 %v10098_v55  ;;  %9603 = vmatpush3.bf16.msra.mxu1 %v10099_v2  ;;  %v5348_v55 = vsel %vm3176_vm4, %v5345_v31, %v5347_v16  ;;  %v10112_v25 = vld [vmem:[%s15163_s5 + $0xa0] sm:$0xff]  }
 0x594   : > { %v5129_v53 = vpop.permute.xlu1 %5128  ;;  %9586 = vmatprep.subr.bf16.mxu0 %v14078_v21  ;;  %9604 = vmatprep.subr.bf16.mxu1 %v14078_v21 }
 0x595   : > { %v5438_v63 = vmax.f32 %v5418_v56, 0.0  ;;  %v5175_v34 = vadd.f32 %v5129_v53, %v5083_v39 }
 0x596   : > { %v14590_v20 = vpop.permute.xlu0 %4368 }
 0x597   : > { %5459 = vst.msk [vmem:[#allocation5 + $0x70] sm:$0xff] %vm5444_vm5, %v5438_v63  ;;  %9587 = vmatpush3.bf16.msra.mxu0 %v10100_v13  ;;  %9605 = vmatpush3.bf16.msra.mxu1 %v10101_v9  ;;  %v10115_v63 = vld [vmem:[%s15163_s5 + $0xa8] sm:$0xff]  }
 0x598   : > { %v5221_v44 = vpop.permute.xlu1 %5220  ;;  %9606 = vmatprep.subr.bf16.mxu1 %v14078_v21  ;;  %9612 = vmatprep.subr.bf16.mxu0 %v14078_v21 }
 0x599   : > { %v5267_v12 = vadd.f32 %v5221_v44, %v5175_v34 }
 0x59a   : > { %v14605_v4 = vpop.permute.xlu0 %4372  ;;  %9589 = vmatmul.mubr.bf16.vlgmr.msra.gmra.mrb[212].mxu0 %v6874_v28 }
 0x59b   : > { %v5390_v38 = vadd.f32 %v5344_v33, %v5267_v12  ;;  %9607 = vmatpush3.bf16.msra.mxu1 %v10102_v0  ;;  %9613 = vmatpush3.bf16.msra.mxu0 %v10103_v50  ;;  %v10116_v33 = vld [vmem:[%s15163_s5 + $0xb0] sm:$0xff]  }
 0x59c   : > { %v5041_v36 = vpop.permute.xlu1 %5040  ;;  %9614 = vmatprep.subr.bf16.mxu0 %v14078_v21  ;;  %9632 = vmatprep.subr.bf16.mxu1 %v14078_v21 }
 0x59d   : > { %v5417_v51 = vadd.f32 %v14518_v61, %v5390_v38  ;;  %9628 = vmatprep.mubr.msk.bf16.mxu0 %vm10258_vm0, %v14078_v21  ;;  %v5085_v54 = vadd.f32 %v5041_v36, %v4993_v37 }
 0x59e   : > { %v14622_v24 = vpop.permute.xlu0 %4616  ;;  %9609 = vmatmul.mubr.bf16.vlgmr.msra.gmra.mrb[156].mxu1 %v6981_v57 }
 0x59f   : > { %v5437_v7 = vmax.f32 %v5417_v51, 0.0  ;;  %9615 = vmatpush3.bf16.msra.mxu0 %v10104_v52  ;;  %9633 = vmatpush3.bf16.msra.mxu1 %v10105_v46  ;;  %v15739_v52 = vld [vmem:[#allocation13_spill] sm:$0xff] }
 0x5a0   : > { %v5133_v11 = vpop.permute.xlu1 %5132  ;;  %9616 = vmatprep.subr.bf16.mxu0 %v14078_v21  ;;  %9634 = vmatprep.subr.bf16.mxu1 %v14078_v21 }
 0x5a1   : > { %5458 = vst.msk [vmem:[#allocation5 + $0x68] sm:$0xff] %vm5444_vm5, %v5437_v7  ;;  %9648 = vmatprep.mubr.msk.bf16.mxu1 %vm10258_vm0, %v14078_v21  ;;  %v5177_v18 = vadd.f32 %v5133_v11, %v5085_v54  ;;  %v10119_v11 = vld [vmem:[%s15163_s5 + $0x88] sm:$0xff]  }
 0x5a2   : > { %v14638_v49 = vpop.permute.xlu0 %4741 }
 0x5a3   : > { %9617 = vmatpush3.bf16.msra.mxu0 %v10106_v47  ;;  %9635 = vmatpush3.bf16.msra.mxu1 %v10107_v5  ;;  %v10118_v47 = vld [vmem:[%s15163_s5 + $0xb8] sm:$0xff]  }
 0x5a4   : > { %v5225_v58 = vpop.permute.xlu1 %5224  ;;  %9618 = vmatprep.subr.bf16.mxu0 %v14078_v21  ;;  %9636 = vmatprep.subr.bf16.mxu1 %v14078_v21 }
 0x5a5   : > { %v5269_v10 = vadd.f32 %v5225_v58, %v5177_v18  ;;  %v10121_v58 = vld [vmem:[%s15163_s5 + $0x90] sm:$0xff]  }
 0x5a6   : > { %v14649_v23 = vpop.permute.xlu0 %4866 }
 0x5a7   : > { %v5392_v2 = vadd.f32 %v5348_v55, %v5269_v10  ;;  %9619 = vmatpush3.bf16.msra.mxu0 %v10108_v59  ;;  %9637 = vmatpush3.bf16.msra.mxu1 %v10109_v62  ;;  %v14742_v55 = vld [vmem:[#allocation4 + $0x338] sm:$0xff] }
 0x5a8   : > { %v4291_v42 = vpop.permute.xlu1 %4290  ;;  %9620 = vmatprep.subr.bf16.mxu0 %v14078_v21  ;;  %9638 = vmatprep.subr.bf16.mxu1 %v14663_v19  ;;  %v4436_v21 = vld [vmem:[#allocation4 + $0x350] sm:$0x1]  ;;  %v5498_v44 = vld [vmem:[#allocation5 + $0x60] ss:$2 sm:$0x1f] }
 0x5a9   : > { %v5419_v6 = vadd.f32 %v14518_v61, %v5392_v2  ;;  %v4497_v13 = vrot.slane %v4436_v21, 1  ;;  %v4331_v9 = vadd.f32 %v4291_v42, %v14413_v17  ;;  %v4412_v17 = vadd.f32 %v14590_v20, %v14392_v8  ;;  %v5500_v12 = vld [vmem:[#allocation5 + $0x61] ss:$2 sm:$0x1f]  ;;  %v10117_v8 = vld [vmem:[%s15163_s5 + $0xb0] sm:$0xff]   ;;  %v10123_v42 = vld [vmem:[%s15163_s5 + $0x98] sm:$0xff]  }
 0x5aa   : > { %v14667_v31 = vpop.permute.xlu0 %4950  ;;  %v5505_v36 = vmax.f32 %v5498_v44, %v5500_v12  ;;  %v10125_v21 = vld [vmem:[%s15163_s5 + $0xa0] sm:$0xff]  }
 0x5ab   : > { %v5439_v60 = vmax.f32 %v5419_v6, 0.0  ;;  %9621 = vmatpush3.bf16.msra.mxu0 %v10110_v41  ;;  %9639 = vmatpush3.bf16.msra.mxu1 %v10111_v29  ;;  %v4535_v46 = vadd.f32 %v15739_v52, %v4412_v17  ;;  %v4330_v41 = vadd.f32 %v14577_v45, %v14379_v14  ;;  %v5349_v6 = vrot.slane %v14742_v55, 4  ;;  %v10122_v14 = vld [vmem:[%s15163_s5 + $0x98] sm:$0xff]   ;;  %v10138_v55 = vld [vmem:[%s15163_s5 + $0xa8] sm:$0xff]  }
 0x5ac   : > { %v14675_v32 = vpop.permute.xlu1 %4370  ;;  %9622 = vmatprep.subr.bf16.mxu0 %v14663_v19  ;;  %9640 = vmatprep.subr.bf16.mxu1 %v14663_v19 }
 0x5ad   : > { %5460 = vst.msk [vmem:[#allocation5 + $0x78] sm:$0xff] %vm5444_vm5, %v5439_v60  ;;  %v4660_v7 = vadd.f32 %v14622_v24, %v4535_v46  ;;  %v4414_v45 = vadd.f32 %v14605_v4, %v4330_v41  ;;  %v10124_v4 = vld [vmem:[%s15163_s5 + $0xa0] sm:$0xff]   ;;  %v4413_v17 = vadd.f32 %v14675_v32, %v14432_v30  ;;  %v10128_v30 = vld [vmem:[%s15163_s5 + $0xb0] sm:$0xff]   ;;  %v10131_v46 = vld [vmem:[%s15163_s5 + $0xb8] sm:$0xff]  }
 0x5ae   : > { %v14680_v56 = vpop.permute.xlu0 %4620 }
 0x5af   : > { %v5884_v53 = vpop.f32.mrb[132].mxu1  ;;  %9623 = vmatpush3.bf16.msra.mxu0 %v10112_v25  ;;  %9641 = vmatpush3.bf16.msra.mxu1 %v10113_v15  ;;  %v4785_v54 = vadd.f32 %v14638_v49, %v4660_v7  ;;  %v10120_v49 = vld [vmem:[%s15163_s5 + $0x90] sm:$0xff]   ;;  %v4536_v32 = vadd.f32 %v14015_v1, %v4413_v17  ;;  %v10130_v7 = vld [vmem:[%s15163_s5 + $0xb8] sm:$0xff]  }
 0x5b0   : > { %v14690_v39 = vadd.f32 %v5884_v53, %v14572_v3  ;;  %v4375_v43 = vpop.permute.xlu1 %4374  ;;  %v9390_v34 = vpop.f32.mrb[133].mxu1  ;;  %9624 = vmatprep.subr.bf16.mxu0 %v14663_v19  ;;  %9642 = vmatprep.subr.bf16.mxu1 %v14663_v19  ;;  %v4498_v3 = vsel %vm2798_vm1, %v14221_v22, %v4497_v13  ;;  %v5350_v13 = vsel %vm3176_vm4, %v5347_v16, %v5349_v6  ;;  %v10127_v16 = vld [vmem:[%s15163_s5 + $0xa8] sm:$0xff]   ;;  %v10141_v17 = vld [vmem:[%s15163_s5 + $0xb0] sm:$0xff]  }
 0x5b1   : > { %v4415_v0 = vadd.f32 %v4375_v43, %v4331_v9  ;;  %v5887_v50 = vpop.f32.mrb[134].mxu1  ;;  %v4910_v59 = vadd.f32 %v14649_v23, %v4785_v54  ;;  %v4537_v53 = vadd.f32 %v14245_v40, %v4414_v45  ;;  %v10126_v40 = vld [vmem:[%s15163_s5 + $0xa8] sm:$0xff]  }
 0x5b2   : > { %v14696_v28 = vpop.permute.xlu0 %4745  ;;  %v9391_v26 = vpop.f32.mrb[135].mxu1 }
 0x5b3   : > { %9625 = vmatpush3.bf16.msra.mxu0 %v10114_v27  ;;  %9643 = vmatpush3.bf16.msra.mxu1 %v10115_v63  ;;  %v14706_v20 = vadd.f32 %v4498_v3, %v4415_v0  ;;  %v4994_v23 = vadd.f32 %v14667_v31, %v4910_v59  ;;  %v4662_v43 = vadd.f32 %v14680_v56, %v4537_v53  ;;  %v10129_v26 = vld [vmem:[%s15163_s5 + $0xb0] sm:$0xff]   ;;  %v14806_v3 = vld [vmem:[#allocation4 + $0x378] sm:$0xff] }
 0x5b4   : > { %v14708_v35 = vpop.permute.xlu1 %4952  ;;  %9626 = vmatprep.subr.bf16.mxu0 %v14663_v19  ;;  %9644 = vmatprep.subr.bf16.mxu1 %v14663_v19  ;;  %v5502_v38 = vld [vmem:[#allocation5 + $0x70] ss:$2 sm:$0x1f]  ;;  %v5504_v22 = vld [vmem:[#allocation5 + $0x71] ss:$2 sm:$0x1f] }
 0x5b5   : > { %v5506_v57 = vmax.f32 %v5502_v38, %v5504_v22  ;;  %v4787_v56 = vadd.f32 %v14696_v28, %v4662_v43  ;;  %v5292_v22 = vld [vmem:[#allocation4 + $0x358] sm:$0xff] }
 0x5b6   : > { %v14713_v51 = vpop.permute.xlu0 %4870 }
 0x5b7   : > { %9627 = vmatpush3.bf16.msra.mxu0 %v10116_v33  ;;  %9645 = vmatpush3.bf16.msra.mxu1 %v10117_v8  ;;  %v5507_v37 = vmax.f32 %v5505_v36, %v5506_v57  ;;  %v4912_v44 = vadd.f32 %v14713_v51, %v4787_v56  ;;  %v5353_v36 = vrot.slane %v14806_v3, 4  ;;  %v5294_v56 = vld [vmem:[#allocation4 + $0x398] sm:$0xf] }
 0x5b8   : > { %v14719_v5 = vpop.permute.xlu1 %4618  ;;  %9646 = vmatprep.subr.bf16.mxu1 %v14663_v19  ;;  %9652 = vmatprep.subr.bf16.mxu0 %v14663_v19 }
 0x5b9   : > { %v14727_v24 = vpack.c.bf16 %v5507_v37, %v5507_v37  ;;  %v4661_v8 = vadd.f32 %v14719_v5, %v4536_v32  ;;  %v10142_v32 = vld [vmem:[%s15163_s5 + $0xb8] sm:$0xff]  }
 0x5ba   : > { %v5043_v18 = vpop.permute.xlu0 %5042 }
 0x5bb   : > { %9629 = vmatmul.mubr.bf16.vlgmr.msra.gmra.mrb[216].mxu0 %v14727_v24  ;;  %9647 = vmatpush3.bf16.msra.mxu1 %v10118_v47  ;;  %v7195_v62 = vshrl.u32 %v14727_v24, 16  ;;  %v5086_v29 = vadd.f32 %v5043_v18, %v4994_v23  ;;  %v10132_v23 = vld [vmem:[%s15163_s5 + $0xc0] sm:$0xff]  }
 0x5bc   : > { %9653 = vmatpush3.bf16.msra.mxu0 %v10119_v11  ;;  %v14735_v10 = vpop.permute.xlu1 %4743  ;;  %9672 = vmatprep.subr.bf16.mxu1 %v14663_v19  ;;  %v5351_v11 = vrot.slane %v5292_v22, 4  ;;  %v10144_v22 = vld [vmem:[%s15163_s5 + $0xc0] sm:$0xff]  }
 0x5bd   : > { %9654 = vmatprep.subr.bf16.mxu0 %v14663_v19  ;;  %9668 = vmatprep.mubr.msk.bf16.mxu0 %vm10258_vm0, %v14663_v19  ;;  %v4786_v37 = vadd.f32 %v14735_v10, %v4661_v8 }
 0x5be   : > { %v5135_v2 = vpop.permute.xlu0 %5134  ;;  %9649 = vmatmul.mubr.bf16.vlgmr.msra.gmra.mrb[160].mxu1 %v7195_v62 }
 0x5bf   : > { %9673 = vmatpush3.bf16.msra.mxu1 %v10121_v58  ;;  %9688 = vmatprep.mubr.msk.bf16.mxu1 %vm10258_vm0, %v14663_v19  ;;  %v5178_v60 = vadd.f32 %v5135_v2, %v5086_v29  ;;  %v10133_v58 = vld [vmem:[%s15163_s5 + $0xc0] sm:$0xff]  }
 0x5c0   : > { %9655 = vmatpush3.bf16.msra.mxu0 %v10120_v49  ;;  %v14757_v31 = vpop.permute.xlu1 %4868  ;;  %9674 = vmatprep.subr.bf16.mxu1 %v14663_v19  ;;  %v5354_v49 = vsel %vm3176_vm4, %v5351_v11, %v5353_v36 }
 0x5c1   : > { %9656 = vmatprep.subr.bf16.mxu0 %v14663_v19 }
 0x5c2   : > { %v5227_v25 = vpop.permute.xlu0 %5226 }
 0x5c3   : > { %v5270_v15 = vadd.f32 %v5227_v25, %v5178_v60  ;;  %9675 = vmatpush3.bf16.msra.mxu1 %v10123_v42  ;;  %v10134_v42 = vld [vmem:[%s15163_s5 + $0xc8] sm:$0xff]   ;;  %v7304_v25 = vrot.slane %v14727_v24, 1 }
 0x5c4   : > { %9657 = vmatpush3.bf16.msra.mxu0 %v10122_v14  ;;  %v14773_v9 = vpop.permute.xlu1 %4956  ;;  %9676 = vmatprep.subr.bf16.mxu1 %v14663_v19  ;;  %v10135_v14 = vld [vmem:[%s15163_s5 + $0x98] sm:$0xff]  }
 0x5c5   : > { %v5393_v27 = vadd.f32 %v5350_v13, %v5270_v15  ;;  %9658 = vmatprep.subr.bf16.mxu0 %v14663_v19 }
 0x5c6   : > { %v4955_v63 = vpop.permute.xlu0 %4954 }
 0x5c7   : > { %v5420_v48 = vadd.f32 %v14518_v61, %v5393_v27  ;;  %9677 = vmatpush3.bf16.msra.mxu1 %v10125_v21  ;;  %v4996_v28 = vadd.f32 %v4955_v63, %v4912_v44  ;;  %v10137_v21 = vld [vmem:[%s15163_s5 + $0xa0] sm:$0xff]   ;;  %v5352_v63 = vsel %vm3176_vm4, %v5349_v6, %v5351_v11 }
 0x5c8   : > { %9659 = vmatpush3.bf16.msra.mxu0 %v10124_v4  ;;  %v14786_v34 = vpop.permute.xlu1 %4622  ;;  %9678 = vmatprep.subr.bf16.mxu1 %v14663_v19  ;;  %v7411_v4 = vrot.slane %v7195_v62, 1 }
 0x5c9   : > { %v5440_v0 = vmax.f32 %v5420_v48, 0.0  ;;  %9660 = vmatprep.subr.bf16.mxu0 %v14663_v19  ;;  %v10139_v48 = vld [vmem:[%s15163_s5 + $0xa8] sm:$0xff]  }
 0x5ca   : > { %v5047_v50 = vpop.permute.xlu0 %5046 }
 0x5cb   : > { %5461 = vst.msk [vmem:[#allocation5 + $0x80] sm:$0xff] %vm5444_vm5, %v5440_v0  ;;  %9679 = vmatpush3.bf16.msra.mxu1 %v10127_v16  ;;  %v5088_v38 = vadd.f32 %v5047_v50, %v4996_v28  ;;  %v10140_v50 = vld [vmem:[%s15163_s5 + $0xb0] sm:$0xff]  }
 0x5cc   : > { %9661 = vmatpush3.bf16.msra.mxu0 %v10126_v40  ;;  %v4748_v12 = vpop.permute.xlu1 %4747  ;;  %9680 = vmatprep.subr.bf16.mxu1 %v14663_v19 }
 0x5cd   : > { %9662 = vmatprep.subr.bf16.mxu0 %v14663_v19 }
 0x5ce   : > { %v5139_v33 = vpop.permute.xlu0 %5138 }
 0x5cf   : > { %v5991_v52 = vpop.f32.mrb[136].mxu1  ;;  %9681 = vmatpush3.bf16.msra.mxu1 %v10129_v26  ;;  %v5180_v47 = vadd.f32 %v5139_v33, %v5088_v38  ;;  %v10145_v38 = vld [vmem:[%s15163_s5 + $0xc0] sm:$0xff]  }
 0x5d0   : > { %v14815_v1 = vadd.f32 %v5991_v52, %v14690_v39  ;;  %9663 = vmatpush3.bf16.msra.mxu0 %v10128_v30  ;;  %v4873_v57 = vpop.permute.xlu1 %4872  ;;  %v9410_v51 = vpop.f32.mrb[137].mxu1  ;;  %9682 = vmatprep.subr.bf16.mxu1 %v14663_v19  ;;  %v4911_v39 = vadd.f32 %v14757_v31, %v4786_v37  ;;  %v10147_v37 = vld [vmem:[%s15163_s5 + $0xc8] sm:$0xff]  }
 0x5d1   : > { %v5994_v5 = vpop.f32.mrb[138].mxu1  ;;  %9664 = vmatprep.subr.bf16.mxu0 %v14663_v19 }
 0x5d2   : > { %v5231_v54 = vpop.permute.xlu0 %5230  ;;  %v9411_v18 = vpop.f32.mrb[139].mxu1  ;;  %v4995_v29 = vadd.f32 %v14708_v35, %v4911_v39  ;;  %v4663_v35 = vadd.f32 %v14786_v34, %v14706_v20  ;;  %v10136_v20 = vld [vmem:[%s15163_s5 + $0xa0] sm:$0xff]   ;;  %v10148_v39 = vld [vmem:[%s15163_s5 + $0xd0] sm:$0xff]  }
 0x5d3   : > { %v5272_v59 = vadd.f32 %v5231_v54, %v5180_v47  ;;  %9683 = vmatpush3.bf16.msra.mxu1 %v10131_v46  ;;  %v10149_v18 = vld [vmem:[%s15163_s5 + $0xd0] sm:$0xff]  }
 0x5d4   : > { %9665 = vmatpush3.bf16.msra.mxu0 %v10130_v7  ;;  %v5045_v10 = vpop.permute.xlu1 %5044  ;;  %9684 = vmatprep.subr.bf16.mxu1 %v14663_v19  ;;  %v4788_v53 = vadd.f32 %v4748_v12, %v4663_v35  ;;  %v10143_v12 = vld [vmem:[%s15163_s5 + $0xb8] sm:$0xff]   ;;  %v10156_v35 = vld [vmem:[%s15163_s5 + $0xc0] sm:$0xff]  }
 0x5d5   : > { %v5395_v2 = vadd.f32 %v5354_v49, %v5272_v59  ;;  %9666 = vmatprep.subr.bf16.mxu0 %v14663_v19  ;;  %v5087_v60 = vadd.f32 %v5045_v10, %v4995_v29  ;;  %v10150_v49 = vld [vmem:[%s15163_s5 + $0xd8] sm:$0xff]   ;;  %v10151_v10 = vld [vmem:[%s15163_s5 + $0xa8] sm:$0xff]  }
 0x5d6   : > { %v4913_v43 = vadd.f32 %v4873_v57, %v4788_v53 }
 0x5d7   : > { %v5422_v41 = vadd.f32 %v14518_v61, %v5395_v2  ;;  %9685 = vmatpush3.bf16.msra.mxu1 %v10133_v58 }
 0x5d8   : > { %9667 = vmatpush3.bf16.msra.mxu0 %v10132_v23  ;;  %v5137_v31 = vpop.permute.xlu1 %5136  ;;  %9686 = vmatprep.subr.bf16.mxu1 %v14663_v19  ;;  %v4997_v40 = vadd.f32 %v14773_v9, %v4913_v43  ;;  %v5355_v9 = vrot.slane %v5294_v56, 4  ;;  %v10164_v56 = vld [vmem:[%s15163_s5 + $0xe0] sm:$0xff]  }
 0x5d9   : > { %v5442_v45 = vmax.f32 %v5422_v41, 0.0  ;;  %9692 = vmatprep.subr.bf16.mxu0 %v14663_v19  ;;  %v5179_v15 = vadd.f32 %v5137_v31, %v5087_v60  ;;  %v7518_v41 = vrot.slane %v14727_v24, 2  ;;  %v10154_v60 = vld [vmem:[%s15163_s5 + $0xb8] sm:$0xff]  }
 0x5da   : > { %v5356_v33 = vsel %vm3176_vm4, %v5353_v36, %v5355_v9 }
 0x5db   : > { %5463 = vst.msk [vmem:[#allocation5 + $0x90] sm:$0xff] %vm5444_vm5, %v5442_v45  ;;  %9669 = vmatmul.mubr.bf16.vlgmr.msra.gmra.mrb[220].mxu0 %v7304_v25  ;;  %9687 = vmatpush3.bf16.msra.mxu1 %v10134_v42  ;;  %v10153_v45 = vld [vmem:[%s15163_s5 + $0xb0] sm:$0xff]   ;;  %v10155_v25 = vld [vmem:[%s15163_s5 + $0xb8] sm:$0xff]  }
 0x5dc   : > { %9693 = vmatpush3.bf16.msra.mxu0 %v10135_v14  ;;  %v5229_v13 = vpop.permute.xlu1 %5228  ;;  %9712 = vmatprep.subr.bf16.mxu1 %v14663_v19  ;;  %v10152_v14 = vld [vmem:[%s15163_s5 + $0xb0] sm:$0xff]  }
 0x5dd   : > { %v5271_v27 = vadd.f32 %v5229_v13, %v5179_v15  ;;  %9694 = vmatprep.subr.bf16.mxu0 %v14663_v19  ;;  %9708 = vmatprep.mubr.msk.bf16.mxu0 %vm10258_vm0, %v14663_v19  ;;  %v10157_v15 = vld [vmem:[%s15163_s5 + $0xc0] sm:$0xff]   ;;  %v10159_v13 = vld [vmem:[%s15163_s5 + $0xc8] sm:$0xff]  }
 0x5de   : > { %9689 = vmatmul.mubr.bf16.vlgmr.msra.gmra.mrb[164].mxu1 %v7411_v4  ;;  %v10160_v4 = vld [vmem:[%s15163_s5 + $0xd0] sm:$0xff]  }
 0x5df   : > { %v5394_v62 = vadd.f32 %v5352_v63, %v5271_v27  ;;  %9713 = vmatpush3.bf16.msra.mxu1 %v10137_v21  ;;  %9728 = vmatprep.mubr.msk.bf16.mxu1 %vm10258_vm0, %v14663_v19  ;;  %v10158_v21 = vld [vmem:[%s15163_s5 + $0xc8] sm:$0xff]  }
 0x5e0   : > { %9695 = vmatpush3.bf16.msra.mxu0 %v10136_v20  ;;  %v5049_v16 = vpop.permute.xlu1 %5048  ;;  %9714 = vmatprep.subr.bf16.mxu1 %v14663_v19  ;;  %v10161_v20 = vld [vmem:[%s15163_s5 + $0xd0] sm:$0xff]  }
 0x5e1   : > { %v5421_v6 = vadd.f32 %v14518_v61, %v5394_v62  ;;  %9696 = vmatprep.subr.bf16.mxu0 %v14663_v19  ;;  %v5089_v44 = vadd.f32 %v5049_v16, %v4997_v40 }
 0x5e3   : > { %v5441_v34 = vmax.f32 %v5421_v6, 0.0  ;;  %9715 = vmatpush3.bf16.msra.mxu1 %v10139_v48  ;;  %v10162_v6 = vld [vmem:[%s15163_s5 + $0xd8] sm:$0xff]  }
 0x5e4   : > { %9697 = vmatpush3.bf16.msra.mxu0 %v10138_v55  ;;  %v5141_v0 = vpop.permute.xlu1 %5140  ;;  %9716 = vmatprep.subr.bf16.mxu1 %v14663_v19 }
 0x5e5   : > { %5462 = vst.msk [vmem:[#allocation5 + $0x88] sm:$0xff] %vm5444_vm5, %v5441_v34  ;;  %9698 = vmatprep.subr.bf16.mxu0 %v14663_v19  ;;  %v5181_v26 = vadd.f32 %v5141_v0, %v5089_v44  ;;  %v10163_v34 = vld [vmem:[%s15163_s5 + $0xd8] sm:$0xff]   ;;  %v10165_v0 = vld [vmem:[%s15163_s5 + $0xe0] sm:$0xff]  }
 0x5e6   : > { %v10167_v44 = vld [vmem:[%s15163_s5 + $0xb8] sm:$0xff]  }
 0x5e7   : > { %9717 = vmatpush3.bf16.msra.mxu1 %v10141_v17 }
 0x5e8   : > { %9699 = vmatpush3.bf16.msra.mxu0 %v10140_v50  ;;  %v5233_v30 = vpop.permute.xlu1 %5232  ;;  %9718 = vmatprep.subr.bf16.mxu1 %v14663_v19  ;;  %v10166_v50 = vld [vmem:[%s15163_s5 + $0xe8] sm:$0xff]  }
 0x5e9   : > { %v5273_v28 = vadd.f32 %v5233_v30, %v5181_v26  ;;  %9700 = vmatprep.subr.bf16.mxu0 %v14663_v19  ;;  %v10168_v26 = vld [vmem:[%s15163_s5 + $0xc0] sm:$0xff]  }
 0x5eb   : > { %v5396_v8 = vadd.f32 %v5356_v33, %v5273_v28  ;;  %9719 = vmatpush3.bf16.msra.mxu1 %v10143_v12  ;;  %v10169_v12 = vld [vmem:[%s15163_s5 + $0xc0] sm:$0xff]   ;;  %v10171_v28 = vld [vmem:[%s15163_s5 + $0xc8] sm:$0xff]   ;;  %v10172_v33 = vld [vmem:[%s15163_s5 + $0xd0] sm:$0xff]  }
 0x5ec   : > { %9701 = vmatpush3.bf16.msra.mxu0 %v10142_v32  ;;  %9720 = vmatprep.subr.bf16.mxu1 %v14663_v19  ;;  %v5509_v59 = vld [vmem:[#allocation5 + $0x80] ss:$2 sm:$0x1f]  ;;  %v5511_v58 = vld [vmem:[#allocation5 + $0x81] ss:$2 sm:$0x1f] }
 0x5ed   : > { %v5423_v52 = vadd.f32 %v14518_v61, %v5396_v8  ;;  %v6097_v46 = vpop.f32.mrb[196].mxu0  ;;  %9702 = vmatprep.subr.bf16.mxu0 %v14663_v19  ;;  %v10146_v61 = vld [vmem:[%s15163_s5 + $0xc8] sm:$0xff]   ;;  %v5516_v29 = vmax.f32 %v5509_v59, %v5511_v58  ;;  %v10173_v8 = vld [vmem:[%s15163_s5 + $0xd0] sm:$0xff]   ;;  %v10182_v59 = vld [vmem:[%s15163_s5 + $0xf8] sm:$0xff]  }
 0x5ee   : > { %v6103_v3 = vadd.f32 %v6097_v46, %v14815_v1  ;;  %v9430_v36 = vpop.f32.mrb[197].mxu0  ;;  %v10170_v32 = vld [vmem:[%s15163_s5 + $0xc8] sm:$0xff]   ;;  %v10177_v46 = vld [vmem:[%s15163_s5 + $0xe0] sm:$0xff]  }
 0x5ef   : > { %v5443_v57 = vmax.f32 %v5423_v52, 0.0  ;;  %9721 = vmatpush3.bf16.msra.mxu1 %v10145_v38  ;;  %v6100_v51 = vpop.f32.mrb[198].mxu0  ;;  %v6206_v7 = vpop.f32.mrb[140].mxu1  ;;  %v10174_v38 = vld [vmem:[%s15163_s5 + $0xd8] sm:$0xff]   ;;  %v10176_v52 = vld [vmem:[%s15163_s5 + $0xe0] sm:$0xff]  }
 0x5f0   : > { %9703 = vmatpush3.bf16.msra.mxu0 %v10144_v22  ;;  %v14909_v47 = vadd.f32 %v6206_v7, %v6103_v3  ;;  %v9431_v5 = vpop.f32.mrb[199].mxu0  ;;  %v9450_v11 = vpop.f32.mrb[141].mxu1  ;;  %9722 = vmatprep.subr.bf16.mxu1 %v14663_v19  ;;  %v10175_v22 = vld [vmem:[%s15163_s5 + $0xd8] sm:$0xff]  }
 0x5f1   : > { %5464 = vst.msk [vmem:[#allocation5 + $0x98] sm:$0xff] %vm5444_vm5, %v5443_v57  ;;  %v6209_v1 = vpop.f32.mrb[142].mxu1  ;;  %9704 = vmatprep.subr.bf16.mxu0 %v14663_v19 }
 0x5f2   : > { %v9451_v54 = vpop.f32.mrb[143].mxu1 }
 0x5f3   : > { %9723 = vmatpush3.bf16.msra.mxu1 %v10147_v37  ;;  %v10178_v37 = vld [vmem:[%s15163_s5 + $0xe8] sm:$0xff]  }
 0x5f4   : > { %9705 = vmatpush3.bf16.msra.mxu0 %v10146_v61  ;;  %9724 = vmatprep.subr.bf16.mxu1 %v14663_v19 }
 0x5f5   : > { %9706 = vmatprep.subr.bf16.mxu0 %v14663_v19 }
 0x5f7   : > { %9725 = vmatpush3.bf16.msra.mxu1 %v10149_v18  ;;  %v10180_v18 = vld [vmem:[%s15163_s5 + $0xf0] sm:$0xff]  }
 0x5f8   : > { %9707 = vmatpush3.bf16.msra.mxu0 %v10148_v39  ;;  %9726 = vmatprep.subr.bf16.mxu1 %v14663_v19  ;;  %v5513_v23 = vld [vmem:[#allocation5 + $0x90] ss:$2 sm:$0x1f]  ;;  %v5515_v2 = vld [vmem:[#allocation5 + $0x91] ss:$2 sm:$0x1f] }
 0x5f9   : > { %9732 = vmatprep.subr.bf16.mxu0 %v14663_v19  ;;  %v5517_v42 = vmax.f32 %v5513_v23, %v5515_v2  ;;  %v10181_v39 = vld [vmem:[%s15163_s5 + $0xf0] sm:$0xff]  }
 0x5fb   : > { %9709 = vmatmul.mubr.bf16.vlgmr.msra.gmra.mrb[224].mxu0 %v7518_v41  ;;  %9727 = vmatpush3.bf16.msra.mxu1 %v10150_v49  ;;  %v5518_v31 = vmax.f32 %v5516_v29, %v5517_v42 }
 0x5fc   : > { %9733 = vmatpush3.bf16.msra.mxu0 %v10151_v10  ;;  %9752 = vmatprep.subr.bf16.mxu1 %v14663_v19 }
 0x5fd   : > { %9734 = vmatprep.subr.bf16.mxu0 %v14663_v19  ;;  %v14942_v24 = vpack.c.bf16 %v5518_v31, %v5518_v31  ;;  %9748 = vmatprep.mubr.msk.bf16.mxu0 %vm10258_vm0, %v14663_v19 }
 0x5ff   : > { %9729 = vmatmul.mubr.bf16.vlgmr.msra.gmra.mrb[168].mxu1 %v14942_v24  ;;  %v7732_v9 = vshrl.u32 %v14942_v24, 16  ;;  %v7841_v30 = vrot.slane %v14942_v24, 1  ;;  %v8055_v49 = vrot.slane %v14942_v24, 2 }
 0x600   : > { %9735 = vmatpush3.bf16.msra.mxu0 %v10152_v14  ;;  %9753 = vmatpush3.bf16.msra.mxu1 %v10153_v45 }
 0x601   : > { %9736 = vmatprep.subr.bf16.mxu0 %v14663_v19  ;;  %9754 = vmatprep.subr.bf16.mxu1 %v14663_v19  ;;  %v7948_v58 = vrot.slane %v7732_v9, 1 }
 0x602   : > { %9768 = vmatprep.mubr.msk.bf16.mxu1 %vm10258_vm0, %v14663_v19 }
 0x604   : > { %9737 = vmatpush3.bf16.msra.mxu0 %v10154_v60  ;;  %9755 = vmatpush3.bf16.msra.mxu1 %v10155_v25 }
 0x605   : > { %9738 = vmatprep.subr.bf16.mxu0 %v14663_v19  ;;  %9756 = vmatprep.subr.bf16.mxu1 %v14663_v19 }
 0x608   : > { %9739 = vmatpush3.bf16.msra.mxu0 %v10156_v35  ;;  %9757 = vmatpush3.bf16.msra.mxu1 %v10157_v15 }
 0x609   : > { %9740 = vmatprep.subr.bf16.mxu0 %v14663_v19  ;;  %9758 = vmatprep.subr.bf16.mxu1 %v14663_v19 }
 0x60c   : > { %9741 = vmatpush3.bf16.msra.mxu0 %v10158_v21  ;;  %9759 = vmatpush3.bf16.msra.mxu1 %v10159_v13 }
 0x60d   : > { %v6314_v53 = vpop.f32.mrb[200].mxu0  ;;  %9742 = vmatprep.subr.bf16.mxu0 %v14663_v19  ;;  %9760 = vmatprep.subr.bf16.mxu1 %v14663_v19 }
 0x60e   : > { %v6320_v27 = vadd.f32 %v6314_v53, %v14909_v47  ;;  %v9470_v63 = vpop.f32.mrb[201].mxu0  ;;  %v10179_v47 = vld [vmem:[%s15163_s5 + $0xe8] sm:$0xff]  }
 0x60f   : > { %v6317_v43 = vpop.f32.mrb[202].mxu0  ;;  %v6421_v62 = vpop.f32.mrb[144].mxu1  ;;  %v10183_v63 = vld [vmem:[%s15165_s7] sm:$0xff]  }
 0x610   : > { %v6427_v48 = vadd.f32 %v6421_v62, %v6320_v27  ;;  %9743 = vmatpush3.bf16.msra.mxu0 %v10160_v4  ;;  %9761 = vmatpush3.bf16.msra.mxu1 %v10161_v20  ;;  %v9471_v16 = vpop.f32.mrb[203].mxu0  ;;  %v9490_v55 = vpop.f32.mrb[145].mxu1  ;;  %v10184_v43 = vld [vmem:[%s15165_s7 + $0x8] sm:$0xff]   ;;  %v10185_v62 = vld [vmem:[%s15165_s7 + $0x10] sm:$0xff]  }
 0x611   : > { %v6424_v40 = vpop.f32.mrb[146].mxu1  ;;  %9744 = vmatprep.subr.bf16.mxu0 %v14663_v19  ;;  %9762 = vmatprep.subr.bf16.mxu1 %v14663_v19  ;;  %v10187_v16 = vld [vmem:[%s15165_s7 + $0x20] sm:$0xff]  }
 0x612   : > { %v9491_v17 = vpop.f32.mrb[147].mxu1 }
 0x613   : > { %v10188_v17 = vld [vmem:[%s15165_s7 + $0x28] sm:$0xff]  }
 0x614   : > { %9745 = vmatpush3.bf16.msra.mxu0 %v10162_v6  ;;  %9763 = vmatpush3.bf16.msra.mxu1 %v10163_v34 }
 0x615   : > { %9746 = vmatprep.subr.bf16.mxu0 %v14663_v19  ;;  %9764 = vmatprep.subr.bf16.mxu1 %v14663_v19 }
 0x618   : > { %9747 = vmatpush3.bf16.msra.mxu0 %v10164_v56  ;;  %9765 = vmatpush3.bf16.msra.mxu1 %v10165_v0 }
 0x619   : > { %9766 = vmatprep.subr.bf16.mxu1 %v14663_v19  ;;  %9772 = vmatprep.subr.bf16.mxu0 %v14663_v19 }
 0x61b   : > { %9749 = vmatmul.mubr.bf16.vlgmr.msra.gmra.mrb[228].mxu0 %v7732_v9 }
 0x61c   : > { %9767 = vmatpush3.bf16.msra.mxu1 %v10166_v50  ;;  %9773 = vmatpush3.bf16.msra.mxu0 %v10167_v44 }
 0x61d   : > { %9774 = vmatprep.subr.bf16.mxu0 %v14663_v19  ;;  %9792 = vmatprep.subr.bf16.mxu1 %v14663_v19 }
 0x61e   : > { %9788 = vmatprep.mubr.msk.bf16.mxu0 %vm10258_vm0, %v14663_v19 }
 0x61f   : > { %9769 = vmatmul.mubr.bf16.vlgmr.msra.gmra.mrb[172].mxu1 %v7841_v30  ;;  %v10190_v30 = vld [vmem:[%s15165_s7 + $0x38] sm:$0xff]  }
 0x620   : > { %9775 = vmatpush3.bf16.msra.mxu0 %v10168_v26  ;;  %9793 = vmatpush3.bf16.msra.mxu1 %v10169_v12  ;;  %v10189_v12 = vld [vmem:[%s15165_s7 + $0x30] sm:$0xff]  }
 0x621   : > { %9776 = vmatprep.subr.bf16.mxu0 %v14663_v19  ;;  %9794 = vmatprep.subr.bf16.mxu1 %v14663_v19 }
 0x622   : > { %9808 = vmatprep.mubr.msk.bf16.mxu1 %vm10258_vm0, %v14663_v19 }
 0x624   : > { %9777 = vmatpush3.bf16.msra.mxu0 %v10170_v32  ;;  %9795 = vmatpush3.bf16.msra.mxu1 %v10171_v28  ;;  %v10191_v32 = vld [vmem:[%s15167_s9] sm:$0xff]   ;;  %v10192_v28 = vld [vmem:[%s15167_s9 + $0x8] sm:$0xff]  }
 0x625   : > { %9778 = vmatprep.subr.bf16.mxu0 %v14663_v19  ;;  %9796 = vmatprep.subr.bf16.mxu1 %v14663_v19 }
 0x628   : > { %9779 = vmatpush3.bf16.msra.mxu0 %v10172_v33  ;;  %9797 = vmatpush3.bf16.msra.mxu1 %v10173_v8  ;;  %v10193_v33 = vld [vmem:[%s15167_s9 + $0x10] sm:$0xff]   ;;  %v10194_v8 = vld [vmem:[%s15167_s9 + $0x18] sm:$0xff]  }
 0x629   : > { %9780 = vmatprep.subr.bf16.mxu0 %v14663_v19  ;;  %9798 = vmatprep.subr.bf16.mxu1 %v14663_v19 }
 0x62c   : > { %9781 = vmatpush3.bf16.msra.mxu0 %v10174_v38  ;;  %9799 = vmatpush3.bf16.msra.mxu1 %v10175_v22  ;;  %v10195_v38 = vld [vmem:[%s15167_s9 + $0x20] sm:$0xff]   ;;  %v10196_v22 = vld [vmem:[%s15167_s9 + $0x28] sm:$0xff]  }
 0x62d   : > { %v6528_v3 = vpop.f32.mrb[204].mxu0  ;;  %9782 = vmatprep.subr.bf16.mxu0 %v14663_v19  ;;  %9800 = vmatprep.subr.bf16.mxu1 %v14663_v19 }
 0x62e   : > { %v6534_v36 = vadd.f32 %v6528_v3, %v6427_v48  ;;  %v9510_v57 = vpop.f32.mrb[205].mxu0  ;;  %v10186_v48 = vld [vmem:[%s15165_s7 + $0x18] sm:$0xff]  }
 0x62f   : > { %v6531_v51 = vpop.f32.mrb[206].mxu0 }
 0x630   : > { %9783 = vmatpush3.bf16.msra.mxu0 %v10176_v52  ;;  %9801 = vmatpush3.bf16.msra.mxu1 %v10177_v46  ;;  %v9511_v7 = vpop.f32.mrb[207].mxu0 }
 0x631   : > { %v6634_v5 = vpop.f32.mrb[148].mxu1  ;;  %9784 = vmatprep.subr.bf16.mxu0 %v14663_v19  ;;  %9802 = vmatprep.subr.bf16.mxu1 %v14663_v19 }
 0x632   : > { %v6640_v11 = vadd.f32 %v6634_v5, %v6534_v36  ;;  %v9530_v61 = vpop.f32.mrb[149].mxu1 }
 0x633   : > { %v6637_v1 = vpop.f32.mrb[150].mxu1 }
 0x634   : > { %9785 = vmatpush3.bf16.msra.mxu0 %v10178_v37  ;;  %9803 = vmatpush3.bf16.msra.mxu1 %v10179_v47  ;;  %v9531_v54 = vpop.f32.mrb[151].mxu1 }
 0x635   : > { %9786 = vmatprep.subr.bf16.mxu0 %v14663_v19  ;;  %9804 = vmatprep.subr.bf16.mxu1 %v14663_v19 }
 0x638   : > { %9787 = vmatpush3.bf16.msra.mxu0 %v10180_v18  ;;  %9805 = vmatpush3.bf16.msra.mxu1 %v10181_v39 }
 0x639   : > { %9806 = vmatprep.subr.bf16.mxu1 %v14663_v19  ;;  %9812 = vmatprep.subr.bf16.mxu0 %v14663_v19 }
 0x63b   : > { %9789 = vmatmul.mubr.bf16.vlgmr.msra.gmra.mrb[232].mxu0 %v7948_v58 }
 0x63c   : > { %9807 = vmatpush3.bf16.msra.mxu1 %v10182_v59  ;;  %9828 = vmatprep.mubr.msk.bf16.mxu0 %vm10258_vm0, %v14663_v19 }
 0x63d   : > { %9832 = vmatprep.subr.bf16.mxu1 %v14663_v19  ;;  %9813 = vmatpush3.bf16.msra.mxu0 %v10183_v63 }
 0x63e   : > { %9814 = vmatprep.subr.bf16.mxu0 %v14663_v19 }
 0x63f   : > { %9809 = vmatmul.mubr.bf16.vlgmr.msra.gmra.mrb[176].mxu1 %v8055_v49 }
 0x640   : > { %9848 = vmatprep.mubr.msk.bf16.mxu1 %vm10258_vm0, %v14663_v19  ;;  %9833 = vmatpush3.bf16.msra.mxu1 %v10191_v32 }
 0x641   : > { %9815 = vmatpush3.bf16.msra.mxu0 %v10184_v43  ;;  %9834 = vmatprep.subr.bf16.mxu1 %v14663_v19 }
 0x642   : > { %9816 = vmatprep.subr.bf16.mxu0 %v14663_v19 }
 0x644   : > { %9835 = vmatpush3.bf16.msra.mxu1 %v10192_v28 }
 0x645   : > { %9817 = vmatpush3.bf16.msra.mxu0 %v10185_v62  ;;  %9836 = vmatprep.subr.bf16.mxu1 %v14663_v19 }
 0x646   : > { %9818 = vmatprep.subr.bf16.mxu0 %v14663_v19 }
 0x648   : > { %9837 = vmatpush3.bf16.msra.mxu1 %v10193_v33 }
 0x649   : > { %9819 = vmatpush3.bf16.msra.mxu0 %v10186_v48  ;;  %9838 = vmatprep.subr.bf16.mxu1 %v14663_v19 }
 0x64a   : > { %9820 = vmatprep.subr.bf16.mxu0 %v14663_v19 }
 0x64c   : > { %9839 = vmatpush3.bf16.msra.mxu1 %v10194_v8 }
 0x64d   : > { %v6743_v10 = vpop.f32.mrb[208].mxu0  ;;  %9821 = vmatpush3.bf16.msra.mxu0 %v10187_v16  ;;  %9840 = vmatprep.subr.bf16.mxu1 %v14663_v19 }
 0x64e   : > { %v6749_v23 = vadd.f32 %v6743_v10, %v6640_v11  ;;  %v9550_v2 = vpop.f32.mrb[209].mxu0  ;;  %9822 = vmatprep.subr.bf16.mxu0 %v14663_v19 }
 0x64f   : > { %v6746_v41 = vpop.f32.mrb[210].mxu0 }
 0x650   : > { %v9551_v29 = vpop.f32.mrb[211].mxu0  ;;  %9841 = vmatpush3.bf16.msra.mxu1 %v10195_v38 }
 0x651   : > { %v6851_v42 = vpop.f32.mrb[152].mxu1  ;;  %9823 = vmatpush3.bf16.msra.mxu0 %v10188_v17  ;;  %9842 = vmatprep.subr.bf16.mxu1 %v14663_v19 }
 0x652   : > { %v6857_v31 = vadd.f32 %v6851_v42, %v6749_v23  ;;  %v9570_v14 = vpop.f32.mrb[153].mxu1  ;;  %9824 = vmatprep.subr.bf16.mxu0 %v14663_v19 }
 0x653   : > { %v6854_v45 = vpop.f32.mrb[154].mxu1 }
 0x654   : > { %v9571_v60 = vpop.f32.mrb[155].mxu1  ;;  %9843 = vmatpush3.bf16.msra.mxu1 %v10196_v22 }
 0x655   : > { %9825 = vmatpush3.bf16.msra.mxu0 %v10189_v12  ;;  %9844 = vmatprep.subr.bf16.mxu1 %v14663_v19 }
 0x656   : > { %9826 = vmatprep.subr.bf16.mxu0 %v14663_v19 }
 0x659   : > { %9827 = vmatpush3.bf16.msra.mxu0 %v10190_v30 }
 0x66d   : > { %v6958_v25 = vpop.f32.mrb[212].mxu0 }
 0x66e   : > { %v6964_v35 = vadd.f32 %v6958_v25, %v6857_v31  ;;  %v9590_v15 = vpop.f32.mrb[213].mxu0 }
 0x66f   : > { %v6961_v24 = vpop.f32.mrb[214].mxu0 }
 0x670   : > { %v9591_v21 = vpop.f32.mrb[215].mxu0 }
 0x671   : > { %v7065_v13 = vpop.f32.mrb[156].mxu1 }
 0x672   : > { %v7071_v4 = vadd.f32 %v7065_v13, %v6964_v35  ;;  %v9610_v20 = vpop.f32.mrb[157].mxu1 }
 0x673   : > { %v7068_v53 = vpop.f32.mrb[158].mxu1  ;;  %v8146_v20 = vld [vmem:[%s15164_s6] sm:$0x1] }
 0x674   : > { %v9611_v27 = vpop.f32.mrb[159].mxu1 }
 0x68e   : > { %v7171_v55 = vpop.f32.mrb[216].mxu0 }
 0x68f   : > { %v7177_v6 = vadd.f32 %v7171_v55, %v7071_v4  ;;  %v9630_v34 = vpop.f32.mrb[217].mxu0  ;;  %v10197_v55 = vld [vmem:[%s15167_s9 + $0x30] sm:$0xff]  }
 0x690   : > { %v7174_v40 = vpop.f32.mrb[218].mxu0  ;;  %9845 = vmatpush3.bf16.msra.mxu1 %v10197_v55  ;;  %v8166_v34 = vld [vmem:[%s15166_s8] sm:$0x1] }
 0x691   : > { %v9631_v56 = vpop.f32.mrb[219].mxu0  ;;  %v7280_v0 = vpop.f32.mrb[160].mxu1  ;;  %9846 = vmatprep.subr.bf16.mxu1 %v14663_v19  ;;  %v8273_v19 = vld [vmem:[%s15168_s10] sm:$0x1] }
 0x692   : > { %v7286_v50 = vadd.f32 %v7280_v0, %v7177_v6  ;;  %v9650_v44 = vpop.f32.mrb[161].mxu1  ;;  %v10198_v6 = vld [vmem:[%s15167_s9 + $0x38] sm:$0xff]  }
 0x693   : > { %v7283_v9 = vpop.f32.mrb[162].mxu1 }
 0x694   : > { %v9651_v26 = vpop.f32.mrb[163].mxu1  ;;  %9847 = vmatpush3.bf16.msra.mxu1 %v10198_v6 }
 0x695   : > { %v8362_v26 = vlaneseq }
 0x697   : > { %v8363_v12 = vshrl.u32 %v8362_v26, 7 }
 0x699   : > { %v8364_v30 = vsub.s32 0, %v8363_v12 }
 0x6ae   : > { %v7388_v52 = vpop.f32.mrb[220].mxu0 }
 0x6af   : > { %v7394_v46 = vadd.f32 %v7388_v52, %v7286_v50  ;;  %v9670_v3 = vpop.f32.mrb[221].mxu0 }
 0x6b0   : > { %v7391_v36 = vpop.f32.mrb[222].mxu0 }
 0x6b1   : > { %v9671_v57 = vpop.f32.mrb[223].mxu0  ;;  %v7495_v51 = vpop.f32.mrb[164].mxu1 }
 0x6b2   : > { %v7501_v7 = vadd.f32 %v7495_v51, %v7394_v46  ;;  %v9690_v37 = vpop.f32.mrb[165].mxu1 }
 0x6b3   : > { %v7498_v47 = vpop.f32.mrb[166].mxu1 }
 0x6b4   : > { %v9691_v5 = vpop.f32.mrb[167].mxu1 }
 0x6ce   : > { %v7602_v11 = vpop.f32.mrb[224].mxu0 }
 0x6cf   : > { %v7608_v61 = vadd.f32 %v7602_v11, %v7501_v7  ;;  %v9710_v1 = vpop.f32.mrb[225].mxu0 }
 0x6d0   : > { %v7605_v54 = vpop.f32.mrb[226].mxu0 }
 0x6d1   : > { %v9711_v18 = vpop.f32.mrb[227].mxu0 }
 0x6d2   : > { %v7708_v39 = vpop.f32.mrb[168].mxu1 }
 0x6d3   : > { %v7714_v59 = vadd.f32 %v7708_v39, %v7608_v61  ;;  %v9730_v58 = vpop.f32.mrb[169].mxu1 }
 0x6d4   : > { %v7711_v49 = vpop.f32.mrb[170].mxu1 }
 0x6d5   : > { %v9731_v10 = vpop.f32.mrb[171].mxu1 }
 0x6ee   : > { %v7817_v23 = vpop.f32.mrb[228].mxu0 }
 0x6ef   : > { %v7823_v2 = vadd.f32 %v7817_v23, %v7714_v59  ;;  %v9750_v41 = vpop.f32.mrb[229].mxu0 }
 0x6f0   : > { %v7820_v29 = vpop.f32.mrb[230].mxu0 }
 0x6f1   : > { %v9751_v42 = vpop.f32.mrb[231].mxu0 }
 0x6f2   : > { %v7925_v31 = vpop.f32.mrb[172].mxu1 }
 0x6f3   : > { %v7931_v14 = vadd.f32 %v7925_v31, %v7823_v2  ;;  %v9770_v45 = vpop.f32.mrb[173].mxu1 }
 0x6f4   : > { %v7928_v60 = vpop.f32.mrb[174].mxu1 }
 0x6f5   : > { %v9771_v25 = vpop.f32.mrb[175].mxu1 }
 0x70e   : > { %v8032_v35 = vpop.f32.mrb[232].mxu0 }
 0x70f   : > { %v8038_v15 = vadd.f32 %v8032_v35, %v7931_v14  ;;  %v9790_v24 = vpop.f32.mrb[233].mxu0 }
 0x710   : > { %v8035_v21 = vpop.f32.mrb[234].mxu0 }
 0x711   : > { %v9791_v13 = vpop.f32.mrb[235].mxu0 }
 0x712   : > { %v8139_v4 = vpop.f32.mrb[176].mxu1 }
 0x713   : > { %v8145_v53 = vadd.f32 %v8139_v4, %v8038_v15  ;;  %v9810_v27 = vpop.f32.mrb[177].mxu1 }
 0x714   : > { %v8142_v63 = vpop.f32.mrb[178].mxu1 }
 0x715   : > { %v8147_v43 = vadd.f32 %v8146_v20, %v8145_v53  ;;  %v9811_v62 = vpop.f32.mrb[179].mxu1 }
 0x717   : > { %v8148_v48 = vmax.f32 %v8147_v43, 0.0 }
 0x719   : > { %v8149_v16 = vpack.c.bf16 %v8148_v48, %v8148_v48 }
 0x71b   : > { %9829 = vmatmul.mubr.bf16.vlgmr.msra.gmra.mrb[236].mxu0 %v8149_v16 }
 0x7ee   : > { %v8249_v40 = vpop.f32.mrb[236].mxu0 }
 0x7ef   : > { %v8250_v17 = vadd.f32 %v8249_v40, %v8166_v34  ;;  %v9830_v56 = vpop.f32.mrb[237].mxu0 }
 0x7f0   : > { %v8252_v0 = vpop.f32.mrb[238].mxu0 }
 0x7f1   : > { %v8255_v50 = vmax.f32 %v8250_v17, 0.0  ;;  %v9831_v44 = vpop.f32.mrb[239].mxu0 }
 0x7f3   : > { %v8256_v9 = vpack.c.bf16 %v8255_v50, %v8255_v50 }
 0x7f5   : > { %9849 = vmatmul.mubr.bf16.vlgmr.msra.gmra.mrb[180].mxu1 %v8256_v9 }
 0x8c8   : > { %v8356_v32 = vpop.f32.mrb[180].mxu1 }
 0x8c9   : > { %v8357_v28 = vadd.f32 %v8356_v32, %v8273_v19  ;;  %v9850_v33 = vpop.f32.mrb[181].mxu1 }
 0x8ca   : > { %v8359_v8 = vpop.f32.mrb[182].mxu1 }
 0x8cb   : > { %v8365_v38 = vrot.slane %v8357_v28, %v8364_v30  ;;  %v9851_v22 = vpop.f32.mrb[183].mxu1 }
 0x8cd   : > { %8366 = vst [vmem:[%s386_s20] sm:$0xff] %v8365_v38 }
 0x8ce PF: > { %s21_s17 = sadd.s32 1, %s10255_s17  }
 0x8cf   : > { %p18_p5 = scmp.ge.s32.totalorder %s21_s17, 4  }
 0x8d1   :  { %20 = sbr.rel (!%p18_p5) target bundleno = 1 (0x1), region = 224 }

</bundles_post_ra>
